<compile_context>
chip_gen: v5e
topology: v5e:2x2
jax: 0.10.0
libtpu: 0.0.40
codegen_flags: <defaults>
</compile_context>

<pallas_src>
import math

import jax
import jax.numpy as jnp
import numpy as np
from jax.experimental import pallas as pl


# ----------------------------- shared GRU cell math -----------------------------

def _gru_gates(gx, gh, h_prev, H):
    """PyTorch GRU update from pre-computed gate pre-activations.

    gx = x @ W_ih^T + b_ih, gh = h @ W_hh^T + b_hh, both (B, 3H) laid out [r | z | n].
    Note b_hn stays inside the r * (.) term, matching torch.nn.GRU.
    """
    r = jax.nn.sigmoid(gx[:, 0:H] + gh[:, 0:H])
    z = jax.nn.sigmoid(gx[:, H:2 * H] + gh[:, H:2 * H])
    n = jnp.tanh(gx[:, 2 * H:3 * H] + r * gh[:, 2 * H:3 * H])
    return (1.0 - z) * n + z * h_prev


# ----------------------------- fused Pallas kernel -----------------------------

def _make_fused_kernel(T, B, H, L):
    H3, H6 = 3 * H, 6 * H

    def kernel(*refs):
        # ---- unpack refs: inputs, then outputs (no scratch: everything fits in vregs/VMEM)
        pos = 0
        emb_ref = refs[pos]; pos += 1                                   # (T*B, E), t-major rows
        enc = [refs[pos + 4 * l: pos + 4 * l + 4] for l in range(L)]; pos += 4 * L
        dec = [refs[pos + 4 * l: pos + 4 * l + 4] for l in range(L)]; pos += 4 * L
        bn_ref = refs[pos]; pos += 1                                    # (4,H): gamma,beta,mean,var
        icw_ref, icb_ref = refs[pos], refs[pos + 1]; pos += 2
        t1w_ref, t1b_ref, lng_ref, lnb_ref, t2w_ref, t2b_ref = refs[pos:pos + 6]; pos += 6
        intent_ref, slot_ref = refs[pos], refs[pos + 1]

        zeros_h = jnp.zeros((B, H), jnp.float32)

        # ------------------- encoder: L-layer bidirectional GRU -------------------
        x_f = emb_ref[...]          # layer-0 input (shared by both directions)
        x_b = x_f
        finals = []                 # final hidden states, PyTorch order [l0_f, l0_b, l1_f, ...]
        for l in range(L):
            wih_ref, bih_ref, whh_ref, bhh_ref = enc[l]
            wih = wih_ref[...]
            # Hoisted input projection: one big MXU matmul for all timesteps and BOTH
            # directions (fwd gates = cols [:3H], bwd gates = cols [3H:]).
            if l == 0:
                gx_all = jnp.dot(x_f, wih, preferred_element_type=jnp.float32)
            else:  # layer input is concat(fwd, bwd); split the packed (2H, 6H) weight rows
                gx_all = (jnp.dot(x_f, wih[0:H, :], preferred_element_type=jnp.float32)
                          + jnp.dot(x_b, wih[H:2 * H, :], preferred_element_type=jnp.float32))
            gx_all = gx_all + bih_ref[...]                              # (T*B, 6H)

            whh = whh_ref[...]
            bhh = bhh_ref[...]
            whh_f, whh_b = whh[:, 0:H3], whh[:, H3:H6]
            bhh_f, bhh_b = bhh[:, 0:H3], bhh[:, H3:H6]

            h_f = zeros_h
            h_b = zeros_h
            outs_f = [None] * T
            outs_b = [None] * T
            # Fused fwd+bwd recurrence; the bwd direction reads row T-1-t directly (no flips).
            for t in range(T):
                rt = T - 1 - t
                gx_f = gx_all[t * B:(t + 1) * B, 0:H3]
                gx_b = gx_all[rt * B:(rt + 1) * B, H3:H6]
                gh_f = jnp.dot(h_f, whh_f, preferred_element_type=jnp.float32) + bhh_f
                gh_b = jnp.dot(h_b, whh_b, preferred_element_type=jnp.float32) + bhh_b
                h_f = _gru_gates(gx_f, gh_f, h_f, H)
                h_b = _gru_gates(gx_b, gh_b, h_b, H)
                outs_f[t] = h_f
                outs_b[rt] = h_b
            finals.append(h_f)      # fwd final state (t = T-1)
            finals.append(h_b)      # bwd final state (t = 0)
            x_f = jnp.concatenate(outs_f, axis=0)                       # (T*B, H), t-major
            x_b = jnp.concatenate(outs_b, axis=0)

        # --------- intent head: bn1 (eval) + intcls applied to mean over the 2L states ---------
        # eval-mode BatchNorm1d is a per-channel affine map -> it commutes with the mean
        # over the (layer, direction) axis, so we average the 2L final states first.
        h_sum = finals[0]
        for f in finals[1:]:
            h_sum = h_sum + f
        h_mean = h_sum * (1.0 / float(2 * L))                           # (B, H)
        gamma, beta = bn_ref[0:1, :], bn_ref[1:2, :]
        r_mean, r_var = bn_ref[2:3, :], bn_ref[3:4, :]
        h_bn = (h_mean - r_mean) * jax.lax.rsqrt(r_var + 1e-5) * gamma + beta
        intent_ref[...] = (jnp.dot(h_bn, icw_ref[...], preferred_element_type=jnp.float32)
                           + icb_ref[...])                              # (B, C_int)

        # --------------- dgru: L-layer unidirectional GRU ---------------
        # input = (fwd half + bwd half) / 2 ; h0[l] = (h_n[l] + h_n[L + l]) / 2  (chunk(2,0) avg)
        x_seq = (x_f + x_b) * 0.5                                       # (T*B, H)
        for l in range(L):
            dwih_ref, dbih_ref, dwhh_ref, dbhh_ref = dec[l]
            gx_all = (jnp.dot(x_seq, dwih_ref[...], preferred_element_type=jnp.float32)
                      + dbih_ref[...])                                  # (T*B, 3H), hoisted
            dwhh = dwhh_ref[...]
            dbhh = dbhh_ref[...]
            h = (finals[l] + finals[L + l]) * 0.5
            outs = [None] * T
            for t in range(T):
                gh = jnp.dot(h, dwhh, preferred_element_type=jnp.float32) + dbhh
                h = _gru_gates(gx_all[t * B:(t + 1) * B, :], gh, h, H)
                outs[t] = h
            x_seq = jnp.concatenate(outs, axis=0)                       # (T*B, H)

        # ------- tagl head: Linear -> LayerNorm -> Dropout(id, eval) -> ReLU -> Linear -------
        z1 = jnp.dot(x_seq, t1w_ref[...], preferred_element_type=jnp.float32) + t1b_ref[...]
        mu = jnp.mean(z1, axis=-1, keepdims=True)
        var = jnp.mean(jnp.square(z1 - mu), axis=-1, keepdims=True)
        z1 = (z1 - mu) * jax.lax.rsqrt(var + 1e-5) * lng_ref[...] + lnb_ref[...]
        z1 = jnp.maximum(z1, 0.0)
        slot_ref[...] = (jnp.dot(z1, t2w_ref[...], preferred_element_type=jnp.float32)
                         + t2b_ref[...])                                # (T*B, C_slot)

    return kernel


# ----------------------------- wrapper -----------------------------

def slottagger_forward(params, token_ids):
    """Fused-Pallas forward. Returns (intent (B, C_int), slot logits (B, T, C_slot))."""
    enc, dec = params["enc"], params["dec"]
    L = len(enc)
    H = dec[0][0].shape[0]
    E = params["embedding"].shape[1]
    C_int = params["icw"].shape[1]
    C_slot = params["t2w"].shape[1]
    B, T = token_ids.shape

    # Embedding gather (dynamic integer indexing) is glue, done in plain JAX.  Rows are
    # flattened t-major so every in-kernel (T*B, .) activation indexes row t*B + b.
    emb = jnp.take(params["embedding"], token_ids, axis=0).astype(jnp.float32)   # (B, T, E)
    emb_flat = jnp.transpose(emb, (1, 0, 2)).reshape(T * B, E)

    inputs = [emb_flat]
    for l in range(L):
        inputs.extend(enc[l])
    for l in range(L):
        inputs.extend(dec[l])
    inputs.extend([params["bn"], params["icw"], params["icb"],
                   params["t1w"], params["t1b"], params["lng"], params["lnb"],
                   params["t2w"], params["t2b"]])

    intent, slot_flat = pl.pallas_call(
        _make_fused_kernel(T=T, B=B, H=H, L=L),
        out_shape=(jax.ShapeDtypeStruct((B, C_int), jnp.float32),
                   jax.ShapeDtypeStruct((T * B, C_slot), jnp.float32)),
    )(*inputs)

    slot = jnp.transpose(slot_flat.reshape(T, B, C_slot), (1, 0, 2))              # (B, T, C)
    return intent, slot


# ----------------------------- pure-JAX reference -----------------------------

def forward_ref(params, token_ids):
    """Literal re-implementation of Slottagger.forward (eval mode) in plain JAX."""
    enc, dec = params["enc"], params["dec"]
    L = len(enc)
    H = dec[0][0].shape[0]
    H3 = 3 * H
    B, T = token_ids.shape

    x = jnp.take(params["embedding"], token_ids, axis=0).astype(jnp.float32)      # (B, T, E)

    finals = []
    for l in range(L):
        wih, bih, whh, bhh = enc[l]
        h_f = jnp.zeros((B, H), jnp.float32)
        h_b = jnp.zeros((B, H), jnp.float32)
        outs_f = [None] * T
        outs_b = [None] * T
        for t in range(T):                              # forward direction
            gx = x[:, t] @ wih[:, :H3] + bih[:, :H3]
            gh = h_f @ whh[:, :H3] + bhh[:, :H3]
            h_f = _gru_gates(gx, gh, h_f, H)
            outs_f[t] = h_f
        for t in range(T - 1, -1, -1):                  # backward direction
            gx = x[:, t] @ wih[:, H3:] + bih[:, H3:]
            gh = h_b @ whh[:, H3:] + bhh[:, H3:]
            h_b = _gru_gates(gx, gh, h_b, H)
            outs_b[t] = h_b
        x = jnp.stack([jnp.concatenate([outs_f[t], outs_b[t]], axis=-1)
                       for t in range(T)], axis=1)                                # (B, T, 2H)
        finals += [h_f, h_b]
    out = x
    h_n = jnp.stack(finals, axis=0)                     # (2L, B, H), PyTorch ordering

    # t = out.chunk(2, -1); b = h.chunk(2, 0); dgru((t0+t1)/2, (b0+b1)/2)
    x_seq = (out[:, :, :H] + out[:, :, H:]) * 0.5                                 # (B, T, H)
    h0 = (h_n[:L] + h_n[L:]) * 0.5                                                # (L, B, H)
    for l in range(L):
        dwih, dbih, dwhh, dbhh = dec[l]
        h = h0[l]
        outs = [None] * T
        for t in range(T):
            gx = x_seq[:, t] @ dwih + dbih
            gh = h @ dwhh + dbhh
            h = _gru_gates(gx, gh, h, H)
            outs[t] = h
        x_seq = jnp.stack(outs, axis=1)
    tago = x_seq                                                                  # (B, T, H)

    # intent = intcls(mean(bn1(permute(h, (1, 2, 0))), -1))      (bn1 in eval mode)
    bn = params["bn"]
    gamma, beta, r_mean, r_var = bn[0], bn[1], bn[2], bn[3]
    hp = jnp.transpose(h_n, (1, 2, 0))                                            # (B, H, 2L)
    hbn = ((hp - r_mean[None, :, None]) * jax.lax.rsqrt(r_var[None, :, None] + 1e-5)
           * gamma[None, :, None] + beta[None, :, None])
    intent = jnp.mean(hbn, axis=-1) @ params["icw"] + params["icb"]

    # slot = tagl(tago)
    z1 = tago @ params["t1w"] + params["t1b"]
    mu = jnp.mean(z1, axis=-1, keepdims=True)
    var = jnp.mean(jnp.square(z1 - mu), axis=-1, keepdims=True)
    z1 = (z1 - mu) * jax.lax.rsqrt(var + 1e-5) * params["lng"] + params["lnb"]
    z1 = jnp.maximum(z1, 0.0)
    slot = z1 @ params["t2w"] + params["t2b"]
    return intent, slot


# ----------------------------- parameter init -----------------------------

def init_params(key, vocab, emb_dim, hidden, num_layers, num_class_intent, num_class_slot):
    keys = iter(jax.random.split(key, 256))

    def unif(shape, scale):
        return jax.random.uniform(next(keys), shape, jnp.float32, -scale, scale)

    H = hidden
    k = 1.0 / math.sqrt(H)
    embedding = jax.random.normal(next(keys), (vocab, emb_dim), jnp.float32)

    # Encoder bi-GRU: weights stored transposed (in, out) and packed [fwd | bwd] along
    # the gate axis: W_ih (E_in, 6H), b_ih (1, 6H), W_hh (H, 6H), b_hh (1, 6H).
    enc = []
    for l in range(num_layers):
        e_in = emb_dim if l == 0 else 2 * H
        enc.append((unif((e_in, 6 * H), k), unif((1, 6 * H), k),
                    unif((H, 6 * H), k), unif((1, 6 * H), k)))

    # dgru (unidirectional): W_ih (H, 3H), b_ih (1, 3H), W_hh (H, 3H), b_hh (1, 3H).
    dec = []
    for l in range(num_layers):
        dec.append((unif((H, 3 * H), k), unif((1, 3 * H), k),
                    unif((H, 3 * H), k), unif((1, 3 * H), k)))

    # bn1 = BatchNorm1d(H) in eval mode; rows = [gamma, beta, running_mean, running_var].
    bn = jnp.stack([1.0 + unif((H,), 0.2),
                    unif((H,), 0.2),
                    unif((H,), 0.5),
                    1.0 + unif((H,), 0.3)], axis=0)          # strictly positive variance

    h2 = H // 2
    k2 = 1.0 / math.sqrt(h2)
    return {
        "embedding": embedding,
        "enc": enc,
        "dec": dec,
        "bn": bn,
        "icw": unif((H, num_class_intent), k), "icb": unif((1, num_class_intent), k),
        "t1w": unif((H, h2), k), "t1b": unif((1, h2), k),
        "lng": 1.0 + unif((1, h2), 0.2), "lnb": unif((1, h2), 0.2),
        "t2w": unif((h2, num_class_slot), k2), "t2b": unif((1, num_class_slot), k2),
    }


# ----------------------------- main -----------------------------

if __name__ == "__main__":
    VOCAB, EMB_DIM = 50, 32
    HIDDEN, NUM_LAYERS = 32, 2                 # bidirectional encoder (forward() requires it)
    NUM_CLASS = {"slot": 10, "intent": 6}
    B, T = 2, 8

    key = jax.random.PRNGKey(0)
    kp, kx = jax.random.split(key)
    params = init_params(kp, VOCAB, EMB_DIM, HIDDEN, NUM_LAYERS,
                         NUM_CLASS["intent"], NUM_CLASS["slot"])
    token_ids = jax.random.randint(kx, (B, T), 0, VOCAB, dtype=jnp.int32)

    intent, slot = slottagger_forward(params, token_ids)
    intent = jax.block_until_ready(intent)
    slot = jax.block_until_ready(slot)
    assert intent.shape == (B, NUM_CLASS["intent"])
    assert slot.shape == (B, T, NUM_CLASS["slot"])

    intent_ref, slot_ref = forward_ref(params, token_ids)
    np.testing.assert_allclose(np.asarray(intent), np.asarray(intent_ref), rtol=1e-3, atol=1e-3)
    np.testing.assert_allclose(np.asarray(slot), np.asarray(slot_ref), rtol=1e-3, atol=1e-3)

    print("KERNEL_OK")
</pallas_src>

<mosaic_0001>
module attributes {stable_mosaic.version = 11 : i64} {
  func.func @kernel(%arg0: memref<16x32xf32, #tpu.memory_space<vmem>>, %arg1: memref<32x192xf32, #tpu.memory_space<vmem>>, %arg2: memref<1x192xf32, #tpu.memory_space<vmem>>, %arg3: memref<32x192xf32, #tpu.memory_space<vmem>>, %arg4: memref<1x192xf32, #tpu.memory_space<vmem>>, %arg5: memref<64x192xf32, #tpu.memory_space<vmem>>, %arg6: memref<1x192xf32, #tpu.memory_space<vmem>>, %arg7: memref<32x192xf32, #tpu.memory_space<vmem>>, %arg8: memref<1x192xf32, #tpu.memory_space<vmem>>, %arg9: memref<32x96xf32, #tpu.memory_space<vmem>>, %arg10: memref<1x96xf32, #tpu.memory_space<vmem>>, %arg11: memref<32x96xf32, #tpu.memory_space<vmem>>, %arg12: memref<1x96xf32, #tpu.memory_space<vmem>>, %arg13: memref<32x96xf32, #tpu.memory_space<vmem>>, %arg14: memref<1x96xf32, #tpu.memory_space<vmem>>, %arg15: memref<32x96xf32, #tpu.memory_space<vmem>>, %arg16: memref<1x96xf32, #tpu.memory_space<vmem>>, %arg17: memref<4x32xf32, #tpu.memory_space<vmem>>, %arg18: memref<32x6xf32, #tpu.memory_space<vmem>>, %arg19: memref<1x6xf32, #tpu.memory_space<vmem>>, %arg20: memref<32x16xf32, #tpu.memory_space<vmem>>, %arg21: memref<1x16xf32, #tpu.memory_space<vmem>>, %arg22: memref<1x16xf32, #tpu.memory_space<vmem>>, %arg23: memref<1x16xf32, #tpu.memory_space<vmem>>, %arg24: memref<16x10xf32, #tpu.memory_space<vmem>>, %arg25: memref<1x10xf32, #tpu.memory_space<vmem>>, %arg26: memref<2x6xf32, #tpu.memory_space<vmem>>, %arg27: memref<16x10xf32, #tpu.memory_space<vmem>>) attributes {dimension_semantics = [], scalar_prefetch = 0 : i64, scratch_operands = 0 : i64, tpu.core_type = #tpu.core_type<tc>} {
    %cst = arith.constant 0.000000e+00 : f32
    %0 = vector.broadcast %cst : f32 to vector<2x32xf32>
    %c0 = arith.constant 0 : index
    %c0_0 = arith.constant 0 : index
    %1 = vector.load %arg0[%c0, %c0_0] : memref<16x32xf32, #tpu.memory_space<vmem>>, vector<16x32xf32>
    %c0_1 = arith.constant 0 : index
    %c0_2 = arith.constant 0 : index
    %2 = vector.load %arg1[%c0_1, %c0_2] : memref<32x192xf32, #tpu.memory_space<vmem>>, vector<32x192xf32>
    %cst_3 = arith.constant dense<0.000000e+00> : vector<16x192xf32>
    %3 = tpu.matmul %1, %2, %cst_3 {dimension_numbers = #tpu.dot_dimension_numbers<[1], [0], [0], [1], [0, 0, 1, 1], [], []>} : vector<16x32xf32>, vector<32x192xf32>, vector<16x192xf32> -> vector<16x192xf32>
    %c0_4 = arith.constant 0 : index
    %c0_5 = arith.constant 0 : index
    %4 = vector.load %arg2[%c0_4, %c0_5] : memref<1x192xf32, #tpu.memory_space<vmem>>, vector<1x192xf32>
    %5 = vector.broadcast %4 : vector<1x192xf32> to vector<16x192xf32>
    %6 = arith.addf %3, %5 : vector<16x192xf32>
    %c0_6 = arith.constant 0 : index
    %c0_7 = arith.constant 0 : index
    %7 = vector.load %arg3[%c0_6, %c0_7] : memref<32x192xf32, #tpu.memory_space<vmem>>, vector<32x192xf32>
    %c0_8 = arith.constant 0 : index
    %c0_9 = arith.constant 0 : index
    %8 = vector.load %arg4[%c0_8, %c0_9] : memref<1x192xf32, #tpu.memory_space<vmem>>, vector<1x192xf32>
    %9 = vector.extract_strided_slice %7 {offsets = [0, 0], sizes = [32, 96], strides = [1, 1]} : vector<32x192xf32> to vector<32x96xf32>
    %10 = vector.extract_strided_slice %7 {offsets = [0, 96], sizes = [32, 96], strides = [1, 1]} : vector<32x192xf32> to vector<32x96xf32>
    %11 = vector.extract_strided_slice %8 {offsets = [0, 0], sizes = [1, 96], strides = [1, 1]} : vector<1x192xf32> to vector<1x96xf32>
    %12 = vector.extract_strided_slice %8 {offsets = [0, 96], sizes = [1, 96], strides = [1, 1]} : vector<1x192xf32> to vector<1x96xf32>
    %13 = vector.extract_strided_slice %6 {offsets = [0, 0], sizes = [2, 96], strides = [1, 1]} : vector<16x192xf32> to vector<2x96xf32>
    %14 = vector.extract_strided_slice %6 {offsets = [14, 96], sizes = [2, 96], strides = [1, 1]} : vector<16x192xf32> to vector<2x96xf32>
    %cst_10 = arith.constant dense<0.000000e+00> : vector<2x96xf32>
    %15 = tpu.matmul %0, %9, %cst_10 {dimension_numbers = #tpu.dot_dimension_numbers<[1], [0], [0], [1], [0, 0, 1, 1], [], []>} : vector<2x32xf32>, vector<32x96xf32>, vector<2x96xf32> -> vector<2x96xf32>
    %16 = vector.broadcast %11 : vector<1x96xf32> to vector<2x96xf32>
    %17 = arith.addf %15, %16 : vector<2x96xf32>
    %cst_11 = arith.constant dense<0.000000e+00> : vector<2x96xf32>
    %18 = tpu.matmul %0, %10, %cst_11 {dimension_numbers = #tpu.dot_dimension_numbers<[1], [0], [0], [1], [0, 0, 1, 1], [], []>} : vector<2x32xf32>, vector<32x96xf32>, vector<2x96xf32> -> vector<2x96xf32>
    %19 = vector.broadcast %12 : vector<1x96xf32> to vector<2x96xf32>
    %20 = arith.addf %18, %19 : vector<2x96xf32>
    %21 = vector.extract_strided_slice %13 {offsets = [0, 0], sizes = [2, 32], strides = [1, 1]} : vector<2x96xf32> to vector<2x32xf32>
    %22 = vector.extract_strided_slice %17 {offsets = [0, 0], sizes = [2, 32], strides = [1, 1]} : vector<2x96xf32> to vector<2x32xf32>
    %23 = arith.addf %21, %22 : vector<2x32xf32>
    %24 = arith.negf %23 : vector<2x32xf32>
    %25 = math.exp %24 : vector<2x32xf32>
    %cst_12 = arith.constant 1.000000e+00 : f32
    %26 = vector.broadcast %cst_12 : f32 to vector<2x32xf32>
    %27 = arith.addf %26, %25 : vector<2x32xf32>
    %28 = arith.divf %26, %27 : vector<2x32xf32>
    %29 = vector.extract_strided_slice %13 {offsets = [0, 32], sizes = [2, 32], strides = [1, 1]} : vector<2x96xf32> to vector<2x32xf32>
    %30 = vector.extract_strided_slice %17 {offsets = [0, 32], sizes = [2, 32], strides = [1, 1]} : vector<2x96xf32> to vector<2x32xf32>
    %31 = arith.addf %29, %30 : vector<2x32xf32>
    %32 = arith.negf %31 : vector<2x32xf32>
    %33 = math.exp %32 : vector<2x32xf32>
    %cst_13 = arith.constant 1.000000e+00 : f32
    %34 = vector.broadcast %cst_13 : f32 to vector<2x32xf32>
    %35 = arith.addf %34, %33 : vector<2x32xf32>
    %36 = arith.divf %34, %35 : vector<2x32xf32>
    %37 = vector.extract_strided_slice %13 {offsets = [0, 64], sizes = [2, 32], strides = [1, 1]} : vector<2x96xf32> to vector<2x32xf32>
    %38 = vector.extract_strided_slice %17 {offsets = [0, 64], sizes = [2, 32], strides = [1, 1]} : vector<2x96xf32> to vector<2x32xf32>
    %39 = arith.mulf %28, %38 : vector<2x32xf32>
    %40 = arith.addf %37, %39 : vector<2x32xf32>
    %41 = math.tanh %40 : vector<2x32xf32>
    %cst_14 = arith.constant 1.000000e+00 : f32
    %42 = vector.broadcast %cst_14 : f32 to vector<2x32xf32>
    %43 = arith.subf %42, %36 : vector<2x32xf32>
    %44 = arith.mulf %43, %41 : vector<2x32xf32>
    %45 = arith.mulf %36, %0 : vector<2x32xf32>
    %46 = arith.addf %44, %45 : vector<2x32xf32>
    %47 = vector.extract_strided_slice %14 {offsets = [0, 0], sizes = [2, 32], strides = [1, 1]} : vector<2x96xf32> to vector<2x32xf32>
    %48 = vector.extract_strided_slice %20 {offsets = [0, 0], sizes = [2, 32], strides = [1, 1]} : vector<2x96xf32> to vector<2x32xf32>
    %49 = arith.addf %47, %48 : vector<2x32xf32>
    %50 = arith.negf %49 : vector<2x32xf32>
    %51 = math.exp %50 : vector<2x32xf32>
    %cst_15 = arith.constant 1.000000e+00 : f32
    %52 = vector.broadcast %cst_15 : f32 to vector<2x32xf32>
    %53 = arith.addf %52, %51 : vector<2x32xf32>
    %54 = arith.divf %52, %53 : vector<2x32xf32>
    %55 = vector.extract_strided_slice %14 {offsets = [0, 32], sizes = [2, 32], strides = [1, 1]} : vector<2x96xf32> to vector<2x32xf32>
    %56 = vector.extract_strided_slice %20 {offsets = [0, 32], sizes = [2, 32], strides = [1, 1]} : vector<2x96xf32> to vector<2x32xf32>
    %57 = arith.addf %55, %56 : vector<2x32xf32>
    %58 = arith.negf %57 : vector<2x32xf32>
    %59 = math.exp %58 : vector<2x32xf32>
    %cst_16 = arith.constant 1.000000e+00 : f32
    %60 = vector.broadcast %cst_16 : f32 to vector<2x32xf32>
    %61 = arith.addf %60, %59 : vector<2x32xf32>
    %62 = arith.divf %60, %61 : vector<2x32xf32>
    %63 = vector.extract_strided_slice %14 {offsets = [0, 64], sizes = [2, 32], strides = [1, 1]} : vector<2x96xf32> to vector<2x32xf32>
    %64 = vector.extract_strided_slice %20 {offsets = [0, 64], sizes = [2, 32], strides = [1, 1]} : vector<2x96xf32> to vector<2x32xf32>
    %65 = arith.mulf %54, %64 : vector<2x32xf32>
    %66 = arith.addf %63, %65 : vector<2x32xf32>
    %67 = math.tanh %66 : vector<2x32xf32>
    %cst_17 = arith.constant 1.000000e+00 : f32
    %68 = vector.broadcast %cst_17 : f32 to vector<2x32xf32>
    %69 = arith.subf %68, %62 : vector<2x32xf32>
    %70 = arith.mulf %69, %67 : vector<2x32xf32>
    %71 = arith.mulf %62, %0 : vector<2x32xf32>
    %72 = arith.addf %70, %71 : vector<2x32xf32>
    %73 = vector.extract_strided_slice %6 {offsets = [2, 0], sizes = [2, 96], strides = [1, 1]} : vector<16x192xf32> to vector<2x96xf32>
    %74 = vector.extract_strided_slice %6 {offsets = [12, 96], sizes = [2, 96], strides = [1, 1]} : vector<16x192xf32> to vector<2x96xf32>
    %cst_18 = arith.constant dense<0.000000e+00> : vector<2x96xf32>
    %75 = tpu.matmul %46, %9, %cst_18 {dimension_numbers = #tpu.dot_dimension_numbers<[1], [0], [0], [1], [0, 0, 1, 1], [], []>} : vector<2x32xf32>, vector<32x96xf32>, vector<2x96xf32> -> vector<2x96xf32>
    %76 = vector.broadcast %11 : vector<1x96xf32> to vector<2x96xf32>
    %77 = arith.addf %75, %76 : vector<2x96xf32>
    %cst_19 = arith.constant dense<0.000000e+00> : vector<2x96xf32>
    %78 = tpu.matmul %72, %10, %cst_19 {dimension_numbers = #tpu.dot_dimension_numbers<[1], [0], [0], [1], [0, 0, 1, 1], [], []>} : vector<2x32xf32>, vector<32x96xf32>, vector<2x96xf32> -> vector<2x96xf32>
    %79 = vector.broadcast %12 : vector<1x96xf32> to vector<2x96xf32>
    %80 = arith.addf %78, %79 : vector<2x96xf32>
    %81 = vector.extract_strided_slice %73 {offsets = [0, 0], sizes = [2, 32], strides = [1, 1]} : vector<2x96xf32> to vector<2x32xf32>
    %82 = vector.extract_strided_slice %77 {offsets = [0, 0], sizes = [2, 32], strides = [1, 1]} : vector<2x96xf32> to vector<2x32xf32>
    %83 = arith.addf %81, %82 : vector<2x32xf32>
    %84 = arith.negf %83 : vector<2x32xf32>
    %85 = math.exp %84 : vector<2x32xf32>
    %cst_20 = arith.constant 1.000000e+00 : f32
    %86 = vector.broadcast %cst_20 : f32 to vector<2x32xf32>
    %87 = arith.addf %86, %85 : vector<2x32xf32>
    %88 = arith.divf %86, %87 : vector<2x32xf32>
    %89 = vector.extract_strided_slice %73 {offsets = [0, 32], sizes = [2, 32], strides = [1, 1]} : vector<2x96xf32> to vector<2x32xf32>
    %90 = vector.extract_strided_slice %77 {offsets = [0, 32], sizes = [2, 32], strides = [1, 1]} : vector<2x96xf32> to vector<2x32xf32>
    %91 = arith.addf %89, %90 : vector<2x32xf32>
    %92 = arith.negf %91 : vector<2x32xf32>
    %93 = math.exp %92 : vector<2x32xf32>
    %cst_21 = arith.constant 1.000000e+00 : f32
    %94 = vector.broadcast %cst_21 : f32 to vector<2x32xf32>
    %95 = arith.addf %94, %93 : vector<2x32xf32>
    %96 = arith.divf %94, %95 : vector<2x32xf32>
    %97 = vector.extract_strided_slice %73 {offsets = [0, 64], sizes = [2, 32], strides = [1, 1]} : vector<2x96xf32> to vector<2x32xf32>
    %98 = vector.extract_strided_slice %77 {offsets = [0, 64], sizes = [2, 32], strides = [1, 1]} : vector<2x96xf32> to vector<2x32xf32>
    %99 = arith.mulf %88, %98 : vector<2x32xf32>
    %100 = arith.addf %97, %99 : vector<2x32xf32>
    %101 = math.tanh %100 : vector<2x32xf32>
    %cst_22 = arith.constant 1.000000e+00 : f32
    %102 = vector.broadcast %cst_22 : f32 to vector<2x32xf32>
    %103 = arith.subf %102, %96 : vector<2x32xf32>
    %104 = arith.mulf %103, %101 : vector<2x32xf32>
    %105 = arith.mulf %96, %46 : vector<2x32xf32>
    %106 = arith.addf %104, %105 : vector<2x32xf32>
    %107 = vector.extract_strided_slice %74 {offsets = [0, 0], sizes = [2, 32], strides = [1, 1]} : vector<2x96xf32> to vector<2x32xf32>
    %108 = vector.extract_strided_slice %80 {offsets = [0, 0], sizes = [2, 32], strides = [1, 1]} : vector<2x96xf32> to vector<2x32xf32>
    %109 = arith.addf %107, %108 : vector<2x32xf32>
    %110 = arith.negf %109 : vector<2x32xf32>
    %111 = math.exp %110 : vector<2x32xf32>
    %cst_23 = arith.constant 1.000000e+00 : f32
    %112 = vector.broadcast %cst_23 : f32 to vector<2x32xf32>
    %113 = arith.addf %112, %111 : vector<2x32xf32>
    %114 = arith.divf %112, %113 : vector<2x32xf32>
    %115 = vector.extract_strided_slice %74 {offsets = [0, 32], sizes = [2, 32], strides = [1, 1]} : vector<2x96xf32> to vector<2x32xf32>
    %116 = vector.extract_strided_slice %80 {offsets = [0, 32], sizes = [2, 32], strides = [1, 1]} : vector<2x96xf32> to vector<2x32xf32>
    %117 = arith.addf %115, %116 : vector<2x32xf32>
    %118 = arith.negf %117 : vector<2x32xf32>
    %119 = math.exp %118 : vector<2x32xf32>
    %cst_24 = arith.constant 1.000000e+00 : f32
    %120 = vector.broadcast %cst_24 : f32 to vector<2x32xf32>
    %121 = arith.addf %120, %119 : vector<2x32xf32>
    %122 = arith.divf %120, %121 : vector<2x32xf32>
    %123 = vector.extract_strided_slice %74 {offsets = [0, 64], sizes = [2, 32], strides = [1, 1]} : vector<2x96xf32> to vector<2x32xf32>
    %124 = vector.extract_strided_slice %80 {offsets = [0, 64], sizes = [2, 32], strides = [1, 1]} : vector<2x96xf32> to vector<2x32xf32>
    %125 = arith.mulf %114, %124 : vector<2x32xf32>
    %126 = arith.addf %123, %125 : vector<2x32xf32>
    %127 = math.tanh %126 : vector<2x32xf32>
    %cst_25 = arith.constant 1.000000e+00 : f32
    %128 = vector.broadcast %cst_25 : f32 to vector<2x32xf32>
    %129 = arith.subf %128, %122 : vector<2x32xf32>
    %130 = arith.mulf %129, %127 : vector<2x32xf32>
    %131 = arith.mulf %122, %72 : vector<2x32xf32>
    %132 = arith.addf %130, %131 : vector<2x32xf32>
    %133 = vector.extract_strided_slice %6 {offsets = [4, 0], sizes = [2, 96], strides = [1, 1]} : vector<16x192xf32> to vector<2x96xf32>
    %134 = vector.extract_strided_slice %6 {offsets = [10, 96], sizes = [2, 96], strides = [1, 1]} : vector<16x192xf32> to vector<2x96xf32>
    %cst_26 = arith.constant dense<0.000000e+00> : vector<2x96xf32>
    %135 = tpu.matmul %106, %9, %cst_26 {dimension_numbers = #tpu.dot_dimension_numbers<[1], [0], [0], [1], [0, 0, 1, 1], [], []>} : vector<2x32xf32>, vector<32x96xf32>, vector<2x96xf32> -> vector<2x96xf32>
    %136 = vector.broadcast %11 : vector<1x96xf32> to vector<2x96xf32>
    %137 = arith.addf %135, %136 : vector<2x96xf32>
    %cst_27 = arith.constant dense<0.000000e+00> : vector<2x96xf32>
    %138 = tpu.matmul %132, %10, %cst_27 {dimension_numbers = #tpu.dot_dimension_numbers<[1], [0], [0], [1], [0, 0, 1, 1], [], []>} : vector<2x32xf32>, vector<32x96xf32>, vector<2x96xf32> -> vector<2x96xf32>
    %139 = vector.broadcast %12 : vector<1x96xf32> to vector<2x96xf32>
    %140 = arith.addf %138, %139 : vector<2x96xf32>
    %141 = vector.extract_strided_slice %133 {offsets = [0, 0], sizes = [2, 32], strides = [1, 1]} : vector<2x96xf32> to vector<2x32xf32>
    %142 = vector.extract_strided_slice %137 {offsets = [0, 0], sizes = [2, 32], strides = [1, 1]} : vector<2x96xf32> to vector<2x32xf32>
    %143 = arith.addf %141, %142 : vector<2x32xf32>
    %144 = arith.negf %143 : vector<2x32xf32>
    %145 = math.exp %144 : vector<2x32xf32>
    %cst_28 = arith.constant 1.000000e+00 : f32
    %146 = vector.broadcast %cst_28 : f32 to vector<2x32xf32>
    %147 = arith.addf %146, %145 : vector<2x32xf32>
    %148 = arith.divf %146, %147 : vector<2x32xf32>
    %149 = vector.extract_strided_slice %133 {offsets = [0, 32], sizes = [2, 32], strides = [1, 1]} : vector<2x96xf32> to vector<2x32xf32>
    %150 = vector.extract_strided_slice %137 {offsets = [0, 32], sizes = [2, 32], strides = [1, 1]} : vector<2x96xf32> to vector<2x32xf32>
    %151 = arith.addf %149, %150 : vector<2x32xf32>
    %152 = arith.negf %151 : vector<2x32xf32>
    %153 = math.exp %152 : vector<2x32xf32>
    %cst_29 = arith.constant 1.000000e+00 : f32
    %154 = vector.broadcast %cst_29 : f32 to vector<2x32xf32>
    %155 = arith.addf %154, %153 : vector<2x32xf32>
    %156 = arith.divf %154, %155 : vector<2x32xf32>
    %157 = vector.extract_strided_slice %133 {offsets = [0, 64], sizes = [2, 32], strides = [1, 1]} : vector<2x96xf32> to vector<2x32xf32>
    %158 = vector.extract_strided_slice %137 {offsets = [0, 64], sizes = [2, 32], strides = [1, 1]} : vector<2x96xf32> to vector<2x32xf32>
    %159 = arith.mulf %148, %158 : vector<2x32xf32>
    %160 = arith.addf %157, %159 : vector<2x32xf32>
    %161 = math.tanh %160 : vector<2x32xf32>
    %cst_30 = arith.constant 1.000000e+00 : f32
    %162 = vector.broadcast %cst_30 : f32 to vector<2x32xf32>
    %163 = arith.subf %162, %156 : vector<2x32xf32>
    %164 = arith.mulf %163, %161 : vector<2x32xf32>
    %165 = arith.mulf %156, %106 : vector<2x32xf32>
    %166 = arith.addf %164, %165 : vector<2x32xf32>
    %167 = vector.extract_strided_slice %134 {offsets = [0, 0], sizes = [2, 32], strides = [1, 1]} : vector<2x96xf32> to vector<2x32xf32>
    %168 = vector.extract_strided_slice %140 {offsets = [0, 0], sizes = [2, 32], strides = [1, 1]} : vector<2x96xf32> to vector<2x32xf32>
    %169 = arith.addf %167, %168 : vector<2x32xf32>
    %170 = arith.negf %169 : vector<2x32xf32>
    %171 = math.exp %170 : vector<2x32xf32>
    %cst_31 = arith.constant 1.000000e+00 : f32
    %172 = vector.broadcast %cst_31 : f32 to vector<2x32xf32>
    %173 = arith.addf %172, %171 : vector<2x32xf32>
    %174 = arith.divf %172, %173 : vector<2x32xf32>
    %175 = vector.extract_strided_slice %134 {offsets = [0, 32], sizes = [2, 32], strides = [1, 1]} : vector<2x96xf32> to vector<2x32xf32>
    %176 = vector.extract_strided_slice %140 {offsets = [0, 32], sizes = [2, 32], strides = [1, 1]} : vector<2x96xf32> to vector<2x32xf32>
    %177 = arith.addf %175, %176 : vector<2x32xf32>
    %178 = arith.negf %177 : vector<2x32xf32>
    %179 = math.exp %178 : vector<2x32xf32>
    %cst_32 = arith.constant 1.000000e+00 : f32
    %180 = vector.broadcast %cst_32 : f32 to vector<2x32xf32>
    %181 = arith.addf %180, %179 : vector<2x32xf32>
    %182 = arith.divf %180, %181 : vector<2x32xf32>
    %183 = vector.extract_strided_slice %134 {offsets = [0, 64], sizes = [2, 32], strides = [1, 1]} : vector<2x96xf32> to vector<2x32xf32>
    %184 = vector.extract_strided_slice %140 {offsets = [0, 64], sizes = [2, 32], strides = [1, 1]} : vector<2x96xf32> to vector<2x32xf32>
    %185 = arith.mulf %174, %184 : vector<2x32xf32>
    %186 = arith.addf %183, %185 : vector<2x32xf32>
    %187 = math.tanh %186 : vector<2x32xf32>
    %cst_33 = arith.constant 1.000000e+00 : f32
    %188 = vector.broadcast %cst_33 : f32 to vector<2x32xf32>
    %189 = arith.subf %188, %182 : vector<2x32xf32>
    %190 = arith.mulf %189, %187 : vector<2x32xf32>
    %191 = arith.mulf %182, %132 : vector<2x32xf32>
    %192 = arith.addf %190, %191 : vector<2x32xf32>
    %193 = vector.extract_strided_slice %6 {offsets = [6, 0], sizes = [2, 96], strides = [1, 1]} : vector<16x192xf32> to vector<2x96xf32>
    %194 = vector.extract_strided_slice %6 {offsets = [8, 96], sizes = [2, 96], strides = [1, 1]} : vector<16x192xf32> to vector<2x96xf32>
    %cst_34 = arith.constant dense<0.000000e+00> : vector<2x96xf32>
    %195 = tpu.matmul %166, %9, %cst_34 {dimension_numbers = #tpu.dot_dimension_numbers<[1], [0], [0], [1], [0, 0, 1, 1], [], []>} : vector<2x32xf32>, vector<32x96xf32>, vector<2x96xf32> -> vector<2x96xf32>
    %196 = vector.broadcast %11 : vector<1x96xf32> to vector<2x96xf32>
    %197 = arith.addf %195, %196 : vector<2x96xf32>
    %cst_35 = arith.constant dense<0.000000e+00> : vector<2x96xf32>
    %198 = tpu.matmul %192, %10, %cst_35 {dimension_numbers = #tpu.dot_dimension_numbers<[1], [0], [0], [1], [0, 0, 1, 1], [], []>} : vector<2x32xf32>, vector<32x96xf32>, vector<2x96xf32> -> vector<2x96xf32>
    %199 = vector.broadcast %12 : vector<1x96xf32> to vector<2x96xf32>
    %200 = arith.addf %198, %199 : vector<2x96xf32>
    %201 = vector.extract_strided_slice %193 {offsets = [0, 0], sizes = [2, 32], strides = [1, 1]} : vector<2x96xf32> to vector<2x32xf32>
    %202 = vector.extract_strided_slice %197 {offsets = [0, 0], sizes = [2, 32], strides = [1, 1]} : vector<2x96xf32> to vector<2x32xf32>
    %203 = arith.addf %201, %202 : vector<2x32xf32>
    %204 = arith.negf %203 : vector<2x32xf32>
    %205 = math.exp %204 : vector<2x32xf32>
    %cst_36 = arith.constant 1.000000e+00 : f32
    %206 = vector.broadcast %cst_36 : f32 to vector<2x32xf32>
    %207 = arith.addf %206, %205 : vector<2x32xf32>
    %208 = arith.divf %206, %207 : vector<2x32xf32>
    %209 = vector.extract_strided_slice %193 {offsets = [0, 32], sizes = [2, 32], strides = [1, 1]} : vector<2x96xf32> to vector<2x32xf32>
    %210 = vector.extract_strided_slice %197 {offsets = [0, 32], sizes = [2, 32], strides = [1, 1]} : vector<2x96xf32> to vector<2x32xf32>
    %211 = arith.addf %209, %210 : vector<2x32xf32>
    %212 = arith.negf %211 : vector<2x32xf32>
    %213 = math.exp %212 : vector<2x32xf32>
    %cst_37 = arith.constant 1.000000e+00 : f32
    %214 = vector.broadcast %cst_37 : f32 to vector<2x32xf32>
    %215 = arith.addf %214, %213 : vector<2x32xf32>
    %216 = arith.divf %214, %215 : vector<2x32xf32>
    %217 = vector.extract_strided_slice %193 {offsets = [0, 64], sizes = [2, 32], strides = [1, 1]} : vector<2x96xf32> to vector<2x32xf32>
    %218 = vector.extract_strided_slice %197 {offsets = [0, 64], sizes = [2, 32], strides = [1, 1]} : vector<2x96xf32> to vector<2x32xf32>
    %219 = arith.mulf %208, %218 : vector<2x32xf32>
    %220 = arith.addf %217, %219 : vector<2x32xf32>
    %221 = math.tanh %220 : vector<2x32xf32>
    %cst_38 = arith.constant 1.000000e+00 : f32
    %222 = vector.broadcast %cst_38 : f32 to vector<2x32xf32>
    %223 = arith.subf %222, %216 : vector<2x32xf32>
    %224 = arith.mulf %223, %221 : vector<2x32xf32>
    %225 = arith.mulf %216, %166 : vector<2x32xf32>
    %226 = arith.addf %224, %225 : vector<2x32xf32>
    %227 = vector.extract_strided_slice %194 {offsets = [0, 0], sizes = [2, 32], strides = [1, 1]} : vector<2x96xf32> to vector<2x32xf32>
    %228 = vector.extract_strided_slice %200 {offsets = [0, 0], sizes = [2, 32], strides = [1, 1]} : vector<2x96xf32> to vector<2x32xf32>
    %229 = arith.addf %227, %228 : vector<2x32xf32>
    %230 = arith.negf %229 : vector<2x32xf32>
    %231 = math.exp %230 : vector<2x32xf32>
    %cst_39 = arith.constant 1.000000e+00 : f32
    %232 = vector.broadcast %cst_39 : f32 to vector<2x32xf32>
    %233 = arith.addf %232, %231 : vector<2x32xf32>
    %234 = arith.divf %232, %233 : vector<2x32xf32>
    %235 = vector.extract_strided_slice %194 {offsets = [0, 32], sizes = [2, 32], strides = [1, 1]} : vector<2x96xf32> to vector<2x32xf32>
    %236 = vector.extract_strided_slice %200 {offsets = [0, 32], sizes = [2, 32], strides = [1, 1]} : vector<2x96xf32> to vector<2x32xf32>
    %237 = arith.addf %235, %236 : vector<2x32xf32>
    %238 = arith.negf %237 : vector<2x32xf32>
    %239 = math.exp %238 : vector<2x32xf32>
    %cst_40 = arith.constant 1.000000e+00 : f32
    %240 = vector.broadcast %cst_40 : f32 to vector<2x32xf32>
    %241 = arith.addf %240, %239 : vector<2x32xf32>
    %242 = arith.divf %240, %241 : vector<2x32xf32>
    %243 = vector.extract_strided_slice %194 {offsets = [0, 64], sizes = [2, 32], strides = [1, 1]} : vector<2x96xf32> to vector<2x32xf32>
    %244 = vector.extract_strided_slice %200 {offsets = [0, 64], sizes = [2, 32], strides = [1, 1]} : vector<2x96xf32> to vector<2x32xf32>
    %245 = arith.mulf %234, %244 : vector<2x32xf32>
    %246 = arith.addf %243, %245 : vector<2x32xf32>
    %247 = math.tanh %246 : vector<2x32xf32>
    %cst_41 = arith.constant 1.000000e+00 : f32
    %248 = vector.broadcast %cst_41 : f32 to vector<2x32xf32>
    %249 = arith.subf %248, %242 : vector<2x32xf32>
    %250 = arith.mulf %249, %247 : vector<2x32xf32>
    %251 = arith.mulf %242, %192 : vector<2x32xf32>
    %252 = arith.addf %250, %251 : vector<2x32xf32>
    %253 = vector.extract_strided_slice %6 {offsets = [8, 0], sizes = [2, 96], strides = [1, 1]} : vector<16x192xf32> to vector<2x96xf32>
    %254 = vector.extract_strided_slice %6 {offsets = [6, 96], sizes = [2, 96], strides = [1, 1]} : vector<16x192xf32> to vector<2x96xf32>
    %cst_42 = arith.constant dense<0.000000e+00> : vector<2x96xf32>
    %255 = tpu.matmul %226, %9, %cst_42 {dimension_numbers = #tpu.dot_dimension_numbers<[1], [0], [0], [1], [0, 0, 1, 1], [], []>} : vector<2x32xf32>, vector<32x96xf32>, vector<2x96xf32> -> vector<2x96xf32>
    %256 = vector.broadcast %11 : vector<1x96xf32> to vector<2x96xf32>
    %257 = arith.addf %255, %256 : vector<2x96xf32>
    %cst_43 = arith.constant dense<0.000000e+00> : vector<2x96xf32>
    %258 = tpu.matmul %252, %10, %cst_43 {dimension_numbers = #tpu.dot_dimension_numbers<[1], [0], [0], [1], [0, 0, 1, 1], [], []>} : vector<2x32xf32>, vector<32x96xf32>, vector<2x96xf32> -> vector<2x96xf32>
    %259 = vector.broadcast %12 : vector<1x96xf32> to vector<2x96xf32>
    %260 = arith.addf %258, %259 : vector<2x96xf32>
    %261 = vector.extract_strided_slice %253 {offsets = [0, 0], sizes = [2, 32], strides = [1, 1]} : vector<2x96xf32> to vector<2x32xf32>
    %262 = vector.extract_strided_slice %257 {offsets = [0, 0], sizes = [2, 32], strides = [1, 1]} : vector<2x96xf32> to vector<2x32xf32>
    %263 = arith.addf %261, %262 : vector<2x32xf32>
    %264 = arith.negf %263 : vector<2x32xf32>
    %265 = math.exp %264 : vector<2x32xf32>
    %cst_44 = arith.constant 1.000000e+00 : f32
    %266 = vector.broadcast %cst_44 : f32 to vector<2x32xf32>
    %267 = arith.addf %266, %265 : vector<2x32xf32>
    %268 = arith.divf %266, %267 : vector<2x32xf32>
    %269 = vector.extract_strided_slice %253 {offsets = [0, 32], sizes = [2, 32], strides = [1, 1]} : vector<2x96xf32> to vector<2x32xf32>
    %270 = vector.extract_strided_slice %257 {offsets = [0, 32], sizes = [2, 32], strides = [1, 1]} : vector<2x96xf32> to vector<2x32xf32>
    %271 = arith.addf %269, %270 : vector<2x32xf32>
    %272 = arith.negf %271 : vector<2x32xf32>
    %273 = math.exp %272 : vector<2x32xf32>
    %cst_45 = arith.constant 1.000000e+00 : f32
    %274 = vector.broadcast %cst_45 : f32 to vector<2x32xf32>
    %275 = arith.addf %274, %273 : vector<2x32xf32>
    %276 = arith.divf %274, %275 : vector<2x32xf32>
    %277 = vector.extract_strided_slice %253 {offsets = [0, 64], sizes = [2, 32], strides = [1, 1]} : vector<2x96xf32> to vector<2x32xf32>
    %278 = vector.extract_strided_slice %257 {offsets = [0, 64], sizes = [2, 32], strides = [1, 1]} : vector<2x96xf32> to vector<2x32xf32>
    %279 = arith.mulf %268, %278 : vector<2x32xf32>
    %280 = arith.addf %277, %279 : vector<2x32xf32>
    %281 = math.tanh %280 : vector<2x32xf32>
    %cst_46 = arith.constant 1.000000e+00 : f32
    %282 = vector.broadcast %cst_46 : f32 to vector<2x32xf32>
    %283 = arith.subf %282, %276 : vector<2x32xf32>
    %284 = arith.mulf %283, %281 : vector<2x32xf32>
    %285 = arith.mulf %276, %226 : vector<2x32xf32>
    %286 = arith.addf %284, %285 : vector<2x32xf32>
    %287 = vector.extract_strided_slice %254 {offsets = [0, 0], sizes = [2, 32], strides = [1, 1]} : vector<2x96xf32> to vector<2x32xf32>
    %288 = vector.extract_strided_slice %260 {offsets = [0, 0], sizes = [2, 32], strides = [1, 1]} : vector<2x96xf32> to vector<2x32xf32>
    %289 = arith.addf %287, %288 : vector<2x32xf32>
    %290 = arith.negf %289 : vector<2x32xf32>
    %291 = math.exp %290 : vector<2x32xf32>
    %cst_47 = arith.constant 1.000000e+00 : f32
    %292 = vector.broadcast %cst_47 : f32 to vector<2x32xf32>
    %293 = arith.addf %292, %291 : vector<2x32xf32>
    %294 = arith.divf %292, %293 : vector<2x32xf32>
    %295 = vector.extract_strided_slice %254 {offsets = [0, 32], sizes = [2, 32], strides = [1, 1]} : vector<2x96xf32> to vector<2x32xf32>
    %296 = vector.extract_strided_slice %260 {offsets = [0, 32], sizes = [2, 32], strides = [1, 1]} : vector<2x96xf32> to vector<2x32xf32>
    %297 = arith.addf %295, %296 : vector<2x32xf32>
    %298 = arith.negf %297 : vector<2x32xf32>
    %299 = math.exp %298 : vector<2x32xf32>
    %cst_48 = arith.constant 1.000000e+00 : f32
    %300 = vector.broadcast %cst_48 : f32 to vector<2x32xf32>
    %301 = arith.addf %300, %299 : vector<2x32xf32>
    %302 = arith.divf %300, %301 : vector<2x32xf32>
    %303 = vector.extract_strided_slice %254 {offsets = [0, 64], sizes = [2, 32], strides = [1, 1]} : vector<2x96xf32> to vector<2x32xf32>
    %304 = vector.extract_strided_slice %260 {offsets = [0, 64], sizes = [2, 32], strides = [1, 1]} : vector<2x96xf32> to vector<2x32xf32>
    %305 = arith.mulf %294, %304 : vector<2x32xf32>
    %306 = arith.addf %303, %305 : vector<2x32xf32>
    %307 = math.tanh %306 : vector<2x32xf32>
    %cst_49 = arith.constant 1.000000e+00 : f32
    %308 = vector.broadcast %cst_49 : f32 to vector<2x32xf32>
    %309 = arith.subf %308, %302 : vector<2x32xf32>
    %310 = arith.mulf %309, %307 : vector<2x32xf32>
    %311 = arith.mulf %302, %252 : vector<2x32xf32>
    %312 = arith.addf %310, %311 : vector<2x32xf32>
    %313 = vector.extract_strided_slice %6 {offsets = [10, 0], sizes = [2, 96], strides = [1, 1]} : vector<16x192xf32> to vector<2x96xf32>
    %314 = vector.extract_strided_slice %6 {offsets = [4, 96], sizes = [2, 96], strides = [1, 1]} : vector<16x192xf32> to vector<2x96xf32>
    %cst_50 = arith.constant dense<0.000000e+00> : vector<2x96xf32>
    %315 = tpu.matmul %286, %9, %cst_50 {dimension_numbers = #tpu.dot_dimension_numbers<[1], [0], [0], [1], [0, 0, 1, 1], [], []>} : vector<2x32xf32>, vector<32x96xf32>, vector<2x96xf32> -> vector<2x96xf32>
    %316 = vector.broadcast %11 : vector<1x96xf32> to vector<2x96xf32>
    %317 = arith.addf %315, %316 : vector<2x96xf32>
    %cst_51 = arith.constant dense<0.000000e+00> : vector<2x96xf32>
    %318 = tpu.matmul %312, %10, %cst_51 {dimension_numbers = #tpu.dot_dimension_numbers<[1], [0], [0], [1], [0, 0, 1, 1], [], []>} : vector<2x32xf32>, vector<32x96xf32>, vector<2x96xf32> -> vector<2x96xf32>
    %319 = vector.broadcast %12 : vector<1x96xf32> to vector<2x96xf32>
    %320 = arith.addf %318, %319 : vector<2x96xf32>
    %321 = vector.extract_strided_slice %313 {offsets = [0, 0], sizes = [2, 32], strides = [1, 1]} : vector<2x96xf32> to vector<2x32xf32>
    %322 = vector.extract_strided_slice %317 {offsets = [0, 0], sizes = [2, 32], strides = [1, 1]} : vector<2x96xf32> to vector<2x32xf32>
    %323 = arith.addf %321, %322 : vector<2x32xf32>
    %324 = arith.negf %323 : vector<2x32xf32>
    %325 = math.exp %324 : vector<2x32xf32>
    %cst_52 = arith.constant 1.000000e+00 : f32
    %326 = vector.broadcast %cst_52 : f32 to vector<2x32xf32>
    %327 = arith.addf %326, %325 : vector<2x32xf32>
    %328 = arith.divf %326, %327 : vector<2x32xf32>
    %329 = vector.extract_strided_slice %313 {offsets = [0, 32], sizes = [2, 32], strides = [1, 1]} : vector<2x96xf32> to vector<2x32xf32>
    %330 = vector.extract_strided_slice %317 {offsets = [0, 32], sizes = [2, 32], strides = [1, 1]} : vector<2x96xf32> to vector<2x32xf32>
    %331 = arith.addf %329, %330 : vector<2x32xf32>
    %332 = arith.negf %331 : vector<2x32xf32>
    %333 = math.exp %332 : vector<2x32xf32>
    %cst_53 = arith.constant 1.000000e+00 : f32
    %334 = vector.broadcast %cst_53 : f32 to vector<2x32xf32>
    %335 = arith.addf %334, %333 : vector<2x32xf32>
    %336 = arith.divf %334, %335 : vector<2x32xf32>
    %337 = vector.extract_strided_slice %313 {offsets = [0, 64], sizes = [2, 32], strides = [1, 1]} : vector<2x96xf32> to vector<2x32xf32>
    %338 = vector.extract_strided_slice %317 {offsets = [0, 64], sizes = [2, 32], strides = [1, 1]} : vector<2x96xf32> to vector<2x32xf32>
    %339 = arith.mulf %328, %338 : vector<2x32xf32>
    %340 = arith.addf %337, %339 : vector<2x32xf32>
    %341 = math.tanh %340 : vector<2x32xf32>
    %cst_54 = arith.constant 1.000000e+00 : f32
    %342 = vector.broadcast %cst_54 : f32 to vector<2x32xf32>
    %343 = arith.subf %342, %336 : vector<2x32xf32>
    %344 = arith.mulf %343, %341 : vector<2x32xf32>
    %345 = arith.mulf %336, %286 : vector<2x32xf32>
    %346 = arith.addf %344, %345 : vector<2x32xf32>
    %347 = vector.extract_strided_slice %314 {offsets = [0, 0], sizes = [2, 32], strides = [1, 1]} : vector<2x96xf32> to vector<2x32xf32>
    %348 = vector.extract_strided_slice %320 {offsets = [0, 0], sizes = [2, 32], strides = [1, 1]} : vector<2x96xf32> to vector<2x32xf32>
    %349 = arith.addf %347, %348 : vector<2x32xf32>
    %350 = arith.negf %349 : vector<2x32xf32>
    %351 = math.exp %350 : vector<2x32xf32>
    %cst_55 = arith.constant 1.000000e+00 : f32
    %352 = vector.broadcast %cst_55 : f32 to vector<2x32xf32>
    %353 = arith.addf %352, %351 : vector<2x32xf32>
    %354 = arith.divf %352, %353 : vector<2x32xf32>
    %355 = vector.extract_strided_slice %314 {offsets = [0, 32], sizes = [2, 32], strides = [1, 1]} : vector<2x96xf32> to vector<2x32xf32>
    %356 = vector.extract_strided_slice %320 {offsets = [0, 32], sizes = [2, 32], strides = [1, 1]} : vector<2x96xf32> to vector<2x32xf32>
    %357 = arith.addf %355, %356 : vector<2x32xf32>
    %358 = arith.negf %357 : vector<2x32xf32>
    %359 = math.exp %358 : vector<2x32xf32>
    %cst_56 = arith.constant 1.000000e+00 : f32
    %360 = vector.broadcast %cst_56 : f32 to vector<2x32xf32>
    %361 = arith.addf %360, %359 : vector<2x32xf32>
    %362 = arith.divf %360, %361 : vector<2x32xf32>
    %363 = vector.extract_strided_slice %314 {offsets = [0, 64], sizes = [2, 32], strides = [1, 1]} : vector<2x96xf32> to vector<2x32xf32>
    %364 = vector.extract_strided_slice %320 {offsets = [0, 64], sizes = [2, 32], strides = [1, 1]} : vector<2x96xf32> to vector<2x32xf32>
    %365 = arith.mulf %354, %364 : vector<2x32xf32>
    %366 = arith.addf %363, %365 : vector<2x32xf32>
    %367 = math.tanh %366 : vector<2x32xf32>
    %cst_57 = arith.constant 1.000000e+00 : f32
    %368 = vector.broadcast %cst_57 : f32 to vector<2x32xf32>
    %369 = arith.subf %368, %362 : vector<2x32xf32>
    %370 = arith.mulf %369, %367 : vector<2x32xf32>
    %371 = arith.mulf %362, %312 : vector<2x32xf32>
    %372 = arith.addf %370, %371 : vector<2x32xf32>
    %373 = vector.extract_strided_slice %6 {offsets = [12, 0], sizes = [2, 96], strides = [1, 1]} : vector<16x192xf32> to vector<2x96xf32>
    %374 = vector.extract_strided_slice %6 {offsets = [2, 96], sizes = [2, 96], strides = [1, 1]} : vector<16x192xf32> to vector<2x96xf32>
    %cst_58 = arith.constant dense<0.000000e+00> : vector<2x96xf32>
    %375 = tpu.matmul %346, %9, %cst_58 {dimension_numbers = #tpu.dot_dimension_numbers<[1], [0], [0], [1], [0, 0, 1, 1], [], []>} : vector<2x32xf32>, vector<32x96xf32>, vector<2x96xf32> -> vector<2x96xf32>
    %376 = vector.broadcast %11 : vector<1x96xf32> to vector<2x96xf32>
    %377 = arith.addf %375, %376 : vector<2x96xf32>
    %cst_59 = arith.constant dense<0.000000e+00> : vector<2x96xf32>
    %378 = tpu.matmul %372, %10, %cst_59 {dimension_numbers = #tpu.dot_dimension_numbers<[1], [0], [0], [1], [0, 0, 1, 1], [], []>} : vector<2x32xf32>, vector<32x96xf32>, vector<2x96xf32> -> vector<2x96xf32>
    %379 = vector.broadcast %12 : vector<1x96xf32> to vector<2x96xf32>
    %380 = arith.addf %378, %379 : vector<2x96xf32>
    %381 = vector.extract_strided_slice %373 {offsets = [0, 0], sizes = [2, 32], strides = [1, 1]} : vector<2x96xf32> to vector<2x32xf32>
    %382 = vector.extract_strided_slice %377 {offsets = [0, 0], sizes = [2, 32], strides = [1, 1]} : vector<2x96xf32> to vector<2x32xf32>
    %383 = arith.addf %381, %382 : vector<2x32xf32>
    %384 = arith.negf %383 : vector<2x32xf32>
    %385 = math.exp %384 : vector<2x32xf32>
    %cst_60 = arith.constant 1.000000e+00 : f32
    %386 = vector.broadcast %cst_60 : f32 to vector<2x32xf32>
    %387 = arith.addf %386, %385 : vector<2x32xf32>
    %388 = arith.divf %386, %387 : vector<2x32xf32>
    %389 = vector.extract_strided_slice %373 {offsets = [0, 32], sizes = [2, 32], strides = [1, 1]} : vector<2x96xf32> to vector<2x32xf32>
    %390 = vector.extract_strided_slice %377 {offsets = [0, 32], sizes = [2, 32], strides = [1, 1]} : vector<2x96xf32> to vector<2x32xf32>
    %391 = arith.addf %389, %390 : vector<2x32xf32>
    %392 = arith.negf %391 : vector<2x32xf32>
    %393 = math.exp %392 : vector<2x32xf32>
    %cst_61 = arith.constant 1.000000e+00 : f32
    %394 = vector.broadcast %cst_61 : f32 to vector<2x32xf32>
    %395 = arith.addf %394, %393 : vector<2x32xf32>
    %396 = arith.divf %394, %395 : vector<2x32xf32>
    %397 = vector.extract_strided_slice %373 {offsets = [0, 64], sizes = [2, 32], strides = [1, 1]} : vector<2x96xf32> to vector<2x32xf32>
    %398 = vector.extract_strided_slice %377 {offsets = [0, 64], sizes = [2, 32], strides = [1, 1]} : vector<2x96xf32> to vector<2x32xf32>
    %399 = arith.mulf %388, %398 : vector<2x32xf32>
    %400 = arith.addf %397, %399 : vector<2x32xf32>
    %401 = math.tanh %400 : vector<2x32xf32>
    %cst_62 = arith.constant 1.000000e+00 : f32
    %402 = vector.broadcast %cst_62 : f32 to vector<2x32xf32>
    %403 = arith.subf %402, %396 : vector<2x32xf32>
    %404 = arith.mulf %403, %401 : vector<2x32xf32>
    %405 = arith.mulf %396, %346 : vector<2x32xf32>
    %406 = arith.addf %404, %405 : vector<2x32xf32>
    %407 = vector.extract_strided_slice %374 {offsets = [0, 0], sizes = [2, 32], strides = [1, 1]} : vector<2x96xf32> to vector<2x32xf32>
    %408 = vector.extract_strided_slice %380 {offsets = [0, 0], sizes = [2, 32], strides = [1, 1]} : vector<2x96xf32> to vector<2x32xf32>
    %409 = arith.addf %407, %408 : vector<2x32xf32>
    %410 = arith.negf %409 : vector<2x32xf32>
    %411 = math.exp %410 : vector<2x32xf32>
    %cst_63 = arith.constant 1.000000e+00 : f32
    %412 = vector.broadcast %cst_63 : f32 to vector<2x32xf32>
    %413 = arith.addf %412, %411 : vector<2x32xf32>
    %414 = arith.divf %412, %413 : vector<2x32xf32>
    %415 = vector.extract_strided_slice %374 {offsets = [0, 32], sizes = [2, 32], strides = [1, 1]} : vector<2x96xf32> to vector<2x32xf32>
    %416 = vector.extract_strided_slice %380 {offsets = [0, 32], sizes = [2, 32], strides = [1, 1]} : vector<2x96xf32> to vector<2x32xf32>
    %417 = arith.addf %415, %416 : vector<2x32xf32>
    %418 = arith.negf %417 : vector<2x32xf32>
    %419 = math.exp %418 : vector<2x32xf32>
    %cst_64 = arith.constant 1.000000e+00 : f32
    %420 = vector.broadcast %cst_64 : f32 to vector<2x32xf32>
    %421 = arith.addf %420, %419 : vector<2x32xf32>
    %422 = arith.divf %420, %421 : vector<2x32xf32>
    %423 = vector.extract_strided_slice %374 {offsets = [0, 64], sizes = [2, 32], strides = [1, 1]} : vector<2x96xf32> to vector<2x32xf32>
    %424 = vector.extract_strided_slice %380 {offsets = [0, 64], sizes = [2, 32], strides = [1, 1]} : vector<2x96xf32> to vector<2x32xf32>
    %425 = arith.mulf %414, %424 : vector<2x32xf32>
    %426 = arith.addf %423, %425 : vector<2x32xf32>
    %427 = math.tanh %426 : vector<2x32xf32>
    %cst_65 = arith.constant 1.000000e+00 : f32
    %428 = vector.broadcast %cst_65 : f32 to vector<2x32xf32>
    %429 = arith.subf %428, %422 : vector<2x32xf32>
    %430 = arith.mulf %429, %427 : vector<2x32xf32>
    %431 = arith.mulf %422, %372 : vector<2x32xf32>
    %432 = arith.addf %430, %431 : vector<2x32xf32>
    %433 = vector.extract_strided_slice %6 {offsets = [14, 0], sizes = [2, 96], strides = [1, 1]} : vector<16x192xf32> to vector<2x96xf32>
    %434 = vector.extract_strided_slice %6 {offsets = [0, 96], sizes = [2, 96], strides = [1, 1]} : vector<16x192xf32> to vector<2x96xf32>
    %cst_66 = arith.constant dense<0.000000e+00> : vector<2x96xf32>
    %435 = tpu.matmul %406, %9, %cst_66 {dimension_numbers = #tpu.dot_dimension_numbers<[1], [0], [0], [1], [0, 0, 1, 1], [], []>} : vector<2x32xf32>, vector<32x96xf32>, vector<2x96xf32> -> vector<2x96xf32>
    %436 = vector.broadcast %11 : vector<1x96xf32> to vector<2x96xf32>
    %437 = arith.addf %435, %436 : vector<2x96xf32>
    %cst_67 = arith.constant dense<0.000000e+00> : vector<2x96xf32>
    %438 = tpu.matmul %432, %10, %cst_67 {dimension_numbers = #tpu.dot_dimension_numbers<[1], [0], [0], [1], [0, 0, 1, 1], [], []>} : vector<2x32xf32>, vector<32x96xf32>, vector<2x96xf32> -> vector<2x96xf32>
    %439 = vector.broadcast %12 : vector<1x96xf32> to vector<2x96xf32>
    %440 = arith.addf %438, %439 : vector<2x96xf32>
    %441 = vector.extract_strided_slice %433 {offsets = [0, 0], sizes = [2, 32], strides = [1, 1]} : vector<2x96xf32> to vector<2x32xf32>
    %442 = vector.extract_strided_slice %437 {offsets = [0, 0], sizes = [2, 32], strides = [1, 1]} : vector<2x96xf32> to vector<2x32xf32>
    %443 = arith.addf %441, %442 : vector<2x32xf32>
    %444 = arith.negf %443 : vector<2x32xf32>
    %445 = math.exp %444 : vector<2x32xf32>
    %cst_68 = arith.constant 1.000000e+00 : f32
    %446 = vector.broadcast %cst_68 : f32 to vector<2x32xf32>
    %447 = arith.addf %446, %445 : vector<2x32xf32>
    %448 = arith.divf %446, %447 : vector<2x32xf32>
    %449 = vector.extract_strided_slice %433 {offsets = [0, 32], sizes = [2, 32], strides = [1, 1]} : vector<2x96xf32> to vector<2x32xf32>
    %450 = vector.extract_strided_slice %437 {offsets = [0, 32], sizes = [2, 32], strides = [1, 1]} : vector<2x96xf32> to vector<2x32xf32>
    %451 = arith.addf %449, %450 : vector<2x32xf32>
    %452 = arith.negf %451 : vector<2x32xf32>
    %453 = math.exp %452 : vector<2x32xf32>
    %cst_69 = arith.constant 1.000000e+00 : f32
    %454 = vector.broadcast %cst_69 : f32 to vector<2x32xf32>
    %455 = arith.addf %454, %453 : vector<2x32xf32>
    %456 = arith.divf %454, %455 : vector<2x32xf32>
    %457 = vector.extract_strided_slice %433 {offsets = [0, 64], sizes = [2, 32], strides = [1, 1]} : vector<2x96xf32> to vector<2x32xf32>
    %458 = vector.extract_strided_slice %437 {offsets = [0, 64], sizes = [2, 32], strides = [1, 1]} : vector<2x96xf32> to vector<2x32xf32>
    %459 = arith.mulf %448, %458 : vector<2x32xf32>
    %460 = arith.addf %457, %459 : vector<2x32xf32>
    %461 = math.tanh %460 : vector<2x32xf32>
    %cst_70 = arith.constant 1.000000e+00 : f32
    %462 = vector.broadcast %cst_70 : f32 to vector<2x32xf32>
    %463 = arith.subf %462, %456 : vector<2x32xf32>
    %464 = arith.mulf %463, %461 : vector<2x32xf32>
    %465 = arith.mulf %456, %406 : vector<2x32xf32>
    %466 = arith.addf %464, %465 : vector<2x32xf32>
    %467 = vector.extract_strided_slice %434 {offsets = [0, 0], sizes = [2, 32], strides = [1, 1]} : vector<2x96xf32> to vector<2x32xf32>
    %468 = vector.extract_strided_slice %440 {offsets = [0, 0], sizes = [2, 32], strides = [1, 1]} : vector<2x96xf32> to vector<2x32xf32>
    %469 = arith.addf %467, %468 : vector<2x32xf32>
    %470 = arith.negf %469 : vector<2x32xf32>
    %471 = math.exp %470 : vector<2x32xf32>
    %cst_71 = arith.constant 1.000000e+00 : f32
    %472 = vector.broadcast %cst_71 : f32 to vector<2x32xf32>
    %473 = arith.addf %472, %471 : vector<2x32xf32>
    %474 = arith.divf %472, %473 : vector<2x32xf32>
    %475 = vector.extract_strided_slice %434 {offsets = [0, 32], sizes = [2, 32], strides = [1, 1]} : vector<2x96xf32> to vector<2x32xf32>
    %476 = vector.extract_strided_slice %440 {offsets = [0, 32], sizes = [2, 32], strides = [1, 1]} : vector<2x96xf32> to vector<2x32xf32>
    %477 = arith.addf %475, %476 : vector<2x32xf32>
    %478 = arith.negf %477 : vector<2x32xf32>
    %479 = math.exp %478 : vector<2x32xf32>
    %cst_72 = arith.constant 1.000000e+00 : f32
    %480 = vector.broadcast %cst_72 : f32 to vector<2x32xf32>
    %481 = arith.addf %480, %479 : vector<2x32xf32>
    %482 = arith.divf %480, %481 : vector<2x32xf32>
    %483 = vector.extract_strided_slice %434 {offsets = [0, 64], sizes = [2, 32], strides = [1, 1]} : vector<2x96xf32> to vector<2x32xf32>
    %484 = vector.extract_strided_slice %440 {offsets = [0, 64], sizes = [2, 32], strides = [1, 1]} : vector<2x96xf32> to vector<2x32xf32>
    %485 = arith.mulf %474, %484 : vector<2x32xf32>
    %486 = arith.addf %483, %485 : vector<2x32xf32>
    %487 = math.tanh %486 : vector<2x32xf32>
    %cst_73 = arith.constant 1.000000e+00 : f32
    %488 = vector.broadcast %cst_73 : f32 to vector<2x32xf32>
    %489 = arith.subf %488, %482 : vector<2x32xf32>
    %490 = arith.mulf %489, %487 : vector<2x32xf32>
    %491 = arith.mulf %482, %432 : vector<2x32xf32>
    %492 = arith.addf %490, %491 : vector<2x32xf32>
    %493 = tpu.concatenate %46, %106, %166, %226, %286, %346, %406, %466 in 0 : vector<2x32xf32>, vector<2x32xf32>, vector<2x32xf32>, vector<2x32xf32>, vector<2x32xf32>, vector<2x32xf32>, vector<2x32xf32>, vector<2x32xf32> -> vector<16x32xf32>
    %494 = tpu.concatenate %492, %432, %372, %312, %252, %192, %132, %72 in 0 : vector<2x32xf32>, vector<2x32xf32>, vector<2x32xf32>, vector<2x32xf32>, vector<2x32xf32>, vector<2x32xf32>, vector<2x32xf32>, vector<2x32xf32> -> vector<16x32xf32>
    %c0_74 = arith.constant 0 : index
    %c0_75 = arith.constant 0 : index
    %495 = vector.load %arg5[%c0_74, %c0_75] : memref<64x192xf32, #tpu.memory_space<vmem>>, vector<64x192xf32>
    %496 = vector.extract_strided_slice %495 {offsets = [0, 0], sizes = [32, 192], strides = [1, 1]} : vector<64x192xf32> to vector<32x192xf32>
    %cst_76 = arith.constant dense<0.000000e+00> : vector<16x192xf32>
    %497 = tpu.matmul %493, %496, %cst_76 {dimension_numbers = #tpu.dot_dimension_numbers<[1], [0], [0], [1], [0, 0, 1, 1], [], []>} : vector<16x32xf32>, vector<32x192xf32>, vector<16x192xf32> -> vector<16x192xf32>
    %498 = vector.extract_strided_slice %495 {offsets = [32, 0], sizes = [32, 192], strides = [1, 1]} : vector<64x192xf32> to vector<32x192xf32>
    %cst_77 = arith.constant dense<0.000000e+00> : vector<16x192xf32>
    %499 = tpu.matmul %494, %498, %cst_77 {dimension_numbers = #tpu.dot_dimension_numbers<[1], [0], [0], [1], [0, 0, 1, 1], [], []>} : vector<16x32xf32>, vector<32x192xf32>, vector<16x192xf32> -> vector<16x192xf32>
    %500 = arith.addf %497, %499 : vector<16x192xf32>
    %c0_78 = arith.constant 0 : index
    %c0_79 = arith.constant 0 : index
    %501 = vector.load %arg6[%c0_78, %c0_79] : memref<1x192xf32, #tpu.memory_space<vmem>>, vector<1x192xf32>
    %502 = vector.broadcast %501 : vector<1x192xf32> to vector<16x192xf32>
    %503 = arith.addf %500, %502 : vector<16x192xf32>
    %c0_80 = arith.constant 0 : index
    %c0_81 = arith.constant 0 : index
    %504 = vector.load %arg7[%c0_80, %c0_81] : memref<32x192xf32, #tpu.memory_space<vmem>>, vector<32x192xf32>
    %c0_82 = arith.constant 0 : index
    %c0_83 = arith.constant 0 : index
    %505 = vector.load %arg8[%c0_82, %c0_83] : memref<1x192xf32, #tpu.memory_space<vmem>>, vector<1x192xf32>
    %506 = vector.extract_strided_slice %504 {offsets = [0, 0], sizes = [32, 96], strides = [1, 1]} : vector<32x192xf32> to vector<32x96xf32>
    %507 = vector.extract_strided_slice %504 {offsets = [0, 96], sizes = [32, 96], strides = [1, 1]} : vector<32x192xf32> to vector<32x96xf32>
    %508 = vector.extract_strided_slice %505 {offsets = [0, 0], sizes = [1, 96], strides = [1, 1]} : vector<1x192xf32> to vector<1x96xf32>
    %509 = vector.extract_strided_slice %505 {offsets = [0, 96], sizes = [1, 96], strides = [1, 1]} : vector<1x192xf32> to vector<1x96xf32>
    %510 = vector.extract_strided_slice %503 {offsets = [0, 0], sizes = [2, 96], strides = [1, 1]} : vector<16x192xf32> to vector<2x96xf32>
    %511 = vector.extract_strided_slice %503 {offsets = [14, 96], sizes = [2, 96], strides = [1, 1]} : vector<16x192xf32> to vector<2x96xf32>
    %cst_84 = arith.constant dense<0.000000e+00> : vector<2x96xf32>
    %512 = tpu.matmul %0, %506, %cst_84 {dimension_numbers = #tpu.dot_dimension_numbers<[1], [0], [0], [1], [0, 0, 1, 1], [], []>} : vector<2x32xf32>, vector<32x96xf32>, vector<2x96xf32> -> vector<2x96xf32>
    %513 = vector.broadcast %508 : vector<1x96xf32> to vector<2x96xf32>
    %514 = arith.addf %512, %513 : vector<2x96xf32>
    %cst_85 = arith.constant dense<0.000000e+00> : vector<2x96xf32>
    %515 = tpu.matmul %0, %507, %cst_85 {dimension_numbers = #tpu.dot_dimension_numbers<[1], [0], [0], [1], [0, 0, 1, 1], [], []>} : vector<2x32xf32>, vector<32x96xf32>, vector<2x96xf32> -> vector<2x96xf32>
    %516 = vector.broadcast %509 : vector<1x96xf32> to vector<2x96xf32>
    %517 = arith.addf %515, %516 : vector<2x96xf32>
    %518 = vector.extract_strided_slice %510 {offsets = [0, 0], sizes = [2, 32], strides = [1, 1]} : vector<2x96xf32> to vector<2x32xf32>
    %519 = vector.extract_strided_slice %514 {offsets = [0, 0], sizes = [2, 32], strides = [1, 1]} : vector<2x96xf32> to vector<2x32xf32>
    %520 = arith.addf %518, %519 : vector<2x32xf32>
    %521 = arith.negf %520 : vector<2x32xf32>
    %522 = math.exp %521 : vector<2x32xf32>
    %cst_86 = arith.constant 1.000000e+00 : f32
    %523 = vector.broadcast %cst_86 : f32 to vector<2x32xf32>
    %524 = arith.addf %523, %522 : vector<2x32xf32>
    %525 = arith.divf %523, %524 : vector<2x32xf32>
    %526 = vector.extract_strided_slice %510 {offsets = [0, 32], sizes = [2, 32], strides = [1, 1]} : vector<2x96xf32> to vector<2x32xf32>
    %527 = vector.extract_strided_slice %514 {offsets = [0, 32], sizes = [2, 32], strides = [1, 1]} : vector<2x96xf32> to vector<2x32xf32>
    %528 = arith.addf %526, %527 : vector<2x32xf32>
    %529 = arith.negf %528 : vector<2x32xf32>
    %530 = math.exp %529 : vector<2x32xf32>
    %cst_87 = arith.constant 1.000000e+00 : f32
    %531 = vector.broadcast %cst_87 : f32 to vector<2x32xf32>
    %532 = arith.addf %531, %530 : vector<2x32xf32>
    %533 = arith.divf %531, %532 : vector<2x32xf32>
    %534 = vector.extract_strided_slice %510 {offsets = [0, 64], sizes = [2, 32], strides = [1, 1]} : vector<2x96xf32> to vector<2x32xf32>
    %535 = vector.extract_strided_slice %514 {offsets = [0, 64], sizes = [2, 32], strides = [1, 1]} : vector<2x96xf32> to vector<2x32xf32>
    %536 = arith.mulf %525, %535 : vector<2x32xf32>
    %537 = arith.addf %534, %536 : vector<2x32xf32>
    %538 = math.tanh %537 : vector<2x32xf32>
    %cst_88 = arith.constant 1.000000e+00 : f32
    %539 = vector.broadcast %cst_88 : f32 to vector<2x32xf32>
    %540 = arith.subf %539, %533 : vector<2x32xf32>
    %541 = arith.mulf %540, %538 : vector<2x32xf32>
    %542 = arith.mulf %533, %0 : vector<2x32xf32>
    %543 = arith.addf %541, %542 : vector<2x32xf32>
    %544 = vector.extract_strided_slice %511 {offsets = [0, 0], sizes = [2, 32], strides = [1, 1]} : vector<2x96xf32> to vector<2x32xf32>
    %545 = vector.extract_strided_slice %517 {offsets = [0, 0], sizes = [2, 32], strides = [1, 1]} : vector<2x96xf32> to vector<2x32xf32>
    %546 = arith.addf %544, %545 : vector<2x32xf32>
    %547 = arith.negf %546 : vector<2x32xf32>
    %548 = math.exp %547 : vector<2x32xf32>
    %cst_89 = arith.constant 1.000000e+00 : f32
    %549 = vector.broadcast %cst_89 : f32 to vector<2x32xf32>
    %550 = arith.addf %549, %548 : vector<2x32xf32>
    %551 = arith.divf %549, %550 : vector<2x32xf32>
    %552 = vector.extract_strided_slice %511 {offsets = [0, 32], sizes = [2, 32], strides = [1, 1]} : vector<2x96xf32> to vector<2x32xf32>
    %553 = vector.extract_strided_slice %517 {offsets = [0, 32], sizes = [2, 32], strides = [1, 1]} : vector<2x96xf32> to vector<2x32xf32>
    %554 = arith.addf %552, %553 : vector<2x32xf32>
    %555 = arith.negf %554 : vector<2x32xf32>
    %556 = math.exp %555 : vector<2x32xf32>
    %cst_90 = arith.constant 1.000000e+00 : f32
    %557 = vector.broadcast %cst_90 : f32 to vector<2x32xf32>
    %558 = arith.addf %557, %556 : vector<2x32xf32>
    %559 = arith.divf %557, %558 : vector<2x32xf32>
    %560 = vector.extract_strided_slice %511 {offsets = [0, 64], sizes = [2, 32], strides = [1, 1]} : vector<2x96xf32> to vector<2x32xf32>
    %561 = vector.extract_strided_slice %517 {offsets = [0, 64], sizes = [2, 32], strides = [1, 1]} : vector<2x96xf32> to vector<2x32xf32>
    %562 = arith.mulf %551, %561 : vector<2x32xf32>
    %563 = arith.addf %560, %562 : vector<2x32xf32>
    %564 = math.tanh %563 : vector<2x32xf32>
    %cst_91 = arith.constant 1.000000e+00 : f32
    %565 = vector.broadcast %cst_91 : f32 to vector<2x32xf32>
    %566 = arith.subf %565, %559 : vector<2x32xf32>
    %567 = arith.mulf %566, %564 : vector<2x32xf32>
    %568 = arith.mulf %559, %0 : vector<2x32xf32>
    %569 = arith.addf %567, %568 : vector<2x32xf32>
    %570 = vector.extract_strided_slice %503 {offsets = [2, 0], sizes = [2, 96], strides = [1, 1]} : vector<16x192xf32> to vector<2x96xf32>
    %571 = vector.extract_strided_slice %503 {offsets = [12, 96], sizes = [2, 96], strides = [1, 1]} : vector<16x192xf32> to vector<2x96xf32>
    %cst_92 = arith.constant dense<0.000000e+00> : vector<2x96xf32>
    %572 = tpu.matmul %543, %506, %cst_92 {dimension_numbers = #tpu.dot_dimension_numbers<[1], [0], [0], [1], [0, 0, 1, 1], [], []>} : vector<2x32xf32>, vector<32x96xf32>, vector<2x96xf32> -> vector<2x96xf32>
    %573 = vector.broadcast %508 : vector<1x96xf32> to vector<2x96xf32>
    %574 = arith.addf %572, %573 : vector<2x96xf32>
    %cst_93 = arith.constant dense<0.000000e+00> : vector<2x96xf32>
    %575 = tpu.matmul %569, %507, %cst_93 {dimension_numbers = #tpu.dot_dimension_numbers<[1], [0], [0], [1], [0, 0, 1, 1], [], []>} : vector<2x32xf32>, vector<32x96xf32>, vector<2x96xf32> -> vector<2x96xf32>
    %576 = vector.broadcast %509 : vector<1x96xf32> to vector<2x96xf32>
    %577 = arith.addf %575, %576 : vector<2x96xf32>
    %578 = vector.extract_strided_slice %570 {offsets = [0, 0], sizes = [2, 32], strides = [1, 1]} : vector<2x96xf32> to vector<2x32xf32>
    %579 = vector.extract_strided_slice %574 {offsets = [0, 0], sizes = [2, 32], strides = [1, 1]} : vector<2x96xf32> to vector<2x32xf32>
    %580 = arith.addf %578, %579 : vector<2x32xf32>
    %581 = arith.negf %580 : vector<2x32xf32>
    %582 = math.exp %581 : vector<2x32xf32>
    %cst_94 = arith.constant 1.000000e+00 : f32
    %583 = vector.broadcast %cst_94 : f32 to vector<2x32xf32>
    %584 = arith.addf %583, %582 : vector<2x32xf32>
    %585 = arith.divf %583, %584 : vector<2x32xf32>
    %586 = vector.extract_strided_slice %570 {offsets = [0, 32], sizes = [2, 32], strides = [1, 1]} : vector<2x96xf32> to vector<2x32xf32>
    %587 = vector.extract_strided_slice %574 {offsets = [0, 32], sizes = [2, 32], strides = [1, 1]} : vector<2x96xf32> to vector<2x32xf32>
    %588 = arith.addf %586, %587 : vector<2x32xf32>
    %589 = arith.negf %588 : vector<2x32xf32>
    %590 = math.exp %589 : vector<2x32xf32>
    %cst_95 = arith.constant 1.000000e+00 : f32
    %591 = vector.broadcast %cst_95 : f32 to vector<2x32xf32>
    %592 = arith.addf %591, %590 : vector<2x32xf32>
    %593 = arith.divf %591, %592 : vector<2x32xf32>
    %594 = vector.extract_strided_slice %570 {offsets = [0, 64], sizes = [2, 32], strides = [1, 1]} : vector<2x96xf32> to vector<2x32xf32>
    %595 = vector.extract_strided_slice %574 {offsets = [0, 64], sizes = [2, 32], strides = [1, 1]} : vector<2x96xf32> to vector<2x32xf32>
    %596 = arith.mulf %585, %595 : vector<2x32xf32>
    %597 = arith.addf %594, %596 : vector<2x32xf32>
    %598 = math.tanh %597 : vector<2x32xf32>
    %cst_96 = arith.constant 1.000000e+00 : f32
    %599 = vector.broadcast %cst_96 : f32 to vector<2x32xf32>
    %600 = arith.subf %599, %593 : vector<2x32xf32>
    %601 = arith.mulf %600, %598 : vector<2x32xf32>
    %602 = arith.mulf %593, %543 : vector<2x32xf32>
    %603 = arith.addf %601, %602 : vector<2x32xf32>
    %604 = vector.extract_strided_slice %571 {offsets = [0, 0], sizes = [2, 32], strides = [1, 1]} : vector<2x96xf32> to vector<2x32xf32>
    %605 = vector.extract_strided_slice %577 {offsets = [0, 0], sizes = [2, 32], strides = [1, 1]} : vector<2x96xf32> to vector<2x32xf32>
    %606 = arith.addf %604, %605 : vector<2x32xf32>
    %607 = arith.negf %606 : vector<2x32xf32>
    %608 = math.exp %607 : vector<2x32xf32>
    %cst_97 = arith.constant 1.000000e+00 : f32
    %609 = vector.broadcast %cst_97 : f32 to vector<2x32xf32>
    %610 = arith.addf %609, %608 : vector<2x32xf32>
    %611 = arith.divf %609, %610 : vector<2x32xf32>
    %612 = vector.extract_strided_slice %571 {offsets = [0, 32], sizes = [2, 32], strides = [1, 1]} : vector<2x96xf32> to vector<2x32xf32>
    %613 = vector.extract_strided_slice %577 {offsets = [0, 32], sizes = [2, 32], strides = [1, 1]} : vector<2x96xf32> to vector<2x32xf32>
    %614 = arith.addf %612, %613 : vector<2x32xf32>
    %615 = arith.negf %614 : vector<2x32xf32>
    %616 = math.exp %615 : vector<2x32xf32>
    %cst_98 = arith.constant 1.000000e+00 : f32
    %617 = vector.broadcast %cst_98 : f32 to vector<2x32xf32>
    %618 = arith.addf %617, %616 : vector<2x32xf32>
    %619 = arith.divf %617, %618 : vector<2x32xf32>
    %620 = vector.extract_strided_slice %571 {offsets = [0, 64], sizes = [2, 32], strides = [1, 1]} : vector<2x96xf32> to vector<2x32xf32>
    %621 = vector.extract_strided_slice %577 {offsets = [0, 64], sizes = [2, 32], strides = [1, 1]} : vector<2x96xf32> to vector<2x32xf32>
    %622 = arith.mulf %611, %621 : vector<2x32xf32>
    %623 = arith.addf %620, %622 : vector<2x32xf32>
    %624 = math.tanh %623 : vector<2x32xf32>
    %cst_99 = arith.constant 1.000000e+00 : f32
    %625 = vector.broadcast %cst_99 : f32 to vector<2x32xf32>
    %626 = arith.subf %625, %619 : vector<2x32xf32>
    %627 = arith.mulf %626, %624 : vector<2x32xf32>
    %628 = arith.mulf %619, %569 : vector<2x32xf32>
    %629 = arith.addf %627, %628 : vector<2x32xf32>
    %630 = vector.extract_strided_slice %503 {offsets = [4, 0], sizes = [2, 96], strides = [1, 1]} : vector<16x192xf32> to vector<2x96xf32>
    %631 = vector.extract_strided_slice %503 {offsets = [10, 96], sizes = [2, 96], strides = [1, 1]} : vector<16x192xf32> to vector<2x96xf32>
    %cst_100 = arith.constant dense<0.000000e+00> : vector<2x96xf32>
    %632 = tpu.matmul %603, %506, %cst_100 {dimension_numbers = #tpu.dot_dimension_numbers<[1], [0], [0], [1], [0, 0, 1, 1], [], []>} : vector<2x32xf32>, vector<32x96xf32>, vector<2x96xf32> -> vector<2x96xf32>
    %633 = vector.broadcast %508 : vector<1x96xf32> to vector<2x96xf32>
    %634 = arith.addf %632, %633 : vector<2x96xf32>
    %cst_101 = arith.constant dense<0.000000e+00> : vector<2x96xf32>
    %635 = tpu.matmul %629, %507, %cst_101 {dimension_numbers = #tpu.dot_dimension_numbers<[1], [0], [0], [1], [0, 0, 1, 1], [], []>} : vector<2x32xf32>, vector<32x96xf32>, vector<2x96xf32> -> vector<2x96xf32>
    %636 = vector.broadcast %509 : vector<1x96xf32> to vector<2x96xf32>
    %637 = arith.addf %635, %636 : vector<2x96xf32>
    %638 = vector.extract_strided_slice %630 {offsets = [0, 0], sizes = [2, 32], strides = [1, 1]} : vector<2x96xf32> to vector<2x32xf32>
    %639 = vector.extract_strided_slice %634 {offsets = [0, 0], sizes = [2, 32], strides = [1, 1]} : vector<2x96xf32> to vector<2x32xf32>
    %640 = arith.addf %638, %639 : vector<2x32xf32>
    %641 = arith.negf %640 : vector<2x32xf32>
    %642 = math.exp %641 : vector<2x32xf32>
    %cst_102 = arith.constant 1.000000e+00 : f32
    %643 = vector.broadcast %cst_102 : f32 to vector<2x32xf32>
    %644 = arith.addf %643, %642 : vector<2x32xf32>
    %645 = arith.divf %643, %644 : vector<2x32xf32>
    %646 = vector.extract_strided_slice %630 {offsets = [0, 32], sizes = [2, 32], strides = [1, 1]} : vector<2x96xf32> to vector<2x32xf32>
    %647 = vector.extract_strided_slice %634 {offsets = [0, 32], sizes = [2, 32], strides = [1, 1]} : vector<2x96xf32> to vector<2x32xf32>
    %648 = arith.addf %646, %647 : vector<2x32xf32>
    %649 = arith.negf %648 : vector<2x32xf32>
    %650 = math.exp %649 : vector<2x32xf32>
    %cst_103 = arith.constant 1.000000e+00 : f32
    %651 = vector.broadcast %cst_103 : f32 to vector<2x32xf32>
    %652 = arith.addf %651, %650 : vector<2x32xf32>
    %653 = arith.divf %651, %652 : vector<2x32xf32>
    %654 = vector.extract_strided_slice %630 {offsets = [0, 64], sizes = [2, 32], strides = [1, 1]} : vector<2x96xf32> to vector<2x32xf32>
    %655 = vector.extract_strided_slice %634 {offsets = [0, 64], sizes = [2, 32], strides = [1, 1]} : vector<2x96xf32> to vector<2x32xf32>
    %656 = arith.mulf %645, %655 : vector<2x32xf32>
    %657 = arith.addf %654, %656 : vector<2x32xf32>
    %658 = math.tanh %657 : vector<2x32xf32>
    %cst_104 = arith.constant 1.000000e+00 : f32
    %659 = vector.broadcast %cst_104 : f32 to vector<2x32xf32>
    %660 = arith.subf %659, %653 : vector<2x32xf32>
    %661 = arith.mulf %660, %658 : vector<2x32xf32>
    %662 = arith.mulf %653, %603 : vector<2x32xf32>
    %663 = arith.addf %661, %662 : vector<2x32xf32>
    %664 = vector.extract_strided_slice %631 {offsets = [0, 0], sizes = [2, 32], strides = [1, 1]} : vector<2x96xf32> to vector<2x32xf32>
    %665 = vector.extract_strided_slice %637 {offsets = [0, 0], sizes = [2, 32], strides = [1, 1]} : vector<2x96xf32> to vector<2x32xf32>
    %666 = arith.addf %664, %665 : vector<2x32xf32>
    %667 = arith.negf %666 : vector<2x32xf32>
    %668 = math.exp %667 : vector<2x32xf32>
    %cst_105 = arith.constant 1.000000e+00 : f32
    %669 = vector.broadcast %cst_105 : f32 to vector<2x32xf32>
    %670 = arith.addf %669, %668 : vector<2x32xf32>
    %671 = arith.divf %669, %670 : vector<2x32xf32>
    %672 = vector.extract_strided_slice %631 {offsets = [0, 32], sizes = [2, 32], strides = [1, 1]} : vector<2x96xf32> to vector<2x32xf32>
    %673 = vector.extract_strided_slice %637 {offsets = [0, 32], sizes = [2, 32], strides = [1, 1]} : vector<2x96xf32> to vector<2x32xf32>
    %674 = arith.addf %672, %673 : vector<2x32xf32>
    %675 = arith.negf %674 : vector<2x32xf32>
    %676 = math.exp %675 : vector<2x32xf32>
    %cst_106 = arith.constant 1.000000e+00 : f32
    %677 = vector.broadcast %cst_106 : f32 to vector<2x32xf32>
    %678 = arith.addf %677, %676 : vector<2x32xf32>
    %679 = arith.divf %677, %678 : vector<2x32xf32>
    %680 = vector.extract_strided_slice %631 {offsets = [0, 64], sizes = [2, 32], strides = [1, 1]} : vector<2x96xf32> to vector<2x32xf32>
    %681 = vector.extract_strided_slice %637 {offsets = [0, 64], sizes = [2, 32], strides = [1, 1]} : vector<2x96xf32> to vector<2x32xf32>
    %682 = arith.mulf %671, %681 : vector<2x32xf32>
    %683 = arith.addf %680, %682 : vector<2x32xf32>
    %684 = math.tanh %683 : vector<2x32xf32>
    %cst_107 = arith.constant 1.000000e+00 : f32
    %685 = vector.broadcast %cst_107 : f32 to vector<2x32xf32>
    %686 = arith.subf %685, %679 : vector<2x32xf32>
    %687 = arith.mulf %686, %684 : vector<2x32xf32>
    %688 = arith.mulf %679, %629 : vector<2x32xf32>
    %689 = arith.addf %687, %688 : vector<2x32xf32>
    %690 = vector.extract_strided_slice %503 {offsets = [6, 0], sizes = [2, 96], strides = [1, 1]} : vector<16x192xf32> to vector<2x96xf32>
    %691 = vector.extract_strided_slice %503 {offsets = [8, 96], sizes = [2, 96], strides = [1, 1]} : vector<16x192xf32> to vector<2x96xf32>
    %cst_108 = arith.constant dense<0.000000e+00> : vector<2x96xf32>
    %692 = tpu.matmul %663, %506, %cst_108 {dimension_numbers = #tpu.dot_dimension_numbers<[1], [0], [0], [1], [0, 0, 1, 1], [], []>} : vector<2x32xf32>, vector<32x96xf32>, vector<2x96xf32> -> vector<2x96xf32>
    %693 = vector.broadcast %508 : vector<1x96xf32> to vector<2x96xf32>
    %694 = arith.addf %692, %693 : vector<2x96xf32>
    %cst_109 = arith.constant dense<0.000000e+00> : vector<2x96xf32>
    %695 = tpu.matmul %689, %507, %cst_109 {dimension_numbers = #tpu.dot_dimension_numbers<[1], [0], [0], [1], [0, 0, 1, 1], [], []>} : vector<2x32xf32>, vector<32x96xf32>, vector<2x96xf32> -> vector<2x96xf32>
    %696 = vector.broadcast %509 : vector<1x96xf32> to vector<2x96xf32>
    %697 = arith.addf %695, %696 : vector<2x96xf32>
    %698 = vector.extract_strided_slice %690 {offsets = [0, 0], sizes = [2, 32], strides = [1, 1]} : vector<2x96xf32> to vector<2x32xf32>
    %699 = vector.extract_strided_slice %694 {offsets = [0, 0], sizes = [2, 32], strides = [1, 1]} : vector<2x96xf32> to vector<2x32xf32>
    %700 = arith.addf %698, %699 : vector<2x32xf32>
    %701 = arith.negf %700 : vector<2x32xf32>
    %702 = math.exp %701 : vector<2x32xf32>
    %cst_110 = arith.constant 1.000000e+00 : f32
    %703 = vector.broadcast %cst_110 : f32 to vector<2x32xf32>
    %704 = arith.addf %703, %702 : vector<2x32xf32>
    %705 = arith.divf %703, %704 : vector<2x32xf32>
    %706 = vector.extract_strided_slice %690 {offsets = [0, 32], sizes = [2, 32], strides = [1, 1]} : vector<2x96xf32> to vector<2x32xf32>
    %707 = vector.extract_strided_slice %694 {offsets = [0, 32], sizes = [2, 32], strides = [1, 1]} : vector<2x96xf32> to vector<2x32xf32>
    %708 = arith.addf %706, %707 : vector<2x32xf32>
    %709 = arith.negf %708 : vector<2x32xf32>
    %710 = math.exp %709 : vector<2x32xf32>
    %cst_111 = arith.constant 1.000000e+00 : f32
    %711 = vector.broadcast %cst_111 : f32 to vector<2x32xf32>
    %712 = arith.addf %711, %710 : vector<2x32xf32>
    %713 = arith.divf %711, %712 : vector<2x32xf32>
    %714 = vector.extract_strided_slice %690 {offsets = [0, 64], sizes = [2, 32], strides = [1, 1]} : vector<2x96xf32> to vector<2x32xf32>
    %715 = vector.extract_strided_slice %694 {offsets = [0, 64], sizes = [2, 32], strides = [1, 1]} : vector<2x96xf32> to vector<2x32xf32>
    %716 = arith.mulf %705, %715 : vector<2x32xf32>
    %717 = arith.addf %714, %716 : vector<2x32xf32>
    %718 = math.tanh %717 : vector<2x32xf32>
    %cst_112 = arith.constant 1.000000e+00 : f32
    %719 = vector.broadcast %cst_112 : f32 to vector<2x32xf32>
    %720 = arith.subf %719, %713 : vector<2x32xf32>
    %721 = arith.mulf %720, %718 : vector<2x32xf32>
    %722 = arith.mulf %713, %663 : vector<2x32xf32>
    %723 = arith.addf %721, %722 : vector<2x32xf32>
    %724 = vector.extract_strided_slice %691 {offsets = [0, 0], sizes = [2, 32], strides = [1, 1]} : vector<2x96xf32> to vector<2x32xf32>
    %725 = vector.extract_strided_slice %697 {offsets = [0, 0], sizes = [2, 32], strides = [1, 1]} : vector<2x96xf32> to vector<2x32xf32>
    %726 = arith.addf %724, %725 : vector<2x32xf32>
    %727 = arith.negf %726 : vector<2x32xf32>
    %728 = math.exp %727 : vector<2x32xf32>
    %cst_113 = arith.constant 1.000000e+00 : f32
    %729 = vector.broadcast %cst_113 : f32 to vector<2x32xf32>
    %730 = arith.addf %729, %728 : vector<2x32xf32>
    %731 = arith.divf %729, %730 : vector<2x32xf32>
    %732 = vector.extract_strided_slice %691 {offsets = [0, 32], sizes = [2, 32], strides = [1, 1]} : vector<2x96xf32> to vector<2x32xf32>
    %733 = vector.extract_strided_slice %697 {offsets = [0, 32], sizes = [2, 32], strides = [1, 1]} : vector<2x96xf32> to vector<2x32xf32>
    %734 = arith.addf %732, %733 : vector<2x32xf32>
    %735 = arith.negf %734 : vector<2x32xf32>
    %736 = math.exp %735 : vector<2x32xf32>
    %cst_114 = arith.constant 1.000000e+00 : f32
    %737 = vector.broadcast %cst_114 : f32 to vector<2x32xf32>
    %738 = arith.addf %737, %736 : vector<2x32xf32>
    %739 = arith.divf %737, %738 : vector<2x32xf32>
    %740 = vector.extract_strided_slice %691 {offsets = [0, 64], sizes = [2, 32], strides = [1, 1]} : vector<2x96xf32> to vector<2x32xf32>
    %741 = vector.extract_strided_slice %697 {offsets = [0, 64], sizes = [2, 32], strides = [1, 1]} : vector<2x96xf32> to vector<2x32xf32>
    %742 = arith.mulf %731, %741 : vector<2x32xf32>
    %743 = arith.addf %740, %742 : vector<2x32xf32>
    %744 = math.tanh %743 : vector<2x32xf32>
    %cst_115 = arith.constant 1.000000e+00 : f32
    %745 = vector.broadcast %cst_115 : f32 to vector<2x32xf32>
    %746 = arith.subf %745, %739 : vector<2x32xf32>
    %747 = arith.mulf %746, %744 : vector<2x32xf32>
    %748 = arith.mulf %739, %689 : vector<2x32xf32>
    %749 = arith.addf %747, %748 : vector<2x32xf32>
    %750 = vector.extract_strided_slice %503 {offsets = [8, 0], sizes = [2, 96], strides = [1, 1]} : vector<16x192xf32> to vector<2x96xf32>
    %751 = vector.extract_strided_slice %503 {offsets = [6, 96], sizes = [2, 96], strides = [1, 1]} : vector<16x192xf32> to vector<2x96xf32>
    %cst_116 = arith.constant dense<0.000000e+00> : vector<2x96xf32>
    %752 = tpu.matmul %723, %506, %cst_116 {dimension_numbers = #tpu.dot_dimension_numbers<[1], [0], [0], [1], [0, 0, 1, 1], [], []>} : vector<2x32xf32>, vector<32x96xf32>, vector<2x96xf32> -> vector<2x96xf32>
    %753 = vector.broadcast %508 : vector<1x96xf32> to vector<2x96xf32>
    %754 = arith.addf %752, %753 : vector<2x96xf32>
    %cst_117 = arith.constant dense<0.000000e+00> : vector<2x96xf32>
    %755 = tpu.matmul %749, %507, %cst_117 {dimension_numbers = #tpu.dot_dimension_numbers<[1], [0], [0], [1], [0, 0, 1, 1], [], []>} : vector<2x32xf32>, vector<32x96xf32>, vector<2x96xf32> -> vector<2x96xf32>
    %756 = vector.broadcast %509 : vector<1x96xf32> to vector<2x96xf32>
    %757 = arith.addf %755, %756 : vector<2x96xf32>
    %758 = vector.extract_strided_slice %750 {offsets = [0, 0], sizes = [2, 32], strides = [1, 1]} : vector<2x96xf32> to vector<2x32xf32>
    %759 = vector.extract_strided_slice %754 {offsets = [0, 0], sizes = [2, 32], strides = [1, 1]} : vector<2x96xf32> to vector<2x32xf32>
    %760 = arith.addf %758, %759 : vector<2x32xf32>
    %761 = arith.negf %760 : vector<2x32xf32>
    %762 = math.exp %761 : vector<2x32xf32>
    %cst_118 = arith.constant 1.000000e+00 : f32
    %763 = vector.broadcast %cst_118 : f32 to vector<2x32xf32>
    %764 = arith.addf %763, %762 : vector<2x32xf32>
    %765 = arith.divf %763, %764 : vector<2x32xf32>
    %766 = vector.extract_strided_slice %750 {offsets = [0, 32], sizes = [2, 32], strides = [1, 1]} : vector<2x96xf32> to vector<2x32xf32>
    %767 = vector.extract_strided_slice %754 {offsets = [0, 32], sizes = [2, 32], strides = [1, 1]} : vector<2x96xf32> to vector<2x32xf32>
    %768 = arith.addf %766, %767 : vector<2x32xf32>
    %769 = arith.negf %768 : vector<2x32xf32>
    %770 = math.exp %769 : vector<2x32xf32>
    %cst_119 = arith.constant 1.000000e+00 : f32
    %771 = vector.broadcast %cst_119 : f32 to vector<2x32xf32>
    %772 = arith.addf %771, %770 : vector<2x32xf32>
    %773 = arith.divf %771, %772 : vector<2x32xf32>
    %774 = vector.extract_strided_slice %750 {offsets = [0, 64], sizes = [2, 32], strides = [1, 1]} : vector<2x96xf32> to vector<2x32xf32>
    %775 = vector.extract_strided_slice %754 {offsets = [0, 64], sizes = [2, 32], strides = [1, 1]} : vector<2x96xf32> to vector<2x32xf32>
    %776 = arith.mulf %765, %775 : vector<2x32xf32>
    %777 = arith.addf %774, %776 : vector<2x32xf32>
    %778 = math.tanh %777 : vector<2x32xf32>
    %cst_120 = arith.constant 1.000000e+00 : f32
    %779 = vector.broadcast %cst_120 : f32 to vector<2x32xf32>
    %780 = arith.subf %779, %773 : vector<2x32xf32>
    %781 = arith.mulf %780, %778 : vector<2x32xf32>
    %782 = arith.mulf %773, %723 : vector<2x32xf32>
    %783 = arith.addf %781, %782 : vector<2x32xf32>
    %784 = vector.extract_strided_slice %751 {offsets = [0, 0], sizes = [2, 32], strides = [1, 1]} : vector<2x96xf32> to vector<2x32xf32>
    %785 = vector.extract_strided_slice %757 {offsets = [0, 0], sizes = [2, 32], strides = [1, 1]} : vector<2x96xf32> to vector<2x32xf32>
    %786 = arith.addf %784, %785 : vector<2x32xf32>
    %787 = arith.negf %786 : vector<2x32xf32>
    %788 = math.exp %787 : vector<2x32xf32>
    %cst_121 = arith.constant 1.000000e+00 : f32
    %789 = vector.broadcast %cst_121 : f32 to vector<2x32xf32>
    %790 = arith.addf %789, %788 : vector<2x32xf32>
    %791 = arith.divf %789, %790 : vector<2x32xf32>
    %792 = vector.extract_strided_slice %751 {offsets = [0, 32], sizes = [2, 32], strides = [1, 1]} : vector<2x96xf32> to vector<2x32xf32>
    %793 = vector.extract_strided_slice %757 {offsets = [0, 32], sizes = [2, 32], strides = [1, 1]} : vector<2x96xf32> to vector<2x32xf32>
    %794 = arith.addf %792, %793 : vector<2x32xf32>
    %795 = arith.negf %794 : vector<2x32xf32>
    %796 = math.exp %795 : vector<2x32xf32>
    %cst_122 = arith.constant 1.000000e+00 : f32
    %797 = vector.broadcast %cst_122 : f32 to vector<2x32xf32>
    %798 = arith.addf %797, %796 : vector<2x32xf32>
    %799 = arith.divf %797, %798 : vector<2x32xf32>
    %800 = vector.extract_strided_slice %751 {offsets = [0, 64], sizes = [2, 32], strides = [1, 1]} : vector<2x96xf32> to vector<2x32xf32>
    %801 = vector.extract_strided_slice %757 {offsets = [0, 64], sizes = [2, 32], strides = [1, 1]} : vector<2x96xf32> to vector<2x32xf32>
    %802 = arith.mulf %791, %801 : vector<2x32xf32>
    %803 = arith.addf %800, %802 : vector<2x32xf32>
    %804 = math.tanh %803 : vector<2x32xf32>
    %cst_123 = arith.constant 1.000000e+00 : f32
    %805 = vector.broadcast %cst_123 : f32 to vector<2x32xf32>
    %806 = arith.subf %805, %799 : vector<2x32xf32>
    %807 = arith.mulf %806, %804 : vector<2x32xf32>
    %808 = arith.mulf %799, %749 : vector<2x32xf32>
    %809 = arith.addf %807, %808 : vector<2x32xf32>
    %810 = vector.extract_strided_slice %503 {offsets = [10, 0], sizes = [2, 96], strides = [1, 1]} : vector<16x192xf32> to vector<2x96xf32>
    %811 = vector.extract_strided_slice %503 {offsets = [4, 96], sizes = [2, 96], strides = [1, 1]} : vector<16x192xf32> to vector<2x96xf32>
    %cst_124 = arith.constant dense<0.000000e+00> : vector<2x96xf32>
    %812 = tpu.matmul %783, %506, %cst_124 {dimension_numbers = #tpu.dot_dimension_numbers<[1], [0], [0], [1], [0, 0, 1, 1], [], []>} : vector<2x32xf32>, vector<32x96xf32>, vector<2x96xf32> -> vector<2x96xf32>
    %813 = vector.broadcast %508 : vector<1x96xf32> to vector<2x96xf32>
    %814 = arith.addf %812, %813 : vector<2x96xf32>
    %cst_125 = arith.constant dense<0.000000e+00> : vector<2x96xf32>
    %815 = tpu.matmul %809, %507, %cst_125 {dimension_numbers = #tpu.dot_dimension_numbers<[1], [0], [0], [1], [0, 0, 1, 1], [], []>} : vector<2x32xf32>, vector<32x96xf32>, vector<2x96xf32> -> vector<2x96xf32>
    %816 = vector.broadcast %509 : vector<1x96xf32> to vector<2x96xf32>
    %817 = arith.addf %815, %816 : vector<2x96xf32>
    %818 = vector.extract_strided_slice %810 {offsets = [0, 0], sizes = [2, 32], strides = [1, 1]} : vector<2x96xf32> to vector<2x32xf32>
    %819 = vector.extract_strided_slice %814 {offsets = [0, 0], sizes = [2, 32], strides = [1, 1]} : vector<2x96xf32> to vector<2x32xf32>
    %820 = arith.addf %818, %819 : vector<2x32xf32>
    %821 = arith.negf %820 : vector<2x32xf32>
    %822 = math.exp %821 : vector<2x32xf32>
    %cst_126 = arith.constant 1.000000e+00 : f32
    %823 = vector.broadcast %cst_126 : f32 to vector<2x32xf32>
    %824 = arith.addf %823, %822 : vector<2x32xf32>
    %825 = arith.divf %823, %824 : vector<2x32xf32>
    %826 = vector.extract_strided_slice %810 {offsets = [0, 32], sizes = [2, 32], strides = [1, 1]} : vector<2x96xf32> to vector<2x32xf32>
    %827 = vector.extract_strided_slice %814 {offsets = [0, 32], sizes = [2, 32], strides = [1, 1]} : vector<2x96xf32> to vector<2x32xf32>
    %828 = arith.addf %826, %827 : vector<2x32xf32>
    %829 = arith.negf %828 : vector<2x32xf32>
    %830 = math.exp %829 : vector<2x32xf32>
    %cst_127 = arith.constant 1.000000e+00 : f32
    %831 = vector.broadcast %cst_127 : f32 to vector<2x32xf32>
    %832 = arith.addf %831, %830 : vector<2x32xf32>
    %833 = arith.divf %831, %832 : vector<2x32xf32>
    %834 = vector.extract_strided_slice %810 {offsets = [0, 64], sizes = [2, 32], strides = [1, 1]} : vector<2x96xf32> to vector<2x32xf32>
    %835 = vector.extract_strided_slice %814 {offsets = [0, 64], sizes = [2, 32], strides = [1, 1]} : vector<2x96xf32> to vector<2x32xf32>
    %836 = arith.mulf %825, %835 : vector<2x32xf32>
    %837 = arith.addf %834, %836 : vector<2x32xf32>
    %838 = math.tanh %837 : vector<2x32xf32>
    %cst_128 = arith.constant 1.000000e+00 : f32
    %839 = vector.broadcast %cst_128 : f32 to vector<2x32xf32>
    %840 = arith.subf %839, %833 : vector<2x32xf32>
    %841 = arith.mulf %840, %838 : vector<2x32xf32>
    %842 = arith.mulf %833, %783 : vector<2x32xf32>
    %843 = arith.addf %841, %842 : vector<2x32xf32>
    %844 = vector.extract_strided_slice %811 {offsets = [0, 0], sizes = [2, 32], strides = [1, 1]} : vector<2x96xf32> to vector<2x32xf32>
    %845 = vector.extract_strided_slice %817 {offsets = [0, 0], sizes = [2, 32], strides = [1, 1]} : vector<2x96xf32> to vector<2x32xf32>
    %846 = arith.addf %844, %845 : vector<2x32xf32>
    %847 = arith.negf %846 : vector<2x32xf32>
    %848 = math.exp %847 : vector<2x32xf32>
    %cst_129 = arith.constant 1.000000e+00 : f32
    %849 = vector.broadcast %cst_129 : f32 to vector<2x32xf32>
    %850 = arith.addf %849, %848 : vector<2x32xf32>
    %851 = arith.divf %849, %850 : vector<2x32xf32>
    %852 = vector.extract_strided_slice %811 {offsets = [0, 32], sizes = [2, 32], strides = [1, 1]} : vector<2x96xf32> to vector<2x32xf32>
    %853 = vector.extract_strided_slice %817 {offsets = [0, 32], sizes = [2, 32], strides = [1, 1]} : vector<2x96xf32> to vector<2x32xf32>
    %854 = arith.addf %852, %853 : vector<2x32xf32>
    %855 = arith.negf %854 : vector<2x32xf32>
    %856 = math.exp %855 : vector<2x32xf32>
    %cst_130 = arith.constant 1.000000e+00 : f32
    %857 = vector.broadcast %cst_130 : f32 to vector<2x32xf32>
    %858 = arith.addf %857, %856 : vector<2x32xf32>
    %859 = arith.divf %857, %858 : vector<2x32xf32>
    %860 = vector.extract_strided_slice %811 {offsets = [0, 64], sizes = [2, 32], strides = [1, 1]} : vector<2x96xf32> to vector<2x32xf32>
    %861 = vector.extract_strided_slice %817 {offsets = [0, 64], sizes = [2, 32], strides = [1, 1]} : vector<2x96xf32> to vector<2x32xf32>
    %862 = arith.mulf %851, %861 : vector<2x32xf32>
    %863 = arith.addf %860, %862 : vector<2x32xf32>
    %864 = math.tanh %863 : vector<2x32xf32>
    %cst_131 = arith.constant 1.000000e+00 : f32
    %865 = vector.broadcast %cst_131 : f32 to vector<2x32xf32>
    %866 = arith.subf %865, %859 : vector<2x32xf32>
    %867 = arith.mulf %866, %864 : vector<2x32xf32>
    %868 = arith.mulf %859, %809 : vector<2x32xf32>
    %869 = arith.addf %867, %868 : vector<2x32xf32>
    %870 = vector.extract_strided_slice %503 {offsets = [12, 0], sizes = [2, 96], strides = [1, 1]} : vector<16x192xf32> to vector<2x96xf32>
    %871 = vector.extract_strided_slice %503 {offsets = [2, 96], sizes = [2, 96], strides = [1, 1]} : vector<16x192xf32> to vector<2x96xf32>
    %cst_132 = arith.constant dense<0.000000e+00> : vector<2x96xf32>
    %872 = tpu.matmul %843, %506, %cst_132 {dimension_numbers = #tpu.dot_dimension_numbers<[1], [0], [0], [1], [0, 0, 1, 1], [], []>} : vector<2x32xf32>, vector<32x96xf32>, vector<2x96xf32> -> vector<2x96xf32>
    %873 = vector.broadcast %508 : vector<1x96xf32> to vector<2x96xf32>
    %874 = arith.addf %872, %873 : vector<2x96xf32>
    %cst_133 = arith.constant dense<0.000000e+00> : vector<2x96xf32>
    %875 = tpu.matmul %869, %507, %cst_133 {dimension_numbers = #tpu.dot_dimension_numbers<[1], [0], [0], [1], [0, 0, 1, 1], [], []>} : vector<2x32xf32>, vector<32x96xf32>, vector<2x96xf32> -> vector<2x96xf32>
    %876 = vector.broadcast %509 : vector<1x96xf32> to vector<2x96xf32>
    %877 = arith.addf %875, %876 : vector<2x96xf32>
    %878 = vector.extract_strided_slice %870 {offsets = [0, 0], sizes = [2, 32], strides = [1, 1]} : vector<2x96xf32> to vector<2x32xf32>
    %879 = vector.extract_strided_slice %874 {offsets = [0, 0], sizes = [2, 32], strides = [1, 1]} : vector<2x96xf32> to vector<2x32xf32>
    %880 = arith.addf %878, %879 : vector<2x32xf32>
    %881 = arith.negf %880 : vector<2x32xf32>
    %882 = math.exp %881 : vector<2x32xf32>
    %cst_134 = arith.constant 1.000000e+00 : f32
    %883 = vector.broadcast %cst_134 : f32 to vector<2x32xf32>
    %884 = arith.addf %883, %882 : vector<2x32xf32>
    %885 = arith.divf %883, %884 : vector<2x32xf32>
    %886 = vector.extract_strided_slice %870 {offsets = [0, 32], sizes = [2, 32], strides = [1, 1]} : vector<2x96xf32> to vector<2x32xf32>
    %887 = vector.extract_strided_slice %874 {offsets = [0, 32], sizes = [2, 32], strides = [1, 1]} : vector<2x96xf32> to vector<2x32xf32>
    %888 = arith.addf %886, %887 : vector<2x32xf32>
    %889 = arith.negf %888 : vector<2x32xf32>
    %890 = math.exp %889 : vector<2x32xf32>
    %cst_135 = arith.constant 1.000000e+00 : f32
    %891 = vector.broadcast %cst_135 : f32 to vector<2x32xf32>
    %892 = arith.addf %891, %890 : vector<2x32xf32>
    %893 = arith.divf %891, %892 : vector<2x32xf32>
    %894 = vector.extract_strided_slice %870 {offsets = [0, 64], sizes = [2, 32], strides = [1, 1]} : vector<2x96xf32> to vector<2x32xf32>
    %895 = vector.extract_strided_slice %874 {offsets = [0, 64], sizes = [2, 32], strides = [1, 1]} : vector<2x96xf32> to vector<2x32xf32>
    %896 = arith.mulf %885, %895 : vector<2x32xf32>
    %897 = arith.addf %894, %896 : vector<2x32xf32>
    %898 = math.tanh %897 : vector<2x32xf32>
    %cst_136 = arith.constant 1.000000e+00 : f32
    %899 = vector.broadcast %cst_136 : f32 to vector<2x32xf32>
    %900 = arith.subf %899, %893 : vector<2x32xf32>
    %901 = arith.mulf %900, %898 : vector<2x32xf32>
    %902 = arith.mulf %893, %843 : vector<2x32xf32>
    %903 = arith.addf %901, %902 : vector<2x32xf32>
    %904 = vector.extract_strided_slice %871 {offsets = [0, 0], sizes = [2, 32], strides = [1, 1]} : vector<2x96xf32> to vector<2x32xf32>
    %905 = vector.extract_strided_slice %877 {offsets = [0, 0], sizes = [2, 32], strides = [1, 1]} : vector<2x96xf32> to vector<2x32xf32>
    %906 = arith.addf %904, %905 : vector<2x32xf32>
    %907 = arith.negf %906 : vector<2x32xf32>
    %908 = math.exp %907 : vector<2x32xf32>
    %cst_137 = arith.constant 1.000000e+00 : f32
    %909 = vector.broadcast %cst_137 : f32 to vector<2x32xf32>
    %910 = arith.addf %909, %908 : vector<2x32xf32>
    %911 = arith.divf %909, %910 : vector<2x32xf32>
    %912 = vector.extract_strided_slice %871 {offsets = [0, 32], sizes = [2, 32], strides = [1, 1]} : vector<2x96xf32> to vector<2x32xf32>
    %913 = vector.extract_strided_slice %877 {offsets = [0, 32], sizes = [2, 32], strides = [1, 1]} : vector<2x96xf32> to vector<2x32xf32>
    %914 = arith.addf %912, %913 : vector<2x32xf32>
    %915 = arith.negf %914 : vector<2x32xf32>
    %916 = math.exp %915 : vector<2x32xf32>
    %cst_138 = arith.constant 1.000000e+00 : f32
    %917 = vector.broadcast %cst_138 : f32 to vector<2x32xf32>
    %918 = arith.addf %917, %916 : vector<2x32xf32>
    %919 = arith.divf %917, %918 : vector<2x32xf32>
    %920 = vector.extract_strided_slice %871 {offsets = [0, 64], sizes = [2, 32], strides = [1, 1]} : vector<2x96xf32> to vector<2x32xf32>
    %921 = vector.extract_strided_slice %877 {offsets = [0, 64], sizes = [2, 32], strides = [1, 1]} : vector<2x96xf32> to vector<2x32xf32>
    %922 = arith.mulf %911, %921 : vector<2x32xf32>
    %923 = arith.addf %920, %922 : vector<2x32xf32>
    %924 = math.tanh %923 : vector<2x32xf32>
    %cst_139 = arith.constant 1.000000e+00 : f32
    %925 = vector.broadcast %cst_139 : f32 to vector<2x32xf32>
    %926 = arith.subf %925, %919 : vector<2x32xf32>
    %927 = arith.mulf %926, %924 : vector<2x32xf32>
    %928 = arith.mulf %919, %869 : vector<2x32xf32>
    %929 = arith.addf %927, %928 : vector<2x32xf32>
    %930 = vector.extract_strided_slice %503 {offsets = [14, 0], sizes = [2, 96], strides = [1, 1]} : vector<16x192xf32> to vector<2x96xf32>
    %931 = vector.extract_strided_slice %503 {offsets = [0, 96], sizes = [2, 96], strides = [1, 1]} : vector<16x192xf32> to vector<2x96xf32>
    %cst_140 = arith.constant dense<0.000000e+00> : vector<2x96xf32>
    %932 = tpu.matmul %903, %506, %cst_140 {dimension_numbers = #tpu.dot_dimension_numbers<[1], [0], [0], [1], [0, 0, 1, 1], [], []>} : vector<2x32xf32>, vector<32x96xf32>, vector<2x96xf32> -> vector<2x96xf32>
    %933 = vector.broadcast %508 : vector<1x96xf32> to vector<2x96xf32>
    %934 = arith.addf %932, %933 : vector<2x96xf32>
    %cst_141 = arith.constant dense<0.000000e+00> : vector<2x96xf32>
    %935 = tpu.matmul %929, %507, %cst_141 {dimension_numbers = #tpu.dot_dimension_numbers<[1], [0], [0], [1], [0, 0, 1, 1], [], []>} : vector<2x32xf32>, vector<32x96xf32>, vector<2x96xf32> -> vector<2x96xf32>
    %936 = vector.broadcast %509 : vector<1x96xf32> to vector<2x96xf32>
    %937 = arith.addf %935, %936 : vector<2x96xf32>
    %938 = vector.extract_strided_slice %930 {offsets = [0, 0], sizes = [2, 32], strides = [1, 1]} : vector<2x96xf32> to vector<2x32xf32>
    %939 = vector.extract_strided_slice %934 {offsets = [0, 0], sizes = [2, 32], strides = [1, 1]} : vector<2x96xf32> to vector<2x32xf32>
    %940 = arith.addf %938, %939 : vector<2x32xf32>
    %941 = arith.negf %940 : vector<2x32xf32>
    %942 = math.exp %941 : vector<2x32xf32>
    %cst_142 = arith.constant 1.000000e+00 : f32
    %943 = vector.broadcast %cst_142 : f32 to vector<2x32xf32>
    %944 = arith.addf %943, %942 : vector<2x32xf32>
    %945 = arith.divf %943, %944 : vector<2x32xf32>
    %946 = vector.extract_strided_slice %930 {offsets = [0, 32], sizes = [2, 32], strides = [1, 1]} : vector<2x96xf32> to vector<2x32xf32>
    %947 = vector.extract_strided_slice %934 {offsets = [0, 32], sizes = [2, 32], strides = [1, 1]} : vector<2x96xf32> to vector<2x32xf32>
    %948 = arith.addf %946, %947 : vector<2x32xf32>
    %949 = arith.negf %948 : vector<2x32xf32>
    %950 = math.exp %949 : vector<2x32xf32>
    %cst_143 = arith.constant 1.000000e+00 : f32
    %951 = vector.broadcast %cst_143 : f32 to vector<2x32xf32>
    %952 = arith.addf %951, %950 : vector<2x32xf32>
    %953 = arith.divf %951, %952 : vector<2x32xf32>
    %954 = vector.extract_strided_slice %930 {offsets = [0, 64], sizes = [2, 32], strides = [1, 1]} : vector<2x96xf32> to vector<2x32xf32>
    %955 = vector.extract_strided_slice %934 {offsets = [0, 64], sizes = [2, 32], strides = [1, 1]} : vector<2x96xf32> to vector<2x32xf32>
    %956 = arith.mulf %945, %955 : vector<2x32xf32>
    %957 = arith.addf %954, %956 : vector<2x32xf32>
    %958 = math.tanh %957 : vector<2x32xf32>
    %cst_144 = arith.constant 1.000000e+00 : f32
    %959 = vector.broadcast %cst_144 : f32 to vector<2x32xf32>
    %960 = arith.subf %959, %953 : vector<2x32xf32>
    %961 = arith.mulf %960, %958 : vector<2x32xf32>
    %962 = arith.mulf %953, %903 : vector<2x32xf32>
    %963 = arith.addf %961, %962 : vector<2x32xf32>
    %964 = vector.extract_strided_slice %931 {offsets = [0, 0], sizes = [2, 32], strides = [1, 1]} : vector<2x96xf32> to vector<2x32xf32>
    %965 = vector.extract_strided_slice %937 {offsets = [0, 0], sizes = [2, 32], strides = [1, 1]} : vector<2x96xf32> to vector<2x32xf32>
    %966 = arith.addf %964, %965 : vector<2x32xf32>
    %967 = arith.negf %966 : vector<2x32xf32>
    %968 = math.exp %967 : vector<2x32xf32>
    %cst_145 = arith.constant 1.000000e+00 : f32
    %969 = vector.broadcast %cst_145 : f32 to vector<2x32xf32>
    %970 = arith.addf %969, %968 : vector<2x32xf32>
    %971 = arith.divf %969, %970 : vector<2x32xf32>
    %972 = vector.extract_strided_slice %931 {offsets = [0, 32], sizes = [2, 32], strides = [1, 1]} : vector<2x96xf32> to vector<2x32xf32>
    %973 = vector.extract_strided_slice %937 {offsets = [0, 32], sizes = [2, 32], strides = [1, 1]} : vector<2x96xf32> to vector<2x32xf32>
    %974 = arith.addf %972, %973 : vector<2x32xf32>
    %975 = arith.negf %974 : vector<2x32xf32>
    %976 = math.exp %975 : vector<2x32xf32>
    %cst_146 = arith.constant 1.000000e+00 : f32
    %977 = vector.broadcast %cst_146 : f32 to vector<2x32xf32>
    %978 = arith.addf %977, %976 : vector<2x32xf32>
    %979 = arith.divf %977, %978 : vector<2x32xf32>
    %980 = vector.extract_strided_slice %931 {offsets = [0, 64], sizes = [2, 32], strides = [1, 1]} : vector<2x96xf32> to vector<2x32xf32>
    %981 = vector.extract_strided_slice %937 {offsets = [0, 64], sizes = [2, 32], strides = [1, 1]} : vector<2x96xf32> to vector<2x32xf32>
    %982 = arith.mulf %971, %981 : vector<2x32xf32>
    %983 = arith.addf %980, %982 : vector<2x32xf32>
    %984 = math.tanh %983 : vector<2x32xf32>
    %cst_147 = arith.constant 1.000000e+00 : f32
    %985 = vector.broadcast %cst_147 : f32 to vector<2x32xf32>
    %986 = arith.subf %985, %979 : vector<2x32xf32>
    %987 = arith.mulf %986, %984 : vector<2x32xf32>
    %988 = arith.mulf %979, %929 : vector<2x32xf32>
    %989 = arith.addf %987, %988 : vector<2x32xf32>
    %990 = tpu.concatenate %543, %603, %663, %723, %783, %843, %903, %963 in 0 : vector<2x32xf32>, vector<2x32xf32>, vector<2x32xf32>, vector<2x32xf32>, vector<2x32xf32>, vector<2x32xf32>, vector<2x32xf32>, vector<2x32xf32> -> vector<16x32xf32>
    %991 = tpu.concatenate %989, %929, %869, %809, %749, %689, %629, %569 in 0 : vector<2x32xf32>, vector<2x32xf32>, vector<2x32xf32>, vector<2x32xf32>, vector<2x32xf32>, vector<2x32xf32>, vector<2x32xf32>, vector<2x32xf32> -> vector<16x32xf32>
    %992 = arith.addf %466, %492 : vector<2x32xf32>
    %993 = arith.addf %992, %963 : vector<2x32xf32>
    %994 = arith.addf %993, %989 : vector<2x32xf32>
    %cst_148 = arith.constant 2.500000e-01 : f32
    %995 = vector.broadcast %cst_148 : f32 to vector<2x32xf32>
    %996 = arith.mulf %994, %995 : vector<2x32xf32>
    %c0_149 = arith.constant 0 : index
    %c0_150 = arith.constant 0 : index
    %997 = vector.load %arg17[%c0_149, %c0_150] : memref<4x32xf32, #tpu.memory_space<vmem>>, vector<1x32xf32>
    %c1 = arith.constant 1 : index
    %c0_151 = arith.constant 0 : index
    %998 = vector.load %arg17[%c1, %c0_151] : memref<4x32xf32, #tpu.memory_space<vmem>>, vector<1x32xf32>
    %c2 = arith.constant 2 : index
    %c0_152 = arith.constant 0 : index
    %999 = vector.load %arg17[%c2, %c0_152] : memref<4x32xf32, #tpu.memory_space<vmem>>, vector<1x32xf32>
    %c3 = arith.constant 3 : index
    %c0_153 = arith.constant 0 : index
    %1000 = vector.load %arg17[%c3, %c0_153] : memref<4x32xf32, #tpu.memory_space<vmem>>, vector<1x32xf32>
    %1001 = vector.broadcast %999 : vector<1x32xf32> to vector<2x32xf32>
    %1002 = arith.subf %996, %1001 : vector<2x32xf32>
    %cst_154 = arith.constant 9.99999974E-6 : f32
    %1003 = vector.broadcast %cst_154 : f32 to vector<1x32xf32>
    %1004 = arith.addf %1000, %1003 : vector<1x32xf32>
    %1005 = math.rsqrt %1004 : vector<1x32xf32>
    %1006 = vector.broadcast %1005 : vector<1x32xf32> to vector<2x32xf32>
    %1007 = arith.mulf %1002, %1006 : vector<2x32xf32>
    %1008 = vector.broadcast %997 : vector<1x32xf32> to vector<2x32xf32>
    %1009 = arith.mulf %1007, %1008 : vector<2x32xf32>
    %1010 = vector.broadcast %998 : vector<1x32xf32> to vector<2x32xf32>
    %1011 = arith.addf %1009, %1010 : vector<2x32xf32>
    %c0_155 = arith.constant 0 : index
    %c0_156 = arith.constant 0 : index
    %1012 = vector.load %arg18[%c0_155, %c0_156] : memref<32x6xf32, #tpu.memory_space<vmem>>, vector<32x6xf32>
    %cst_157 = arith.constant dense<0.000000e+00> : vector<2x6xf32>
    %1013 = tpu.matmul %1011, %1012, %cst_157 {dimension_numbers = #tpu.dot_dimension_numbers<[1], [0], [0], [1], [0, 0, 1, 1], [], []>} : vector<2x32xf32>, vector<32x6xf32>, vector<2x6xf32> -> vector<2x6xf32>
    %c0_158 = arith.constant 0 : index
    %c0_159 = arith.constant 0 : index
    %1014 = vector.load %arg19[%c0_158, %c0_159] : memref<1x6xf32, #tpu.memory_space<vmem>>, vector<1x6xf32>
    %1015 = vector.broadcast %1014 : vector<1x6xf32> to vector<2x6xf32>
    %1016 = arith.addf %1013, %1015 : vector<2x6xf32>
    %c0_160 = arith.constant 0 : index
    %c0_161 = arith.constant 0 : index
    %1017 = vector.load %arg26[%c0_160, %c0_161] : memref<2x6xf32, #tpu.memory_space<vmem>>, vector<2x6xf32>
    tpu.vector_store %arg26[%c0_160, %c0_161], %1016 {strides = array<i32>} : memref<2x6xf32, #tpu.memory_space<vmem>>, vector<2x6xf32>,
    %1018 = arith.addf %990, %991 : vector<16x32xf32>
    %cst_162 = arith.constant 5.000000e-01 : f32
    %1019 = vector.broadcast %cst_162 : f32 to vector<16x32xf32>
    %1020 = arith.mulf %1018, %1019 : vector<16x32xf32>
    %c0_163 = arith.constant 0 : index
    %c0_164 = arith.constant 0 : index
    %1021 = vector.load %arg9[%c0_163, %c0_164] : memref<32x96xf32, #tpu.memory_space<vmem>>, vector<32x96xf32>
    %cst_165 = arith.constant dense<0.000000e+00> : vector<16x96xf32>
    %1022 = tpu.matmul %1020, %1021, %cst_165 {dimension_numbers = #tpu.dot_dimension_numbers<[1], [0], [0], [1], [0, 0, 1, 1], [], []>} : vector<16x32xf32>, vector<32x96xf32>, vector<16x96xf32> -> vector<16x96xf32>
    %c0_166 = arith.constant 0 : index
    %c0_167 = arith.constant 0 : index
    %1023 = vector.load %arg10[%c0_166, %c0_167] : memref<1x96xf32, #tpu.memory_space<vmem>>, vector<1x96xf32>
    %1024 = vector.broadcast %1023 : vector<1x96xf32> to vector<16x96xf32>
    %1025 = arith.addf %1022, %1024 : vector<16x96xf32>
    %c0_168 = arith.constant 0 : index
    %c0_169 = arith.constant 0 : index
    %1026 = vector.load %arg11[%c0_168, %c0_169] : memref<32x96xf32, #tpu.memory_space<vmem>>, vector<32x96xf32>
    %c0_170 = arith.constant 0 : index
    %c0_171 = arith.constant 0 : index
    %1027 = vector.load %arg12[%c0_170, %c0_171] : memref<1x96xf32, #tpu.memory_space<vmem>>, vector<1x96xf32>
    %1028 = arith.addf %466, %963 : vector<2x32xf32>
    %cst_172 = arith.constant 5.000000e-01 : f32
    %1029 = vector.broadcast %cst_172 : f32 to vector<2x32xf32>
    %1030 = arith.mulf %1028, %1029 : vector<2x32xf32>
    %cst_173 = arith.constant dense<0.000000e+00> : vector<2x96xf32>
    %1031 = tpu.matmul %1030, %1026, %cst_173 {dimension_numbers = #tpu.dot_dimension_numbers<[1], [0], [0], [1], [0, 0, 1, 1], [], []>} : vector<2x32xf32>, vector<32x96xf32>, vector<2x96xf32> -> vector<2x96xf32>
    %1032 = vector.broadcast %1027 : vector<1x96xf32> to vector<2x96xf32>
    %1033 = arith.addf %1031, %1032 : vector<2x96xf32>
    %1034 = vector.extract_strided_slice %1025 {offsets = [0, 0], sizes = [2, 96], strides = [1, 1]} : vector<16x96xf32> to vector<2x96xf32>
    %1035 = vector.extract_strided_slice %1034 {offsets = [0, 0], sizes = [2, 32], strides = [1, 1]} : vector<2x96xf32> to vector<2x32xf32>
    %1036 = vector.extract_strided_slice %1033 {offsets = [0, 0], sizes = [2, 32], strides = [1, 1]} : vector<2x96xf32> to vector<2x32xf32>
    %1037 = arith.addf %1035, %1036 : vector<2x32xf32>
    %1038 = arith.negf %1037 : vector<2x32xf32>
    %1039 = math.exp %1038 : vector<2x32xf32>
    %cst_174 = arith.constant 1.000000e+00 : f32
    %1040 = vector.broadcast %cst_174 : f32 to vector<2x32xf32>
    %1041 = arith.addf %1040, %1039 : vector<2x32xf32>
    %1042 = arith.divf %1040, %1041 : vector<2x32xf32>
    %1043 = vector.extract_strided_slice %1034 {offsets = [0, 32], sizes = [2, 32], strides = [1, 1]} : vector<2x96xf32> to vector<2x32xf32>
    %1044 = vector.extract_strided_slice %1033 {offsets = [0, 32], sizes = [2, 32], strides = [1, 1]} : vector<2x96xf32> to vector<2x32xf32>
    %1045 = arith.addf %1043, %1044 : vector<2x32xf32>
    %1046 = arith.negf %1045 : vector<2x32xf32>
    %1047 = math.exp %1046 : vector<2x32xf32>
    %cst_175 = arith.constant 1.000000e+00 : f32
    %1048 = vector.broadcast %cst_175 : f32 to vector<2x32xf32>
    %1049 = arith.addf %1048, %1047 : vector<2x32xf32>
    %1050 = arith.divf %1048, %1049 : vector<2x32xf32>
    %1051 = vector.extract_strided_slice %1034 {offsets = [0, 64], sizes = [2, 32], strides = [1, 1]} : vector<2x96xf32> to vector<2x32xf32>
    %1052 = vector.extract_strided_slice %1033 {offsets = [0, 64], sizes = [2, 32], strides = [1, 1]} : vector<2x96xf32> to vector<2x32xf32>
    %1053 = arith.mulf %1042, %1052 : vector<2x32xf32>
    %1054 = arith.addf %1051, %1053 : vector<2x32xf32>
    %1055 = math.tanh %1054 : vector<2x32xf32>
    %cst_176 = arith.constant 1.000000e+00 : f32
    %1056 = vector.broadcast %cst_176 : f32 to vector<2x32xf32>
    %1057 = arith.subf %1056, %1050 : vector<2x32xf32>
    %1058 = arith.mulf %1057, %1055 : vector<2x32xf32>
    %1059 = arith.mulf %1050, %1030 : vector<2x32xf32>
    %1060 = arith.addf %1058, %1059 : vector<2x32xf32>
    %cst_177 = arith.constant dense<0.000000e+00> : vector<2x96xf32>
    %1061 = tpu.matmul %1060, %1026, %cst_177 {dimension_numbers = #tpu.dot_dimension_numbers<[1], [0], [0], [1], [0, 0, 1, 1], [], []>} : vector<2x32xf32>, vector<32x96xf32>, vector<2x96xf32> -> vector<2x96xf32>
    %1062 = vector.broadcast %1027 : vector<1x96xf32> to vector<2x96xf32>
    %1063 = arith.addf %1061, %1062 : vector<2x96xf32>
    %1064 = vector.extract_strided_slice %1025 {offsets = [2, 0], sizes = [2, 96], strides = [1, 1]} : vector<16x96xf32> to vector<2x96xf32>
    %1065 = vector.extract_strided_slice %1064 {offsets = [0, 0], sizes = [2, 32], strides = [1, 1]} : vector<2x96xf32> to vector<2x32xf32>
    %1066 = vector.extract_strided_slice %1063 {offsets = [0, 0], sizes = [2, 32], strides = [1, 1]} : vector<2x96xf32> to vector<2x32xf32>
    %1067 = arith.addf %1065, %1066 : vector<2x32xf32>
    %1068 = arith.negf %1067 : vector<2x32xf32>
    %1069 = math.exp %1068 : vector<2x32xf32>
    %cst_178 = arith.constant 1.000000e+00 : f32
    %1070 = vector.broadcast %cst_178 : f32 to vector<2x32xf32>
    %1071 = arith.addf %1070, %1069 : vector<2x32xf32>
    %1072 = arith.divf %1070, %1071 : vector<2x32xf32>
    %1073 = vector.extract_strided_slice %1064 {offsets = [0, 32], sizes = [2, 32], strides = [1, 1]} : vector<2x96xf32> to vector<2x32xf32>
    %1074 = vector.extract_strided_slice %1063 {offsets = [0, 32], sizes = [2, 32], strides = [1, 1]} : vector<2x96xf32> to vector<2x32xf32>
    %1075 = arith.addf %1073, %1074 : vector<2x32xf32>
    %1076 = arith.negf %1075 : vector<2x32xf32>
    %1077 = math.exp %1076 : vector<2x32xf32>
    %cst_179 = arith.constant 1.000000e+00 : f32
    %1078 = vector.broadcast %cst_179 : f32 to vector<2x32xf32>
    %1079 = arith.addf %1078, %1077 : vector<2x32xf32>
    %1080 = arith.divf %1078, %1079 : vector<2x32xf32>
    %1081 = vector.extract_strided_slice %1064 {offsets = [0, 64], sizes = [2, 32], strides = [1, 1]} : vector<2x96xf32> to vector<2x32xf32>
    %1082 = vector.extract_strided_slice %1063 {offsets = [0, 64], sizes = [2, 32], strides = [1, 1]} : vector<2x96xf32> to vector<2x32xf32>
    %1083 = arith.mulf %1072, %1082 : vector<2x32xf32>
    %1084 = arith.addf %1081, %1083 : vector<2x32xf32>
    %1085 = math.tanh %1084 : vector<2x32xf32>
    %cst_180 = arith.constant 1.000000e+00 : f32
    %1086 = vector.broadcast %cst_180 : f32 to vector<2x32xf32>
    %1087 = arith.subf %1086, %1080 : vector<2x32xf32>
    %1088 = arith.mulf %1087, %1085 : vector<2x32xf32>
    %1089 = arith.mulf %1080, %1060 : vector<2x32xf32>
    %1090 = arith.addf %1088, %1089 : vector<2x32xf32>
    %cst_181 = arith.constant dense<0.000000e+00> : vector<2x96xf32>
    %1091 = tpu.matmul %1090, %1026, %cst_181 {dimension_numbers = #tpu.dot_dimension_numbers<[1], [0], [0], [1], [0, 0, 1, 1], [], []>} : vector<2x32xf32>, vector<32x96xf32>, vector<2x96xf32> -> vector<2x96xf32>
    %1092 = vector.broadcast %1027 : vector<1x96xf32> to vector<2x96xf32>
    %1093 = arith.addf %1091, %1092 : vector<2x96xf32>
    %1094 = vector.extract_strided_slice %1025 {offsets = [4, 0], sizes = [2, 96], strides = [1, 1]} : vector<16x96xf32> to vector<2x96xf32>
    %1095 = vector.extract_strided_slice %1094 {offsets = [0, 0], sizes = [2, 32], strides = [1, 1]} : vector<2x96xf32> to vector<2x32xf32>
    %1096 = vector.extract_strided_slice %1093 {offsets = [0, 0], sizes = [2, 32], strides = [1, 1]} : vector<2x96xf32> to vector<2x32xf32>
    %1097 = arith.addf %1095, %1096 : vector<2x32xf32>
    %1098 = arith.negf %1097 : vector<2x32xf32>
    %1099 = math.exp %1098 : vector<2x32xf32>
    %cst_182 = arith.constant 1.000000e+00 : f32
    %1100 = vector.broadcast %cst_182 : f32 to vector<2x32xf32>
    %1101 = arith.addf %1100, %1099 : vector<2x32xf32>
    %1102 = arith.divf %1100, %1101 : vector<2x32xf32>
    %1103 = vector.extract_strided_slice %1094 {offsets = [0, 32], sizes = [2, 32], strides = [1, 1]} : vector<2x96xf32> to vector<2x32xf32>
    %1104 = vector.extract_strided_slice %1093 {offsets = [0, 32], sizes = [2, 32], strides = [1, 1]} : vector<2x96xf32> to vector<2x32xf32>
    %1105 = arith.addf %1103, %1104 : vector<2x32xf32>
    %1106 = arith.negf %1105 : vector<2x32xf32>
    %1107 = math.exp %1106 : vector<2x32xf32>
    %cst_183 = arith.constant 1.000000e+00 : f32
    %1108 = vector.broadcast %cst_183 : f32 to vector<2x32xf32>
    %1109 = arith.addf %1108, %1107 : vector<2x32xf32>
    %1110 = arith.divf %1108, %1109 : vector<2x32xf32>
    %1111 = vector.extract_strided_slice %1094 {offsets = [0, 64], sizes = [2, 32], strides = [1, 1]} : vector<2x96xf32> to vector<2x32xf32>
    %1112 = vector.extract_strided_slice %1093 {offsets = [0, 64], sizes = [2, 32], strides = [1, 1]} : vector<2x96xf32> to vector<2x32xf32>
    %1113 = arith.mulf %1102, %1112 : vector<2x32xf32>
    %1114 = arith.addf %1111, %1113 : vector<2x32xf32>
    %1115 = math.tanh %1114 : vector<2x32xf32>
    %cst_184 = arith.constant 1.000000e+00 : f32
    %1116 = vector.broadcast %cst_184 : f32 to vector<2x32xf32>
    %1117 = arith.subf %1116, %1110 : vector<2x32xf32>
    %1118 = arith.mulf %1117, %1115 : vector<2x32xf32>
    %1119 = arith.mulf %1110, %1090 : vector<2x32xf32>
    %1120 = arith.addf %1118, %1119 : vector<2x32xf32>
    %cst_185 = arith.constant dense<0.000000e+00> : vector<2x96xf32>
    %1121 = tpu.matmul %1120, %1026, %cst_185 {dimension_numbers = #tpu.dot_dimension_numbers<[1], [0], [0], [1], [0, 0, 1, 1], [], []>} : vector<2x32xf32>, vector<32x96xf32>, vector<2x96xf32> -> vector<2x96xf32>
    %1122 = vector.broadcast %1027 : vector<1x96xf32> to vector<2x96xf32>
    %1123 = arith.addf %1121, %1122 : vector<2x96xf32>
    %1124 = vector.extract_strided_slice %1025 {offsets = [6, 0], sizes = [2, 96], strides = [1, 1]} : vector<16x96xf32> to vector<2x96xf32>
    %1125 = vector.extract_strided_slice %1124 {offsets = [0, 0], sizes = [2, 32], strides = [1, 1]} : vector<2x96xf32> to vector<2x32xf32>
    %1126 = vector.extract_strided_slice %1123 {offsets = [0, 0], sizes = [2, 32], strides = [1, 1]} : vector<2x96xf32> to vector<2x32xf32>
    %1127 = arith.addf %1125, %1126 : vector<2x32xf32>
    %1128 = arith.negf %1127 : vector<2x32xf32>
    %1129 = math.exp %1128 : vector<2x32xf32>
    %cst_186 = arith.constant 1.000000e+00 : f32
    %1130 = vector.broadcast %cst_186 : f32 to vector<2x32xf32>
    %1131 = arith.addf %1130, %1129 : vector<2x32xf32>
    %1132 = arith.divf %1130, %1131 : vector<2x32xf32>
    %1133 = vector.extract_strided_slice %1124 {offsets = [0, 32], sizes = [2, 32], strides = [1, 1]} : vector<2x96xf32> to vector<2x32xf32>
    %1134 = vector.extract_strided_slice %1123 {offsets = [0, 32], sizes = [2, 32], strides = [1, 1]} : vector<2x96xf32> to vector<2x32xf32>
    %1135 = arith.addf %1133, %1134 : vector<2x32xf32>
    %1136 = arith.negf %1135 : vector<2x32xf32>
    %1137 = math.exp %1136 : vector<2x32xf32>
    %cst_187 = arith.constant 1.000000e+00 : f32
    %1138 = vector.broadcast %cst_187 : f32 to vector<2x32xf32>
    %1139 = arith.addf %1138, %1137 : vector<2x32xf32>
    %1140 = arith.divf %1138, %1139 : vector<2x32xf32>
    %1141 = vector.extract_strided_slice %1124 {offsets = [0, 64], sizes = [2, 32], strides = [1, 1]} : vector<2x96xf32> to vector<2x32xf32>
    %1142 = vector.extract_strided_slice %1123 {offsets = [0, 64], sizes = [2, 32], strides = [1, 1]} : vector<2x96xf32> to vector<2x32xf32>
    %1143 = arith.mulf %1132, %1142 : vector<2x32xf32>
    %1144 = arith.addf %1141, %1143 : vector<2x32xf32>
    %1145 = math.tanh %1144 : vector<2x32xf32>
    %cst_188 = arith.constant 1.000000e+00 : f32
    %1146 = vector.broadcast %cst_188 : f32 to vector<2x32xf32>
    %1147 = arith.subf %1146, %1140 : vector<2x32xf32>
    %1148 = arith.mulf %1147, %1145 : vector<2x32xf32>
    %1149 = arith.mulf %1140, %1120 : vector<2x32xf32>
    %1150 = arith.addf %1148, %1149 : vector<2x32xf32>
    %cst_189 = arith.constant dense<0.000000e+00> : vector<2x96xf32>
    %1151 = tpu.matmul %1150, %1026, %cst_189 {dimension_numbers = #tpu.dot_dimension_numbers<[1], [0], [0], [1], [0, 0, 1, 1], [], []>} : vector<2x32xf32>, vector<32x96xf32>, vector<2x96xf32> -> vector<2x96xf32>
    %1152 = vector.broadcast %1027 : vector<1x96xf32> to vector<2x96xf32>
    %1153 = arith.addf %1151, %1152 : vector<2x96xf32>
    %1154 = vector.extract_strided_slice %1025 {offsets = [8, 0], sizes = [2, 96], strides = [1, 1]} : vector<16x96xf32> to vector<2x96xf32>
    %1155 = vector.extract_strided_slice %1154 {offsets = [0, 0], sizes = [2, 32], strides = [1, 1]} : vector<2x96xf32> to vector<2x32xf32>
    %1156 = vector.extract_strided_slice %1153 {offsets = [0, 0], sizes = [2, 32], strides = [1, 1]} : vector<2x96xf32> to vector<2x32xf32>
    %1157 = arith.addf %1155, %1156 : vector<2x32xf32>
    %1158 = arith.negf %1157 : vector<2x32xf32>
    %1159 = math.exp %1158 : vector<2x32xf32>
    %cst_190 = arith.constant 1.000000e+00 : f32
    %1160 = vector.broadcast %cst_190 : f32 to vector<2x32xf32>
    %1161 = arith.addf %1160, %1159 : vector<2x32xf32>
    %1162 = arith.divf %1160, %1161 : vector<2x32xf32>
    %1163 = vector.extract_strided_slice %1154 {offsets = [0, 32], sizes = [2, 32], strides = [1, 1]} : vector<2x96xf32> to vector<2x32xf32>
    %1164 = vector.extract_strided_slice %1153 {offsets = [0, 32], sizes = [2, 32], strides = [1, 1]} : vector<2x96xf32> to vector<2x32xf32>
    %1165 = arith.addf %1163, %1164 : vector<2x32xf32>
    %1166 = arith.negf %1165 : vector<2x32xf32>
    %1167 = math.exp %1166 : vector<2x32xf32>
    %cst_191 = arith.constant 1.000000e+00 : f32
    %1168 = vector.broadcast %cst_191 : f32 to vector<2x32xf32>
    %1169 = arith.addf %1168, %1167 : vector<2x32xf32>
    %1170 = arith.divf %1168, %1169 : vector<2x32xf32>
    %1171 = vector.extract_strided_slice %1154 {offsets = [0, 64], sizes = [2, 32], strides = [1, 1]} : vector<2x96xf32> to vector<2x32xf32>
    %1172 = vector.extract_strided_slice %1153 {offsets = [0, 64], sizes = [2, 32], strides = [1, 1]} : vector<2x96xf32> to vector<2x32xf32>
    %1173 = arith.mulf %1162, %1172 : vector<2x32xf32>
    %1174 = arith.addf %1171, %1173 : vector<2x32xf32>
    %1175 = math.tanh %1174 : vector<2x32xf32>
    %cst_192 = arith.constant 1.000000e+00 : f32
    %1176 = vector.broadcast %cst_192 : f32 to vector<2x32xf32>
    %1177 = arith.subf %1176, %1170 : vector<2x32xf32>
    %1178 = arith.mulf %1177, %1175 : vector<2x32xf32>
    %1179 = arith.mulf %1170, %1150 : vector<2x32xf32>
    %1180 = arith.addf %1178, %1179 : vector<2x32xf32>
    %cst_193 = arith.constant dense<0.000000e+00> : vector<2x96xf32>
    %1181 = tpu.matmul %1180, %1026, %cst_193 {dimension_numbers = #tpu.dot_dimension_numbers<[1], [0], [0], [1], [0, 0, 1, 1], [], []>} : vector<2x32xf32>, vector<32x96xf32>, vector<2x96xf32> -> vector<2x96xf32>
    %1182 = vector.broadcast %1027 : vector<1x96xf32> to vector<2x96xf32>
    %1183 = arith.addf %1181, %1182 : vector<2x96xf32>
    %1184 = vector.extract_strided_slice %1025 {offsets = [10, 0], sizes = [2, 96], strides = [1, 1]} : vector<16x96xf32> to vector<2x96xf32>
    %1185 = vector.extract_strided_slice %1184 {offsets = [0, 0], sizes = [2, 32], strides = [1, 1]} : vector<2x96xf32> to vector<2x32xf32>
    %1186 = vector.extract_strided_slice %1183 {offsets = [0, 0], sizes = [2, 32], strides = [1, 1]} : vector<2x96xf32> to vector<2x32xf32>
    %1187 = arith.addf %1185, %1186 : vector<2x32xf32>
    %1188 = arith.negf %1187 : vector<2x32xf32>
    %1189 = math.exp %1188 : vector<2x32xf32>
    %cst_194 = arith.constant 1.000000e+00 : f32
    %1190 = vector.broadcast %cst_194 : f32 to vector<2x32xf32>
    %1191 = arith.addf %1190, %1189 : vector<2x32xf32>
    %1192 = arith.divf %1190, %1191 : vector<2x32xf32>
    %1193 = vector.extract_strided_slice %1184 {offsets = [0, 32], sizes = [2, 32], strides = [1, 1]} : vector<2x96xf32> to vector<2x32xf32>
    %1194 = vector.extract_strided_slice %1183 {offsets = [0, 32], sizes = [2, 32], strides = [1, 1]} : vector<2x96xf32> to vector<2x32xf32>
    %1195 = arith.addf %1193, %1194 : vector<2x32xf32>
    %1196 = arith.negf %1195 : vector<2x32xf32>
    %1197 = math.exp %1196 : vector<2x32xf32>
    %cst_195 = arith.constant 1.000000e+00 : f32
    %1198 = vector.broadcast %cst_195 : f32 to vector<2x32xf32>
    %1199 = arith.addf %1198, %1197 : vector<2x32xf32>
    %1200 = arith.divf %1198, %1199 : vector<2x32xf32>
    %1201 = vector.extract_strided_slice %1184 {offsets = [0, 64], sizes = [2, 32], strides = [1, 1]} : vector<2x96xf32> to vector<2x32xf32>
    %1202 = vector.extract_strided_slice %1183 {offsets = [0, 64], sizes = [2, 32], strides = [1, 1]} : vector<2x96xf32> to vector<2x32xf32>
    %1203 = arith.mulf %1192, %1202 : vector<2x32xf32>
    %1204 = arith.addf %1201, %1203 : vector<2x32xf32>
    %1205 = math.tanh %1204 : vector<2x32xf32>
    %cst_196 = arith.constant 1.000000e+00 : f32
    %1206 = vector.broadcast %cst_196 : f32 to vector<2x32xf32>
    %1207 = arith.subf %1206, %1200 : vector<2x32xf32>
    %1208 = arith.mulf %1207, %1205 : vector<2x32xf32>
    %1209 = arith.mulf %1200, %1180 : vector<2x32xf32>
    %1210 = arith.addf %1208, %1209 : vector<2x32xf32>
    %cst_197 = arith.constant dense<0.000000e+00> : vector<2x96xf32>
    %1211 = tpu.matmul %1210, %1026, %cst_197 {dimension_numbers = #tpu.dot_dimension_numbers<[1], [0], [0], [1], [0, 0, 1, 1], [], []>} : vector<2x32xf32>, vector<32x96xf32>, vector<2x96xf32> -> vector<2x96xf32>
    %1212 = vector.broadcast %1027 : vector<1x96xf32> to vector<2x96xf32>
    %1213 = arith.addf %1211, %1212 : vector<2x96xf32>
    %1214 = vector.extract_strided_slice %1025 {offsets = [12, 0], sizes = [2, 96], strides = [1, 1]} : vector<16x96xf32> to vector<2x96xf32>
    %1215 = vector.extract_strided_slice %1214 {offsets = [0, 0], sizes = [2, 32], strides = [1, 1]} : vector<2x96xf32> to vector<2x32xf32>
    %1216 = vector.extract_strided_slice %1213 {offsets = [0, 0], sizes = [2, 32], strides = [1, 1]} : vector<2x96xf32> to vector<2x32xf32>
    %1217 = arith.addf %1215, %1216 : vector<2x32xf32>
    %1218 = arith.negf %1217 : vector<2x32xf32>
    %1219 = math.exp %1218 : vector<2x32xf32>
    %cst_198 = arith.constant 1.000000e+00 : f32
    %1220 = vector.broadcast %cst_198 : f32 to vector<2x32xf32>
    %1221 = arith.addf %1220, %1219 : vector<2x32xf32>
    %1222 = arith.divf %1220, %1221 : vector<2x32xf32>
    %1223 = vector.extract_strided_slice %1214 {offsets = [0, 32], sizes = [2, 32], strides = [1, 1]} : vector<2x96xf32> to vector<2x32xf32>
    %1224 = vector.extract_strided_slice %1213 {offsets = [0, 32], sizes = [2, 32], strides = [1, 1]} : vector<2x96xf32> to vector<2x32xf32>
    %1225 = arith.addf %1223, %1224 : vector<2x32xf32>
    %1226 = arith.negf %1225 : vector<2x32xf32>
    %1227 = math.exp %1226 : vector<2x32xf32>
    %cst_199 = arith.constant 1.000000e+00 : f32
    %1228 = vector.broadcast %cst_199 : f32 to vector<2x32xf32>
    %1229 = arith.addf %1228, %1227 : vector<2x32xf32>
    %1230 = arith.divf %1228, %1229 : vector<2x32xf32>
    %1231 = vector.extract_strided_slice %1214 {offsets = [0, 64], sizes = [2, 32], strides = [1, 1]} : vector<2x96xf32> to vector<2x32xf32>
    %1232 = vector.extract_strided_slice %1213 {offsets = [0, 64], sizes = [2, 32], strides = [1, 1]} : vector<2x96xf32> to vector<2x32xf32>
    %1233 = arith.mulf %1222, %1232 : vector<2x32xf32>
    %1234 = arith.addf %1231, %1233 : vector<2x32xf32>
    %1235 = math.tanh %1234 : vector<2x32xf32>
    %cst_200 = arith.constant 1.000000e+00 : f32
    %1236 = vector.broadcast %cst_200 : f32 to vector<2x32xf32>
    %1237 = arith.subf %1236, %1230 : vector<2x32xf32>
    %1238 = arith.mulf %1237, %1235 : vector<2x32xf32>
    %1239 = arith.mulf %1230, %1210 : vector<2x32xf32>
    %1240 = arith.addf %1238, %1239 : vector<2x32xf32>
    %cst_201 = arith.constant dense<0.000000e+00> : vector<2x96xf32>
    %1241 = tpu.matmul %1240, %1026, %cst_201 {dimension_numbers = #tpu.dot_dimension_numbers<[1], [0], [0], [1], [0, 0, 1, 1], [], []>} : vector<2x32xf32>, vector<32x96xf32>, vector<2x96xf32> -> vector<2x96xf32>
    %1242 = vector.broadcast %1027 : vector<1x96xf32> to vector<2x96xf32>
    %1243 = arith.addf %1241, %1242 : vector<2x96xf32>
    %1244 = vector.extract_strided_slice %1025 {offsets = [14, 0], sizes = [2, 96], strides = [1, 1]} : vector<16x96xf32> to vector<2x96xf32>
    %1245 = vector.extract_strided_slice %1244 {offsets = [0, 0], sizes = [2, 32], strides = [1, 1]} : vector<2x96xf32> to vector<2x32xf32>
    %1246 = vector.extract_strided_slice %1243 {offsets = [0, 0], sizes = [2, 32], strides = [1, 1]} : vector<2x96xf32> to vector<2x32xf32>
    %1247 = arith.addf %1245, %1246 : vector<2x32xf32>
    %1248 = arith.negf %1247 : vector<2x32xf32>
    %1249 = math.exp %1248 : vector<2x32xf32>
    %cst_202 = arith.constant 1.000000e+00 : f32
    %1250 = vector.broadcast %cst_202 : f32 to vector<2x32xf32>
    %1251 = arith.addf %1250, %1249 : vector<2x32xf32>
    %1252 = arith.divf %1250, %1251 : vector<2x32xf32>
    %1253 = vector.extract_strided_slice %1244 {offsets = [0, 32], sizes = [2, 32], strides = [1, 1]} : vector<2x96xf32> to vector<2x32xf32>
    %1254 = vector.extract_strided_slice %1243 {offsets = [0, 32], sizes = [2, 32], strides = [1, 1]} : vector<2x96xf32> to vector<2x32xf32>
    %1255 = arith.addf %1253, %1254 : vector<2x32xf32>
    %1256 = arith.negf %1255 : vector<2x32xf32>
    %1257 = math.exp %1256 : vector<2x32xf32>
    %cst_203 = arith.constant 1.000000e+00 : f32
    %1258 = vector.broadcast %cst_203 : f32 to vector<2x32xf32>
    %1259 = arith.addf %1258, %1257 : vector<2x32xf32>
    %1260 = arith.divf %1258, %1259 : vector<2x32xf32>
    %1261 = vector.extract_strided_slice %1244 {offsets = [0, 64], sizes = [2, 32], strides = [1, 1]} : vector<2x96xf32> to vector<2x32xf32>
    %1262 = vector.extract_strided_slice %1243 {offsets = [0, 64], sizes = [2, 32], strides = [1, 1]} : vector<2x96xf32> to vector<2x32xf32>
    %1263 = arith.mulf %1252, %1262 : vector<2x32xf32>
    %1264 = arith.addf %1261, %1263 : vector<2x32xf32>
    %1265 = math.tanh %1264 : vector<2x32xf32>
    %cst_204 = arith.constant 1.000000e+00 : f32
    %1266 = vector.broadcast %cst_204 : f32 to vector<2x32xf32>
    %1267 = arith.subf %1266, %1260 : vector<2x32xf32>
    %1268 = arith.mulf %1267, %1265 : vector<2x32xf32>
    %1269 = arith.mulf %1260, %1240 : vector<2x32xf32>
    %1270 = arith.addf %1268, %1269 : vector<2x32xf32>
    %1271 = tpu.concatenate %1060, %1090, %1120, %1150, %1180, %1210, %1240, %1270 in 0 : vector<2x32xf32>, vector<2x32xf32>, vector<2x32xf32>, vector<2x32xf32>, vector<2x32xf32>, vector<2x32xf32>, vector<2x32xf32>, vector<2x32xf32> -> vector<16x32xf32>
    %c0_205 = arith.constant 0 : index
    %c0_206 = arith.constant 0 : index
    %1272 = vector.load %arg13[%c0_205, %c0_206] : memref<32x96xf32, #tpu.memory_space<vmem>>, vector<32x96xf32>
    %cst_207 = arith.constant dense<0.000000e+00> : vector<16x96xf32>
    %1273 = tpu.matmul %1271, %1272, %cst_207 {dimension_numbers = #tpu.dot_dimension_numbers<[1], [0], [0], [1], [0, 0, 1, 1], [], []>} : vector<16x32xf32>, vector<32x96xf32>, vector<16x96xf32> -> vector<16x96xf32>
    %c0_208 = arith.constant 0 : index
    %c0_209 = arith.constant 0 : index
    %1274 = vector.load %arg14[%c0_208, %c0_209] : memref<1x96xf32, #tpu.memory_space<vmem>>, vector<1x96xf32>
    %1275 = vector.broadcast %1274 : vector<1x96xf32> to vector<16x96xf32>
    %1276 = arith.addf %1273, %1275 : vector<16x96xf32>
    %c0_210 = arith.constant 0 : index
    %c0_211 = arith.constant 0 : index
    %1277 = vector.load %arg15[%c0_210, %c0_211] : memref<32x96xf32, #tpu.memory_space<vmem>>, vector<32x96xf32>
    %c0_212 = arith.constant 0 : index
    %c0_213 = arith.constant 0 : index
    %1278 = vector.load %arg16[%c0_212, %c0_213] : memref<1x96xf32, #tpu.memory_space<vmem>>, vector<1x96xf32>
    %1279 = arith.addf %492, %989 : vector<2x32xf32>
    %cst_214 = arith.constant 5.000000e-01 : f32
    %1280 = vector.broadcast %cst_214 : f32 to vector<2x32xf32>
    %1281 = arith.mulf %1279, %1280 : vector<2x32xf32>
    %cst_215 = arith.constant dense<0.000000e+00> : vector<2x96xf32>
    %1282 = tpu.matmul %1281, %1277, %cst_215 {dimension_numbers = #tpu.dot_dimension_numbers<[1], [0], [0], [1], [0, 0, 1, 1], [], []>} : vector<2x32xf32>, vector<32x96xf32>, vector<2x96xf32> -> vector<2x96xf32>
    %1283 = vector.broadcast %1278 : vector<1x96xf32> to vector<2x96xf32>
    %1284 = arith.addf %1282, %1283 : vector<2x96xf32>
    %1285 = vector.extract_strided_slice %1276 {offsets = [0, 0], sizes = [2, 96], strides = [1, 1]} : vector<16x96xf32> to vector<2x96xf32>
    %1286 = vector.extract_strided_slice %1285 {offsets = [0, 0], sizes = [2, 32], strides = [1, 1]} : vector<2x96xf32> to vector<2x32xf32>
    %1287 = vector.extract_strided_slice %1284 {offsets = [0, 0], sizes = [2, 32], strides = [1, 1]} : vector<2x96xf32> to vector<2x32xf32>
    %1288 = arith.addf %1286, %1287 : vector<2x32xf32>
    %1289 = arith.negf %1288 : vector<2x32xf32>
    %1290 = math.exp %1289 : vector<2x32xf32>
    %cst_216 = arith.constant 1.000000e+00 : f32
    %1291 = vector.broadcast %cst_216 : f32 to vector<2x32xf32>
    %1292 = arith.addf %1291, %1290 : vector<2x32xf32>
    %1293 = arith.divf %1291, %1292 : vector<2x32xf32>
    %1294 = vector.extract_strided_slice %1285 {offsets = [0, 32], sizes = [2, 32], strides = [1, 1]} : vector<2x96xf32> to vector<2x32xf32>
    %1295 = vector.extract_strided_slice %1284 {offsets = [0, 32], sizes = [2, 32], strides = [1, 1]} : vector<2x96xf32> to vector<2x32xf32>
    %1296 = arith.addf %1294, %1295 : vector<2x32xf32>
    %1297 = arith.negf %1296 : vector<2x32xf32>
    %1298 = math.exp %1297 : vector<2x32xf32>
    %cst_217 = arith.constant 1.000000e+00 : f32
    %1299 = vector.broadcast %cst_217 : f32 to vector<2x32xf32>
    %1300 = arith.addf %1299, %1298 : vector<2x32xf32>
    %1301 = arith.divf %1299, %1300 : vector<2x32xf32>
    %1302 = vector.extract_strided_slice %1285 {offsets = [0, 64], sizes = [2, 32], strides = [1, 1]} : vector<2x96xf32> to vector<2x32xf32>
    %1303 = vector.extract_strided_slice %1284 {offsets = [0, 64], sizes = [2, 32], strides = [1, 1]} : vector<2x96xf32> to vector<2x32xf32>
    %1304 = arith.mulf %1293, %1303 : vector<2x32xf32>
    %1305 = arith.addf %1302, %1304 : vector<2x32xf32>
    %1306 = math.tanh %1305 : vector<2x32xf32>
    %cst_218 = arith.constant 1.000000e+00 : f32
    %1307 = vector.broadcast %cst_218 : f32 to vector<2x32xf32>
    %1308 = arith.subf %1307, %1301 : vector<2x32xf32>
    %1309 = arith.mulf %1308, %1306 : vector<2x32xf32>
    %1310 = arith.mulf %1301, %1281 : vector<2x32xf32>
    %1311 = arith.addf %1309, %1310 : vector<2x32xf32>
    %cst_219 = arith.constant dense<0.000000e+00> : vector<2x96xf32>
    %1312 = tpu.matmul %1311, %1277, %cst_219 {dimension_numbers = #tpu.dot_dimension_numbers<[1], [0], [0], [1], [0, 0, 1, 1], [], []>} : vector<2x32xf32>, vector<32x96xf32>, vector<2x96xf32> -> vector<2x96xf32>
    %1313 = vector.broadcast %1278 : vector<1x96xf32> to vector<2x96xf32>
    %1314 = arith.addf %1312, %1313 : vector<2x96xf32>
    %1315 = vector.extract_strided_slice %1276 {offsets = [2, 0], sizes = [2, 96], strides = [1, 1]} : vector<16x96xf32> to vector<2x96xf32>
    %1316 = vector.extract_strided_slice %1315 {offsets = [0, 0], sizes = [2, 32], strides = [1, 1]} : vector<2x96xf32> to vector<2x32xf32>
    %1317 = vector.extract_strided_slice %1314 {offsets = [0, 0], sizes = [2, 32], strides = [1, 1]} : vector<2x96xf32> to vector<2x32xf32>
    %1318 = arith.addf %1316, %1317 : vector<2x32xf32>
    %1319 = arith.negf %1318 : vector<2x32xf32>
    %1320 = math.exp %1319 : vector<2x32xf32>
    %cst_220 = arith.constant 1.000000e+00 : f32
    %1321 = vector.broadcast %cst_220 : f32 to vector<2x32xf32>
    %1322 = arith.addf %1321, %1320 : vector<2x32xf32>
    %1323 = arith.divf %1321, %1322 : vector<2x32xf32>
    %1324 = vector.extract_strided_slice %1315 {offsets = [0, 32], sizes = [2, 32], strides = [1, 1]} : vector<2x96xf32> to vector<2x32xf32>
    %1325 = vector.extract_strided_slice %1314 {offsets = [0, 32], sizes = [2, 32], strides = [1, 1]} : vector<2x96xf32> to vector<2x32xf32>
    %1326 = arith.addf %1324, %1325 : vector<2x32xf32>
    %1327 = arith.negf %1326 : vector<2x32xf32>
    %1328 = math.exp %1327 : vector<2x32xf32>
    %cst_221 = arith.constant 1.000000e+00 : f32
    %1329 = vector.broadcast %cst_221 : f32 to vector<2x32xf32>
    %1330 = arith.addf %1329, %1328 : vector<2x32xf32>
    %1331 = arith.divf %1329, %1330 : vector<2x32xf32>
    %1332 = vector.extract_strided_slice %1315 {offsets = [0, 64], sizes = [2, 32], strides = [1, 1]} : vector<2x96xf32> to vector<2x32xf32>
    %1333 = vector.extract_strided_slice %1314 {offsets = [0, 64], sizes = [2, 32], strides = [1, 1]} : vector<2x96xf32> to vector<2x32xf32>
    %1334 = arith.mulf %1323, %1333 : vector<2x32xf32>
    %1335 = arith.addf %1332, %1334 : vector<2x32xf32>
    %1336 = math.tanh %1335 : vector<2x32xf32>
    %cst_222 = arith.constant 1.000000e+00 : f32
    %1337 = vector.broadcast %cst_222 : f32 to vector<2x32xf32>
    %1338 = arith.subf %1337, %1331 : vector<2x32xf32>
    %1339 = arith.mulf %1338, %1336 : vector<2x32xf32>
    %1340 = arith.mulf %1331, %1311 : vector<2x32xf32>
    %1341 = arith.addf %1339, %1340 : vector<2x32xf32>
    %cst_223 = arith.constant dense<0.000000e+00> : vector<2x96xf32>
    %1342 = tpu.matmul %1341, %1277, %cst_223 {dimension_numbers = #tpu.dot_dimension_numbers<[1], [0], [0], [1], [0, 0, 1, 1], [], []>} : vector<2x32xf32>, vector<32x96xf32>, vector<2x96xf32> -> vector<2x96xf32>
    %1343 = vector.broadcast %1278 : vector<1x96xf32> to vector<2x96xf32>
    %1344 = arith.addf %1342, %1343 : vector<2x96xf32>
    %1345 = vector.extract_strided_slice %1276 {offsets = [4, 0], sizes = [2, 96], strides = [1, 1]} : vector<16x96xf32> to vector<2x96xf32>
    %1346 = vector.extract_strided_slice %1345 {offsets = [0, 0], sizes = [2, 32], strides = [1, 1]} : vector<2x96xf32> to vector<2x32xf32>
    %1347 = vector.extract_strided_slice %1344 {offsets = [0, 0], sizes = [2, 32], strides = [1, 1]} : vector<2x96xf32> to vector<2x32xf32>
    %1348 = arith.addf %1346, %1347 : vector<2x32xf32>
    %1349 = arith.negf %1348 : vector<2x32xf32>
    %1350 = math.exp %1349 : vector<2x32xf32>
    %cst_224 = arith.constant 1.000000e+00 : f32
    %1351 = vector.broadcast %cst_224 : f32 to vector<2x32xf32>
    %1352 = arith.addf %1351, %1350 : vector<2x32xf32>
    %1353 = arith.divf %1351, %1352 : vector<2x32xf32>
    %1354 = vector.extract_strided_slice %1345 {offsets = [0, 32], sizes = [2, 32], strides = [1, 1]} : vector<2x96xf32> to vector<2x32xf32>
    %1355 = vector.extract_strided_slice %1344 {offsets = [0, 32], sizes = [2, 32], strides = [1, 1]} : vector<2x96xf32> to vector<2x32xf32>
    %1356 = arith.addf %1354, %1355 : vector<2x32xf32>
    %1357 = arith.negf %1356 : vector<2x32xf32>
    %1358 = math.exp %1357 : vector<2x32xf32>
    %cst_225 = arith.constant 1.000000e+00 : f32
    %1359 = vector.broadcast %cst_225 : f32 to vector<2x32xf32>
    %1360 = arith.addf %1359, %1358 : vector<2x32xf32>
    %1361 = arith.divf %1359, %1360 : vector<2x32xf32>
    %1362 = vector.extract_strided_slice %1345 {offsets = [0, 64], sizes = [2, 32], strides = [1, 1]} : vector<2x96xf32> to vector<2x32xf32>
    %1363 = vector.extract_strided_slice %1344 {offsets = [0, 64], sizes = [2, 32], strides = [1, 1]} : vector<2x96xf32> to vector<2x32xf32>
    %1364 = arith.mulf %1353, %1363 : vector<2x32xf32>
    %1365 = arith.addf %1362, %1364 : vector<2x32xf32>
    %1366 = math.tanh %1365 : vector<2x32xf32>
    %cst_226 = arith.constant 1.000000e+00 : f32
    %1367 = vector.broadcast %cst_226 : f32 to vector<2x32xf32>
    %1368 = arith.subf %1367, %1361 : vector<2x32xf32>
    %1369 = arith.mulf %1368, %1366 : vector<2x32xf32>
    %1370 = arith.mulf %1361, %1341 : vector<2x32xf32>
    %1371 = arith.addf %1369, %1370 : vector<2x32xf32>
    %cst_227 = arith.constant dense<0.000000e+00> : vector<2x96xf32>
    %1372 = tpu.matmul %1371, %1277, %cst_227 {dimension_numbers = #tpu.dot_dimension_numbers<[1], [0], [0], [1], [0, 0, 1, 1], [], []>} : vector<2x32xf32>, vector<32x96xf32>, vector<2x96xf32> -> vector<2x96xf32>
    %1373 = vector.broadcast %1278 : vector<1x96xf32> to vector<2x96xf32>
    %1374 = arith.addf %1372, %1373 : vector<2x96xf32>
    %1375 = vector.extract_strided_slice %1276 {offsets = [6, 0], sizes = [2, 96], strides = [1, 1]} : vector<16x96xf32> to vector<2x96xf32>
    %1376 = vector.extract_strided_slice %1375 {offsets = [0, 0], sizes = [2, 32], strides = [1, 1]} : vector<2x96xf32> to vector<2x32xf32>
    %1377 = vector.extract_strided_slice %1374 {offsets = [0, 0], sizes = [2, 32], strides = [1, 1]} : vector<2x96xf32> to vector<2x32xf32>
    %1378 = arith.addf %1376, %1377 : vector<2x32xf32>
    %1379 = arith.negf %1378 : vector<2x32xf32>
    %1380 = math.exp %1379 : vector<2x32xf32>
    %cst_228 = arith.constant 1.000000e+00 : f32
    %1381 = vector.broadcast %cst_228 : f32 to vector<2x32xf32>
    %1382 = arith.addf %1381, %1380 : vector<2x32xf32>
    %1383 = arith.divf %1381, %1382 : vector<2x32xf32>
    %1384 = vector.extract_strided_slice %1375 {offsets = [0, 32], sizes = [2, 32], strides = [1, 1]} : vector<2x96xf32> to vector<2x32xf32>
    %1385 = vector.extract_strided_slice %1374 {offsets = [0, 32], sizes = [2, 32], strides = [1, 1]} : vector<2x96xf32> to vector<2x32xf32>
    %1386 = arith.addf %1384, %1385 : vector<2x32xf32>
    %1387 = arith.negf %1386 : vector<2x32xf32>
    %1388 = math.exp %1387 : vector<2x32xf32>
    %cst_229 = arith.constant 1.000000e+00 : f32
    %1389 = vector.broadcast %cst_229 : f32 to vector<2x32xf32>
    %1390 = arith.addf %1389, %1388 : vector<2x32xf32>
    %1391 = arith.divf %1389, %1390 : vector<2x32xf32>
    %1392 = vector.extract_strided_slice %1375 {offsets = [0, 64], sizes = [2, 32], strides = [1, 1]} : vector<2x96xf32> to vector<2x32xf32>
    %1393 = vector.extract_strided_slice %1374 {offsets = [0, 64], sizes = [2, 32], strides = [1, 1]} : vector<2x96xf32> to vector<2x32xf32>
    %1394 = arith.mulf %1383, %1393 : vector<2x32xf32>
    %1395 = arith.addf %1392, %1394 : vector<2x32xf32>
    %1396 = math.tanh %1395 : vector<2x32xf32>
    %cst_230 = arith.constant 1.000000e+00 : f32
    %1397 = vector.broadcast %cst_230 : f32 to vector<2x32xf32>
    %1398 = arith.subf %1397, %1391 : vector<2x32xf32>
    %1399 = arith.mulf %1398, %1396 : vector<2x32xf32>
    %1400 = arith.mulf %1391, %1371 : vector<2x32xf32>
    %1401 = arith.addf %1399, %1400 : vector<2x32xf32>
    %cst_231 = arith.constant dense<0.000000e+00> : vector<2x96xf32>
    %1402 = tpu.matmul %1401, %1277, %cst_231 {dimension_numbers = #tpu.dot_dimension_numbers<[1], [0], [0], [1], [0, 0, 1, 1], [], []>} : vector<2x32xf32>, vector<32x96xf32>, vector<2x96xf32> -> vector<2x96xf32>
    %1403 = vector.broadcast %1278 : vector<1x96xf32> to vector<2x96xf32>
    %1404 = arith.addf %1402, %1403 : vector<2x96xf32>
    %1405 = vector.extract_strided_slice %1276 {offsets = [8, 0], sizes = [2, 96], strides = [1, 1]} : vector<16x96xf32> to vector<2x96xf32>
    %1406 = vector.extract_strided_slice %1405 {offsets = [0, 0], sizes = [2, 32], strides = [1, 1]} : vector<2x96xf32> to vector<2x32xf32>
    %1407 = vector.extract_strided_slice %1404 {offsets = [0, 0], sizes = [2, 32], strides = [1, 1]} : vector<2x96xf32> to vector<2x32xf32>
    %1408 = arith.addf %1406, %1407 : vector<2x32xf32>
    %1409 = arith.negf %1408 : vector<2x32xf32>
    %1410 = math.exp %1409 : vector<2x32xf32>
    %cst_232 = arith.constant 1.000000e+00 : f32
    %1411 = vector.broadcast %cst_232 : f32 to vector<2x32xf32>
    %1412 = arith.addf %1411, %1410 : vector<2x32xf32>
    %1413 = arith.divf %1411, %1412 : vector<2x32xf32>
    %1414 = vector.extract_strided_slice %1405 {offsets = [0, 32], sizes = [2, 32], strides = [1, 1]} : vector<2x96xf32> to vector<2x32xf32>
    %1415 = vector.extract_strided_slice %1404 {offsets = [0, 32], sizes = [2, 32], strides = [1, 1]} : vector<2x96xf32> to vector<2x32xf32>
    %1416 = arith.addf %1414, %1415 : vector<2x32xf32>
    %1417 = arith.negf %1416 : vector<2x32xf32>
    %1418 = math.exp %1417 : vector<2x32xf32>
    %cst_233 = arith.constant 1.000000e+00 : f32
    %1419 = vector.broadcast %cst_233 : f32 to vector<2x32xf32>
    %1420 = arith.addf %1419, %1418 : vector<2x32xf32>
    %1421 = arith.divf %1419, %1420 : vector<2x32xf32>
    %1422 = vector.extract_strided_slice %1405 {offsets = [0, 64], sizes = [2, 32], strides = [1, 1]} : vector<2x96xf32> to vector<2x32xf32>
    %1423 = vector.extract_strided_slice %1404 {offsets = [0, 64], sizes = [2, 32], strides = [1, 1]} : vector<2x96xf32> to vector<2x32xf32>
    %1424 = arith.mulf %1413, %1423 : vector<2x32xf32>
    %1425 = arith.addf %1422, %1424 : vector<2x32xf32>
    %1426 = math.tanh %1425 : vector<2x32xf32>
    %cst_234 = arith.constant 1.000000e+00 : f32
    %1427 = vector.broadcast %cst_234 : f32 to vector<2x32xf32>
    %1428 = arith.subf %1427, %1421 : vector<2x32xf32>
    %1429 = arith.mulf %1428, %1426 : vector<2x32xf32>
    %1430 = arith.mulf %1421, %1401 : vector<2x32xf32>
    %1431 = arith.addf %1429, %1430 : vector<2x32xf32>
    %cst_235 = arith.constant dense<0.000000e+00> : vector<2x96xf32>
    %1432 = tpu.matmul %1431, %1277, %cst_235 {dimension_numbers = #tpu.dot_dimension_numbers<[1], [0], [0], [1], [0, 0, 1, 1], [], []>} : vector<2x32xf32>, vector<32x96xf32>, vector<2x96xf32> -> vector<2x96xf32>
    %1433 = vector.broadcast %1278 : vector<1x96xf32> to vector<2x96xf32>
    %1434 = arith.addf %1432, %1433 : vector<2x96xf32>
    %1435 = vector.extract_strided_slice %1276 {offsets = [10, 0], sizes = [2, 96], strides = [1, 1]} : vector<16x96xf32> to vector<2x96xf32>
    %1436 = vector.extract_strided_slice %1435 {offsets = [0, 0], sizes = [2, 32], strides = [1, 1]} : vector<2x96xf32> to vector<2x32xf32>
    %1437 = vector.extract_strided_slice %1434 {offsets = [0, 0], sizes = [2, 32], strides = [1, 1]} : vector<2x96xf32> to vector<2x32xf32>
    %1438 = arith.addf %1436, %1437 : vector<2x32xf32>
    %1439 = arith.negf %1438 : vector<2x32xf32>
    %1440 = math.exp %1439 : vector<2x32xf32>
    %cst_236 = arith.constant 1.000000e+00 : f32
    %1441 = vector.broadcast %cst_236 : f32 to vector<2x32xf32>
    %1442 = arith.addf %1441, %1440 : vector<2x32xf32>
    %1443 = arith.divf %1441, %1442 : vector<2x32xf32>
    %1444 = vector.extract_strided_slice %1435 {offsets = [0, 32], sizes = [2, 32], strides = [1, 1]} : vector<2x96xf32> to vector<2x32xf32>
    %1445 = vector.extract_strided_slice %1434 {offsets = [0, 32], sizes = [2, 32], strides = [1, 1]} : vector<2x96xf32> to vector<2x32xf32>
    %1446 = arith.addf %1444, %1445 : vector<2x32xf32>
    %1447 = arith.negf %1446 : vector<2x32xf32>
    %1448 = math.exp %1447 : vector<2x32xf32>
    %cst_237 = arith.constant 1.000000e+00 : f32
    %1449 = vector.broadcast %cst_237 : f32 to vector<2x32xf32>
    %1450 = arith.addf %1449, %1448 : vector<2x32xf32>
    %1451 = arith.divf %1449, %1450 : vector<2x32xf32>
    %1452 = vector.extract_strided_slice %1435 {offsets = [0, 64], sizes = [2, 32], strides = [1, 1]} : vector<2x96xf32> to vector<2x32xf32>
    %1453 = vector.extract_strided_slice %1434 {offsets = [0, 64], sizes = [2, 32], strides = [1, 1]} : vector<2x96xf32> to vector<2x32xf32>
    %1454 = arith.mulf %1443, %1453 : vector<2x32xf32>
    %1455 = arith.addf %1452, %1454 : vector<2x32xf32>
    %1456 = math.tanh %1455 : vector<2x32xf32>
    %cst_238 = arith.constant 1.000000e+00 : f32
    %1457 = vector.broadcast %cst_238 : f32 to vector<2x32xf32>
    %1458 = arith.subf %1457, %1451 : vector<2x32xf32>
    %1459 = arith.mulf %1458, %1456 : vector<2x32xf32>
    %1460 = arith.mulf %1451, %1431 : vector<2x32xf32>
    %1461 = arith.addf %1459, %1460 : vector<2x32xf32>
    %cst_239 = arith.constant dense<0.000000e+00> : vector<2x96xf32>
    %1462 = tpu.matmul %1461, %1277, %cst_239 {dimension_numbers = #tpu.dot_dimension_numbers<[1], [0], [0], [1], [0, 0, 1, 1], [], []>} : vector<2x32xf32>, vector<32x96xf32>, vector<2x96xf32> -> vector<2x96xf32>
    %1463 = vector.broadcast %1278 : vector<1x96xf32> to vector<2x96xf32>
    %1464 = arith.addf %1462, %1463 : vector<2x96xf32>
    %1465 = vector.extract_strided_slice %1276 {offsets = [12, 0], sizes = [2, 96], strides = [1, 1]} : vector<16x96xf32> to vector<2x96xf32>
    %1466 = vector.extract_strided_slice %1465 {offsets = [0, 0], sizes = [2, 32], strides = [1, 1]} : vector<2x96xf32> to vector<2x32xf32>
    %1467 = vector.extract_strided_slice %1464 {offsets = [0, 0], sizes = [2, 32], strides = [1, 1]} : vector<2x96xf32> to vector<2x32xf32>
    %1468 = arith.addf %1466, %1467 : vector<2x32xf32>
    %1469 = arith.negf %1468 : vector<2x32xf32>
    %1470 = math.exp %1469 : vector<2x32xf32>
    %cst_240 = arith.constant 1.000000e+00 : f32
    %1471 = vector.broadcast %cst_240 : f32 to vector<2x32xf32>
    %1472 = arith.addf %1471, %1470 : vector<2x32xf32>
    %1473 = arith.divf %1471, %1472 : vector<2x32xf32>
    %1474 = vector.extract_strided_slice %1465 {offsets = [0, 32], sizes = [2, 32], strides = [1, 1]} : vector<2x96xf32> to vector<2x32xf32>
    %1475 = vector.extract_strided_slice %1464 {offsets = [0, 32], sizes = [2, 32], strides = [1, 1]} : vector<2x96xf32> to vector<2x32xf32>
    %1476 = arith.addf %1474, %1475 : vector<2x32xf32>
    %1477 = arith.negf %1476 : vector<2x32xf32>
    %1478 = math.exp %1477 : vector<2x32xf32>
    %cst_241 = arith.constant 1.000000e+00 : f32
    %1479 = vector.broadcast %cst_241 : f32 to vector<2x32xf32>
    %1480 = arith.addf %1479, %1478 : vector<2x32xf32>
    %1481 = arith.divf %1479, %1480 : vector<2x32xf32>
    %1482 = vector.extract_strided_slice %1465 {offsets = [0, 64], sizes = [2, 32], strides = [1, 1]} : vector<2x96xf32> to vector<2x32xf32>
    %1483 = vector.extract_strided_slice %1464 {offsets = [0, 64], sizes = [2, 32], strides = [1, 1]} : vector<2x96xf32> to vector<2x32xf32>
    %1484 = arith.mulf %1473, %1483 : vector<2x32xf32>
    %1485 = arith.addf %1482, %1484 : vector<2x32xf32>
    %1486 = math.tanh %1485 : vector<2x32xf32>
    %cst_242 = arith.constant 1.000000e+00 : f32
    %1487 = vector.broadcast %cst_242 : f32 to vector<2x32xf32>
    %1488 = arith.subf %1487, %1481 : vector<2x32xf32>
    %1489 = arith.mulf %1488, %1486 : vector<2x32xf32>
    %1490 = arith.mulf %1481, %1461 : vector<2x32xf32>
    %1491 = arith.addf %1489, %1490 : vector<2x32xf32>
    %cst_243 = arith.constant dense<0.000000e+00> : vector<2x96xf32>
    %1492 = tpu.matmul %1491, %1277, %cst_243 {dimension_numbers = #tpu.dot_dimension_numbers<[1], [0], [0], [1], [0, 0, 1, 1], [], []>} : vector<2x32xf32>, vector<32x96xf32>, vector<2x96xf32> -> vector<2x96xf32>
    %1493 = vector.broadcast %1278 : vector<1x96xf32> to vector<2x96xf32>
    %1494 = arith.addf %1492, %1493 : vector<2x96xf32>
    %1495 = vector.extract_strided_slice %1276 {offsets = [14, 0], sizes = [2, 96], strides = [1, 1]} : vector<16x96xf32> to vector<2x96xf32>
    %1496 = vector.extract_strided_slice %1495 {offsets = [0, 0], sizes = [2, 32], strides = [1, 1]} : vector<2x96xf32> to vector<2x32xf32>
    %1497 = vector.extract_strided_slice %1494 {offsets = [0, 0], sizes = [2, 32], strides = [1, 1]} : vector<2x96xf32> to vector<2x32xf32>
    %1498 = arith.addf %1496, %1497 : vector<2x32xf32>
    %1499 = arith.negf %1498 : vector<2x32xf32>
    %1500 = math.exp %1499 : vector<2x32xf32>
    %cst_244 = arith.constant 1.000000e+00 : f32
    %1501 = vector.broadcast %cst_244 : f32 to vector<2x32xf32>
    %1502 = arith.addf %1501, %1500 : vector<2x32xf32>
    %1503 = arith.divf %1501, %1502 : vector<2x32xf32>
    %1504 = vector.extract_strided_slice %1495 {offsets = [0, 32], sizes = [2, 32], strides = [1, 1]} : vector<2x96xf32> to vector<2x32xf32>
    %1505 = vector.extract_strided_slice %1494 {offsets = [0, 32], sizes = [2, 32], strides = [1, 1]} : vector<2x96xf32> to vector<2x32xf32>
    %1506 = arith.addf %1504, %1505 : vector<2x32xf32>
    %1507 = arith.negf %1506 : vector<2x32xf32>
    %1508 = math.exp %1507 : vector<2x32xf32>
    %cst_245 = arith.constant 1.000000e+00 : f32
    %1509 = vector.broadcast %cst_245 : f32 to vector<2x32xf32>
    %1510 = arith.addf %1509, %1508 : vector<2x32xf32>
    %1511 = arith.divf %1509, %1510 : vector<2x32xf32>
    %1512 = vector.extract_strided_slice %1495 {offsets = [0, 64], sizes = [2, 32], strides = [1, 1]} : vector<2x96xf32> to vector<2x32xf32>
    %1513 = vector.extract_strided_slice %1494 {offsets = [0, 64], sizes = [2, 32], strides = [1, 1]} : vector<2x96xf32> to vector<2x32xf32>
    %1514 = arith.mulf %1503, %1513 : vector<2x32xf32>
    %1515 = arith.addf %1512, %1514 : vector<2x32xf32>
    %1516 = math.tanh %1515 : vector<2x32xf32>
    %cst_246 = arith.constant 1.000000e+00 : f32
    %1517 = vector.broadcast %cst_246 : f32 to vector<2x32xf32>
    %1518 = arith.subf %1517, %1511 : vector<2x32xf32>
    %1519 = arith.mulf %1518, %1516 : vector<2x32xf32>
    %1520 = arith.mulf %1511, %1491 : vector<2x32xf32>
    %1521 = arith.addf %1519, %1520 : vector<2x32xf32>
    %1522 = tpu.concatenate %1311, %1341, %1371, %1401, %1431, %1461, %1491, %1521 in 0 : vector<2x32xf32>, vector<2x32xf32>, vector<2x32xf32>, vector<2x32xf32>, vector<2x32xf32>, vector<2x32xf32>, vector<2x32xf32>, vector<2x32xf32> -> vector<16x32xf32>
    %c0_247 = arith.constant 0 : index
    %c0_248 = arith.constant 0 : index
    %1523 = vector.load %arg20[%c0_247, %c0_248] : memref<32x16xf32, #tpu.memory_space<vmem>>, vector<32x16xf32>
    %cst_249 = arith.constant dense<0.000000e+00> : vector<16x16xf32>
    %1524 = tpu.matmul %1522, %1523, %cst_249 {dimension_numbers = #tpu.dot_dimension_numbers<[1], [0], [0], [1], [0, 0, 1, 1], [], []>} : vector<16x32xf32>, vector<32x16xf32>, vector<16x16xf32> -> vector<16x16xf32>
    %c0_250 = arith.constant 0 : index
    %c0_251 = arith.constant 0 : index
    %1525 = vector.load %arg21[%c0_250, %c0_251] : memref<1x16xf32, #tpu.memory_space<vmem>>, vector<1x16xf32>
    %1526 = vector.broadcast %1525 : vector<1x16xf32> to vector<16x16xf32>
    %1527 = arith.addf %1524, %1526 : vector<16x16xf32>
    %cst_252 = arith.constant dense<0.000000e+00> : vector<16xf32>
    %1528 = vector.multi_reduction <add>, %1527, %cst_252 [1] : vector<16x16xf32> to vector<16xf32>
    %1529 = vector.shape_cast %1528 : vector<16xf32> to vector<16x1xf32>
    %cst_253 = arith.constant 1.600000e+01 : f32
    %1530 = vector.broadcast %cst_253 : f32 to vector<16x1xf32>
    %1531 = arith.divf %1529, %1530 : vector<16x1xf32>
    %1532 = vector.broadcast %1531 : vector<16x1xf32> to vector<16x16xf32>
    %1533 = arith.subf %1527, %1532 : vector<16x16xf32>
    %1534 = arith.mulf %1533, %1533 : vector<16x16xf32>
    %cst_254 = arith.constant dense<0.000000e+00> : vector<16xf32>
    %1535 = vector.multi_reduction <add>, %1534, %cst_254 [1] : vector<16x16xf32> to vector<16xf32>
    %1536 = vector.shape_cast %1535 : vector<16xf32> to vector<16x1xf32>
    %cst_255 = arith.constant 1.600000e+01 : f32
    %1537 = vector.broadcast %cst_255 : f32 to vector<16x1xf32>
    %1538 = arith.divf %1536, %1537 : vector<16x1xf32>
    %1539 = vector.broadcast %1531 : vector<16x1xf32> to vector<16x16xf32>
    %1540 = arith.subf %1527, %1539 : vector<16x16xf32>
    %cst_256 = arith.constant 9.99999974E-6 : f32
    %1541 = vector.broadcast %cst_256 : f32 to vector<16x1xf32>
    %1542 = arith.addf %1538, %1541 : vector<16x1xf32>
    %1543 = math.rsqrt %1542 : vector<16x1xf32>
    %1544 = vector.broadcast %1543 : vector<16x1xf32> to vector<16x16xf32>
    %1545 = arith.mulf %1540, %1544 : vector<16x16xf32>
    %c0_257 = arith.constant 0 : index
    %c0_258 = arith.constant 0 : index
    %1546 = vector.load %arg22[%c0_257, %c0_258] : memref<1x16xf32, #tpu.memory_space<vmem>>, vector<1x16xf32>
    %1547 = vector.broadcast %1546 : vector<1x16xf32> to vector<16x16xf32>
    %1548 = arith.mulf %1545, %1547 : vector<16x16xf32>
    %c0_259 = arith.constant 0 : index
    %c0_260 = arith.constant 0 : index
    %1549 = vector.load %arg23[%c0_259, %c0_260] : memref<1x16xf32, #tpu.memory_space<vmem>>, vector<1x16xf32>
    %1550 = vector.broadcast %1549 : vector<1x16xf32> to vector<16x16xf32>
    %1551 = arith.addf %1548, %1550 : vector<16x16xf32>
    %cst_261 = arith.constant 0.000000e+00 : f32
    %1552 = vector.broadcast %cst_261 : f32 to vector<16x16xf32>
    %1553 = arith.maximumf %1551, %1552 : vector<16x16xf32>
    %c0_262 = arith.constant 0 : index
    %c0_263 = arith.constant 0 : index
    %1554 = vector.load %arg24[%c0_262, %c0_263] : memref<16x10xf32, #tpu.memory_space<vmem>>, vector<16x10xf32>
    %cst_264 = arith.constant dense<0.000000e+00> : vector<16x10xf32>
    %1555 = tpu.matmul %1553, %1554, %cst_264 {dimension_numbers = #tpu.dot_dimension_numbers<[1], [0], [0], [1], [0, 0, 1, 1], [], []>} : vector<16x16xf32>, vector<16x10xf32>, vector<16x10xf32> -> vector<16x10xf32>
    %c0_265 = arith.constant 0 : index
    %c0_266 = arith.constant 0 : index
    %1556 = vector.load %arg25[%c0_265, %c0_266] : memref<1x10xf32, #tpu.memory_space<vmem>>, vector<1x10xf32>
    %1557 = vector.broadcast %1556 : vector<1x10xf32> to vector<16x10xf32>
    %1558 = arith.addf %1555, %1557 : vector<16x10xf32>
    %c0_267 = arith.constant 0 : index
    %c0_268 = arith.constant 0 : index
    %1559 = vector.load %arg27[%c0_267, %c0_268] : memref<16x10xf32, #tpu.memory_space<vmem>>, vector<16x10xf32>
    tpu.vector_store %arg27[%c0_267, %c0_268], %1558 {strides = array<i32>} : memref<16x10xf32, #tpu.memory_space<vmem>>, vector<16x10xf32>,
    return
  }
}

</mosaic_0001>

<bundles_post_ra>
// kernel: tpu_custom_call.1
= control target key start
LH: loop header
LB: loop body
LE: loop exit
PB: predicated region body
PF: predicated region fallthrough
CT: control target
= control target key end

     0   :  { %s7083_s0 = inlined_call_operand.hbm [shape: f32[16,32], index: 0, kind: input, shape index: {}]   ;;  %s7084_s1 = inlined_call_operand.vmem [shape: f32[32,192], index: 1, kind: input, shape index: {}]   ;;  %s7085_s2 = inlined_call_operand.hbm [shape: f32[1,192], index: 2, kind: input, shape index: {}]   ;;  %s7086_s3 = inlined_call_operand.hbm [shape: f32[32,192], index: 3, kind: input, shape index: {}]   ;;  %s7087_s4 = inlined_call_operand.hbm [shape: f32[1,192], index: 4, kind: input, shape index: {}]   ;;  %s7088_s5 = inlined_call_operand.hbm [shape: f32[64,192], index: 5, kind: input, shape index: {}]   ;;  %s7089_s6 = inlined_call_operand.hbm [shape: f32[1,192], index: 6, kind: input, shape index: {}]   ;;  %s7090_s7 = inlined_call_operand.hbm [shape: f32[32,192], index: 7, kind: input, shape index: {}]   ;;  %s7091_s8 = inlined_call_operand.hbm [shape: f32[1,192], index: 8, kind: input, shape index: {}]   ;;  %s7092_s9 = inlined_call_operand.hbm [shape: f32[32,96], index: 9, kind: input, shape index: {}]   ;;  %s7093_s10 = inlined_call_operand.hbm [shape: f32[1,96], index: 10, kind: input, shape index: {}]   ;;  %s7094_s11 = inlined_call_operand.hbm [shape: f32[32,96], index: 11, kind: input, shape index: {}]   ;;  %s7095_s12 = inlined_call_operand.hbm [shape: f32[1,96], index: 12, kind: input, shape index: {}]   ;;  %s7096_s13 = inlined_call_operand.hbm [shape: f32[32,96], index: 13, kind: input, shape index: {}]   ;;  %s7097_s14 = inlined_call_operand.hbm [shape: f32[1,96], index: 14, kind: input, shape index: {}]   ;;  %s7098_s15 = inlined_call_operand.hbm [shape: f32[32,96], index: 15, kind: input, shape index: {}]   ;;  %s7099_s16 = inlined_call_operand.hbm [shape: f32[1,96], index: 16, kind: input, shape index: {}]   ;;  %s7100_s17 = inlined_call_operand.hbm [shape: f32[4,32], index: 17, kind: input, shape index: {}]   ;;  %s7101_s18 = inlined_call_operand.vmem [shape: f32[32,6], index: 18, kind: input, shape index: {}]   ;;  %s7102_s19 = inlined_call_operand.vmem [shape: f32[1,6], index: 19, kind: input, shape index: {}]   ;;  %s7103_s20 = inlined_call_operand.vmem [shape: f32[32,16], index: 20, kind: input, shape index: {}]   ;;  %s7104_s21 = inlined_call_operand.vmem [shape: f32[1,16], index: 21, kind: input, shape index: {}]   ;;  %s7105_s22 = inlined_call_operand.vmem [shape: f32[1,16], index: 22, kind: input, shape index: {}]   ;;  %s7106_s23 = inlined_call_operand.vmem [shape: f32[1,16], index: 23, kind: input, shape index: {}]   ;;  %s7107_s24 = inlined_call_operand.vmem [shape: f32[16,10], index: 24, kind: input, shape index: {}]   ;;  %s7108_s25 = inlined_call_operand.vmem [shape: f32[1,10], index: 25, kind: input, shape index: {}]   ;;  %s7109_s26 = inlined_call_operand.hbm [shape: f32[2,6], index: 26, kind: output, shape index: {0}]   ;;  %s7110_s27 = inlined_call_operand.hbm [shape: f32[16,10], index: 27, kind: output, shape index: {1}]  }
   0x1   :  { %7114 = sst [smem:[#allocation43_spill]] %s7083_s0 }
   0x2   :  { %7115 = sst [smem:[#allocation44_spill]] %s7084_s1 }
   0x3   :  { %7116 = sst [smem:[#allocation45_spill]] %s7085_s2 }
   0x4   :  { %7117 = sst [smem:[#allocation46_spill]] %s7086_s3 }
   0x5   :  { %7118 = sst [smem:[#allocation47_spill]] %s7087_s4 }
   0x6   :  { %7119 = sst [smem:[#allocation48_spill]] %s7088_s5 }
   0x7   :  { %7120 = sst [smem:[#allocation49_spill]] %s7089_s6 }
   0x8   :  { %7121 = sst [smem:[#allocation50_spill]] %s7090_s7 }
   0x9   :  { %7122 = sst [smem:[#allocation51_spill]] %s7091_s8 }
   0xa   :  { %7123 = sst [smem:[#allocation52_spill]] %s7092_s9 }
   0xb   :  { %7124 = sst [smem:[#allocation53_spill]] %s7093_s10 }
   0xc   :  { %7125 = sst [smem:[#allocation54_spill]] %s7094_s11 }
   0xd   :  { %7126 = sst [smem:[#allocation55_spill]] %s7108_s25 }
   0xe   :  { %7127 = sst [smem:[#allocation56_spill]] %s7109_s26 }
   0xf   :  { %7128 = sst [smem:[#allocation57_spill]] %s7110_s27 }
  0x10   :  { %33 = vsyncpa [#allocation3], 0 }
  0x11   :  { %34 = vsyncpa [#allocation6], 0 }
  0x12   :  { %35 = vsyncpa [#allocation9], 0 }
  0x13   :  { %36 = vsyncpa [#allocation12], 0 }
  0x14   :  { %37 = vsyncpa [#allocation15], 0 }
  0x15   :  { %38 = vsyncpa [#allocation18], 0 }
  0x16   :  { %39 = vsyncpa [#allocation21], 0 }
  0x17   :  { %40 = vsyncpa [#allocation24], 0 }
  0x18   :  { %41 = vsyncpa [#allocation27], 0 }
  0x19   :  { %42 = vsyncpa [#allocation4], 0  ;;  %s7129_s8 = sld [smem:[#allocation45_spill]] }
  0x1f   :  { %s64_s30 = sshll.u32 %s7129_s8, 4  ;;  %s65_s30 = int_to_ptr.hbm [resolvable:$true] %s64_s30 }
  0x20   :  { %43 = vsyncpa [#allocation31], 0  ;;  %s5686_s9 = smov [#allocation5]   ;;  %s7130_s10 = sld [smem:[#allocation47_spill]] }
  0x21   :  { %s66_s5 = sshll.u32 %s5686_s9, 4  ;;  %s5687_s1 = smov [#allocation8]   ;;  %s67_s5 = int_to_ptr.vmem [resolvable:$true] %s66_s5 }
  0x22   :  { %69 = dma.hbm_to_vmem [thread:$0]  %s65_s30, 32, %s67_s5, [#allocation6]  }
  0x23   :  { %s90_s6 = sshll.u32 %s5687_s1, 4  ;;  %s7131_s3 = sld [smem:[#allocation49_spill]]  ;;  %s91_s6 = int_to_ptr.vmem [resolvable:$true] %s90_s6 }
  0x24   :  { %s7132_s8 = sld [smem:[#allocation51_spill]]  ;;  %s5688_s26 = smov [#allocation11]  }
  0x25   :  { %s114_s25 = sshll.u32 %s5688_s26, 4  ;;  %s5689_s30 = smov [#allocation14]   ;;  %s115_s25 = int_to_ptr.vmem [resolvable:$true] %s114_s25 }
  0x26   :  { %s88_s29 = sshll.u32 %s7130_s10, 4  ;;  %s138_s5 = sshll.u32 %s5689_s30, 4  ;;  %s89_s29 = int_to_ptr.hbm [resolvable:$true] %s88_s29  ;;  %s139_s5 = int_to_ptr.vmem [resolvable:$true] %s138_s5 }
  0x27   :  { %93 = dma.hbm_to_vmem [thread:$0]  %s89_s29, 32, %s91_s6, [#allocation9]  }
  0x28   :  { %s7133_s10 = sld [smem:[#allocation53_spill]]  ;;  %s184_s6 = sshll.u32 %s7095_s12, 4  ;;  %s185_s6 = int_to_ptr.hbm [resolvable:$true] %s184_s6 }
  0x29   :  { %s112_s27 = sshll.u32 %s7131_s3, 4  ;;  %s5690_s2 = smov [#allocation17]   ;;  %s113_s27 = int_to_ptr.hbm [resolvable:$true] %s112_s27 }
  0x2a   :  { %s136_s9 = sshll.u32 %s7132_s8, 4  ;;  %s162_s3 = sshll.u32 %s5690_s2, 4  ;;  %s137_s9 = int_to_ptr.hbm [resolvable:$true] %s136_s9  ;;  %s163_s3 = int_to_ptr.vmem [resolvable:$true] %s162_s3 }
  0x2b   :  { %117 = dma.hbm_to_vmem [thread:$0]  %s113_s27, 32, %s115_s25, [#allocation12]  }
  0x2c   :  { %141 = dma.hbm_to_vmem [thread:$0]  %s137_s9, 32, %s139_s5, [#allocation15]  }
  0x2d   :  { %s5691_s26 = smov [#allocation20]   ;;  %s208_s4 = sshll.u32 %s7097_s14, 4  ;;  %s209_s4 = int_to_ptr.hbm [resolvable:$true] %s208_s4 }
  0x2e   :  { %s160_s1 = sshll.u32 %s7133_s10, 4  ;;  %s186_s25 = sshll.u32 %s5691_s26, 4  ;;  %s161_s1 = int_to_ptr.hbm [resolvable:$true] %s160_s1  ;;  %s187_s25 = int_to_ptr.vmem [resolvable:$true] %s186_s25 }
  0x2f   :  { %165 = dma.hbm_to_vmem [thread:$0]  %s161_s1, 16, %s163_s3, [#allocation18]  }
  0x30   :  { %189 = dma.hbm_to_vmem [thread:$0]  %s185_s6, 16, %s187_s25, [#allocation21]  }
  0x31   :  { %s232_s30 = sshll.u32 %s7099_s16, 4  ;;  %s5692_s5 = smov [#allocation23]   ;;  %s233_s30 = int_to_ptr.hbm [resolvable:$true] %s232_s30 }
  0x32   :  { %s210_s12 = sshll.u32 %s5692_s5, 4  ;;  %s5693_s28 = smov [#allocation26]   ;;  %s211_s12 = int_to_ptr.vmem [resolvable:$true] %s210_s12 }
  0x33   :  { %213 = dma.hbm_to_vmem [thread:$0]  %s209_s4, 16, %s211_s12, [#allocation24]  }
  0x34   :  { %s234_s0 = sshll.u32 %s5693_s28, 4  ;;  %s7134_s11 = sld [smem:[#allocation43_spill]]  ;;  %s235_s0 = int_to_ptr.vmem [resolvable:$true] %s234_s0 }
  0x35   :  { %237 = dma.hbm_to_vmem [thread:$0]  %s233_s30, 16, %s235_s0, [#allocation27]  }
  0x36   :  { %s5694_s14 = smov [#allocation2]   ;;  %s7135_s16 = sld [smem:[#allocation46_spill]] }
  0x37   :  { %s50_s6 = sshll.u32 %s5694_s14, 4  ;;  %s7112_s25 = smov 128   ;;  %s51_s6 = int_to_ptr.vmem [resolvable:$true] %s50_s6 }
  0x38   :  { %s5696_s27 = smov 8   ;;  %s5697_s7 = smov [#allocation7]  }
  0x39   :  { %s76_s4 = sshll.u32 %s5697_s7, 4  ;;  %s5698_s8 = smov 256   ;;  %s77_s4 = int_to_ptr.vmem [resolvable:$true] %s76_s4 }
  0x3a   :  { %s48_s29 = sshll.u32 %s7134_s11, 4  ;;  %s5699_s9 = smov 16   ;;  %s49_s29 = int_to_ptr.hbm [resolvable:$true] %s48_s29 }
  0x3b   :  { %56 = dma.hbm_to_vmem [thread:$0]  %s49_s29, 256, %s51_s6, [#allocation3], %s7112_s25, %s7112_s25, %s5696_s27  }
  0x3c   :  { %s74_s26 = sshll.u32 %s7135_s16, 4  ;;  %s7136_s12 = sld [smem:[#allocation48_spill]]  ;;  %s75_s26 = int_to_ptr.hbm [resolvable:$true] %s74_s26 }
  0x3d   :  { %82 = dma.hbm_to_vmem [thread:$0]  %s75_s26, 1024, %s77_s4, [#allocation6], %s5698_s8, %s5698_s8, %s5699_s9  }
  0x3e   :  { %s5700_s0 = smov [#allocation10]   ;;  %s7137_s14 = sld [smem:[#allocation50_spill]] }
  0x3f   :  { %s100_s10 = sshll.u32 %s5700_s0, 4  ;;  %s5701_s29 = smov [#allocation13]   ;;  %s101_s10 = int_to_ptr.vmem [resolvable:$true] %s100_s10 }
  0x40   :  { %s124_s6 = sshll.u32 %s5701_s29, 4  ;;  %s7138_s7 = sld [smem:[#allocation52_spill]]  ;;  %s125_s6 = int_to_ptr.vmem [resolvable:$true] %s124_s6 }
  0x41   :  { %s7139_s5 = sld [smem:[#allocation54_spill]]  ;;  %s5702_s0 = smov [#allocation16]  }
  0x42   :  { %s98_s28 = sshll.u32 %s7136_s12, 4  ;;  %s148_s25 = sshll.u32 %s5702_s0, 4  ;;  %s99_s28 = int_to_ptr.hbm [resolvable:$true] %s98_s28  ;;  %s149_s25 = int_to_ptr.vmem [resolvable:$true] %s148_s25 }
  0x43   :  { %106 = dma.hbm_to_vmem [thread:$0]  %s99_s28, 2048, %s101_s10, [#allocation9], %s5698_s8, %s5698_s8, %s5699_s9  }
  0x44   :  { %s122_s2 = sshll.u32 %s7137_s14, 4  ;;  %s7140_s28 = smov 128   ;;  %s123_s2 = int_to_ptr.hbm [resolvable:$true] %s122_s2 }
  0x45   :  { %130 = dma.hbm_to_vmem [thread:$0]  %s123_s2, 1024, %s125_s6, [#allocation12], %s5698_s8, %s5698_s8, %s5699_s9  }
  0x46   :  { %s146_s26 = sshll.u32 %s7138_s7, 4  ;;  %s5703_s10 = smov [#allocation19]   ;;  %s147_s26 = int_to_ptr.hbm [resolvable:$true] %s146_s26 }
  0x47   :  { %s170_s12 = sshll.u32 %s7139_s5, 4  ;;  %s172_s1 = sshll.u32 %s5703_s10, 4  ;;  %s171_s12 = int_to_ptr.hbm [resolvable:$true] %s170_s12  ;;  %s173_s1 = int_to_ptr.vmem [resolvable:$true] %s172_s1 }
  0x48   :  { %154 = dma.hbm_to_vmem [thread:$0]  %s147_s26, 512, %s149_s25, [#allocation15], %s7140_s28, %s7140_s28, %s5696_s27  }
  0x49   :  { %s194_s29 = sshll.u32 %s7096_s13, 4  ;;  %s218_s2 = sshll.u32 %s7098_s15, 4  ;;  %s195_s29 = int_to_ptr.hbm [resolvable:$true] %s194_s29  ;;  %s219_s2 = int_to_ptr.hbm [resolvable:$true] %s218_s2 }
  0x4a   :  { %178 = dma.hbm_to_vmem [thread:$0]  %s171_s12, 512, %s173_s1, [#allocation18], %s7140_s28, %s7140_s28, %s5696_s27  }
  0x4b   :  { %s5704_s6 = smov [#allocation22]   ;;  %s5705_s25 = smov [#allocation25]  }
  0x4c   :  { %s196_s3 = sshll.u32 %s5704_s6, 4  ;;  %s220_s13 = sshll.u32 %s5705_s25, 4  ;;  %s197_s3 = int_to_ptr.vmem [resolvable:$true] %s196_s3  ;;  %s221_s13 = int_to_ptr.vmem [resolvable:$true] %s220_s13 }
  0x4d   :  { %202 = dma.hbm_to_vmem [thread:$0]  %s195_s29, 512, %s197_s3, [#allocation21], %s7140_s28, %s7140_s28, %s5696_s27  }
  0x4e   :  { %s243_s26 = sshll.u32 %s7100_s17, 4  ;;  %s5706_s15 = smov [#allocation28]   ;;  %s244_s26 = int_to_ptr.hbm [resolvable:$true] %s243_s26 }
  0x4f   :  { %226 = dma.hbm_to_vmem [thread:$0]  %s219_s2, 512, %s221_s13, [#allocation24], %s7140_s28, %s7140_s28, %s5696_s27  }
  0x50   :  { %s245_s4 = sshll.u32 %s5706_s15, 4  ;;  %s246_s4 = int_to_ptr.vmem [resolvable:$true] %s245_s4 }
  0x51   :  { %248 = dma.hbm_to_vmem [thread:$0]  %s244_s26, 64, %s246_s4, [#allocation27]  }
  0x52   :  { %5664 = dma.done.wait [#allocation3], 256  }
  0x53   :  { %5665 = vsyncadd [#allocation3], 4294967040 }
  0x54   :  { %5666 = dma.done.wait [#allocation6], 1056  }
  0x55   :  { %5667 = vsyncadd [#allocation6], 4294966240 }
  0x56   :  { %5668 = dma.done.wait [#allocation9], 2080  }
  0x57   :  { %5669 = vsyncadd [#allocation9], 4294965216 }
  0x58   :  { %5670 = dma.done.wait [#allocation12], 1056  }
  0x59   :  { %5671 = vsyncadd [#allocation12], 4294966240 }
  0x5a   :  { %5672 = dma.done.wait [#allocation15], 544  }
  0x5b   :  { %5673 = vsyncadd [#allocation15], 4294966752 }
  0x5c   :  { %5674 = dma.done.wait [#allocation18], 528  }
  0x5d   :  { %5675 = vsyncadd [#allocation18], 4294966768 }
  0x5e   :  { %5676 = dma.done.wait [#allocation21], 528  }
  0x5f   :  { %5677 = vsyncadd [#allocation21], 4294966768 }
  0x60   :  { %5678 = dma.done.wait [#allocation24], 528  }
  0x61   :  { %5679 = vsyncadd [#allocation24], 4294966768 }
  0x62   :  { %5680 = dma.done.wait [#allocation27], 80  }
  0x63   :  { %5681 = vsyncadd [#allocation27], 4294967216  ;;  %v5920_v0 = vld [vmem:[#allocation7 + $0x30] sm:$0xff]  ;;  %v409_v1 = vld [vmem:[#allocation7 + $0x38] sm:$0xff]  ;;  %s7141_s5 = sld [smem:[#allocation44_spill]]  ;;  %s5707_s10 = smov 32  }
  0x64   :  { %v5922_v2 = vld [vmem:[#allocation7 + $0x20] sm:$0xff]  ;;  %429 = vmatpush.msra.mxu2 %v5920_v0  ;;  %v4795_v3 = vpack.i.bf16 %v409_v1, %v5920_v0  ;;  %v5926_v4 = vld [vmem:[#allocation7 + $0x10] sm:$0xff]  ;;  %v405_v5 = vld [vmem:[#allocation7 + $0x18] sm:$0xff]  ;;  %vm349_vm0 = vcmask 261120   ;;  %v5708_v16 = vmov 0.0   ;;  %s5709_s7 = smov 64  }
  0x65   :  { %v4805_v7 = vpack.i.bf16 %v405_v5, %v5926_v4  ;;  %v5932_v8 = vld [vmem:[#allocation7] sm:$0xff]  ;;  %v407_v10 = vld [vmem:[#allocation7 + $0x28] sm:$0xff]  ;;  %v334_v22 = vld [vmem:[#allocation2 + $0x8] sm:$0xff]  ;;  %s5710_s26 = smov 96   ;;  %s5712_s0 = smov [#allocation29]  }
  0x66   :  { %4796 = vrot.lane.b32.xlu0 %v4795_v3, %s5707_s10  ;;  %430 = vmatpush.msra.mxu2 %v5922_v2  ;;  %v333_v13 = vld [vmem:[#allocation2] sm:$0xff]  ;;  %v4800_v15 = vpack.i.bf16 %v407_v10, %v5922_v2  ;;  %v410_v23 = vld [vmem:[#allocation8] sm:$0x3]  ;;  %v6025_v44 = vld [vmem:[#allocation5] sm:$0x3]  ;;  %s4596_s1 = sshll.u32 %s5712_s0, 4  ;;  %s4597_s1 = int_to_ptr.vmem [resolvable:$true] %s4596_s1 }
  0x67   :  { %4806 = vrot.lane.b32.xlu1 %v4805_v7, %s5707_s10  ;;  %v403_v14 = vld [vmem:[#allocation7 + $0x8] sm:$0xff]  ;;  %v5985_v24 = vperm.slane %v410_v23, 0  ;;  %v437_v30 = vperm.slane %v410_v23, 1  ;;  %v345_v45 = vperm.slane %v6025_v44, 0  ;;  %s7148_s14 = sld [smem:[#allocation57_spill]] }
  0x68   :  { %431 = vmatpush.msra.mxu2 %v5926_v4  ;;  %v4810_v17 = vpack.i.bf16 %v403_v14, %v5932_v8 }
  0x69   :  { %v341_v6 = vld [vmem:[%s7141_s5 + $0x30] sm:$0xff]  ;;  %v339_v9 = vld [vmem:[%s7141_s5 + $0x20] sm:$0xff]  ;;  %v342_v18 = vld [vmem:[%s7141_s5 + $0x38] sm:$0xff]  ;;  %470 = vrot.lane.b32.xlu2 %v5985_v24, %s5707_s10 }
  0x6a   :  { %368 = vmatpush.msra.mxu0 %v341_v6  ;;  %v337_v11 = vld [vmem:[%s7141_s5 + $0x10] sm:$0xff]  ;;  %v335_v12 = vld [vmem:[%s7141_s5] sm:$0xff]  ;;  %432 = vmatpush.msra.mxu2 %v5932_v8  ;;  %v340_v19 = vld [vmem:[%s7141_s5 + $0x28] sm:$0xff] }
  0x6b   :  { %433 = vmatmul.f32.vlgmr.msra.gmra.mxu2 %v5708_v16  ;;  %4763 = vmatpush.msra.mxu3 %v342_v18  ;;  %v338_v20 = vld [vmem:[%s7141_s5 + $0x18] sm:$0xff]  ;;  %v336_v21 = vld [vmem:[%s7141_s5 + $0x8] sm:$0xff]  ;;  %s7147_s5 = sld [smem:[#allocation56_spill]] }
  0x6c   :  { %369 = vmatpush.msra.mxu0 %v339_v9  ;;  %615 = vmatpush.msrb.mxu2 %v5920_v0 }
  0x6d   :  { %391 = vmatpush.msra.mxu1 %v342_v18  ;;  %4764 = vmatpush.msra.mxu3 %v340_v19  ;;  %s4608_s29 = sshll.u32 %s7148_s14, 4  ;;  %s4609_s29 = int_to_ptr.hbm [resolvable:$true] %s4608_s29 }
  0x6e   :  { %370 = vmatpush.msra.mxu0 %v337_v11  ;;  %4801 = vrot.lane.b32.xlu0 %v4800_v15, %s5707_s10 }
  0x6f   :  { %616 = vmatpush.msrb.mxu2 %v5922_v2  ;;  %4811 = vrot.lane.b32.xlu1 %v4810_v17, %s5707_s10 }
  0x70   :  { %371 = vmatpush.msra.mxu0 %v335_v12  ;;  %392 = vmatpush.msra.mxu1 %v340_v19 }
  0x71   :  { %4634 = vmatmul.msk.f32.vlgmr.msra.gmra.mxu0 %vm349_vm0, %v333_v13  ;;  %617 = vmatpush.msrb.mxu2 %v5926_v4  ;;  %s4598_s12 = sshll.u32 %s7147_s5, 4  ;;  %s4599_s12 = int_to_ptr.hbm [resolvable:$true] %s4598_s12 }
  0x72   :  { %773 = vmatpush.msrb.mxu0 %v5920_v0  ;;  %4765 = vmatpush.msra.mxu3 %v338_v20 }
  0x73   :  { %618 = vmatpush.msrb.mxu2 %v5932_v8  ;;  %393 = vmatpush.msra.mxu1 %v338_v20 }
  0x74   :  { %774 = vmatpush.msrb.mxu0 %v5922_v2  ;;  %4766 = vmatpush.msra.mxu3 %v336_v21 }
  0x75   :  { %931 = vmatpush.msra.mxu2 %v5920_v0  ;;  %394 = vmatpush.msra.mxu1 %v336_v21 }
  0x76   :  { %775 = vmatpush.msrb.mxu0 %v5926_v4  ;;  %4637 = vmatmul.msk.f32.vlgmr.msra.gmra.mxu3 %vm349_vm0, %v334_v22 }
  0x77   :  { %932 = vmatpush.msra.mxu2 %v5922_v2  ;;  %4636 = vmatmul.msk.f32.vlgmr.msra.gmra.mxu1 %vm349_vm0, %v333_v13 }
  0x78   :  { %776 = vmatpush.msrb.mxu0 %v5932_v8  ;;  %472 = vrot.lane.b32.xlu2 %v437_v30, %s5707_s10 }
  0x79   :  { %933 = vmatpush.msra.mxu2 %v5926_v4  ;;  %4635 = vmatmul.msk.f32.gmra.mxu0 %vm349_vm0, %v334_v22 }
  0x7a   :  { %1087 = vmatpush.msra.mxu0 %v5920_v0 }
  0x7b   :  { %934 = vmatpush.msra.mxu2 %v5932_v8 }
  0x7c   :  { %1088 = vmatpush.msra.mxu0 %v5922_v2 }
  0x7e   :  { %1089 = vmatpush.msra.mxu0 %v5926_v4 }
  0x80   :  { %1090 = vmatpush.msra.mxu0 %v5932_v8 }
  0xc3   :  { %v471_v57 = vpop.permute.xlu2 %470 }
  0xd2   :  { %v473_v5 = vpop.permute.xlu2 %472 }
  0xd3   :  { %v6033_v6 = vsel %vm349_vm0, %v471_v57, %v473_v5 }
  0xd8   :  { %v4797_v25 = vpop.permute.xlu0 %4796 }
  0xd9   :  { %v4799_v26 = vunpack.i.h.bf16 %v4797_v25  ;;  %v4798_v27 = vunpack.i.l.bf16 %v4797_v25  ;;  %v4807_v28 = vpop.permute.xlu1 %4806 }
  0xda   :  { %v4809_v31 = vunpack.i.h.bf16 %v4807_v28  ;;  %v4808_v32 = vunpack.i.l.bf16 %v4807_v28 }
  0xdb   :  { %v5990_v29 = vsel %vm349_vm0, %v4798_v27, %v4799_v26 }
  0xdc   :  { %488 = vmatpush.msrb.mxu3 %v5990_v29  ;;  %797 = vmatpush.msrb.mxu1 %v5990_v29  ;;  %v5996_v39 = vsel %vm349_vm0, %v4808_v32, %v4809_v31 }
  0xe0   :  { %v4802_v33 = vpop.permute.xlu0 %4801 }
  0xe1   :  { %v4804_v34 = vunpack.i.h.bf16 %v4802_v33  ;;  %v4803_v35 = vunpack.i.l.bf16 %v4802_v33  ;;  %v4812_v36 = vpop.permute.xlu1 %4811 }
  0xe2   :  { %v4814_v37 = vunpack.i.h.bf16 %v4812_v36  ;;  %v4813_v38 = vunpack.i.l.bf16 %v4812_v36 }
  0xe3   :  { %v5999_v40 = vsel %vm349_vm0, %v4803_v35, %v4804_v34 }
  0xe4   :  { %489 = vmatpush.msrb.mxu3 %v5999_v40  ;;  %798 = vmatpush.msrb.mxu1 %v5999_v40  ;;  %v6004_v41 = vsel %vm349_vm0, %v4813_v38, %v4814_v37 }
  0xe6   :  { %490 = vmatpush.msrb.mxu3 %v5996_v39  ;;  %799 = vmatpush.msrb.mxu1 %v5996_v39 }
  0xe8   :  { %491 = vmatpush.msrb.mxu3 %v6004_v41  ;;  %800 = vmatpush.msrb.mxu1 %v6004_v41 }
  0xe9   :  { %492 = vmatmul.f32.vlgmr.msrb.gmra.mxu3 %v5708_v16 }
  0xea   :  { %1110 = vmatpush.msra.mxu1 %v5990_v29  ;;  %639 = vmatpush.msra.mxu3 %v5990_v29 }
  0xec   :  { %1111 = vmatpush.msra.mxu1 %v5999_v40  ;;  %640 = vmatpush.msra.mxu3 %v5999_v40 }
  0xee   :  { %1112 = vmatpush.msra.mxu1 %v5996_v39  ;;  %v434_v42 = vpop.f32.mrf.mxu2  ;;  %641 = vmatpush.msra.mxu3 %v5996_v39  ;;  %v373_v46 = vpop.f32.mrf.mxu0 }
  0xef   :  { %v435_v43 = vadd.f32 %v434_v42, %v5985_v24  ;;  %v6028_v47 = vadd.f32 %v373_v46, %v345_v45 }
  0xf0   :  { %1113 = vmatpush.msra.mxu1 %v6004_v41  ;;  %642 = vmatpush.msra.mxu3 %v6004_v41 }
  0xf1   :  { %517 = vrot.lane.b32.xlu0 %v435_v43, %s5709_s7  ;;  %v496_v48 = vadd.f32 %v435_v43, %v6028_v47 }
  0xf2   :  { %955 = vmatpush.msrb.mxu3 %v5990_v29 }
  0xf3   :  { %v4638_v49 = vmul.f32 -1.442695, %v496_v48 }
  0xf4   :  { %956 = vmatpush.msrb.mxu3 %v5999_v40 }
  0xf5   :  { %4847 = vpow2.f32 %v4638_v49 }
  0xf6   :  { %957 = vmatpush.msrb.mxu3 %v5996_v39  ;;  %v376_v14 = vpop.f32.mrf.mxu0 }
  0xf7   :  { %v6040_v15 = vadd.f32 %v376_v14, %v345_v45  ;;  %v346_v45 = vperm.slane %v6025_v44, 1 }
  0xf8   :  { %958 = vmatpush.msrb.mxu3 %v6004_v41 }
  0xf9   :  { %v399_v62 = vpop.f32.mrf.mxu3 }
  0xfa   :  { %v6051_v46 = vadd.f32 %v399_v62, %v346_v45 }
  0xfb   :  { %v4848_v50 = vpop.eup %4847 }
  0xfc   :  { %v500_v51 = vadd.f32 1.0, %v4848_v50 }
  0xfe   :  { %4849 = vrcp.f32 %v500_v51  ;;  %v512_v58 = vand.u32 2147483648, %v500_v51  ;;  %vm506_vm2 = vweird.f32 %v500_v51  ;;  %v510_v59 = vand.u32 2147483647, %v500_v51 }
 0x100   :  { %v513_v61 = vor.u32 1.1754944e-38, %v512_v58  ;;  %vm511_vm4 = vcmp.eq.f32.partialorder %v510_v59, 8.507059e+37 }
 0x104   :  { %v4850_v52 = vpop.eup %4849 }
 0x105   :  { %v502_v53 = vmul.f32 %v4850_v52, %v500_v51  ;;  %vm507_vm1 = vweird.f32 %v4850_v52 }
 0x106   :  { %vm508_vm3 = vmor %vm506_vm2, %vm507_vm1 }
 0x107   :  { %v503_v54 = vsub.f32 1.0, %v502_v53 }
 0x109   :  { %v504_v55 = vmul.f32 %v4850_v52, %v503_v54 }
 0x10b   :  { %v505_v56 = vadd.f32 %v4850_v52, %v504_v55 }
 0x10d   :  { %v509_v60 = vsel %vm508_vm3, %v4850_v52, %v505_v56 }
 0x10e   :  { %v514_v1 = vsel %vm511_vm4, %v513_v61, %v509_v60 }
 0x10f   :  { %v527_v36 = vsub.f32 1.0, %v514_v1  ;;  %v533_v38 = vmul.f32 0.0, %v514_v1 }
 0x163   :  { %v518_v63 = vpop.permute.xlu0 %517 }
 0x164   :  { %v520_v3 = vmul.f32 %v518_v63, %v514_v1 }
 0x166   :  { %522 = vrot.lane.b32.xlu2 %v520_v3, %s5709_s7 }
 0x16c   :  { %v493_v7 = vpop.f32.mrf.mxu3 }
 0x16d   :  { %v494_v9 = vadd.f32 %v493_v7, %v6033_v6 }
 0x16f   :  { %v536_v10 = vrot.slane %v494_v9, 2 }
 0x171   :  { %537 = vrot.lane.b32.xlu1 %v536_v10, %s5710_s26  ;;  %580 = vrot.lane.b32.xlu0 %v536_v10, %s5707_s10 }
 0x1c0   :  { %v523_v11 = vpop.permute.xlu2 %522 }
 0x1c1   :  { %v525_v12 = vadd.f32 %v523_v11, %v6028_v47 }
 0x1c3   :  { %4851 = vtanh.f32 %v525_v12 }
 0x1c9   :  { %v4852_v13 = vpop.eup %4851 }
 0x1ca   :  { %529 = vrot.lane.b32.xlu2 %v4852_v13, %s5710_s26 }
 0x1e3   :  { %v538_v17 = vpop.permute.xlu1 %537  ;;  %v581_v32 = vpop.permute.xlu0 %580 }
 0x1e4   :  { %v540_v18 = vadd.f32 %v538_v17, %v6040_v15  ;;  %v560_v52 = vadd.f32 %v538_v17, %v6051_v46 }
 0x1e6   :  { %v4639_v19 = vmul.f32 -1.442695, %v540_v18  ;;  %v4640_v53 = vmul.f32 -1.442695, %v560_v52 }
 0x1e8   :  { %4853 = vpow2.f32 %v4639_v19 }
 0x1ee   :  { %v4854_v20 = vpop.eup %4853 }
 0x1ef   :  { %v544_v21 = vadd.f32 1.0, %v4854_v20 }
 0x1f1   :  { %4855 = vrcp.f32 %v544_v21  ;;  %v556_v25 = vand.u32 2147483648, %v544_v21  ;;  %vm550_vm5 = vweird.f32 %v544_v21  ;;  %v554_v27 = vand.u32 2147483647, %v544_v21 }
 0x1f3   :  { %v557_v30 = vor.u32 1.1754944e-38, %v556_v25  ;;  %vm555_vm8 = vcmp.eq.f32.partialorder %v554_v27, 8.507059e+37 }
 0x1f7   :  { %v4856_v22 = vpop.eup %4855 }
 0x1f8   :  { %v546_v23 = vmul.f32 %v4856_v22, %v544_v21  ;;  %vm551_vm6 = vweird.f32 %v4856_v22 }
 0x1f9   :  { %vm552_vm7 = vmor %vm550_vm5, %vm551_vm6 }
 0x1fa   :  { %v547_v26 = vsub.f32 1.0, %v546_v23 }
 0x1fc   :  { %v548_v28 = vmul.f32 %v4856_v22, %v547_v26 }
 0x1fe   :  { %v549_v31 = vadd.f32 %v4856_v22, %v548_v28 }
 0x200   :  { %v553_v33 = vsel %vm552_vm7, %v4856_v22, %v549_v31 }
 0x201   :  { %v558_v34 = vsel %vm555_vm8, %v557_v30, %v553_v33 }
 0x202   :  { %v583_v35 = vmul.f32 %v581_v32, %v558_v34 }
 0x204   :  { %585 = vrot.lane.b32.xlu1 %v583_v35, %s5709_s7 }
 0x224   :  { %v530_v37 = vpop.permute.xlu2 %529 }
 0x225   :  { %v532_v42 = vmul.f32 %v530_v37, %v527_v36 }
 0x227   :  { %v6044_v43 = vadd.f32 %v533_v38, %v532_v42 }
 0x229   :  { %599 = vrot.lane.b32.xlu0 %v6044_v43, %s5710_s26 }
 0x276   :  { %v586_v48 = vpop.permute.xlu1 %585 }
 0x277   :  { %v588_v49 = vadd.f32 %v586_v48, %v6051_v46 }
 0x279   :  { %4857 = vtanh.f32 %v588_v49 }
 0x27a   :  { %4859 = vpow2.f32 %v4640_v53 }
 0x27f   :  { %v4858_v50 = vpop.eup %4857 }
 0x280   :  { %592 = vrot.lane.b32.xlu1 %v4858_v50, %s5710_s26  ;;  %v4860_v54 = vpop.eup %4859 }
 0x281   :  { %v564_v55 = vadd.f32 1.0, %v4860_v54 }
 0x283   :  { %4861 = vrcp.f32 %v564_v55  ;;  %v576_v61 = vand.u32 2147483648, %v564_v55  ;;  %vm570_vm10 = vweird.f32 %v564_v55  ;;  %v574_v62 = vand.u32 2147483647, %v564_v55 }
 0x285   :  { %v577_v1 = vor.u32 1.1754944e-38, %v576_v61  ;;  %vm575_vm12 = vcmp.eq.f32.partialorder %v574_v62, 8.507059e+37 }
 0x289   :  { %v4862_v56 = vpop.eup %4861 }
 0x28a   :  { %v566_v57 = vmul.f32 %v4862_v56, %v564_v55  ;;  %vm571_vm9 = vweird.f32 %v4862_v56 }
 0x28b   :  { %vm572_vm11 = vmor %vm570_vm10, %vm571_vm9 }
 0x28c   :  { %v567_v58 = vsub.f32 1.0, %v566_v57 }
 0x28e   :  { %v568_v59 = vmul.f32 %v4862_v56, %v567_v58 }
 0x290   :  { %v569_v60 = vadd.f32 %v4862_v56, %v568_v59 }
 0x292   :  { %v573_v63 = vsel %vm572_vm11, %v4862_v56, %v569_v60 }
 0x293   :  { %v578_v3 = vsel %vm575_vm12, %v577_v1, %v573_v63 }
 0x294   :  { %v590_v5 = vsub.f32 1.0, %v578_v3  ;;  %v596_v9 = vmul.f32 0.0, %v578_v3 }
 0x29b   :  { %v600_v51 = vpop.permute.xlu0 %599 }
 0x29c   :  { %4641 = vmatmul.msk.f32.vlgmr.msrb.gmra.mxu2 %vm349_vm0, %v600_v51 }
 0x29d   :  { %1240 = vmatpush.msrb.mxu2 %v5920_v0 }
 0x29f   :  { %1241 = vmatpush.msrb.mxu2 %v5922_v2 }
 0x2a1   :  { %1242 = vmatpush.msrb.mxu2 %v5926_v4 }
 0x2a3   :  { %1243 = vmatpush.msrb.mxu2 %v5932_v8 }
 0x2f2   :  { %v593_v7 = vpop.permute.xlu1 %592 }
 0x2f3   :  { %v595_v10 = vmul.f32 %v593_v7, %v590_v5 }
 0x2f5   :  { %v6061_v11 = vadd.f32 %v596_v9, %v595_v10  ;;  %v686_v9 = vrot.slane %v6044_v43, 6 }
 0x2f7   :  { %v624_v12 = vrot.slane %v6061_v11, 6 }
 0x2f9   :  { %4642 = vmatmul.msk.f32.vlgmr.msra.gmra.mxu3 %vm349_vm0, %v624_v12 }
 0x2fa   :  { %1264 = vmatpush.msra.mxu3 %v5990_v29 }
 0x2fc   :  { %1265 = vmatpush.msra.mxu3 %v5999_v40 }
 0x2fe   :  { %1266 = vmatpush.msra.mxu3 %v5996_v39 }
 0x300   :  { %1267 = vmatpush.msra.mxu3 %v6004_v41 }
 0x31f   :  { %v620_v13 = vpop.f32.mrf.mxu2 }
 0x320   :  { %v621_v14 = vadd.f32 %v620_v13, %v5985_v24 }
 0x322   :  { %v648_v17 = vrot.slane %v621_v14, 6 }
 0x324   :  { %670 = vrot.lane.b32.xlu2 %v648_v17, %s5709_s7  ;;  %v650_v18 = vadd.f32 %v648_v17, %v6028_v47 }
 0x326   :  { %v4643_v19 = vmul.f32 -1.442695, %v650_v18 }
 0x328   :  { %4863 = vpow2.f32 %v4643_v19 }
 0x32e   :  { %v4864_v20 = vpop.eup %4863 }
 0x32f   :  { %v654_v21 = vadd.f32 1.0, %v4864_v20 }
 0x331   :  { %4865 = vrcp.f32 %v654_v21  ;;  %v666_v28 = vand.u32 2147483648, %v654_v21  ;;  %vm660_vm14 = vweird.f32 %v654_v21  ;;  %v664_v30 = vand.u32 2147483647, %v654_v21 }
 0x333   :  { %v667_v33 = vor.u32 1.1754944e-38, %v666_v28  ;;  %vm665_vm1 = vcmp.eq.f32.partialorder %v664_v30, 8.507059e+37 }
 0x337   :  { %v4866_v22 = vpop.eup %4865 }
 0x338   :  { %v656_v23 = vmul.f32 %v4866_v22, %v654_v21  ;;  %vm661_vm13 = vweird.f32 %v4866_v22 }
 0x339   :  { %vm662_vm15 = vmor %vm660_vm14, %vm661_vm13 }
 0x33a   :  { %v657_v25 = vsub.f32 1.0, %v656_v23 }
 0x33c   :  { %v658_v26 = vmul.f32 %v4866_v22, %v657_v25 }
 0x33e   :  { %v659_v27 = vadd.f32 %v4866_v22, %v658_v26 }
 0x340   :  { %v663_v31 = vsel %vm662_vm15, %v4866_v22, %v659_v27 }
 0x341   :  { %v668_v36 = vsel %vm665_vm1, %v667_v33, %v663_v31 }
 0x342   :  { %v680_v7 = vsub.f32 1.0, %v668_v36  ;;  %v688_v13 = vmul.f32 %v686_v9, %v668_v36 }
 0x37c   :  { %v644_v32 = vpop.f32.mrf.mxu3 }
 0x37d   :  { %v645_v34 = vadd.f32 %v644_v32, %v6033_v6 }
 0x37e   :  { %v671_v35 = vpop.permute.xlu2 %670 }
 0x37f   :  { %v691_v37 = vrot.slane %v645_v34, 4  ;;  %v673_v38 = vmul.f32 %v671_v35, %v668_v36 }
 0x381   :  { %735 = vrot.lane.b32.xlu1 %v691_v37, %s5707_s10  ;;  %692 = vrot.lane.b32.xlu0 %v691_v37, %s5710_s26 }
 0x382   :  { %675 = vrot.lane.b32.xlu2 %v673_v38, %s5709_s7 }
 0x3dc   :  { %v676_v42 = vpop.permute.xlu2 %675 }
 0x3dd   :  { %v678_v48 = vadd.f32 %v676_v42, %v6028_v47  ;;  %v751_v42 = vrot.slane %v6061_v11, 2 }
 0x3df   :  { %4867 = vtanh.f32 %v678_v48 }
 0x3e5   :  { %v4868_v49 = vpop.eup %4867 }
 0x3e6   :  { %682 = vrot.lane.b32.xlu1 %v4868_v49, %s5710_s26 }
 0x3f3   :  { %v693_v50 = vpop.permute.xlu0 %692  ;;  %v736_v1 = vpop.permute.xlu1 %735 }
 0x3f4   :  { %v695_v51 = vadd.f32 %v693_v50, %v6040_v15  ;;  %v715_v21 = vadd.f32 %v693_v50, %v6051_v46 }
 0x3f6   :  { %v4644_v52 = vmul.f32 -1.442695, %v695_v51  ;;  %v4645_v22 = vmul.f32 -1.442695, %v715_v21 }
 0x3f8   :  { %4869 = vpow2.f32 %v4644_v52 }
 0x3fe   :  { %v4870_v53 = vpop.eup %4869 }
 0x3ff   :  { %v699_v54 = vadd.f32 1.0, %v4870_v53 }
 0x401   :  { %4871 = vrcp.f32 %v699_v54  ;;  %v711_v58 = vand.u32 2147483648, %v699_v54  ;;  %v709_v60 = vand.u32 2147483647, %v699_v54  ;;  %vm705_vm3 = vweird.f32 %v699_v54 }
 0x403   :  { %v712_v62 = vor.u32 1.1754944e-38, %v711_v58  ;;  %vm710_vm5 = vcmp.eq.f32.partialorder %v709_v60, 8.507059e+37  ;;  %v6105_v60 = vpop.f32.mrf.mxu1 }
 0x407   :  { %v4872_v55 = vpop.eup %4871 }
 0x408   :  { %v701_v56 = vmul.f32 %v4872_v55, %v699_v54  ;;  %vm706_vm2 = vweird.f32 %v4872_v55 }
 0x409   :  { %vm707_vm4 = vmor %vm705_vm3, %vm706_vm2  ;;  %vm1694_vm3 = vcmask 1041408  }
 0x40a   :  { %v702_v57 = vsub.f32 1.0, %v701_v56 }
 0x40c   :  { %v703_v59 = vmul.f32 %v4872_v55, %v702_v57 }
 0x40e   :  { %v704_v61 = vadd.f32 %v4872_v55, %v703_v59 }
 0x410   :  { %v708_v63 = vsel %vm707_vm4, %v4872_v55, %v704_v61  ;;  %vm1696_vm4 = vcmask 1043456  }
 0x411   :  { %v713_v3 = vsel %vm710_vm5, %v712_v62, %v708_v63 }
 0x412   :  { %v738_v5 = vmul.f32 %v736_v1, %v713_v3 }
 0x414   :  { %740 = vrot.lane.b32.xlu0 %v738_v5, %s5709_s7 }
 0x458   :  { %v683_v10 = vpop.permute.xlu1 %682 }
 0x459   :  { %v685_v12 = vmul.f32 %v683_v10, %v680_v7 }
 0x45b   :  { %v6081_v14 = vadd.f32 %v688_v13, %v685_v12 }
 0x45d   :  { %v756_v17 = vrot.slane %v6081_v14, 2 }
 0x45f   :  { %757 = vrot.lane.b32.xlu0 %v756_v17, %s5710_s26  ;;  %v844_v17 = vrot.slane %v6081_v14, 6 }
 0x486   :  { %v741_v18 = vpop.permute.xlu0 %740 }
 0x487   :  { %v743_v19 = vadd.f32 %v741_v18, %v6051_v46 }
 0x489   :  { %4873 = vtanh.f32 %v743_v19 }
 0x48a   :  { %4875 = vpow2.f32 %v4645_v22 }
 0x48f   :  { %v4874_v20 = vpop.eup %4873 }
 0x490   :  { %747 = vrot.lane.b32.xlu2 %v4874_v20, %s5710_s26  ;;  %v4876_v23 = vpop.eup %4875 }
 0x491   :  { %v719_v25 = vadd.f32 1.0, %v4876_v23 }
 0x493   :  { %4877 = vrcp.f32 %v719_v25  ;;  %v731_v33 = vand.u32 2147483648, %v719_v25  ;;  %vm725_vm7 = vweird.f32 %v719_v25  ;;  %v729_v34 = vand.u32 2147483647, %v719_v25 }
 0x495   :  { %v732_v36 = vor.u32 1.1754944e-38, %v731_v33  ;;  %vm730_vm9 = vcmp.eq.f32.partialorder %v729_v34, 8.507059e+37 }
 0x499   :  { %v4878_v26 = vpop.eup %4877 }
 0x49a   :  { %v721_v28 = vmul.f32 %v4878_v26, %v719_v25  ;;  %vm726_vm6 = vweird.f32 %v4878_v26 }
 0x49b   :  { %vm727_vm8 = vmor %vm725_vm7, %vm726_vm6 }
 0x49c   :  { %v722_v30 = vsub.f32 1.0, %v721_v28 }
 0x49e   :  { %v723_v31 = vmul.f32 %v4878_v26, %v722_v30 }
 0x4a0   :  { %v724_v32 = vadd.f32 %v4878_v26, %v723_v31 }
 0x4a2   :  { %v728_v35 = vsel %vm727_vm8, %v4878_v26, %v724_v32 }
 0x4a3   :  { %v733_v37 = vsel %vm730_vm9, %v732_v36, %v728_v35 }
 0x4a4   :  { %v745_v38 = vsub.f32 1.0, %v733_v37  ;;  %v753_v49 = vmul.f32 %v751_v42, %v733_v37 }
 0x4d1   :  { %v758_v27 = vpop.permute.xlu0 %757 }
 0x4d2   :  { %4646 = vmatmul.msk.f32.vlgmr.msrb.gmra.mxu0 %vm349_vm0, %v758_v27 }
 0x4d3   :  { %1398 = vmatpush.msrb.mxu0 %v5920_v0 }
 0x4d5   :  { %1399 = vmatpush.msrb.mxu0 %v5922_v2 }
 0x4d7   :  { %1400 = vmatpush.msrb.mxu0 %v5926_v4 }
 0x4d9   :  { %1401 = vmatpush.msrb.mxu0 %v5932_v8 }
 0x4ea   :  { %v748_v48 = vpop.permute.xlu2 %747 }
 0x4eb   :  { %v750_v50 = vmul.f32 %v748_v48, %v745_v38 }
 0x4ed   :  { %v6094_v51 = vadd.f32 %v753_v49, %v750_v50 }
 0x4ef   :  { %v782_v52 = vrot.slane %v6094_v51, 4 }
 0x4f1   :  { %4647 = vmatmul.msk.f32.vlgmr.msrb.gmra.mxu1 %vm349_vm0, %v782_v52 }
 0x4f2   :  { %1422 = vmatpush.msrb.mxu1 %v5990_v29 }
 0x4f4   :  { %1423 = vmatpush.msrb.mxu1 %v5999_v40 }
 0x4f6   :  { %1424 = vmatpush.msrb.mxu1 %v5996_v39 }
 0x4f8   :  { %1425 = vmatpush.msrb.mxu1 %v6004_v41 }
 0x54f   :  { %v778_v53 = vpop.f32.mrf.mxu0 }
 0x550   :  { %v779_v54 = vadd.f32 %v778_v53, %v5985_v24 }
 0x552   :  { %v806_v55 = vrot.slane %v779_v54, 4 }
 0x554   :  { %v808_v56 = vadd.f32 %v806_v55, %v6028_v47  ;;  %828 = vrot.lane.b32.xlu2 %v806_v55, %s5709_s7 }
 0x556   :  { %v4648_v57 = vmul.f32 -1.442695, %v808_v56 }
 0x558   :  { %4879 = vpow2.f32 %v4648_v57 }
 0x55e   :  { %v4880_v58 = vpop.eup %4879 }
 0x55f   :  { %v812_v59 = vadd.f32 1.0, %v4880_v58 }
 0x561   :  { %4881 = vrcp.f32 %v812_v59  ;;  %v824_v1 = vand.u32 2147483648, %v812_v59  ;;  %v822_v5 = vand.u32 2147483647, %v812_v59  ;;  %vm818_vm11 = vweird.f32 %v812_v59 }
 0x563   :  { %v825_v12 = vor.u32 1.1754944e-38, %v824_v1  ;;  %vm823_vm13 = vcmp.eq.f32.partialorder %v822_v5, 8.507059e+37 }
 0x567   :  { %v4882_v61 = vpop.eup %4881 }
 0x568   :  { %v814_v62 = vmul.f32 %v4882_v61, %v812_v59  ;;  %vm819_vm10 = vweird.f32 %v4882_v61 }
 0x569   :  { %vm820_vm12 = vmor %vm818_vm11, %vm819_vm10 }
 0x56a   :  { %v815_v63 = vsub.f32 1.0, %v814_v62  ;;  %v1695_v62 = vsel %vm1694_vm3, %v6044_v43, %v6081_v14 }
 0x56c   :  { %v816_v3 = vmul.f32 %v4882_v61, %v815_v63 }
 0x56e   :  { %v802_v7 = vpop.f32.mrf.mxu1  ;;  %v817_v9 = vadd.f32 %v4882_v61, %v816_v3 }
 0x56f   :  { %v803_v10 = vadd.f32 %v802_v7, %v6033_v6 }
 0x570   :  { %v821_v13 = vsel %vm820_vm12, %v4882_v61, %v817_v9 }
 0x571   :  { %v849_v18 = vrot.slane %v803_v10, 6  ;;  %v826_v19 = vsel %vm823_vm13, %v825_v12, %v821_v13 }
 0x572   :  { %v846_v20 = vmul.f32 %v844_v17, %v826_v19  ;;  %v838_v57 = vsub.f32 1.0, %v826_v19 }
 0x573   :  { %850 = vrot.lane.b32.xlu1 %v849_v18, %s5710_s26  ;;  %893 = vrot.lane.b32.xlu0 %v849_v18, %s5707_s10 }
 0x5ae   :  { %v829_v21 = vpop.permute.xlu2 %828 }
 0x5af   :  { %v831_v22 = vmul.f32 %v829_v21, %v826_v19 }
 0x5b1   :  { %833 = vrot.lane.b32.xlu1 %v831_v22, %s5709_s7 }
 0x5e5   :  { %v851_v23 = vpop.permute.xlu1 %850  ;;  %v894_v48 = vpop.permute.xlu0 %893 }
 0x5e6   :  { %v853_v25 = vadd.f32 %v851_v23, %v6040_v15  ;;  %v873_v3 = vadd.f32 %v851_v23, %v6051_v46  ;;  %v909_v23 = vrot.slane %v6094_v51, 2 }
 0x5e8   :  { %v4649_v26 = vmul.f32 -1.442695, %v853_v25  ;;  %v4650_v5 = vmul.f32 -1.442695, %v873_v3 }
 0x5ea   :  { %4883 = vpow2.f32 %v4649_v26 }
 0x5f0   :  { %v4884_v27 = vpop.eup %4883 }
 0x5f1   :  { %v857_v28 = vadd.f32 1.0, %v4884_v27 }
 0x5f3   :  { %4885 = vrcp.f32 %v857_v28  ;;  %v869_v33 = vand.u32 2147483648, %v857_v28  ;;  %v867_v35 = vand.u32 2147483647, %v857_v28  ;;  %vm863_vm15 = vweird.f32 %v857_v28 }
 0x5f5   :  { %v870_v37 = vor.u32 1.1754944e-38, %v869_v33  ;;  %vm868_vm2 = vcmp.eq.f32.partialorder %v867_v35, 8.507059e+37 }
 0x5f9   :  { %v4886_v30 = vpop.eup %4885 }
 0x5fa   :  { %v859_v31 = vmul.f32 %v4886_v30, %v857_v28  ;;  %vm864_vm14 = vweird.f32 %v4886_v30 }
 0x5fb   :  { %vm865_vm1 = vmor %vm863_vm15, %vm864_vm14 }
 0x5fc   :  { %v860_v32 = vsub.f32 1.0, %v859_v31 }
 0x5fe   :  { %v861_v34 = vmul.f32 %v4886_v30, %v860_v32 }
 0x600   :  { %v862_v36 = vadd.f32 %v4886_v30, %v861_v34 }
 0x602   :  { %v866_v38 = vsel %vm865_vm1, %v4886_v30, %v862_v36 }
 0x603   :  { %v871_v42 = vsel %vm868_vm2, %v870_v37, %v866_v38  ;;  %vm1698_vm2 = vcmask 1045504  }
 0x604   :  { %v896_v49 = vmul.f32 %v894_v48, %v871_v42 }
 0x606   :  { %898 = vrot.lane.b32.xlu2 %v896_v49, %s5709_s7 }
 0x623   :  { %v834_v50 = vpop.permute.xlu1 %833 }
 0x624   :  { %v836_v52 = vadd.f32 %v834_v50, %v6028_v47 }
 0x626   :  { %4887 = vtanh.f32 %v836_v52 }
 0x62c   :  { %v4888_v53 = vpop.eup %4887 }
 0x62d   :  { %840 = vrot.lane.b32.xlu0 %v4888_v53, %s5710_s26 }
 0x660   :  { %v899_v54 = vpop.permute.xlu2 %898 }
 0x661   :  { %v901_v55 = vadd.f32 %v899_v54, %v6051_v46 }
 0x663   :  { %4889 = vtanh.f32 %v901_v55 }
 0x664   :  { %4891 = vpow2.f32 %v4650_v5 }
 0x669   :  { %v4890_v56 = vpop.eup %4889 }
 0x66a   :  { %905 = vrot.lane.b32.xlu1 %v4890_v56, %s5710_s26  ;;  %v4892_v7 = vpop.eup %4891 }
 0x66b   :  { %v877_v9 = vadd.f32 1.0, %v4892_v7 }
 0x66d   :  { %4893 = vrcp.f32 %v877_v9  ;;  %v889_v14 = vand.u32 2147483648, %v877_v9  ;;  %vm883_vm6 = vweird.f32 %v877_v9  ;;  %v887_v18 = vand.u32 2147483647, %v877_v9 }
 0x66f   :  { %vm888_vm8 = vcmp.eq.f32.partialorder %v887_v18, 8.507059e+37 }
 0x673   :  { %v4894_v10 = vpop.eup %4893 }
 0x674   :  { %v879_v12 = vmul.f32 %v4894_v10, %v877_v9  ;;  %vm884_vm5 = vweird.f32 %v4894_v10 }
 0x675   :  { %vm885_vm7 = vmor %vm883_vm6, %vm884_vm5 }
 0x676   :  { %v880_v13 = vsub.f32 1.0, %v879_v12 }
 0x678   :  { %v881_v17 = vmul.f32 %v4894_v10, %v880_v13 }
 0x67a   :  { %v882_v43 = vadd.f32 %v4894_v10, %v881_v17 }
 0x67c   :  { %v886_v19 = vsel %vm885_vm7, %v4894_v10, %v882_v43 }
 0x69f   :  { %v841_v58 = vpop.permute.xlu0 %840 }
 0x6a0   :  { %v843_v59 = vmul.f32 %v841_v58, %v838_v57 }
 0x6a2   :  { %v6118_v61 = vadd.f32 %v846_v20, %v843_v59  ;;  %v890_v20 = vor.u32 1.1754944e-38, %v889_v14 }
 0x6a4   :  { %v914_v63 = vrot.slane %v6118_v61, 4  ;;  %v6126_v1 = vsel %vm1696_vm4, %v1695_v62, %v6118_v61  ;;  %v891_v21 = vsel %vm888_vm8, %v890_v20, %v886_v19 }
 0x6a5   :  { %v903_v22 = vsub.f32 1.0, %v891_v21  ;;  %v911_v26 = vmul.f32 %v909_v23, %v891_v21 }
 0x6a6   :  { %915 = vrot.lane.b32.xlu2 %v914_v63, %s5710_s26 }
 0x6dc   :  { %v906_v25 = vpop.permute.xlu1 %905 }
 0x6dd   :  { %v908_v27 = vmul.f32 %v906_v25, %v903_v22 }
 0x6df   :  { %v6131_v28 = vadd.f32 %v911_v26, %v908_v27 }
 0x6e1   :  { %v940_v30 = vrot.slane %v6131_v28, 2 }
 0x6e3   :  { %4652 = vmatmul.msk.f32.vlgmr.msrb.gmra.mxu3 %vm349_vm0, %v940_v30 }
 0x6e4   :  { %1580 = vmatpush.msrb.mxu3 %v5990_v29 }
 0x6e6   :  { %1581 = vmatpush.msrb.mxu3 %v5999_v40 }
 0x6e8   :  { %1582 = vmatpush.msrb.mxu3 %v5996_v39 }
 0x6ea   :  { %1583 = vmatpush.msrb.mxu3 %v6004_v41 }
 0x700   :  { %v916_v31 = vpop.permute.xlu2 %915 }
 0x701   :  { %4651 = vmatmul.msk.f32.vlgmr.msra.gmra.mxu2 %vm349_vm0, %v916_v31 }
 0x702   :  { %1556 = vmatpush.msra.mxu2 %v5920_v0 }
 0x704   :  { %1557 = vmatpush.msra.mxu2 %v5922_v2 }
 0x706   :  { %1558 = vmatpush.msra.mxu2 %v5926_v4 }
 0x708   :  { %1559 = vmatpush.msra.mxu2 %v5932_v8 }
 0x766   :  { %v960_v32 = vpop.f32.mrf.mxu3 }
 0x767   :  { %v961_v29 = vadd.f32 %v960_v32, %v6033_v6 }
 0x769   :  { %1007 = vrot.lane.b32.xlu0 %v961_v29, %s5710_s26  ;;  %1050 = vrot.lane.b32.xlu2 %v961_v29, %s5707_s10 }
 0x784   :  { %v936_v39 = vpop.f32.mrf.mxu2 }
 0x785   :  { %v937_v40 = vadd.f32 %v936_v39, %v5985_v24  ;;  %v1002_v39 = vrot.slane %v6118_v61, 6 }
 0x787   :  { %v964_v41 = vrot.slane %v937_v40, 2 }
 0x789   :  { %986 = vrot.lane.b32.xlu1 %v964_v41, %s5709_s7  ;;  %v966_v0 = vadd.f32 %v964_v41, %v6028_v47 }
 0x78b   :  { %v4653_v2 = vmul.f32 -1.442695, %v966_v0 }
 0x78d   :  { %4895 = vpow2.f32 %v4653_v2 }
 0x793   :  { %v4896_v4 = vpop.eup %4895 }
 0x794   :  { %v970_v33 = vadd.f32 1.0, %v4896_v4 }
 0x796   :  { %4897 = vrcp.f32 %v970_v33  ;;  %vm976_vm11 = vweird.f32 %v970_v33  ;;  %v982_v58 = vand.u32 2147483648, %v970_v33  ;;  %v980_v62 = vand.u32 2147483647, %v970_v33 }
 0x798   :  { %v983_v10 = vor.u32 1.1754944e-38, %v982_v58  ;;  %vm981_vm1 = vcmp.eq.f32.partialorder %v980_v62, 8.507059e+37 }
 0x79c   :  { %v4898_v36 = vpop.eup %4897 }
 0x79d   :  { %v972_v42 = vmul.f32 %v4898_v36, %v970_v33  ;;  %vm977_vm9 = vweird.f32 %v4898_v36 }
 0x79e   :  { %vm6153_vm12 = vmor %vm976_vm11, %vm977_vm9 }
 0x79f   :  { %v973_v48 = vsub.f32 1.0, %v972_v42 }
 0x7a1   :  { %v974_v50 = vmul.f32 %v4898_v36, %v973_v48 }
 0x7a3   :  { %v975_v55 = vadd.f32 %v4898_v36, %v974_v50 }
 0x7a5   :  { %v979_v5 = vsel %vm6153_vm12, %v4898_v36, %v975_v55 }
 0x7a6   :  { %v984_v43 = vsel %vm981_vm1, %v983_v10, %v979_v5 }
 0x7a7   :  { %v996_v29 = vsub.f32 1.0, %v984_v43  ;;  %v1004_v0 = vmul.f32 %v1002_v39, %v984_v43 }
 0x7c3   :  { %v1051_v9 = vpop.permute.xlu2 %1050 }
 0x7db   :  { %v1008_v8 = vpop.permute.xlu0 %1007 }
 0x7dc   :  { %v1010_v34 = vadd.f32 %v1008_v8, %v6040_v15  ;;  %v1030_v25 = vadd.f32 %v1008_v8, %v6051_v46 }
 0x7de   :  { %v4654_v35 = vmul.f32 -1.442695, %v1010_v34  ;;  %v4655_v26 = vmul.f32 -1.442695, %v1030_v25 }
 0x7e0   :  { %4899 = vpow2.f32 %v4654_v35 }
 0x7e6   :  { %v4900_v37 = vpop.eup %4899 }
 0x7e7   :  { %v1014_v38 = vadd.f32 1.0, %v4900_v37 }
 0x7e9   :  { %4901 = vrcp.f32 %v1014_v38  ;;  %v1026_v54 = vand.u32 2147483648, %v1014_v38  ;;  %v1024_v57 = vand.u32 2147483647, %v1014_v38  ;;  %vm1020_vm13 = vweird.f32 %v1014_v38 }
 0x7eb   :  { %v1027_v3 = vor.u32 1.1754944e-38, %v1026_v54  ;;  %vm1025_vm15 = vcmp.eq.f32.partialorder %v1024_v57, 8.507059e+37 }
 0x7ef   :  { %v4902_v49 = vpop.eup %4901 }
 0x7f0   :  { %v1016_v52 = vmul.f32 %v4902_v49, %v1014_v38  ;;  %vm1021_vm10 = vweird.f32 %v4902_v49 }
 0x7f1   :  { %vm1022_vm14 = vmor %vm1020_vm13, %vm1021_vm10 }
 0x7f2   :  { %v1017_v53 = vsub.f32 1.0, %v1016_v52 }
 0x7f4   :  { %v1018_v56 = vmul.f32 %v4902_v49, %v1017_v53 }
 0x7f6   :  { %v1019_v63 = vadd.f32 %v4902_v49, %v1018_v56 }
 0x7f8   :  { %v1023_v7 = vsel %vm1022_vm14, %v4902_v49, %v1019_v63 }
 0x7f9   :  { %v1028_v12 = vsel %vm1025_vm15, %v1027_v3, %v1023_v7 }
 0x7fa   :  { %v1053_v13 = vmul.f32 %v1051_v9, %v1028_v12 }
 0x7fb   :  { %v987_v17 = vpop.permute.xlu1 %986 }
 0x7fc   :  { %v989_v14 = vmul.f32 %v987_v17, %v984_v43  ;;  %1055 = vrot.lane.b32.xlu1 %v1053_v13, %s5709_s7 }
 0x7fe   :  { %991 = vrot.lane.b32.xlu0 %v989_v14, %s5709_s7 }
 0x86e   :  { %v1056_v18 = vpop.permute.xlu1 %1055 }
 0x86f   :  { %v1058_v19 = vadd.f32 %v1056_v18, %v6051_v46 }
 0x870   :  { %v992_v20 = vpop.permute.xlu0 %991 }
 0x871   :  { %4903 = vtanh.f32 %v1058_v19  ;;  %v994_v21 = vadd.f32 %v992_v20, %v6028_v47 }
 0x873   :  { %4905 = vtanh.f32 %v994_v21 }
 0x874   :  { %4907 = vpow2.f32 %v4655_v26 }
 0x877   :  { %v4904_v22 = vpop.eup %4903 }
 0x878   :  { %1062 = vrot.lane.b32.xlu0 %v4904_v22, %s5710_s26 }
 0x879   :  { %v4906_v23 = vpop.eup %4905 }
 0x87a   :  { %998 = vrot.lane.b32.xlu2 %v4906_v23, %s5710_s26  ;;  %v4908_v27 = vpop.eup %4907 }
 0x87b   :  { %v1034_v31 = vadd.f32 1.0, %v4908_v27 }
 0x87d   :  { %4909 = vrcp.f32 %v1034_v31  ;;  %v1046_v35 = vand.u32 2147483648, %v1034_v31  ;;  %vm1040_vm6 = vweird.f32 %v1034_v31  ;;  %v1044_v36 = vand.u32 2147483647, %v1034_v31 }
 0x87f   :  { %v1047_v38 = vor.u32 1.1754944e-38, %v1046_v35  ;;  %vm1045_vm8 = vcmp.eq.f32.partialorder %v1044_v36, 8.507059e+37 }
 0x883   :  { %v4910_v32 = vpop.eup %4909 }
 0x884   :  { %v1036_v40 = vmul.f32 %v4910_v32, %v1034_v31  ;;  %vm1041_vm5 = vweird.f32 %v4910_v32 }
 0x885   :  { %vm1042_vm7 = vmor %vm1040_vm6, %vm1041_vm5 }
 0x886   :  { %v1037_v33 = vsub.f32 1.0, %v1036_v40 }
 0x888   :  { %v1038_v61 = vmul.f32 %v4910_v32, %v1037_v33 }
 0x88a   :  { %v1039_v8 = vadd.f32 %v4910_v32, %v1038_v61 }
 0x88c   :  { %v1043_v37 = vsel %vm1042_vm7, %v4910_v32, %v1039_v8  ;;  %v6197_v8 = vadd.f32 %v6105_v60, %v346_v45 }
 0x88d   :  { %v1048_v42 = vsel %vm1045_vm8, %v1047_v38, %v1043_v37 }
 0x88e   :  { %v1060_v48 = vsub.f32 1.0, %v1048_v42 }
 0x8d4   :  { %v999_v41 = vpop.permute.xlu2 %998 }
 0x8d5   :  { %v1001_v2 = vmul.f32 %v999_v41, %v996_v29 }
 0x8d7   :  { %v6167_v4 = vadd.f32 %v1004_v0, %v1001_v2 }
 0x8d9   :  { %v1070_v34 = vrot.slane %v6167_v4, 6  ;;  %v6173_v46 = vsel %vm1698_vm2, %v6126_v1, %v6167_v4  ;;  %v1067_v1 = vmul.f32 %v1048_v42, %v940_v30 }
 0x8db   :  { %1071 = vrot.lane.b32.xlu1 %v1070_v34, %s5710_s26 }
 0x8ea   :  { %v1063_v49 = vpop.permute.xlu0 %1062 }
 0x8eb   :  { %v1065_v50 = vmul.f32 %v1063_v49, %v1060_v48 }
 0x8ed   :  { %v6180_v52 = vadd.f32 %v1067_v1, %v1065_v50 }
 0x8ef   :  { %4657 = vmatmul.msk.f32.vlgmr.msra.gmra.mxu1 %vm349_vm0, %v6180_v52 }
 0x94d   :  { %v1072_v53 = vpop.permute.xlu1 %1071 }
 0x94e   :  { %4656 = vmatmul.msk.f32.vlgmr.msra.gmra.mxu0 %vm349_vm0, %v1072_v53 }
 0x96c   :  { %v1115_v54 = vpop.f32.mrf.mxu1 }
 0x96d   :  { %v1116_v55 = vadd.f32 %v1115_v54, %v6033_v6 }
 0x96f   :  { %v1159_v56 = vrot.slane %v1116_v55, 2 }
 0x971   :  { %1203 = vrot.lane.b32.xlu1 %v1159_v56, %s5707_s10  ;;  %1160 = vrot.lane.b32.xlu2 %v1159_v56, %s5710_s26 }
 0x9cb   :  { %v1092_v57 = vpop.f32.mrf.mxu0  ;;  %v1161_v58 = vpop.permute.xlu2 %1160 }
 0x9cc   :  { %v1093_v30 = vadd.f32 %v1092_v57, %v5985_v24  ;;  %v1163_v59 = vadd.f32 %v1161_v58, %v6028_v47  ;;  %v1183_v38 = vadd.f32 %v1161_v58, %v6197_v8 }
 0x9ce   :  { %v4659_v62 = vmul.f32 -1.442695, %v1163_v59  ;;  %1139 = vrot.lane.b32.xlu0 %v1093_v30, %s5709_s7  ;;  %v1118_v21 = vadd.f32 %v1093_v30, %v6040_v15  ;;  %v4660_v42 = vmul.f32 -1.442695, %v1183_v38 }
 0x9d0   :  { %4911 = vpow2.f32 %v4659_v62  ;;  %v4658_v22 = vmul.f32 -1.442695, %v1118_v21 }
 0x9d6   :  { %v4912_v63 = vpop.eup %4911 }
 0x9d7   :  { %v1167_v3 = vadd.f32 1.0, %v4912_v63  ;;  %v1219_v63 = vrot.slane %v6180_v52, 2 }
 0x9d9   :  { %4913 = vrcp.f32 %v1167_v3  ;;  %v1179_v10 = vand.u32 2147483648, %v1167_v3  ;;  %v1177_v13 = vand.u32 2147483647, %v1167_v3  ;;  %vm1173_vm10 = vweird.f32 %v1167_v3 }
 0x9da   :  { %4915 = vpow2.f32 %v4658_v22 }
 0x9db   :  { %v1180_v43 = vor.u32 1.1754944e-38, %v1179_v10  ;;  %vm1178_vm12 = vcmp.eq.f32.partialorder %v1177_v13, 8.507059e+37 }
 0x9df   :  { %v4914_v5 = vpop.eup %4913 }
 0x9e0   :  { %v1169_v7 = vmul.f32 %v4914_v5, %v1167_v3  ;;  %vm1174_vm9 = vweird.f32 %v4914_v5  ;;  %v4916_v23 = vpop.eup %4915 }
 0x9e1   :  { %vm1175_vm11 = vmor %vm1173_vm10, %vm1174_vm9  ;;  %v1122_v25 = vadd.f32 1.0, %v4916_v23 }
 0x9e2   :  { %v1170_v9 = vsub.f32 1.0, %v1169_v7 }
 0x9e3   :  { %v1204_v18 = vpop.permute.xlu1 %1203  ;;  %4917 = vrcp.f32 %v1122_v25  ;;  %v1134_v39 = vand.u32 2147483648, %v1122_v25  ;;  %vm1128_vm14 = vweird.f32 %v1122_v25  ;;  %v1132_v40 = vand.u32 2147483647, %v1122_v25 }
 0x9e4   :  { %v1171_v12 = vmul.f32 %v4914_v5, %v1170_v9 }
 0x9e5   :  { %v1135_v0 = vor.u32 1.1754944e-38, %v1134_v39  ;;  %vm1133_vm1 = vcmp.eq.f32.partialorder %v1132_v40, 8.507059e+37 }
 0x9e6   :  { %v1172_v17 = vadd.f32 %v4914_v5, %v1171_v12 }
 0x9e8   :  { %v1176_v14 = vsel %vm1175_vm11, %v4914_v5, %v1172_v17 }
 0x9e9   :  { %v1181_v19 = vsel %vm1178_vm12, %v1180_v43, %v1176_v14  ;;  %v4918_v26 = vpop.eup %4917 }
 0x9ea   :  { %v1206_v20 = vmul.f32 %v1204_v18, %v1181_v19  ;;  %v1124_v27 = vmul.f32 %v4918_v26, %v1122_v25  ;;  %vm1129_vm13 = vweird.f32 %v4918_v26 }
 0x9eb   :  { %vm1130_vm15 = vmor %vm1128_vm14, %vm1129_vm13 }
 0x9ec   :  { %1208 = vrot.lane.b32.xlu0 %v1206_v20, %s5709_s7  ;;  %v1125_v31 = vsub.f32 1.0, %v1124_v27 }
 0x9ee   :  { %v1126_v32 = vmul.f32 %v4918_v26, %v1125_v31 }
 0x9f0   :  { %v1127_v29 = vadd.f32 %v4918_v26, %v1126_v32 }
 0x9f2   :  { %v1131_v41 = vsel %vm1130_vm15, %v4918_v26, %v1127_v29 }
 0x9f3   :  { %v1136_v2 = vsel %vm1133_vm1, %v1135_v0, %v1131_v41 }
 0x9f4   :  { %v1149_v12 = vsub.f32 1.0, %v1136_v2  ;;  %v1156_v17 = vmul.f32 %v1136_v2, %v1070_v34 }
 0xa40   :  { %v1140_v33 = vpop.permute.xlu0 %1139 }
 0xa41   :  { %v1142_v61 = vmul.f32 %v1140_v33, %v1136_v2 }
 0xa43   :  { %1144 = vrot.lane.b32.xlu2 %v1142_v61, %s5709_s7 }
 0xa5e   :  { %v1209_v35 = vpop.permute.xlu0 %1208 }
 0xa5f   :  { %v1211_v36 = vadd.f32 %v1209_v35, %v6197_v8 }
 0xa61   :  { %4919 = vtanh.f32 %v1211_v36 }
 0xa62   :  { %4921 = vpow2.f32 %v4660_v42 }
 0xa67   :  { %v4920_v37 = vpop.eup %4919 }
 0xa68   :  { %1215 = vrot.lane.b32.xlu2 %v4920_v37, %s5710_s26  ;;  %v4922_v48 = vpop.eup %4921 }
 0xa69   :  { %v1187_v1 = vadd.f32 1.0, %v4922_v48 }
 0xa6b   :  { %v1199_v56 = vand.u32 2147483648, %v1187_v1  ;;  %vm1193_vm6 = vweird.f32 %v1187_v1  ;;  %v1197_v57 = vand.u32 2147483647, %v1187_v1 }
 0xa6d   :  { %v1200_v30 = vor.u32 1.1754944e-38, %v1199_v56  ;;  %vm1198_vm8 = vcmp.eq.f32.partialorder %v1197_v57, 8.507059e+37 }
 0xa9d   :  { %v1145_v49 = vpop.permute.xlu2 %1144 }
 0xa9e   :  { %v1147_v50 = vadd.f32 %v1145_v49, %v6040_v15 }
 0xaa0   :  { %4923 = vtanh.f32 %v1147_v50 }
 0xaa1   :  { %4925 = vrcp.f32 %v1187_v1 }
 0xaa6   :  { %v4924_v44 = vpop.eup %4923 }
 0xaa7   :  { %1151 = vrot.lane.b32.xlu1 %v4924_v44, %s5710_s26  ;;  %v4926_v45 = vpop.eup %4925 }
 0xaa8   :  { %v1189_v60 = vmul.f32 %v4926_v45, %v1187_v1  ;;  %vm1194_vm5 = vweird.f32 %v4926_v45 }
 0xaa9   :  { %vm1195_vm7 = vmor %vm1193_vm6, %vm1194_vm5 }
 0xaaa   :  { %v1190_v53 = vsub.f32 1.0, %v1189_v60 }
 0xaac   :  { %v1191_v54 = vmul.f32 %v4926_v45, %v1190_v53 }
 0xaae   :  { %v1192_v55 = vadd.f32 %v4926_v45, %v1191_v54 }
 0xab0   :  { %v1196_v58 = vsel %vm1195_vm7, %v4926_v45, %v1192_v55 }
 0xab1   :  { %v1201_v59 = vsel %vm1198_vm8, %v1200_v30, %v1196_v58 }
 0xab2   :  { %v1213_v62 = vsub.f32 1.0, %v1201_v59  ;;  %v1221_v5 = vmul.f32 %v1219_v63, %v1201_v59 }
 0xac2   :  { %v1216_v3 = vpop.permute.xlu2 %1215 }
 0xac3   :  { %v1218_v7 = vmul.f32 %v1216_v3, %v1213_v62 }
 0xac5   :  { %v6205_v9 = vadd.f32 %v1221_v5, %v1218_v7 }
 0xac7   :  { %v1249_v10 = vrot.slane %v6205_v9, 6 }
 0xac9   :  { %4662 = vmatmul.msk.f32.vlgmr.msra.gmra.mxu3 %vm349_vm0, %v1249_v10 }
 0xb19   :  { %v1152_v13 = vpop.permute.xlu1 %1151 }
 0xb1a   :  { %v1154_v43 = vmul.f32 %v1152_v13, %v1149_v12 }
 0xb1c   :  { %v6211_v14 = vadd.f32 %v1156_v17, %v1154_v43 }
 0xb1e   :  { %1224 = vrot.lane.b32.xlu0 %v6211_v14, %s5710_s26 }
 0xb4c   :  { %v1269_v18 = vpop.f32.mrf.mxu3 }
 0xb4d   :  { %v1270_v19 = vadd.f32 %v1269_v18, %v6033_v6 }
 0xb4f   :  { %v1316_v20 = vrot.slane %v1270_v19, 4 }
 0xb51   :  { %1360 = vrot.lane.b32.xlu0 %v1316_v20, %s5707_s10  ;;  %1317 = vrot.lane.b32.xlu1 %v1316_v20, %s5710_s26 }
 0xb90   :  { %v1225_v21 = vpop.permute.xlu0 %1224 }
 0xb91   :  { %4661 = vmatmul.msk.f32.vlgmr.msrb.gmra.mxu2 %vm349_vm0, %v1225_v21 }
 0xbc3   :  { %v1318_v22 = vpop.permute.xlu1 %1317  ;;  %v1361_v36 = vpop.permute.xlu0 %1360 }
 0xbc4   :  { %v1320_v4 = vadd.f32 %v1318_v22, %v6028_v47  ;;  %v1340_v3 = vadd.f32 %v1318_v22, %v6197_v8 }
 0xbc6   :  { %v4664_v34 = vmul.f32 -1.442695, %v1320_v4  ;;  %v4665_v5 = vmul.f32 -1.442695, %v1340_v3 }
 0xbc8   :  { %4927 = vpow2.f32 %v4664_v34 }
 0xbce   :  { %v4928_v23 = vpop.eup %4927 }
 0xbcf   :  { %v1324_v25 = vadd.f32 1.0, %v4928_v23 }
 0xbd1   :  { %4929 = vrcp.f32 %v1324_v25  ;;  %v1336_v41 = vand.u32 2147483648, %v1324_v25  ;;  %vm1330_vm10 = vweird.f32 %v1324_v25  ;;  %v1334_v0 = vand.u32 2147483647, %v1324_v25 }
 0xbd3   :  { %v1337_v61 = vor.u32 1.1754944e-38, %v1336_v41  ;;  %vm1335_vm12 = vcmp.eq.f32.partialorder %v1334_v0, 8.507059e+37  ;;  %v1311_v0 = vrot.slane %v6211_v14, 6 }
 0xbd7   :  { %v4930_v26 = vpop.eup %4929 }
 0xbd8   :  { %v1326_v27 = vmul.f32 %v4930_v26, %v1324_v25  ;;  %vm1331_vm9 = vweird.f32 %v4930_v26 }
 0xbd9   :  { %vm1332_vm11 = vmor %vm1330_vm10, %vm1331_vm9 }
 0xbda   :  { %v1327_v31 = vsub.f32 1.0, %v1326_v27  ;;  %v1376_v27 = vrot.slane %v6205_v9, 2 }
 0xbdc   :  { %v1328_v32 = vmul.f32 %v4930_v26, %v1327_v31 }
 0xbde   :  { %v1329_v39 = vadd.f32 %v4930_v26, %v1328_v32 }
 0xbe0   :  { %v1333_v33 = vsel %vm1332_vm11, %v4930_v26, %v1329_v39 }
 0xbe1   :  { %v1338_v35 = vsel %vm1335_vm12, %v1337_v61, %v1333_v33 }
 0xbe2   :  { %v1363_v37 = vmul.f32 %v1361_v36, %v1338_v35 }
 0xc14   :  { %v1245_v29 = vpop.f32.mrf.mxu2 }
 0xc15   :  { %v1246_v40 = vadd.f32 %v1245_v29, %v5985_v24 }
 0xc17   :  { %v1273_v2 = vrot.slane %v1246_v40, 6 }
 0xc19   :  { %1295 = vrot.lane.b32.xlu2 %v1273_v2, %s5709_s7  ;;  %v1275_v38 = vadd.f32 %v1273_v2, %v6040_v15 }
 0xc1b   :  { %v4663_v42 = vmul.f32 -1.442695, %v1275_v38 }
 0xc1d   :  { %4931 = vpow2.f32 %v4663_v42 }
 0xc21   :  { %1365 = vrot.lane.b32.xlu2 %v1363_v37, %s5709_s7 }
 0xc23   :  { %v4932_v48 = vpop.eup %4931 }
 0xc24   :  { %v1279_v49 = vadd.f32 1.0, %v4932_v48 }
 0xc26   :  { %4933 = vrcp.f32 %v1279_v49  ;;  %v1291_v53 = vand.u32 2147483648, %v1279_v49  ;;  %vm1285_vm14 = vweird.f32 %v1279_v49  ;;  %v1289_v54 = vand.u32 2147483647, %v1279_v49 }
 0xc28   :  { %v1292_v56 = vor.u32 1.1754944e-38, %v1291_v53  ;;  %vm1290_vm1 = vcmp.eq.f32.partialorder %v1289_v54, 8.507059e+37 }
 0xc2c   :  { %v4934_v1 = vpop.eup %4933 }
 0xc2d   :  { %v1281_v50 = vmul.f32 %v4934_v1, %v1279_v49  ;;  %vm1286_vm13 = vweird.f32 %v4934_v1 }
 0xc2e   :  { %vm1287_vm15 = vmor %vm1285_vm14, %vm1286_vm13 }
 0xc2f   :  { %v1282_v44 = vsub.f32 1.0, %v1281_v50 }
 0xc31   :  { %v1283_v45 = vmul.f32 %v4934_v1, %v1282_v44 }
 0xc33   :  { %v1284_v60 = vadd.f32 %v4934_v1, %v1283_v45 }
 0xc35   :  { %v1288_v55 = vsel %vm1287_vm15, %v4934_v1, %v1284_v60 }
 0xc36   :  { %v1293_v58 = vsel %vm1290_vm1, %v1292_v56, %v1288_v55 }
 0xc37   :  { %v1305_v41 = vsub.f32 1.0, %v1293_v58  ;;  %v1313_v33 = vmul.f32 %v1311_v0, %v1293_v58 }
 0xc73   :  { %v1296_v57 = vpop.permute.xlu2 %1295 }
 0xc74   :  { %v1298_v30 = vmul.f32 %v1296_v57, %v1293_v58 }
 0xc76   :  { %1300 = vrot.lane.b32.xlu1 %v1298_v30, %s5709_s7 }
 0xc7b   :  { %v1366_v59 = vpop.permute.xlu2 %1365 }
 0xc7c   :  { %v1368_v62 = vadd.f32 %v1366_v59, %v6197_v8 }
 0xc7e   :  { %4935 = vtanh.f32 %v1368_v62 }
 0xc7f   :  { %4937 = vpow2.f32 %v4665_v5 }
 0xc84   :  { %v4936_v63 = vpop.eup %4935 }
 0xc85   :  { %1372 = vrot.lane.b32.xlu1 %v4936_v63, %s5710_s26  ;;  %v4938_v7 = vpop.eup %4937 }
 0xc86   :  { %v1344_v10 = vadd.f32 1.0, %v4938_v7 }
 0xc88   :  { %4939 = vrcp.f32 %v1344_v10  ;;  %v1356_v21 = vand.u32 2147483648, %v1344_v10  ;;  %vm1350_vm6 = vweird.f32 %v1344_v10  ;;  %v1354_v4 = vand.u32 2147483647, %v1344_v10 }
 0xc8a   :  { %v1357_v23 = vor.u32 1.1754944e-38, %v1356_v21  ;;  %vm1355_vm8 = vcmp.eq.f32.partialorder %v1354_v4, 8.507059e+37 }
 0xc8e   :  { %v4940_v12 = vpop.eup %4939 }
 0xc8f   :  { %v1346_v13 = vmul.f32 %v4940_v12, %v1344_v10  ;;  %vm1351_vm5 = vweird.f32 %v4940_v12 }
 0xc90   :  { %vm1352_vm7 = vmor %vm1350_vm6, %vm1351_vm5 }
 0xc91   :  { %v1347_v17 = vsub.f32 1.0, %v1346_v13 }
 0xc93   :  { %v1348_v18 = vmul.f32 %v4940_v12, %v1347_v17 }
 0xc95   :  { %v1349_v20 = vadd.f32 %v4940_v12, %v1348_v18 }
 0xc97   :  { %v1353_v22 = vsel %vm1352_vm7, %v4940_v12, %v1349_v20 }
 0xc98   :  { %v1358_v25 = vsel %vm1355_vm8, %v1357_v23, %v1353_v22 }
 0xc99   :  { %v1370_v26 = vsub.f32 1.0, %v1358_v25  ;;  %v1378_v32 = vmul.f32 %v1376_v27, %v1358_v25 }
 0xce8   :  { %v1301_v43 = vpop.permute.xlu1 %1300 }
 0xce9   :  { %v1303_v19 = vadd.f32 %v1301_v43, %v6040_v15 }
 0xceb   :  { %4941 = vtanh.f32 %v1303_v19 }
 0xcf1   :  { %v4942_v34 = vpop.eup %4941 }
 0xcf2   :  { %1307 = vrot.lane.b32.xlu0 %v4942_v34, %s5710_s26 }
 0xcf7   :  { %v1373_v31 = vpop.permute.xlu1 %1372 }
 0xcf8   :  { %v1375_v29 = vmul.f32 %v1373_v31, %v1370_v26 }
 0xcfa   :  { %v6231_v39 = vadd.f32 %v1378_v32, %v1375_v29 }
 0xcfc   :  { %v1407_v40 = vrot.slane %v6231_v39, 4 }
 0xcfe   :  { %4667 = vmatmul.msk.f32.vlgmr.msrb.gmra.mxu1 %vm349_vm0, %v1407_v40 }
 0xd64   :  { %v1308_v2 = vpop.permute.xlu0 %1307 }
 0xd65   :  { %v1310_v61 = vmul.f32 %v1308_v2, %v1305_v41 }
 0xd67   :  { %v6236_v35 = vadd.f32 %v1313_v33, %v1310_v61 }
 0xd69   :  { %v1381_v36 = vrot.slane %v6236_v35, 2  ;;  %v1469_v26 = vrot.slane %v6236_v35, 6 }
 0xd6b   :  { %1382 = vrot.lane.b32.xlu2 %v1381_v36, %s5710_s26 }
 0xd7b   :  { %v1427_v37 = vpop.f32.mrf.mxu1 }
 0xd7c   :  { %v1428_v38 = vadd.f32 %v1427_v37, %v6033_v6 }
 0xd7e   :  { %v1474_v42 = vrot.slane %v1428_v38, 6 }
 0xd80   :  { %1518 = vrot.lane.b32.xlu1 %v1474_v42, %s5707_s10  ;;  %1475 = vrot.lane.b32.xlu0 %v1474_v42, %s5710_s26 }
 0xdc5   :  { %v1383_v48 = vpop.permute.xlu2 %1382 }
 0xdc6   :  { %4666 = vmatmul.msk.f32.vlgmr.msrb.gmra.mxu0 %vm349_vm0, %v1383_v48 }
 0xdf2   :  { %v1476_v49 = vpop.permute.xlu0 %1475  ;;  %v1519_v62 = vpop.permute.xlu1 %1518 }
 0xdf3   :  { %v1478_v1 = vadd.f32 %v1476_v49, %v6028_v47  ;;  %v1498_v2 = vadd.f32 %v1476_v49, %v6197_v8 }
 0xdf5   :  { %v4669_v50 = vmul.f32 -1.442695, %v1478_v1  ;;  %v4670_v33 = vmul.f32 -1.442695, %v1498_v2 }
 0xdf7   :  { %4943 = vpow2.f32 %v4669_v50 }
 0xdfd   :  { %v4944_v44 = vpop.eup %4943 }
 0xdfe   :  { %v1482_v45 = vadd.f32 1.0, %v4944_v44 }
 0xe00   :  { %4945 = vrcp.f32 %v1482_v45  ;;  %v1494_v55 = vand.u32 2147483648, %v1482_v45  ;;  %v1492_v57 = vand.u32 2147483647, %v1482_v45  ;;  %vm1488_vm10 = vweird.f32 %v1482_v45 }
 0xe02   :  { %v1495_v30 = vor.u32 1.1754944e-38, %v1494_v55  ;;  %vm1493_vm12 = vcmp.eq.f32.partialorder %v1492_v57, 8.507059e+37 }
 0xe06   :  { %v4946_v60 = vpop.eup %4945 }
 0xe07   :  { %v1484_v53 = vmul.f32 %v4946_v60, %v1482_v45  ;;  %vm1489_vm9 = vweird.f32 %v4946_v60 }
 0xe08   :  { %vm1490_vm11 = vmor %vm1488_vm10, %vm1489_vm9 }
 0xe09   :  { %v1485_v54 = vsub.f32 1.0, %v1484_v53 }
 0xe0b   :  { %v1486_v56 = vmul.f32 %v4946_v60, %v1485_v54  ;;  %v1534_v54 = vrot.slane %v6231_v39, 2 }
 0xe0d   :  { %v1487_v58 = vadd.f32 %v4946_v60, %v1486_v56 }
 0xe0f   :  { %v1491_v59 = vsel %vm1490_vm11, %v4946_v60, %v1487_v58 }
 0xe10   :  { %v1496_v63 = vsel %vm1493_vm12, %v1495_v30, %v1491_v59 }
 0xe11   :  { %v1521_v3 = vmul.f32 %v1519_v62, %v1496_v63 }
 0xe13   :  { %1523 = vrot.lane.b32.xlu0 %v1521_v3, %s5709_s7 }
 0xe43   :  { %v1403_v5 = vpop.f32.mrf.mxu0 }
 0xe44   :  { %v1404_v7 = vadd.f32 %v1403_v5, %v5985_v24 }
 0xe46   :  { %v1431_v10 = vrot.slane %v1404_v7, 4 }
 0xe48   :  { %v1433_v12 = vadd.f32 %v1431_v10, %v6040_v15  ;;  %1453 = vrot.lane.b32.xlu2 %v1431_v10, %s5709_s7 }
 0xe4a   :  { %v4668_v13 = vmul.f32 -1.442695, %v1433_v12 }
 0xe4c   :  { %4947 = vpow2.f32 %v4668_v13 }
 0xe52   :  { %v4948_v17 = vpop.eup %4947 }
 0xe53   :  { %v1437_v43 = vadd.f32 1.0, %v4948_v17  ;;  %v1700_v17 = vsel %vm1694_vm3, %v6211_v14, %v6236_v35 }
 0xe55   :  { %4949 = vrcp.f32 %v1437_v43  ;;  %v1449_v21 = vand.u32 2147483648, %v1437_v43  ;;  %v1447_v22 = vand.u32 2147483647, %v1437_v43  ;;  %vm1443_vm14 = vweird.f32 %v1437_v43 }
 0xe57   :  { %v1450_v23 = vor.u32 1.1754944e-38, %v1449_v21  ;;  %vm1448_vm1 = vcmp.eq.f32.partialorder %v1447_v22, 8.507059e+37 }
 0xe5b   :  { %v4950_v18 = vpop.eup %4949 }
 0xe5c   :  { %v1439_v19 = vmul.f32 %v4950_v18, %v1437_v43  ;;  %vm1444_vm13 = vweird.f32 %v4950_v18 }
 0xe5d   :  { %vm1445_vm15 = vmor %vm1443_vm14, %vm1444_vm13 }
 0xe5e   :  { %v1440_v20 = vsub.f32 1.0, %v1439_v19 }
 0xe60   :  { %v1441_v4 = vmul.f32 %v4950_v18, %v1440_v20 }
 0xe62   :  { %v1442_v34 = vadd.f32 %v4950_v18, %v1441_v4 }
 0xe64   :  { %v1446_v25 = vsel %vm1445_vm15, %v4950_v18, %v1442_v34 }
 0xe65   :  { %v1451_v27 = vsel %vm1448_vm1, %v1450_v23, %v1446_v25 }
 0xe66   :  { %v1471_v31 = vmul.f32 %v1469_v26, %v1451_v27  ;;  %v1463_v7 = vsub.f32 1.0, %v1451_v27 }
 0xe85   :  { %v1524_v32 = vpop.permute.xlu0 %1523 }
 0xe86   :  { %v1526_v29 = vadd.f32 %v1524_v32, %v6197_v8 }
 0xe88   :  { %4951 = vtanh.f32 %v1526_v29 }
 0xe89   :  { %4953 = vpow2.f32 %v4670_v33 }
 0xe8e   :  { %v4952_v40 = vpop.eup %4951 }
 0xe8f   :  { %1530 = vrot.lane.b32.xlu2 %v4952_v40, %s5710_s26  ;;  %v4954_v61 = vpop.eup %4953 }
 0xe90   :  { %v1502_v36 = vadd.f32 1.0, %v4954_v61 }
 0xe92   :  { %4955 = vrcp.f32 %v1502_v36  ;;  %v1514_v50 = vand.u32 2147483648, %v1502_v36  ;;  %vm1508_vm6 = vweird.f32 %v1502_v36  ;;  %v1512_v44 = vand.u32 2147483647, %v1502_v36 }
 0xe94   :  { %v1515_v60 = vor.u32 1.1754944e-38, %v1514_v50  ;;  %vm1513_vm8 = vcmp.eq.f32.partialorder %v1512_v44, 8.507059e+37 }
 0xe98   :  { %v4956_v37 = vpop.eup %4955 }
 0xe99   :  { %v1504_v38 = vmul.f32 %v4956_v37, %v1502_v36  ;;  %vm1509_vm5 = vweird.f32 %v4956_v37 }
 0xe9a   :  { %vm1510_vm7 = vmor %vm1508_vm6, %vm1509_vm5 }
 0xe9b   :  { %v1505_v42 = vsub.f32 1.0, %v1504_v38 }
 0xe9d   :  { %v1506_v48 = vmul.f32 %v4956_v37, %v1505_v42 }
 0xe9f   :  { %v1507_v1 = vadd.f32 %v4956_v37, %v1506_v48 }
 0xea1   :  { %v1511_v45 = vsel %vm1510_vm7, %v4956_v37, %v1507_v1 }
 0xea2   :  { %v1454_v41 = vpop.permute.xlu2 %1453  ;;  %v1516_v53 = vsel %vm1513_vm8, %v1515_v60, %v1511_v45  ;;  %v1723_v60 = vld [vmem:[#allocation10 + $0x70] sm:$0xff] }
 0xea3   :  { %v1456_v0 = vmul.f32 %v1454_v41, %v1451_v27  ;;  %v1528_v49 = vsub.f32 1.0, %v1516_v53  ;;  %v1536_v56 = vmul.f32 %v1534_v54, %v1516_v53  ;;  %v1724_v53 = vld [vmem:[#allocation10 + $0x78] sm:$0xff]  ;;  %1743 = vmatpush.msra.mxu0 %v1723_v60  ;;  %v1722_v54 = vld [vmem:[#allocation10 + $0x68] sm:$0xff] }
 0xea4   :  { %1766 = vmatpush.msra.mxu1 %v1724_v53 }
 0xea5   :  { %1458 = vrot.lane.b32.xlu1 %v1456_v0, %s5709_s7 }
 0xea6   :  { %1767 = vmatpush.msra.mxu1 %v1722_v54 }
 0xee9   :  { %v1531_v55 = vpop.permute.xlu2 %1530 }
 0xeea   :  { %v1533_v57 = vmul.f32 %v1531_v55, %v1528_v49  ;;  %v1721_v49 = vld [vmem:[#allocation10 + $0x60] sm:$0xff] }
 0xeeb   :  { %1744 = vmatpush.msra.mxu0 %v1721_v49 }
 0xeec   :  { %v6255_v58 = vadd.f32 %v1536_v56, %v1533_v57  ;;  %v1720_v56 = vld [vmem:[#allocation10 + $0x58] sm:$0xff] }
 0xeed   :  { %1768 = vmatpush.msra.mxu1 %v1720_v56 }
 0xeee   :  { %v1565_v30 = vrot.slane %v6255_v58, 2 }
 0xef0   :  { %4672 = vmatmul.msk.f32.vlgmr.msrb.gmra.mxu3 %vm349_vm0, %v1565_v30 }
 0xf17   :  { %v1459_v59 = vpop.permute.xlu1 %1458 }
 0xf18   :  { %v1461_v62 = vadd.f32 %v1459_v59, %v6040_v15  ;;  %v1717_v59 = vld [vmem:[#allocation10 + $0x40] sm:$0xff] }
 0xf1a   :  { %4957 = vtanh.f32 %v1461_v62  ;;  %v1718_v62 = vld [vmem:[#allocation10 + $0x48] sm:$0xff] }
 0xf1b   :  { %1769 = vmatpush.msra.mxu1 %v1718_v62 }
 0xf20   :  { %v4958_v63 = vpop.eup %4957 }
 0xf21   :  { %1465 = vrot.lane.b32.xlu0 %v4958_v63, %s5710_s26 }
 0xf73   :  { %v1585_v3 = vpop.f32.mrf.mxu3 }
 0xf74   :  { %v1586_v5 = vadd.f32 %v1585_v3, %v6033_v6 }
 0xf76   :  { %1675 = vrot.lane.b32.xlu0 %v1586_v5, %s5707_s10  ;;  %1632 = vrot.lane.b32.xlu2 %v1586_v5, %s5710_s26 }
 0xf93   :  { %v1466_v10 = vpop.permute.xlu0 %1465 }
 0xf94   :  { %v1468_v12 = vmul.f32 %v1466_v10, %v1463_v7  ;;  %v6286_v10 = vld [vmem:[#allocation13 + $0x30] sm:$0xff] }
 0xf96   :  { %v6266_v13 = vadd.f32 %v1471_v31, %v1468_v12  ;;  %v6288_v12 = vld [vmem:[#allocation13 + $0x20] sm:$0xff] }
 0xf98   :  { %v1539_v43 = vrot.slane %v6266_v13, 4  ;;  %v6274_v18 = vsel %vm1696_vm4, %v1700_v17, %v6266_v13 }
 0xf9a   :  { %1540 = vrot.lane.b32.xlu1 %v1539_v43, %s5710_s26 }
 0xfd0   :  { %v1633_v6 = vpop.permute.xlu2 %1632 }
 0xfd1   :  { %v1635_v19 = vadd.f32 %v1633_v6, %v6028_v47  ;;  %v1655_v38 = vadd.f32 %v1633_v6, %v6197_v8  ;;  %v1848_v6 = vld [vmem:[#allocation13 + $0x28] sm:$0xff] }
 0xfd3   :  { %v4674_v20 = vmul.f32 -1.442695, %v1635_v19  ;;  %v4675_v48 = vmul.f32 -1.442695, %v1655_v38 }
 0xfd5   :  { %4959 = vpow2.f32 %v4674_v20  ;;  %v4820_v20 = vpack.i.bf16 %v1848_v6, %v6288_v12  ;;  %v1713_v6 = vld [vmem:[#allocation10 + $0x20] sm:$0xff] }
 0xfdb   :  { %v4960_v21 = vpop.eup %4959 }
 0xfdc   :  { %v1639_v4 = vadd.f32 1.0, %v4960_v21 }
 0xfde   :  { %4961 = vrcp.f32 %v1639_v4  ;;  %v1651_v14 = vand.u32 2147483648, %v1639_v4  ;;  %v1649_v25 = vand.u32 2147483647, %v1639_v4  ;;  %vm1645_vm10 = vweird.f32 %v1639_v4 }
 0xfe0   :  { %v1652_v27 = vor.u32 1.1754944e-38, %v1651_v14  ;;  %vm1650_vm12 = vcmp.eq.f32.partialorder %v1649_v25, 8.507059e+37  ;;  %v6302_v14 = vld [vmem:[#allocation13] sm:$0xff] }
 0xfe4   :  { %v4962_v22 = vpop.eup %4961 }
 0xfe5   :  { %v1641_v34 = vmul.f32 %v4962_v22, %v1639_v4  ;;  %vm1646_vm9 = vweird.f32 %v4962_v22  ;;  %v1710_v4 = vld [vmem:[#allocation10 + $0x8] sm:$0xff] }
 0xfe6   :  { %vm1647_vm11 = vmor %vm1645_vm10, %vm1646_vm9 }
 0xfe7   :  { %v1642_v23 = vsub.f32 1.0, %v1641_v34 }
 0xfe8   :  { %v1676_v47 = vpop.permute.xlu0 %1675 }
 0xfe9   :  { %v1643_v35 = vmul.f32 %v4962_v22, %v1642_v23 }
 0xfeb   :  { %v1644_v26 = vadd.f32 %v4962_v22, %v1643_v35  ;;  %v1844_v35 = vld [vmem:[#allocation13 + $0x8] sm:$0xff] }
 0xfed   :  { %v1648_v31 = vsel %vm1647_vm11, %v4962_v22, %v1644_v26  ;;  %v6298_v22 = vld [vmem:[#allocation13 + $0x10] sm:$0xff] }
 0xfee   :  { %v1653_v32 = vsel %vm1650_vm12, %v1652_v27, %v1648_v31 }
 0xfef   :  { %v1678_v29 = vmul.f32 %v1676_v47, %v1653_v32  ;;  %v4830_v47 = vpack.i.bf16 %v1844_v35, %v6302_v14 }
 0xff1   :  { %1680 = vrot.lane.b32.xlu2 %v1678_v29, %s5709_s7 }
0x100c   :  { %v1541_v40 = vpop.permute.xlu1 %1540 }
0x100d   :  { %4671 = vmatmul.msk.f32.vlgmr.msra.gmra.mxu2 %vm349_vm0, %v1541_v40 }
0x104b   :  { %v1681_v41 = vpop.permute.xlu2 %1680 }
0x104c   :  { %v1683_v33 = vadd.f32 %v1681_v41, %v6197_v8  ;;  %v1719_v8 = vld [vmem:[#allocation10 + $0x50] sm:$0xff] }
0x104d   :  { %1745 = vmatpush.msra.mxu0 %v1719_v8 }
0x104e   :  { %4963 = vtanh.f32 %v1683_v33 }
0x104f   :  { %1746 = vmatpush.msra.mxu0 %v1717_v59 }
0x1051   :  { %1867 = vmatpush.msrb.mxu0 %v6286_v10 }
0x1053   :  { %1868 = vmatpush.msrb.mxu0 %v6288_v12 }
0x1054   :  { %v4964_v36 = vpop.eup %4963 }
0x1055   :  { %1869 = vmatpush.msrb.mxu0 %v6298_v22 }
0x1057   :  { %1870 = vmatpush.msrb.mxu0 %v6302_v14 }
0x1090   :  { %v1561_v0 = vpop.f32.mrf.mxu2 }
0x1091   :  { %v1562_v2 = vadd.f32 %v1561_v0, %v5985_v24 }
0x1093   :  { %v1589_v61 = vrot.slane %v1562_v2, 2  ;;  %v1850_v2 = vld [vmem:[#allocation13 + $0x38] sm:$0xff] }
0x1095   :  { %1611 = vrot.lane.b32.xlu1 %v1589_v61, %s5709_s7  ;;  %v1591_v37 = vadd.f32 %v1589_v61, %v6040_v15  ;;  %v4815_v61 = vpack.i.bf16 %v1850_v2, %v6286_v10 }
0x1097   :  { %v4673_v42 = vmul.f32 -1.442695, %v1591_v37 }
0x1099   :  { %4965 = vpow2.f32 %v4673_v42 }
0x109a   :  { %4967 = vpow2.f32 %v4675_v48  ;;  %v1846_v48 = vld [vmem:[#allocation13 + $0x18] sm:$0xff] }
0x109d   :  { %1687 = vrot.lane.b32.xlu1 %v4964_v36, %s5710_s26 }
0x109f   :  { %v4966_v1 = vpop.eup %4965 }
0x10a0   :  { %v1595_v50 = vadd.f32 1.0, %v4966_v1  ;;  %v4968_v24 = vpop.eup %4967 }
0x10a1   :  { %v1659_v44 = vadd.f32 1.0, %v4968_v24 }
0x10a2   :  { %4969 = vrcp.f32 %v1595_v50  ;;  %v1607_v19 = vand.u32 2147483648, %v1595_v50  ;;  %vm1601_vm14 = vweird.f32 %v1595_v50  ;;  %v1605_v21 = vand.u32 2147483647, %v1595_v50 }
0x10a3   :  { %4971 = vrcp.f32 %v1659_v44  ;;  %v1671_v26 = vand.u32 2147483648, %v1659_v44  ;;  %vm1665_vm6 = vweird.f32 %v1659_v44  ;;  %v1669_v27 = vand.u32 2147483647, %v1659_v44 }
0x10a4   :  { %v1608_v25 = vor.u32 1.1754944e-38, %v1607_v19  ;;  %vm1606_vm5 = vcmp.eq.f32.partialorder %v1605_v21, 8.507059e+37  ;;  %v1711_v19 = vld [vmem:[#allocation10 + $0x10] sm:$0xff]  ;;  %v1709_v21 = vld [vmem:[#allocation10] sm:$0xff] }
0x10a5   :  { %4821 = vrot.lane.b32.xlu1 %v4820_v20, %s5707_s10  ;;  %v1672_v41 = vor.u32 1.1754944e-38, %v1671_v26  ;;  %vm1670_vm8 = vcmp.eq.f32.partialorder %v1669_v27, 8.507059e+37  ;;  %v1712_v20 = vld [vmem:[#allocation10 + $0x18] sm:$0xff] }
0x10a8   :  { %v4970_v45 = vpop.eup %4969 }
0x10a9   :  { %v1597_v55 = vmul.f32 %v4970_v45, %v1595_v50  ;;  %v4972_v57 = vpop.eup %4971  ;;  %vm1602_vm13 = vweird.f32 %v4970_v45 }
0x10aa   :  { %v1661_v3 = vmul.f32 %v4972_v57, %v1659_v44  ;;  %vm6293_vm15 = vmor %vm1601_vm14, %vm1602_vm13  ;;  %vm1666_vm1 = vweird.f32 %v4972_v57  ;;  %v4825_v44 = vpack.i.bf16 %v1846_v48, %v6298_v22  ;;  %v6424_v48 = vld [vmem:[#allocation11] sm:$0x3] }
0x10ab   :  { %v1598_v63 = vsub.f32 1.0, %v1597_v55  ;;  %vm1667_vm7 = vmor %vm1665_vm6, %vm1666_vm1 }
0x10ac   :  { %v1662_v7 = vsub.f32 1.0, %v1661_v3 }
0x10ad   :  { %v1599_v5 = vmul.f32 %v4970_v45, %v1598_v63  ;;  %4831 = vrot.lane.b32.xlu1 %v4830_v47, %s5707_s10 }
0x10ae   :  { %v1663_v43 = vmul.f32 %v4972_v57, %v1662_v7 }
0x10af   :  { %v1600_v17 = vadd.f32 %v4970_v45, %v1599_v5 }
0x10b0   :  { %v1664_v23 = vadd.f32 %v4972_v57, %v1663_v43  ;;  %v1716_v43 = vld [vmem:[#allocation10 + $0x38] sm:$0xff] }
0x10b1   :  { %v1604_v34 = vsel %vm6293_vm15, %v4970_v45, %v1600_v17  ;;  %1822 = vmatpush.msra.mxu3 %v1716_v43 }
0x10b2   :  { %v6306_v32 = vsel %vm1606_vm5, %v1608_v25, %v1604_v34  ;;  %v1668_v40 = vsel %vm1667_vm7, %v4972_v57, %v1664_v23  ;;  %v1627_v25 = vrot.slane %v6266_v13, 6 }
0x10b3   :  { %v1673_v0 = vsel %vm1670_vm8, %v1672_v41, %v1668_v40  ;;  %v1621_v35 = vsub.f32 1.0, %v6306_v32 }
0x10b4   :  { %v1685_v33 = vsub.f32 1.0, %v1673_v0  ;;  %v1692_v37 = vmul.f32 %v1673_v0, %v1565_v30  ;;  %v1706_v30 = vsel %vm1694_vm3, %v6180_v52, %v6131_v28  ;;  %v1851_v28 = vld [vmem:[#allocation14] sm:$0x3]  ;;  %v1629_v27 = vmul.f32 %v1627_v25, %v6306_v32 }
0x10b5   :  { %v6348_v52 = vperm.slane %v1851_v28, 0  ;;  %v1875_v45 = vperm.slane %v1851_v28, 1 }
0x10b7   :  { %1910 = vrot.lane.b32.xlu1 %v1875_v45, %s5707_s10 }
0x1107   :  { %v1612_v31 = vpop.permute.xlu1 %1611 }
0x1108   :  { %v1614_v29 = vmul.f32 %v1612_v31, %v6306_v32 }
0x110a   :  { %1616 = vrot.lane.b32.xlu0 %v1614_v29, %s5709_s7 }
0x110f   :  { %v1688_v36 = vpop.permute.xlu1 %1687 }
0x1110   :  { %v1690_v38 = vmul.f32 %v1688_v36, %v1685_v33 }
0x1112   :  { %v6315_v42 = vadd.f32 %v1692_v37, %v1690_v38  ;;  %4816 = vrot.lane.b32.xlu0 %v4815_v61, %s5707_s10 }
0x1114   :  { %v1703_v1 = vsel %vm1694_vm3, %v6315_v42, %v6255_v58 }
0x1115   :  { %v1704_v50 = vsel %vm1696_vm4, %v1703_v1, %v6231_v39  ;;  %v1707_v39 = vsel %vm1696_vm4, %v1706_v30, %v6094_v51  ;;  %v1835_v1 = vperm.slane %v6424_v48, 0 }
0x1116   :  { %v1705_v24 = vsel %vm1698_vm2, %v1704_v50, %v6205_v9  ;;  %v1708_v9 = vsel %vm1698_vm2, %v1707_v39, %v6061_v11 }
0x1117   :  { %4676 = vmatmul.msk.f32.vlgmr.msra.gmra.mxu0 %vm349_vm0, %v1705_v24  ;;  %4678 = vmatmul.msk.f32.vlgmr.msra.gmra.mxu1 %vm349_vm0, %v1705_v24  ;;  %v4822_v58 = vpop.permute.xlu1 %4821 }
0x1118   :  { %2211 = vmatpush.msra.mxu0 %v6286_v10  ;;  %v4824_v60 = vunpack.i.h.bf16 %v4822_v58  ;;  %v4823_v53 = vunpack.i.l.bf16 %v4822_v58 }
0x111a   :  { %4826 = vrot.lane.b32.xlu0 %v4825_v44, %s5707_s10  ;;  %2212 = vmatpush.msra.mxu0 %v6288_v12  ;;  %v6358_v56 = vsel %vm349_vm0, %v4823_v53, %v4824_v60 }
0x111c   :  { %2213 = vmatpush.msra.mxu0 %v6298_v22 }
0x111e   :  { %2214 = vmatpush.msra.mxu0 %v6302_v14 }
0x111f   :  { %4677 = vmatmul.msk.f32.gmra.mxu0 %vm349_vm0, %v1708_v9  ;;  %4679 = vmatmul.msk.f32.gmra.mxu1 %vm349_vm0, %v1708_v9  ;;  %v4832_v57 = vpop.permute.xlu1 %4831 }
0x1120   :  { %v4834_v59 = vunpack.i.h.bf16 %v4832_v57  ;;  %v4833_v62 = vunpack.i.l.bf16 %v4832_v57 }
0x1122   :  { %1908 = vrot.lane.b32.xlu0 %v6348_v52, %s5707_s10  ;;  %v6368_v17 = vsel %vm349_vm0, %v4833_v62, %v4834_v59 }
0x1127   :  { %1871 = vmatmul.f32.vlgmr.msrb.gmra.mxu0 %v5708_v16 }
0x1128   :  { %2525 = vmatpush.msrb.mxu0 %v6286_v10 }
0x1129   :  { %v1911_v0 = vpop.permute.xlu1 %1910 }
0x112a   :  { %2526 = vmatpush.msrb.mxu0 %v6288_v12 }
0x112c   :  { %2527 = vmatpush.msrb.mxu0 %v6298_v22 }
0x112e   :  { %2528 = vmatpush.msrb.mxu0 %v6302_v14 }
0x117c   :  { %v1617_v51 = vpop.permute.xlu0 %1616 }
0x117d   :  { %v1619_v11 = vadd.f32 %v1617_v51, %v6040_v15 }
0x117f   :  { %4973 = vtanh.f32 %v1619_v11 }
0x1184   :  { %v4817_v49 = vpop.permute.xlu0 %4816 }
0x1185   :  { %v4974_v54 = vpop.eup %4973  ;;  %v4819_v55 = vunpack.i.h.bf16 %v4817_v49  ;;  %v4818_v8 = vunpack.i.l.bf16 %v4817_v49 }
0x1186   :  { %1623 = vrot.lane.b32.xlu2 %v4974_v54, %s5710_s26 }
0x1187   :  { %v6355_v15 = vsel %vm349_vm0, %v4818_v8, %v4819_v55 }
0x1188   :  { %1926 = vmatpush.msrb.mxu1 %v6355_v15 }
0x118a   :  { %1927 = vmatpush.msrb.mxu1 %v6358_v56 }
0x118c   :  { %v4827_v63 = vpop.permute.xlu0 %4826 }
0x118d   :  { %v4829_v3 = vunpack.i.h.bf16 %v4827_v63  ;;  %v4828_v5 = vunpack.i.l.bf16 %v4827_v63 }
0x118e   :  { %1779 = vrot.lane.b32.xlu2 %v6173_v46, %s5710_s26  ;;  %v1715_v46 = vld [vmem:[#allocation10 + $0x30] sm:$0xff] }
0x118f   :  { %v6365_v7 = vsel %vm349_vm0, %v4828_v5, %v4829_v3  ;;  %1799 = vmatpush.msrb.mxu2 %v1715_v46 }
0x1190   :  { %1928 = vmatpush.msrb.mxu1 %v6365_v7 }
0x1191   :  { %1800 = vmatpush.msrb.mxu2 %v1713_v6 }
0x1192   :  { %1929 = vmatpush.msrb.mxu1 %v6368_v17 }
0x1193   :  { %1930 = vmatmul.f32.vlgmr.msrb.gmra.mxu1 %v5708_v16  ;;  %v1714_v16 = vld [vmem:[#allocation10 + $0x28] sm:$0xff]  ;;  %1801 = vmatpush.msrb.mxu2 %v1711_v19 }
0x1194   :  { %2235 = vmatpush.msra.mxu1 %v6355_v15  ;;  %1823 = vmatpush.msra.mxu3 %v1714_v16  ;;  %v1748_v34 = vpop.f32.mrf.mxu0  ;;  %v1909_v2 = vpop.permute.xlu0 %1908 }
0x1195   :  { %1802 = vmatpush.msrb.mxu2 %v1709_v21  ;;  %v6417_v33 = vsel %vm349_vm0, %v1909_v2, %v1911_v0 }
0x1196   :  { %2236 = vmatpush.msra.mxu1 %v6358_v56  ;;  %1824 = vmatpush.msra.mxu3 %v1712_v20 }
0x1197   :  { %2053 = vmatpush.msra.mxu2 %v6286_v10 }
0x1198   :  { %2237 = vmatpush.msra.mxu1 %v6365_v7  ;;  %1825 = vmatpush.msra.mxu3 %v1710_v4 }
0x1199   :  { %2054 = vmatpush.msra.mxu2 %v6288_v12 }
0x119a   :  { %2238 = vmatpush.msra.mxu1 %v6368_v17  ;;  %2077 = vmatpush.msrb.mxu3 %v6355_v15 }
0x119b   :  { %2055 = vmatpush.msra.mxu2 %v6298_v22 }
0x119c   :  { %2548 = vmatpush.msrb.mxu1 %v6355_v15  ;;  %2078 = vmatpush.msrb.mxu3 %v6358_v56  ;;  %v6389_v23 = vpop.f32.mrf.mxu0 }
0x119d   :  { %2056 = vmatpush.msra.mxu2 %v6302_v14 }
0x119e   :  { %2549 = vmatpush.msrb.mxu1 %v6358_v56  ;;  %2079 = vmatpush.msrb.mxu3 %v6365_v7 }
0x11a0   :  { %2550 = vmatpush.msrb.mxu1 %v6365_v7  ;;  %2080 = vmatpush.msrb.mxu3 %v6368_v17 }
0x11a2   :  { %2551 = vmatpush.msrb.mxu1 %v6368_v17 }
0x11a4   :  { %v1872_v40 = vpop.f32.mrf.mxu0 }
0x11a5   :  { %v1873_v13 = vadd.f32 %v1872_v40, %v6348_v52 }
0x11e0   :  { %v1624_v26 = vpop.permute.xlu2 %1623 }
0x11e1   :  { %v1626_v31 = vmul.f32 %v1624_v26, %v1621_v35 }
0x11e3   :  { %v6394_v47 = vadd.f32 %v1629_v27, %v1626_v31 }
0x11e5   :  { %v1702_v29 = vsel %vm1698_vm2, %v6274_v18, %v6394_v47  ;;  %v6412_v18 = vpop.f32.mrf.mxu1 }
0x11e6   :  { %1781 = vrot.lane.b32.xlu2 %v1702_v29, %s5710_s26 }
0x11e8   :  { %v1780_v41 = vpop.permute.xlu2 %1779 }
0x11e9   :  { %4680 = vmatmul.msk.f32.vlgmr.msrb.gmra.mxu2 %vm349_vm0, %v1780_v41  ;;  %4682 = vmatmul.msk.f32.vlgmr.msra.gmra.mxu3 %vm349_vm0, %v1780_v41 }
0x11ea   :  { %2393 = vmatpush.msra.mxu3 %v6355_v15  ;;  %2369 = vmatpush.msrb.mxu2 %v6286_v10 }
0x11ec   :  { %2394 = vmatpush.msra.mxu3 %v6358_v56  ;;  %2370 = vmatpush.msrb.mxu2 %v6288_v12 }
0x11ed   :  { %v6414_v32 = vpop.f32.mrf.mxu1 }
0x11ee   :  { %1955 = vrot.lane.b32.xlu2 %v1873_v13, %s5709_s7  ;;  %2395 = vmatpush.msra.mxu3 %v6365_v7 }
0x11ef   :  { %2371 = vmatpush.msrb.mxu2 %v6298_v22 }
0x11f0   :  { %2396 = vmatpush.msra.mxu3 %v6368_v17 }
0x11f1   :  { %2372 = vmatpush.msrb.mxu2 %v6302_v14 }
0x1210   :  { %v1931_v61 = vpop.f32.mrf.mxu1 }
0x1211   :  { %v1932_v36 = vadd.f32 %v1931_v61, %v6417_v33 }
0x1213   :  { %v1974_v37 = vrot.slane %v1932_v36, 2  ;;  %v1836_v36 = vperm.slane %v6424_v48, 1 }
0x1215   :  { %1975 = vrot.lane.b32.xlu0 %v1974_v37, %s5710_s26  ;;  %2018 = vrot.lane.b32.xlu1 %v1974_v37, %s5707_s10 }
0x1240   :  { %v1782_v38 = vpop.permute.xlu2 %1781 }
0x1241   :  { %4681 = vmatmul.msk.f32.gmra.mxu2 %vm349_vm0, %v1782_v38  ;;  %4683 = vmatmul.msk.f32.gmra.mxu3 %vm349_vm0, %v1782_v38 }
0x1248   :  { %v1956_v55 = vpop.permute.xlu2 %1955 }
0x126c   :  { %v1804_v50 = vpop.f32.mrf.mxu2  ;;  %v6438_v0 = vpop.f32.mrf.mxu3 }
0x126d   :  { %v1805_v24 = vadd.f32 %v1804_v50, %v1748_v34 }
0x126f   :  { %v6427_v44 = vadd.f32 %v1835_v1, %v1805_v24 }
0x1271   :  { %v1934_v30 = vadd.f32 %v1873_v13, %v6427_v44 }
0x1273   :  { %v4684_v39 = vmul.f32 -1.442695, %v1934_v30 }
0x1275   :  { %4975 = vpow2.f32 %v4684_v39 }
0x127b   :  { %v4976_v9 = vpop.eup %4975 }
0x127c   :  { %v1938_v51 = vadd.f32 1.0, %v4976_v9 }
0x127e   :  { %4977 = vrcp.f32 %v1938_v51  ;;  %v1950_v45 = vand.u32 2147483648, %v1938_v51  ;;  %v1948_v53 = vand.u32 2147483647, %v1938_v51  ;;  %vm1944_vm10 = vweird.f32 %v1938_v51 }
0x1280   :  { %v1951_v54 = vor.u32 1.1754944e-38, %v1950_v45  ;;  %vm1949_vm12 = vcmp.eq.f32.partialorder %v1948_v53, 8.507059e+37 }
0x1284   :  { %v4978_v28 = vpop.eup %4977 }
0x1285   :  { %v1940_v11 = vmul.f32 %v4978_v28, %v1938_v51  ;;  %vm1945_vm9 = vweird.f32 %v4978_v28 }
0x1286   :  { %vm1946_vm11 = vmor %vm1944_vm10, %vm1945_vm9 }
0x1287   :  { %v1941_v58 = vsub.f32 1.0, %v1940_v11  ;;  %v1976_v3 = vpop.permute.xlu0 %1975 }
0x1289   :  { %v1942_v60 = vmul.f32 %v4978_v28, %v1941_v58 }
0x128b   :  { %v1943_v49 = vadd.f32 %v4978_v28, %v1942_v60 }
0x128d   :  { %v1947_v8 = vsel %vm1946_vm11, %v4978_v28, %v1943_v49 }
0x128e   :  { %v1952_v57 = vsel %vm1949_vm12, %v1951_v54, %v1947_v8 }
0x128f   :  { %v1958_v59 = vmul.f32 %v1956_v55, %v1952_v57  ;;  %v1965_v24 = vsub.f32 1.0, %v1952_v57  ;;  %v1971_v39 = vmul.f32 0.0, %v1952_v57 }
0x1291   :  { %1960 = vrot.lane.b32.xlu2 %v1958_v59, %s5709_s7 }
0x12c4   :  { %v1807_v62 = vpop.f32.mrf.mxu2  ;;  %v1830_v2 = vpop.f32.mrf.mxu3 }
0x12c5   :  { %v1808_v63 = vadd.f32 %v1807_v62, %v6389_v23  ;;  %v2019_v23 = vpop.permute.xlu1 %2018  ;;  %v1831_v61 = vadd.f32 %v1830_v2, %v6414_v32 }
0x12c7   :  { %v6432_v5 = vadd.f32 %v1835_v1, %v1808_v63  ;;  %v6444_v37 = vadd.f32 %v1836_v36, %v1831_v61 }
0x12c9   :  { %v1978_v46 = vadd.f32 %v1976_v3, %v6432_v5  ;;  %v1998_v32 = vadd.f32 %v1976_v3, %v6444_v37 }
0x12cb   :  { %v4685_v43 = vmul.f32 -1.442695, %v1978_v46  ;;  %v4686_v28 = vmul.f32 -1.442695, %v1998_v32 }
0x12cd   :  { %4979 = vpow2.f32 %v4685_v43 }
0x12d3   :  { %v4980_v6 = vpop.eup %4979 }
0x12d4   :  { %v1982_v16 = vadd.f32 1.0, %v4980_v6 }
0x12d6   :  { %4981 = vrcp.f32 %v1982_v16  ;;  %v1994_v4 = vand.u32 2147483648, %v1982_v16  ;;  %v1992_v35 = vand.u32 2147483647, %v1982_v16  ;;  %vm1988_vm14 = vweird.f32 %v1982_v16 }
0x12d8   :  { %v1995_v26 = vor.u32 1.1754944e-38, %v1994_v4  ;;  %vm1993_vm1 = vcmp.eq.f32.partialorder %v1992_v35, 8.507059e+37 }
0x12dc   :  { %v4982_v19 = vpop.eup %4981 }
0x12dd   :  { %v1984_v20 = vmul.f32 %v4982_v19, %v1982_v16  ;;  %vm1989_vm13 = vweird.f32 %v4982_v19 }
0x12de   :  { %vm1990_vm15 = vmor %vm1988_vm14, %vm1989_vm13 }
0x12df   :  { %v1985_v21 = vsub.f32 1.0, %v1984_v20 }
0x12e1   :  { %v1986_v34 = vmul.f32 %v4982_v19, %v1985_v21 }
0x12e3   :  { %v1987_v25 = vadd.f32 %v4982_v19, %v1986_v34 }
0x12e5   :  { %v1991_v27 = vsel %vm1990_vm15, %v4982_v19, %v1987_v25 }
0x12e6   :  { %v1996_v31 = vsel %vm1993_vm1, %v1995_v26, %v1991_v27 }
0x12e7   :  { %v2021_v29 = vmul.f32 %v2019_v23, %v1996_v31 }
0x12e9   :  { %2023 = vrot.lane.b32.xlu0 %v2021_v29, %s5709_s7 }
0x12eb   :  { %v1961_v40 = vpop.permute.xlu2 %1960 }
0x12ec   :  { %v1963_v41 = vadd.f32 %v1961_v40, %v6427_v44 }
0x12ee   :  { %4983 = vtanh.f32 %v1963_v41 }
0x12f4   :  { %v4984_v13 = vpop.eup %4983 }
0x12f5   :  { %1967 = vrot.lane.b32.xlu1 %v4984_v13, %s5710_s26 }
0x135b   :  { %v2024_v38 = vpop.permute.xlu0 %2023 }
0x135c   :  { %v2026_v1 = vadd.f32 %v2024_v38, %v6444_v37 }
0x135e   :  { %4985 = vtanh.f32 %v2026_v1 }
0x135f   :  { %4987 = vpow2.f32 %v4686_v28 }
0x1364   :  { %v4986_v50 = vpop.eup %4985 }
0x1365   :  { %2030 = vrot.lane.b32.xlu2 %v4986_v50, %s5710_s26  ;;  %v4988_v11 = vpop.eup %4987 }
0x1366   :  { %v2002_v58 = vadd.f32 1.0, %v4988_v11 }
0x1367   :  { %v1968_v30 = vpop.permute.xlu1 %1967 }
0x1368   :  { %v1970_v9 = vmul.f32 %v1968_v30, %v1965_v24  ;;  %4989 = vrcp.f32 %v2002_v58  ;;  %v2014_v55 = vand.u32 2147483648, %v2002_v58  ;;  %vm2008_vm6 = vweird.f32 %v2002_v58 }
0x1369   :  { %v2012_v8 = vand.u32 2147483647, %v2002_v58 }
0x136a   :  { %v6448_v51 = vadd.f32 %v1971_v39, %v1970_v9  ;;  %v2015_v59 = vor.u32 1.1754944e-38, %v2014_v55 }
0x136b   :  { %vm2013_vm8 = vcmp.eq.f32.partialorder %v2012_v8, 8.507059e+37 }
0x136c   :  { %2037 = vrot.lane.b32.xlu0 %v6448_v51, %s5710_s26 }
0x136e   :  { %v4990_v45 = vpop.eup %4989 }
0x136f   :  { %v2004_v60 = vmul.f32 %v4990_v45, %v2002_v58  ;;  %vm2009_vm5 = vweird.f32 %v4990_v45 }
0x1370   :  { %vm2010_vm7 = vmor %vm2008_vm6, %vm2009_vm5 }
0x1371   :  { %v2005_v53 = vsub.f32 1.0, %v2004_v60 }
0x1373   :  { %v2006_v49 = vmul.f32 %v4990_v45, %v2005_v53 }
0x1375   :  { %v2007_v54 = vadd.f32 %v4990_v45, %v2006_v49 }
0x1377   :  { %v2011_v57 = vsel %vm2010_vm7, %v4990_v45, %v2007_v54 }
0x1378   :  { %v2016_v62 = vsel %vm2013_vm8, %v2015_v59, %v2011_v57 }
0x1379   :  { %v2028_v63 = vsub.f32 1.0, %v2016_v62  ;;  %v2034_v46 = vmul.f32 0.0, %v2016_v62 }
0x13bf   :  { %v2031_v3 = vpop.permute.xlu2 %2030 }
0x13c0   :  { %v2033_v43 = vmul.f32 %v2031_v3, %v2028_v63 }
0x13c2   :  { %v6453_v6 = vadd.f32 %v2034_v46, %v2033_v43 }
0x13c4   :  { %v2062_v16 = vrot.slane %v6453_v6, 6 }
0x13c6   :  { %4688 = vmatmul.msk.f32.vlgmr.msrb.gmra.mxu3 %vm349_vm0, %v2062_v16 }
0x13c7   :  { %2702 = vmatpush.msrb.mxu3 %v6355_v15 }
0x13c9   :  { %2703 = vmatpush.msrb.mxu3 %v6358_v56 }
0x13cb   :  { %2704 = vmatpush.msrb.mxu3 %v6365_v7 }
0x13cd   :  { %2705 = vmatpush.msrb.mxu3 %v6368_v17 }
0x13de   :  { %v2038_v19 = vpop.permute.xlu0 %2037 }
0x13df   :  { %4687 = vmatmul.msk.f32.vlgmr.msra.gmra.mxu2 %vm349_vm0, %v2038_v19 }
0x13e0   :  { %2678 = vmatpush.msra.mxu2 %v6286_v10 }
0x13e2   :  { %2679 = vmatpush.msra.mxu2 %v6288_v12 }
0x13e4   :  { %2680 = vmatpush.msra.mxu2 %v6298_v22 }
0x13e6   :  { %2681 = vmatpush.msra.mxu2 %v6302_v14 }
0x1449   :  { %v2082_v20 = vpop.f32.mrf.mxu3 }
0x144a   :  { %v2083_v21 = vadd.f32 %v2082_v20, %v6417_v33 }
0x144c   :  { %v2129_v4 = vrot.slane %v2083_v21, 4 }
0x144e   :  { %2173 = vrot.lane.b32.xlu0 %v2129_v4, %s5707_s10  ;;  %2130 = vrot.lane.b32.xlu2 %v2129_v4, %s5710_s26 }
0x1462   :  { %v2058_v34 = vpop.f32.mrf.mxu2 }
0x1463   :  { %v2059_v35 = vadd.f32 %v2058_v34, %v6348_v52 }
0x1465   :  { %v2086_v25 = vrot.slane %v2059_v35, 6 }
0x1467   :  { %2108 = vrot.lane.b32.xlu1 %v2086_v25, %s5709_s7  ;;  %v2088_v23 = vadd.f32 %v2086_v25, %v6427_v44 }
0x1469   :  { %v4689_v29 = vmul.f32 -1.442695, %v2088_v23 }
0x14a8   :  { %v2131_v26 = vpop.permute.xlu2 %2130 }
0x14a9   :  { %v2133_v27 = vadd.f32 %v2131_v26, %v6432_v5  ;;  %v2153_v4 = vadd.f32 %v2131_v26, %v6444_v37 }
0x14ab   :  { %v4690_v31 = vmul.f32 -1.442695, %v2133_v27  ;;  %v4691_v34 = vmul.f32 -1.442695, %v2153_v4 }
0x14ad   :  { %4991 = vpow2.f32 %v4690_v31 }
0x14ae   :  { %4993 = vpow2.f32 %v4689_v29 }
0x14b3   :  { %v4992_v40 = vpop.eup %4991 }
0x14b4   :  { %v2137_v41 = vadd.f32 1.0, %v4992_v40  ;;  %v4994_v13 = vpop.eup %4993 }
0x14b5   :  { %v2092_v2 = vadd.f32 1.0, %v4994_v13 }
0x14b6   :  { %4995 = vrcp.f32 %v2137_v41  ;;  %v2149_v50 = vand.u32 2147483648, %v2137_v41  ;;  %v2147_v30 = vand.u32 2147483647, %v2137_v41  ;;  %vm2143_vm10 = vweird.f32 %v2137_v41 }
0x14b7   :  { %4997 = vrcp.f32 %v2092_v2  ;;  %v2104_v55 = vand.u32 2147483648, %v2092_v2  ;;  %vm2098_vm14 = vweird.f32 %v2092_v2  ;;  %v2102_v8 = vand.u32 2147483647, %v2092_v2 }
0x14b8   :  { %v2150_v32 = vor.u32 1.1754944e-38, %v2149_v50  ;;  %vm2148_vm12 = vcmp.eq.f32.partialorder %v2147_v30, 8.507059e+37 }
0x14b9   :  { %v2105_v59 = vor.u32 1.1754944e-38, %v2104_v55  ;;  %vm2103_vm1 = vcmp.eq.f32.partialorder %v2102_v8, 8.507059e+37 }
0x14bc   :  { %v4996_v61 = vpop.eup %4995 }
0x14bd   :  { %v2139_v38 = vmul.f32 %v4996_v61, %v2137_v41  ;;  %vm2144_vm9 = vweird.f32 %v4996_v61  ;;  %v4998_v39 = vpop.eup %4997 }
0x14be   :  { %vm2145_vm11 = vmor %vm2143_vm10, %vm2144_vm9  ;;  %v2094_v45 = vmul.f32 %v4998_v39, %v2092_v2  ;;  %vm2099_vm13 = vweird.f32 %v4998_v39 }
0x14bf   :  { %v2140_v1 = vsub.f32 1.0, %v2139_v38  ;;  %vm2100_vm15 = vmor %vm2098_vm14, %vm2099_vm13 }
0x14c0   :  { %v2174_v58 = vpop.permute.xlu0 %2173  ;;  %v2095_v53 = vsub.f32 1.0, %v2094_v45 }
0x14c1   :  { %v2141_v24 = vmul.f32 %v4996_v61, %v2140_v1  ;;  %v2189_v1 = vrot.slane %v6453_v6, 2 }
0x14c2   :  { %v2096_v49 = vmul.f32 %v4998_v39, %v2095_v53 }
0x14c3   :  { %v2142_v9 = vadd.f32 %v4996_v61, %v2141_v24 }
0x14c4   :  { %v2097_v54 = vadd.f32 %v4998_v39, %v2096_v49 }
0x14c5   :  { %v2146_v28 = vsel %vm2145_vm11, %v4996_v61, %v2142_v9 }
0x14c6   :  { %v2151_v11 = vsel %vm2148_vm12, %v2150_v32, %v2146_v28  ;;  %v2101_v57 = vsel %vm2100_vm15, %v4998_v39, %v2097_v54  ;;  %v2124_v28 = vrot.slane %v6448_v51, 6 }
0x14c7   :  { %v2176_v60 = vmul.f32 %v2174_v58, %v2151_v11  ;;  %v2106_v63 = vsel %vm2103_vm1, %v2105_v59, %v2101_v57 }
0x14c8   :  { %v2118_v32 = vsub.f32 1.0, %v2106_v63  ;;  %v2126_v58 = vmul.f32 %v2124_v28, %v2106_v63 }
0x14c9   :  { %2178 = vrot.lane.b32.xlu2 %v2176_v60, %s5709_s7 }
0x14d9   :  { %v2109_v62 = vpop.permute.xlu1 %2108 }
0x14da   :  { %v2111_v3 = vmul.f32 %v2109_v62, %v2106_v63 }
0x14dc   :  { %2113 = vrot.lane.b32.xlu1 %v2111_v3, %s5709_s7 }
0x1523   :  { %v2179_v46 = vpop.permute.xlu2 %2178 }
0x1524   :  { %v2181_v43 = vadd.f32 %v2179_v46, %v6444_v37 }
0x1526   :  { %4999 = vtanh.f32 %v2181_v43 }
0x152c   :  { %v5000_v16 = vpop.eup %4999 }
0x152d   :  { %2185 = vrot.lane.b32.xlu1 %v5000_v16, %s5710_s26 }
0x154e   :  { %v2114_v19 = vpop.permute.xlu1 %2113 }
0x154f   :  { %v2116_v20 = vadd.f32 %v2114_v19, %v6427_v44 }
0x1551   :  { %5001 = vtanh.f32 %v2116_v20 }
0x1552   :  { %5003 = vpow2.f32 %v4691_v34 }
0x1557   :  { %v5002_v21 = vpop.eup %5001 }
0x1558   :  { %2120 = vrot.lane.b32.xlu0 %v5002_v21, %s5710_s26  ;;  %v5004_v35 = vpop.eup %5003 }
0x1559   :  { %v2157_v25 = vadd.f32 1.0, %v5004_v35 }
0x155b   :  { %5005 = vrcp.f32 %v2157_v25  ;;  %v2169_v41 = vand.u32 2147483648, %v2157_v25  ;;  %vm2163_vm6 = vweird.f32 %v2157_v25  ;;  %v2167_v13 = vand.u32 2147483647, %v2157_v25 }
0x155d   :  { %v2170_v61 = vor.u32 1.1754944e-38, %v2169_v41  ;;  %vm2168_vm8 = vcmp.eq.f32.partialorder %v2167_v13, 8.507059e+37 }
0x1561   :  { %v5006_v23 = vpop.eup %5005 }
0x1562   :  { %v2159_v27 = vmul.f32 %v5006_v23, %v2157_v25  ;;  %vm2164_vm5 = vweird.f32 %v5006_v23 }
0x1563   :  { %vm2165_vm7 = vmor %vm2163_vm6, %vm2164_vm5 }
0x1564   :  { %v2160_v31 = vsub.f32 1.0, %v2159_v27 }
0x1566   :  { %v2161_v29 = vmul.f32 %v5006_v23, %v2160_v31 }
0x1568   :  { %v2162_v40 = vadd.f32 %v5006_v23, %v2161_v29 }
0x156a   :  { %v2166_v2 = vsel %vm2165_vm7, %v5006_v23, %v2162_v40 }
0x156b   :  { %v2171_v38 = vsel %vm2168_vm8, %v2170_v61, %v2166_v2 }
0x156c   :  { %v2183_v26 = vsub.f32 1.0, %v2171_v38  ;;  %v2191_v24 = vmul.f32 %v2189_v1, %v2171_v38 }
0x159f   :  { %v2186_v50 = vpop.permute.xlu1 %2185 }
0x15a0   :  { %v2188_v30 = vmul.f32 %v2186_v50, %v2183_v26 }
0x15a2   :  { %v6481_v39 = vadd.f32 %v2191_v24, %v2188_v30 }
0x15a4   :  { %v2220_v9 = vrot.slane %v6481_v39, 4 }
0x15a6   :  { %4693 = vmatmul.msk.f32.vlgmr.msra.gmra.mxu1 %vm349_vm0, %v2220_v9 }
0x15a7   :  { %2860 = vmatpush.msra.mxu1 %v6355_v15 }
0x15a9   :  { %2861 = vmatpush.msra.mxu1 %v6358_v56 }
0x15ab   :  { %2862 = vmatpush.msra.mxu1 %v6365_v7 }
0x15ad   :  { %2863 = vmatpush.msra.mxu1 %v6368_v17 }
0x15ca   :  { %v2121_v11 = vpop.permute.xlu0 %2120 }
0x15cb   :  { %v2123_v45 = vmul.f32 %v2121_v11, %v2118_v32 }
0x15cd   :  { %v6490_v60 = vadd.f32 %v2126_v58, %v2123_v45 }
0x15cf   :  { %v2194_v53 = vrot.slane %v6490_v60, 2 }
0x15d1   :  { %2195 = vrot.lane.b32.xlu2 %v2194_v53, %s5710_s26 }
0x1623   :  { %v2240_v49 = vpop.f32.mrf.mxu1 }
0x1624   :  { %v2241_v54 = vadd.f32 %v2240_v49, %v6417_v33 }
0x1626   :  { %v2287_v55 = vrot.slane %v2241_v54, 6 }
0x1628   :  { %2288 = vrot.lane.b32.xlu0 %v2287_v55, %s5710_s26  ;;  %2331 = vrot.lane.b32.xlu2 %v2287_v55, %s5707_s10 }
0x162b   :  { %v2196_v8 = vpop.permute.xlu2 %2195 }
0x162c   :  { %4692 = vmatmul.msk.f32.vlgmr.msra.gmra.mxu0 %vm349_vm0, %v2196_v8 }
0x162d   :  { %2836 = vmatpush.msra.mxu0 %v6286_v10 }
0x162f   :  { %2837 = vmatpush.msra.mxu0 %v6288_v12 }
0x1631   :  { %2838 = vmatpush.msra.mxu0 %v6298_v22 }
0x1633   :  { %2839 = vmatpush.msra.mxu0 %v6302_v14 }
0x1682   :  { %v2332_v31 = vpop.permute.xlu2 %2331 }
0x169a   :  { %v2289_v57 = vpop.permute.xlu0 %2288 }
0x169b   :  { %v2291_v59 = vadd.f32 %v2289_v57, %v6432_v5  ;;  %v2311_v55 = vadd.f32 %v2289_v57, %v6444_v37 }
0x169d   :  { %v4695_v62 = vmul.f32 -1.442695, %v2291_v59  ;;  %v4696_v8 = vmul.f32 -1.442695, %v2311_v55 }
0x169f   :  { %5007 = vpow2.f32 %v4695_v62 }
0x16a5   :  { %v5008_v63 = vpop.eup %5007 }
0x16a6   :  { %v2295_v3 = vadd.f32 1.0, %v5008_v63 }
0x16a8   :  { %5009 = vrcp.f32 %v2295_v3  ;;  %v2307_v4 = vand.u32 2147483648, %v2295_v3  ;;  %v2305_v35 = vand.u32 2147483647, %v2295_v3  ;;  %vm2301_vm10 = vweird.f32 %v2295_v3 }
0x16a9   :  { %v2216_v46 = vpop.f32.mrf.mxu0 }
0x16aa   :  { %v2217_v43 = vadd.f32 %v2216_v46, %v6348_v52  ;;  %v2308_v23 = vor.u32 1.1754944e-38, %v2307_v4  ;;  %vm2306_vm12 = vcmp.eq.f32.partialorder %v2305_v35, 8.507059e+37 }
0x16ac   :  { %v2244_v16 = vrot.slane %v2217_v43, 4 }
0x16ae   :  { %v5010_v19 = vpop.eup %5009  ;;  %2266 = vrot.lane.b32.xlu1 %v2244_v16, %s5709_s7  ;;  %v2246_v41 = vadd.f32 %v2244_v16, %v6427_v44 }
0x16af   :  { %v2297_v20 = vmul.f32 %v5010_v19, %v2295_v3  ;;  %vm2302_vm9 = vweird.f32 %v5010_v19 }
0x16b0   :  { %vm2303_vm11 = vmor %vm2301_vm10, %vm2302_vm9  ;;  %v4694_v13 = vmul.f32 -1.442695, %v2246_v41 }
0x16b1   :  { %v2298_v21 = vsub.f32 1.0, %v2297_v20 }
0x16b2   :  { %5011 = vpow2.f32 %v4694_v13 }
0x16b3   :  { %v2299_v34 = vmul.f32 %v5010_v19, %v2298_v21 }
0x16b5   :  { %v2300_v25 = vadd.f32 %v5010_v19, %v2299_v34 }
0x16b7   :  { %v2304_v27 = vsel %vm2303_vm11, %v5010_v19, %v2300_v25 }
0x16b8   :  { %v2309_v29 = vsel %vm2306_vm12, %v2308_v23, %v2304_v27  ;;  %v5012_v2 = vpop.eup %5011  ;;  %v2347_v27 = vrot.slane %v6481_v39, 2 }
0x16b9   :  { %v2334_v40 = vmul.f32 %v2332_v31, %v2309_v29  ;;  %v2250_v61 = vadd.f32 1.0, %v5012_v2 }
0x16bb   :  { %2336 = vrot.lane.b32.xlu1 %v2334_v40, %s5709_s7  ;;  %5013 = vrcp.f32 %v2250_v61  ;;  %v2262_v30 = vand.u32 2147483648, %v2250_v61  ;;  %vm2256_vm14 = vweird.f32 %v2250_v61  ;;  %v2260_v9 = vand.u32 2147483647, %v2250_v61 }
0x16bd   :  { %v2263_v28 = vor.u32 1.1754944e-38, %v2262_v30  ;;  %vm2261_vm1 = vcmp.eq.f32.partialorder %v2260_v9, 8.507059e+37 }
0x16c1   :  { %v5014_v38 = vpop.eup %5013 }
0x16c2   :  { %v2252_v26 = vmul.f32 %v5014_v38, %v2250_v61  ;;  %vm2257_vm13 = vweird.f32 %v5014_v38  ;;  %v2282_v61 = vrot.slane %v6490_v60, 6 }
0x16c3   :  { %vm2258_vm15 = vmor %vm2256_vm14, %vm2257_vm13 }
0x16c4   :  { %v2253_v1 = vsub.f32 1.0, %v2252_v26 }
0x16c6   :  { %v2254_v50 = vmul.f32 %v5014_v38, %v2253_v1 }
0x16c8   :  { %v2255_v24 = vadd.f32 %v5014_v38, %v2254_v50 }
0x16ca   :  { %v2259_v32 = vsel %vm2258_vm15, %v5014_v38, %v2255_v24  ;;  %v3132_v24 = vsel %vm1694_vm3, %v6448_v51, %v6490_v60 }
0x16cb   :  { %v2264_v58 = vsel %vm2261_vm1, %v2263_v28, %v2259_v32 }
0x16cc   :  { %v2276_v2 = vsub.f32 1.0, %v2264_v58  ;;  %v2284_v26 = vmul.f32 %v2282_v61, %v2264_v58 }
0x1720   :  { %v2267_v11 = vpop.permute.xlu1 %2266 }
0x1721   :  { %v2269_v45 = vmul.f32 %v2267_v11, %v2264_v58 }
0x1723   :  { %2271 = vrot.lane.b32.xlu0 %v2269_v45, %s5709_s7 }
0x172d   :  { %v2337_v53 = vpop.permute.xlu1 %2336 }
0x172e   :  { %v2339_v49 = vadd.f32 %v2337_v53, %v6444_v37 }
0x1730   :  { %5015 = vtanh.f32 %v2339_v49 }
0x1731   :  { %5017 = vpow2.f32 %v4696_v8 }
0x1736   :  { %v5016_v54 = vpop.eup %5015 }
0x1737   :  { %2343 = vrot.lane.b32.xlu0 %v5016_v54, %s5710_s26  ;;  %v5018_v59 = vpop.eup %5017 }
0x1738   :  { %v2315_v62 = vadd.f32 1.0, %v5018_v59 }
0x173a   :  { %5019 = vrcp.f32 %v2315_v62  ;;  %v2327_v4 = vand.u32 2147483648, %v2315_v62  ;;  %vm2321_vm6 = vweird.f32 %v2315_v62  ;;  %v2325_v57 = vand.u32 2147483647, %v2315_v62 }
0x173c   :  { %v2328_v35 = vor.u32 1.1754944e-38, %v2327_v4  ;;  %vm2326_vm8 = vcmp.eq.f32.partialorder %v2325_v57, 8.507059e+37 }
0x1740   :  { %v5020_v63 = vpop.eup %5019 }
0x1741   :  { %v2317_v3 = vmul.f32 %v5020_v63, %v2315_v62  ;;  %vm2322_vm5 = vweird.f32 %v5020_v63 }
0x1742   :  { %vm2323_vm7 = vmor %vm2321_vm6, %vm2322_vm5 }
0x1743   :  { %v2318_v16 = vsub.f32 1.0, %v2317_v3 }
0x1745   :  { %v2319_v19 = vmul.f32 %v5020_v63, %v2318_v16 }
0x1747   :  { %v2320_v21 = vadd.f32 %v5020_v63, %v2319_v19 }
0x1749   :  { %v2324_v34 = vsel %vm2323_vm7, %v5020_v63, %v2320_v21 }
0x174a   :  { %v2329_v25 = vsel %vm2326_vm8, %v2328_v35, %v2324_v34 }
0x174b   :  { %v2341_v23 = vsub.f32 1.0, %v2329_v25  ;;  %v2349_v29 = vmul.f32 %v2347_v27, %v2329_v25 }
0x1795   :  { %v2272_v46 = vpop.permute.xlu0 %2271 }
0x1796   :  { %v2274_v43 = vadd.f32 %v2272_v46, %v6427_v44 }
0x1798   :  { %5021 = vtanh.f32 %v2274_v43 }
0x179e   :  { %v5022_v20 = vpop.eup %5021 }
0x179f   :  { %2278 = vrot.lane.b32.xlu2 %v5022_v20, %s5710_s26 }
0x17a9   :  { %v2344_v31 = vpop.permute.xlu0 %2343 }
0x17aa   :  { %v2346_v40 = vmul.f32 %v2344_v31, %v2341_v23 }
0x17ac   :  { %v6514_v41 = vadd.f32 %v2349_v29, %v2346_v40 }
0x17ae   :  { %v2378_v13 = vrot.slane %v6514_v41, 2 }
0x17b0   :  { %4698 = vmatmul.msk.f32.vlgmr.msra.gmra.mxu3 %vm349_vm0, %v2378_v13 }
0x17b1   :  { %3018 = vmatpush.msra.mxu3 %v6355_v15 }
0x17b3   :  { %3019 = vmatpush.msra.mxu3 %v6358_v56 }
0x17b5   :  { %3020 = vmatpush.msra.mxu3 %v6365_v7 }
0x17b7   :  { %3021 = vmatpush.msra.mxu3 %v6368_v17 }
0x17f9   :  { %v2279_v38 = vpop.permute.xlu2 %2278 }
0x17fa   :  { %v2281_v1 = vmul.f32 %v2279_v38, %v2276_v2 }
0x17fc   :  { %v6525_v50 = vadd.f32 %v2284_v26, %v2281_v1 }
0x17fe   :  { %v2352_v15 = vrot.slane %v6525_v50, 4  ;;  %v6533_v56 = vsel %vm1696_vm4, %v3132_v24, %v6525_v50 }
0x1800   :  { %2353 = vrot.lane.b32.xlu1 %v2352_v15, %s5710_s26 }
0x1833   :  { %v2398_v7 = vpop.f32.mrf.mxu3 }
0x1834   :  { %v2399_v17 = vadd.f32 %v2398_v7, %v6417_v33 }
0x1836   :  { %2488 = vrot.lane.b32.xlu1 %v2399_v17, %s5707_s10  ;;  %2445 = vrot.lane.b32.xlu2 %v2399_v17, %s5710_s26 }
0x1872   :  { %v2354_v30 = vpop.permute.xlu1 %2353 }
0x1873   :  { %4697 = vmatmul.msk.f32.vlgmr.msrb.gmra.mxu2 %vm349_vm0, %v2354_v30 }
0x1874   :  { %2994 = vmatpush.msrb.mxu2 %v6286_v10 }
0x1876   :  { %2995 = vmatpush.msrb.mxu2 %v6288_v12 }
0x1878   :  { %2996 = vmatpush.msrb.mxu2 %v6298_v22 }
0x187a   :  { %2997 = vmatpush.msrb.mxu2 %v6302_v14 }
0x1890   :  { %v2446_v51 = vpop.permute.xlu2 %2445 }
0x1891   :  { %v2448_v60 = vadd.f32 %v2446_v51, %v6432_v5  ;;  %v2468_v38 = vadd.f32 %v2446_v51, %v6444_v37 }
0x1893   :  { %v4700_v9 = vmul.f32 -1.442695, %v2448_v60  ;;  %v4701_v26 = vmul.f32 -1.442695, %v2468_v38 }
0x1895   :  { %5023 = vpow2.f32 %v4700_v9 }
0x189b   :  { %v5024_v32 = vpop.eup %5023 }
0x189c   :  { %v2452_v28 = vadd.f32 1.0, %v5024_v32 }
0x189e   :  { %5025 = vrcp.f32 %v2452_v28  ;;  %v2464_v22 = vand.u32 2147483648, %v2452_v28  ;;  %vm2458_vm10 = vweird.f32 %v2452_v28  ;;  %v2462_v14 = vand.u32 2147483647, %v2452_v28 }
0x18a0   :  { %v2465_v8 = vor.u32 1.1754944e-38, %v2464_v22  ;;  %vm2463_vm12 = vcmp.eq.f32.partialorder %v2462_v14, 8.507059e+37 }
0x18a4   :  { %v5026_v11 = vpop.eup %5025 }
0x18a5   :  { %v2454_v58 = vmul.f32 %v5026_v11, %v2452_v28  ;;  %vm2459_vm9 = vweird.f32 %v5026_v11 }
0x18a6   :  { %vm2460_vm11 = vmor %vm2458_vm10, %vm2459_vm9 }
0x18a7   :  { %v2455_v45 = vsub.f32 1.0, %v2454_v58 }
0x18a8   :  { %v2489_v62 = vpop.permute.xlu1 %2488 }
0x18a9   :  { %v2456_v53 = vmul.f32 %v5026_v11, %v2455_v45 }
0x18ab   :  { %v2457_v10 = vadd.f32 %v5026_v11, %v2456_v53 }
0x18ad   :  { %v2461_v55 = vsel %vm2460_vm11, %v5026_v11, %v2457_v10 }
0x18ae   :  { %v2466_v59 = vsel %vm2463_vm12, %v2465_v8, %v2461_v55 }
0x18af   :  { %v2491_v63 = vmul.f32 %v2489_v62, %v2466_v59 }
0x18f6   :  { %v2374_v49 = vpop.f32.mrf.mxu2 }
0x18f7   :  { %v2375_v12 = vadd.f32 %v2374_v49, %v6348_v52 }
0x18f9   :  { %v2402_v54 = vrot.slane %v2375_v12, 2 }
0x18fb   :  { %2424 = vrot.lane.b32.xlu0 %v2402_v54, %s5709_s7  ;;  %v2404_v3 = vadd.f32 %v2402_v54, %v6427_v44  ;;  %v2440_v54 = vrot.slane %v6525_v50, 6 }
0x18fd   :  { %v4699_v46 = vmul.f32 -1.442695, %v2404_v3 }
0x18ff   :  { %5027 = vpow2.f32 %v4699_v46 }
0x1903   :  { %2493 = vrot.lane.b32.xlu0 %v2491_v63, %s5709_s7 }
0x1905   :  { %v5028_v43 = vpop.eup %5027 }
0x1906   :  { %v2408_v16 = vadd.f32 1.0, %v5028_v43 }
0x1908   :  { %5029 = vrcp.f32 %v2408_v16  ;;  %v2420_v34 = vand.u32 2147483648, %v2408_v16  ;;  %vm2414_vm14 = vweird.f32 %v2408_v16  ;;  %v2418_v35 = vand.u32 2147483647, %v2408_v16 }
0x190a   :  { %v2421_v23 = vor.u32 1.1754944e-38, %v2420_v34  ;;  %vm2419_vm1 = vcmp.eq.f32.partialorder %v2418_v35, 8.507059e+37 }
0x190e   :  { %v5030_v19 = vpop.eup %5029 }
0x190f   :  { %v2410_v20 = vmul.f32 %v5030_v19, %v2408_v16  ;;  %vm2415_vm13 = vweird.f32 %v5030_v19 }
0x1910   :  { %vm2416_vm15 = vmor %vm2414_vm14, %vm2415_vm13 }
0x1911   :  { %v2411_v21 = vsub.f32 1.0, %v2410_v20 }
0x1913   :  { %v2412_v4 = vmul.f32 %v5030_v19, %v2411_v21 }
0x1915   :  { %v2413_v57 = vadd.f32 %v5030_v19, %v2412_v4 }
0x1917   :  { %v2417_v25 = vsel %vm2416_vm15, %v5030_v19, %v2413_v57 }
0x1918   :  { %v2422_v27 = vsel %vm2419_vm1, %v2421_v23, %v2417_v25 }
0x1919   :  { %v2434_v14 = vsub.f32 1.0, %v2422_v27  ;;  %v2442_v8 = vmul.f32 %v2440_v54, %v2422_v27 }
0x196d   :  { %v2425_v31 = vpop.permute.xlu0 %2424 }
0x196e   :  { %v2427_v29 = vmul.f32 %v2425_v31, %v2422_v27 }
0x1970   :  { %2429 = vrot.lane.b32.xlu2 %v2427_v29, %s5709_s7 }
0x1975   :  { %v2494_v40 = vpop.permute.xlu0 %2493 }
0x1976   :  { %v2496_v2 = vadd.f32 %v2494_v40, %v6444_v37 }
0x1978   :  { %5031 = vtanh.f32 %v2496_v2 }
0x1979   :  { %5033 = vpow2.f32 %v4701_v26 }
0x197e   :  { %v5032_v61 = vpop.eup %5031 }
0x197f   :  { %2500 = vrot.lane.b32.xlu2 %v5032_v61, %s5710_s26  ;;  %v5034_v1 = vpop.eup %5033 }
0x1980   :  { %v2472_v24 = vadd.f32 1.0, %v5034_v1 }
0x1982   :  { %5035 = vrcp.f32 %v2472_v24  ;;  %v2484_v28 = vand.u32 2147483648, %v2472_v24  ;;  %vm2478_vm6 = vweird.f32 %v2472_v24  ;;  %v2482_v11 = vand.u32 2147483647, %v2472_v24 }
0x1984   :  { %v2485_v58 = vor.u32 1.1754944e-38, %v2484_v28  ;;  %vm2483_vm8 = vcmp.eq.f32.partialorder %v2482_v11, 8.507059e+37 }
0x1988   :  { %v5036_v15 = vpop.eup %5035 }
0x1989   :  { %v2474_v7 = vmul.f32 %v5036_v15, %v2472_v24  ;;  %vm2479_vm5 = vweird.f32 %v5036_v15 }
0x198a   :  { %vm2480_vm7 = vmor %vm2478_vm6, %vm2479_vm5 }
0x198b   :  { %v2475_v17 = vsub.f32 1.0, %v2474_v7 }
0x198d   :  { %v2476_v60 = vmul.f32 %v5036_v15, %v2475_v17 }
0x198f   :  { %v2477_v32 = vadd.f32 %v5036_v15, %v2476_v60 }
0x1991   :  { %v2481_v37 = vsel %vm2480_vm7, %v5036_v15, %v2477_v32 }
0x1992   :  { %v2486_v45 = vsel %vm2483_vm8, %v2485_v58, %v2481_v37 }
0x1993   :  { %v2498_v53 = vsub.f32 1.0, %v2486_v45  ;;  %v2505_v10 = vmul.f32 %v2486_v45, %v2378_v13 }
0x19ca   :  { %v2430_v30 = vpop.permute.xlu2 %2429 }
0x19cb   :  { %v2432_v9 = vadd.f32 %v2430_v30, %v6427_v44 }
0x19cd   :  { %5037 = vtanh.f32 %v2432_v9 }
0x19d3   :  { %v5038_v51 = vpop.eup %5037 }
0x19d4   :  { %2436 = vrot.lane.b32.xlu1 %v5038_v51, %s5710_s26 }
0x19d9   :  { %v2501_v49 = vpop.permute.xlu2 %2500 }
0x19da   :  { %v2503_v12 = vmul.f32 %v2501_v49, %v2498_v53  ;;  %v1828_v49 = vadd.f32 %v6438_v0, %v6412_v18 }
0x19dc   :  { %v6557_v22 = vadd.f32 %v2505_v10, %v2503_v12  ;;  %v6587_v10 = vadd.f32 %v1836_v36, %v1828_v49 }
0x19de   :  { %4703 = vmatmul.msk.f32.vlgmr.msrb.gmra.mxu1 %vm349_vm0, %v6557_v22 }
0x1a46   :  { %v2437_v55 = vpop.permute.xlu1 %2436 }
0x1a47   :  { %v2439_v59 = vmul.f32 %v2437_v55, %v2434_v14 }
0x1a49   :  { %v6562_v62 = vadd.f32 %v2442_v8, %v2439_v59 }
0x1a4b   :  { %v2508_v63 = vrot.slane %v6562_v62, 6  ;;  %v6568_v13 = vsel %vm1698_vm2, %v6533_v56, %v6562_v62 }
0x1a4d   :  { %2509 = vrot.lane.b32.xlu0 %v2508_v63, %s5710_s26 }
0x1a5b   :  { %v2553_v3 = vpop.f32.mrf.mxu1 }
0x1a5c   :  { %v2554_v46 = vadd.f32 %v2553_v3, %v6417_v33 }
0x1a5e   :  { %v2597_v50 = vrot.slane %v2554_v46, 2 }
0x1a60   :  { %2641 = vrot.lane.b32.xlu0 %v2597_v50, %s5707_s10  ;;  %2598 = vrot.lane.b32.xlu1 %v2597_v50, %s5710_s26 }
0x1abf   :  { %v2510_v43 = vpop.permute.xlu0 %2509 }
0x1ac0   :  { %4702 = vmatmul.msk.f32.vlgmr.msrb.gmra.mxu0 %vm349_vm0, %v2510_v43 }
0x1ad2   :  { %v2599_v16 = vpop.permute.xlu1 %2598  ;;  %v2642_v38 = vpop.permute.xlu0 %2641 }
0x1ad3   :  { %v2601_v19 = vadd.f32 %v2599_v16, %v6427_v44  ;;  %v2621_v55 = vadd.f32 %v2599_v16, %v6587_v10 }
0x1ad5   :  { %v4705_v56 = vmul.f32 -1.442695, %v2601_v19  ;;  %v4706_v8 = vmul.f32 -1.442695, %v2621_v55 }
0x1ad7   :  { %5039 = vpow2.f32 %v4705_v56 }
0x1add   :  { %v5040_v20 = vpop.eup %5039 }
0x1ade   :  { %v2605_v21 = vadd.f32 1.0, %v5040_v20 }
0x1ae0   :  { %5041 = vrcp.f32 %v2605_v21  ;;  %v2617_v23 = vand.u32 2147483648, %v2605_v21  ;;  %vm2611_vm10 = vweird.f32 %v2605_v21  ;;  %v2615_v31 = vand.u32 2147483647, %v2605_v21 }
0x1ae2   :  { %v2618_v2 = vor.u32 1.1754944e-38, %v2617_v23  ;;  %vm2616_vm12 = vcmp.eq.f32.partialorder %v2615_v31, 8.507059e+37 }
0x1ae6   :  { %v5042_v4 = vpop.eup %5041 }
0x1ae7   :  { %v2607_v57 = vmul.f32 %v5042_v4, %v2605_v21  ;;  %vm2612_vm9 = vweird.f32 %v5042_v4 }
0x1ae8   :  { %vm2613_vm11 = vmor %vm2611_vm10, %vm2612_vm9 }
0x1ae9   :  { %v2608_v34 = vsub.f32 1.0, %v2607_v57 }
0x1aeb   :  { %v2609_v35 = vmul.f32 %v5042_v4, %v2608_v34  ;;  %v2657_v34 = vrot.slane %v6557_v22, 2 }
0x1aed   :  { %v2610_v25 = vadd.f32 %v5042_v4, %v2609_v35 }
0x1aef   :  { %v2614_v40 = vsel %vm2613_vm11, %v5042_v4, %v2610_v25 }
0x1af0   :  { %v2619_v61 = vsel %vm2616_vm12, %v2618_v2, %v2614_v40 }
0x1af1   :  { %v2644_v26 = vmul.f32 %v2642_v38, %v2619_v61 }
0x1b3d   :  { %v2530_v27 = vpop.f32.mrf.mxu0 }
0x1b3e   :  { %v2531_v29 = vadd.f32 %v2530_v27, %v6348_v52 }
0x1b40   :  { %2577 = vrot.lane.b32.xlu2 %v2531_v29, %s5709_s7  ;;  %v2556_v1 = vadd.f32 %v2531_v29, %v6432_v5 }
0x1b42   :  { %v4704_v24 = vmul.f32 -1.442695, %v2556_v1 }
0x1b44   :  { %5043 = vpow2.f32 %v4704_v24 }
0x1b48   :  { %2646 = vrot.lane.b32.xlu2 %v2644_v26, %s5709_s7 }
0x1b4a   :  { %v5044_v15 = vpop.eup %5043 }
0x1b4b   :  { %v2560_v7 = vadd.f32 1.0, %v5044_v15 }
0x1b4d   :  { %5045 = vrcp.f32 %v2560_v7  ;;  %v2572_v28 = vand.u32 2147483648, %v2560_v7  ;;  %vm2566_vm14 = vweird.f32 %v2560_v7  ;;  %v2570_v11 = vand.u32 2147483647, %v2560_v7 }
0x1b4f   :  { %v2573_v51 = vor.u32 1.1754944e-38, %v2572_v28  ;;  %vm2571_vm1 = vcmp.eq.f32.partialorder %v2570_v11, 8.507059e+37 }
0x1b53   :  { %v5046_v17 = vpop.eup %5045 }
0x1b54   :  { %v2562_v30 = vmul.f32 %v5046_v17, %v2560_v7  ;;  %vm2567_vm13 = vweird.f32 %v5046_v17 }
0x1b55   :  { %vm2568_vm15 = vmor %vm2566_vm14, %vm2567_vm13 }
0x1b56   :  { %v2563_v60 = vsub.f32 1.0, %v2562_v30 }
0x1b58   :  { %v2564_v9 = vmul.f32 %v5046_v17, %v2563_v60 }
0x1b5a   :  { %v2565_v32 = vadd.f32 %v5046_v17, %v2564_v9 }
0x1b5c   :  { %v2569_v37 = vsel %vm2568_vm15, %v5046_v17, %v2565_v32 }
0x1b5d   :  { %v2574_v45 = vsel %vm2571_vm1, %v2573_v51, %v2569_v37 }
0x1b5e   :  { %v2587_v29 = vsub.f32 1.0, %v2574_v45  ;;  %v2594_v2 = vmul.f32 %v2574_v45, %v2508_v63 }
0x1b9a   :  { %v2578_v58 = vpop.permute.xlu2 %2577 }
0x1b9b   :  { %v2580_v53 = vmul.f32 %v2578_v58, %v2574_v45 }
0x1b9d   :  { %2582 = vrot.lane.b32.xlu1 %v2580_v53, %s5709_s7 }
0x1ba2   :  { %v2647_v12 = vpop.permute.xlu2 %2646 }
0x1ba3   :  { %v2649_v14 = vadd.f32 %v2647_v12, %v6587_v10 }
0x1ba5   :  { %5047 = vtanh.f32 %v2649_v14 }
0x1ba6   :  { %5049 = vpow2.f32 %v4706_v8 }
0x1bab   :  { %v5048_v54 = vpop.eup %5047 }
0x1bac   :  { %2653 = vrot.lane.b32.xlu1 %v5048_v54, %s5710_s26  ;;  %v5050_v59 = vpop.eup %5049 }
0x1bad   :  { %v2625_v3 = vadd.f32 1.0, %v5050_v59 }
0x1baf   :  { %5051 = vrcp.f32 %v2625_v3  ;;  %v2637_v19 = vand.u32 2147483648, %v2625_v3  ;;  %vm2631_vm6 = vweird.f32 %v2625_v3  ;;  %v2635_v56 = vand.u32 2147483647, %v2625_v3 }
0x1bb1   :  { %v2638_v21 = vor.u32 1.1754944e-38, %v2637_v19  ;;  %vm2636_vm8 = vcmp.eq.f32.partialorder %v2635_v56, 8.507059e+37 }
0x1bb5   :  { %v5052_v18 = vpop.eup %5051 }
0x1bb6   :  { %v2627_v0 = vmul.f32 %v5052_v18, %v2625_v3  ;;  %vm2632_vm5 = vweird.f32 %v5052_v18 }
0x1bb7   :  { %vm2633_vm7 = vmor %vm2631_vm6, %vm2632_vm5 }
0x1bb8   :  { %v2628_v46 = vsub.f32 1.0, %v2627_v0 }
0x1bba   :  { %v2629_v36 = vmul.f32 %v5052_v18, %v2628_v46 }
0x1bbc   :  { %v2630_v43 = vadd.f32 %v5052_v18, %v2629_v36 }
0x1bbe   :  { %v2634_v16 = vsel %vm2633_vm7, %v5052_v18, %v2630_v43 }
0x1bbf   :  { %v2639_v4 = vsel %vm2636_vm8, %v2638_v21, %v2634_v16 }
0x1bc0   :  { %v2651_v57 = vsub.f32 1.0, %v2639_v4  ;;  %v2659_v25 = vmul.f32 %v2657_v34, %v2639_v4 }
0x1c0f   :  { %v2583_v48 = vpop.permute.xlu1 %2582 }
0x1c10   :  { %v2585_v50 = vadd.f32 %v2583_v48, %v6432_v5 }
0x1c12   :  { %5053 = vtanh.f32 %v2585_v50 }
0x1c18   :  { %v5054_v20 = vpop.eup %5053 }
0x1c19   :  { %2589 = vrot.lane.b32.xlu0 %v5054_v20, %s5710_s26 }
0x1c1e   :  { %v2654_v35 = vpop.permute.xlu1 %2653 }
0x1c1f   :  { %v2656_v23 = vmul.f32 %v2654_v35, %v2651_v57 }
0x1c21   :  { %v6595_v27 = vadd.f32 %v2659_v25, %v2656_v23 }
0x1c23   :  { %v2687_v31 = vrot.slane %v6595_v27, 6 }
0x1c25   :  { %4708 = vmatmul.msk.f32.vlgmr.msrb.gmra.mxu3 %vm349_vm0, %v2687_v31 }
0x1c8b   :  { %v2590_v40 = vpop.permute.xlu0 %2589 }
0x1c8c   :  { %v2592_v61 = vmul.f32 %v2590_v40, %v2587_v29 }
0x1c8e   :  { %v6601_v38 = vadd.f32 %v2594_v2, %v2592_v61 }
0x1c90   :  { %2662 = vrot.lane.b32.xlu2 %v6601_v38, %s5710_s26 }
0x1ca8   :  { %v2707_v26 = vpop.f32.mrf.mxu3 }
0x1ca9   :  { %v2708_v1 = vadd.f32 %v2707_v26, %v6417_v33 }
0x1cab   :  { %v2754_v24 = vrot.slane %v2708_v1, 4 }
0x1cad   :  { %2798 = vrot.lane.b32.xlu1 %v2754_v24, %s5707_s10  ;;  %2755 = vrot.lane.b32.xlu0 %v2754_v24, %s5710_s26 }
0x1cea   :  { %v2663_v15 = vpop.permute.xlu2 %2662 }
0x1ceb   :  { %4707 = vmatmul.msk.f32.vlgmr.msra.gmra.mxu2 %vm349_vm0, %v2663_v15 }
0x1d1f   :  { %v2756_v7 = vpop.permute.xlu0 %2755  ;;  %v2799_v53 = vpop.permute.xlu1 %2798 }
0x1d20   :  { %v2758_v62 = vadd.f32 %v2756_v7, %v6427_v44  ;;  %v2778_v25 = vadd.f32 %v2756_v7, %v6587_v10 }
0x1d22   :  { %v4710_v63 = vmul.f32 -1.442695, %v2758_v62  ;;  %v4711_v23 = vmul.f32 -1.442695, %v2778_v25 }
0x1d24   :  { %5055 = vpow2.f32 %v4710_v63 }
0x1d2a   :  { %v5056_v17 = vpop.eup %5055 }
0x1d2b   :  { %v2762_v30 = vadd.f32 1.0, %v5056_v17 }
0x1d2d   :  { %5057 = vrcp.f32 %v2762_v30  ;;  %v2774_v28 = vand.u32 2147483648, %v2762_v30  ;;  %v2772_v37 = vand.u32 2147483647, %v2762_v30  ;;  %vm2768_vm10 = vweird.f32 %v2762_v30 }
0x1d2f   :  { %v2775_v58 = vor.u32 1.1754944e-38, %v2774_v28  ;;  %vm2773_vm12 = vcmp.eq.f32.partialorder %v2772_v37, 8.507059e+37 }
0x1d33   :  { %v5058_v60 = vpop.eup %5057 }
0x1d34   :  { %v2764_v9 = vmul.f32 %v5058_v60, %v2762_v30  ;;  %vm2769_vm9 = vweird.f32 %v5058_v60  ;;  %v2814_v30 = vrot.slane %v6595_v27, 2 }
0x1d35   :  { %vm2770_vm11 = vmor %vm2768_vm10, %vm2769_vm9 }
0x1d36   :  { %v2765_v32 = vsub.f32 1.0, %v2764_v9 }
0x1d38   :  { %v2766_v11 = vmul.f32 %v5058_v60, %v2765_v32 }
0x1d3a   :  { %v2767_v51 = vadd.f32 %v5058_v60, %v2766_v11 }
0x1d3c   :  { %v2771_v45 = vsel %vm2770_vm11, %v5058_v60, %v2767_v51 }
0x1d3d   :  { %v2776_v49 = vsel %vm2773_vm12, %v2775_v58, %v2771_v45 }
0x1d3e   :  { %v2801_v12 = vmul.f32 %v2799_v53, %v2776_v49 }
0x1d40   :  { %2803 = vrot.lane.b32.xlu0 %v2801_v12, %s5709_s7 }
0x1d6e   :  { %v2683_v14 = vpop.f32.mrf.mxu2 }
0x1d6f   :  { %v2684_v54 = vadd.f32 %v2683_v14, %v6348_v52  ;;  %v2749_v14 = vrot.slane %v6601_v38, 6 }
0x1d71   :  { %v2711_v55 = vrot.slane %v2684_v54, 6 }
0x1d73   :  { %2733 = vrot.lane.b32.xlu2 %v2711_v55, %s5709_s7  ;;  %v2713_v8 = vadd.f32 %v2711_v55, %v6432_v5 }
0x1d75   :  { %v4709_v59 = vmul.f32 -1.442695, %v2713_v8 }
0x1d77   :  { %5059 = vpow2.f32 %v4709_v59 }
0x1d7d   :  { %v5060_v3 = vpop.eup %5059 }
0x1d7e   :  { %v2717_v18 = vadd.f32 1.0, %v5060_v3 }
0x1d80   :  { %5061 = vrcp.f32 %v2717_v18  ;;  %v2729_v16 = vand.u32 2147483648, %v2717_v18  ;;  %vm2723_vm14 = vweird.f32 %v2717_v18  ;;  %v2727_v20 = vand.u32 2147483647, %v2717_v18 }
0x1d82   :  { %v2730_v4 = vor.u32 1.1754944e-38, %v2729_v16  ;;  %vm2728_vm1 = vcmp.eq.f32.partialorder %v2727_v20, 8.507059e+37 }
0x1d86   :  { %v5062_v48 = vpop.eup %5061 }
0x1d87   :  { %v2719_v36 = vmul.f32 %v5062_v48, %v2717_v18  ;;  %vm2724_vm13 = vweird.f32 %v5062_v48 }
0x1d88   :  { %vm2725_vm15 = vmor %vm2723_vm14, %vm2724_vm13 }
0x1d89   :  { %v2720_v43 = vsub.f32 1.0, %v2719_v36 }
0x1d8b   :  { %v2721_v19 = vmul.f32 %v5062_v48, %v2720_v43 }
0x1d8d   :  { %v2722_v56 = vadd.f32 %v5062_v48, %v2721_v19 }
0x1d8f   :  { %v2726_v21 = vsel %vm2725_vm15, %v5062_v48, %v2722_v56 }
0x1d90   :  { %v2731_v34 = vsel %vm2728_vm1, %v2730_v4, %v2726_v21 }
0x1d91   :  { %v2743_v12 = vsub.f32 1.0, %v2731_v34  ;;  %v2751_v55 = vmul.f32 %v2749_v14, %v2731_v34 }
0x1db2   :  { %v2804_v0 = vpop.permute.xlu0 %2803 }
0x1db3   :  { %v2806_v46 = vadd.f32 %v2804_v0, %v6587_v10 }
0x1db5   :  { %5063 = vtanh.f32 %v2806_v46 }
0x1db6   :  { %5065 = vpow2.f32 %v4711_v23 }
0x1dbb   :  { %v5064_v50 = vpop.eup %5063 }
0x1dbc   :  { %2810 = vrot.lane.b32.xlu2 %v5064_v50, %s5710_s26  ;;  %v5066_v31 = vpop.eup %5065 }
0x1dbd   :  { %v2782_v29 = vadd.f32 1.0, %v5066_v31 }
0x1dbf   :  { %5067 = vrcp.f32 %v2782_v29  ;;  %v2794_v24 = vand.u32 2147483648, %v2782_v29  ;;  %vm2788_vm6 = vweird.f32 %v2782_v29  ;;  %v2792_v15 = vand.u32 2147483647, %v2782_v29 }
0x1dc1   :  { %v2795_v63 = vor.u32 1.1754944e-38, %v2794_v24  ;;  %vm2793_vm8 = vcmp.eq.f32.partialorder %v2792_v15, 8.507059e+37 }
0x1dc5   :  { %v5068_v40 = vpop.eup %5067 }
0x1dc6   :  { %v2784_v2 = vmul.f32 %v5068_v40, %v2782_v29  ;;  %vm2789_vm5 = vweird.f32 %v5068_v40 }
0x1dc7   :  { %vm2790_vm7 = vmor %vm2788_vm6, %vm2789_vm5 }
0x1dc8   :  { %v2785_v61 = vsub.f32 1.0, %v2784_v2 }
0x1dca   :  { %v2786_v26 = vmul.f32 %v5068_v40, %v2785_v61 }
0x1dcc   :  { %v2787_v1 = vadd.f32 %v5068_v40, %v2786_v26 }
0x1dcd   :  { %v2734_v57 = vpop.permute.xlu2 %2733 }
0x1dce   :  { %v2736_v35 = vmul.f32 %v2734_v57, %v2731_v34  ;;  %v2791_v62 = vsel %vm2790_vm7, %v5068_v40, %v2787_v1 }
0x1dcf   :  { %v2796_v17 = vsel %vm2793_vm8, %v2795_v63, %v2791_v62 }
0x1dd0   :  { %2738 = vrot.lane.b32.xlu1 %v2736_v35, %s5709_s7  ;;  %v2808_v7 = vsub.f32 1.0, %v2796_v17  ;;  %v2816_v9 = vmul.f32 %v2814_v30, %v2796_v17 }
0x1e16   :  { %v2811_v60 = vpop.permute.xlu2 %2810 }
0x1e17   :  { %v2813_v32 = vmul.f32 %v2811_v60, %v2808_v7 }
0x1e19   :  { %v6619_v28 = vadd.f32 %v2816_v9, %v2813_v32 }
0x1e1b   :  { %v2845_v11 = vrot.slane %v6619_v28, 4 }
0x1e1d   :  { %4713 = vmatmul.msk.f32.vlgmr.msra.gmra.mxu1 %vm349_vm0, %v2845_v11 }
0x1e42   :  { %v2739_v37 = vpop.permute.xlu1 %2738 }
0x1e43   :  { %v2741_v51 = vadd.f32 %v2739_v37, %v6432_v5 }
0x1e45   :  { %5069 = vtanh.f32 %v2741_v51 }
0x1e4b   :  { %v5070_v58 = vpop.eup %5069 }
0x1e4c   :  { %2745 = vrot.lane.b32.xlu0 %v5070_v58, %s5710_s26 }
0x1e9a   :  { %v2865_v45 = vpop.f32.mrf.mxu1 }
0x1e9b   :  { %v2866_v53 = vadd.f32 %v2865_v45, %v6417_v33 }
0x1e9d   :  { %v2912_v49 = vrot.slane %v2866_v53, 6 }
0x1e9f   :  { %2956 = vrot.lane.b32.xlu0 %v2912_v49, %s5707_s10  ;;  %2913 = vrot.lane.b32.xlu2 %v2912_v49, %s5710_s26 }
0x1ebe   :  { %v2746_v54 = vpop.permute.xlu0 %2745 }
0x1ebf   :  { %v2748_v8 = vmul.f32 %v2746_v54, %v2743_v12 }
0x1ec1   :  { %v6629_v59 = vadd.f32 %v2751_v55, %v2748_v8 }
0x1ec3   :  { %v2819_v3 = vrot.slane %v6629_v59, 2 }
0x1ec5   :  { %2820 = vrot.lane.b32.xlu1 %v2819_v3, %s5710_s26 }
0x1ef9   :  { %v2914_v18 = vpop.permute.xlu2 %2913 }
0x1efa   :  { %v2916_v0 = vadd.f32 %v2914_v18, %v6427_v44  ;;  %v2936_v24 = vadd.f32 %v2914_v18, %v6587_v10 }
0x1efc   :  { %v4715_v46 = vmul.f32 -1.442695, %v2916_v0  ;;  %v4716_v62 = vmul.f32 -1.442695, %v2936_v24 }
0x1efe   :  { %5071 = vpow2.f32 %v4715_v46 }
0x1f04   :  { %v5072_v48 = vpop.eup %5071 }
0x1f05   :  { %v2920_v36 = vadd.f32 1.0, %v5072_v48 }
0x1f07   :  { %5073 = vrcp.f32 %v2920_v36  ;;  %v2932_v56 = vand.u32 2147483648, %v2920_v36  ;;  %v2930_v20 = vand.u32 2147483647, %v2920_v36  ;;  %vm2926_vm10 = vweird.f32 %v2920_v36 }
0x1f09   :  { %v2933_v4 = vor.u32 1.1754944e-38, %v2932_v56  ;;  %vm2931_vm12 = vcmp.eq.f32.partialorder %v2930_v20, 8.507059e+37 }
0x1f0d   :  { %v5074_v50 = vpop.eup %5073 }
0x1f0e   :  { %v2922_v43 = vmul.f32 %v5074_v50, %v2920_v36  ;;  %vm2927_vm9 = vweird.f32 %v5074_v50 }
0x1f0f   :  { %vm2928_vm11 = vmor %vm2926_vm10, %vm2927_vm9 }
0x1f10   :  { %v2923_v19 = vsub.f32 1.0, %v2922_v43 }
0x1f11   :  { %v2957_v35 = vpop.permute.xlu0 %2956 }
0x1f12   :  { %v2924_v16 = vmul.f32 %v5074_v50, %v2923_v19  ;;  %v2972_v19 = vrot.slane %v6619_v28, 2 }
0x1f14   :  { %v2925_v21 = vadd.f32 %v5074_v50, %v2924_v16 }
0x1f16   :  { %v2929_v57 = vsel %vm2928_vm11, %v5074_v50, %v2925_v21 }
0x1f17   :  { %v2934_v34 = vsel %vm2931_vm12, %v2933_v4, %v2929_v57 }
0x1f18   :  { %v2959_v25 = vmul.f32 %v2957_v35, %v2934_v34 }
0x1f1a   :  { %2961 = vrot.lane.b32.xlu2 %v2959_v25, %s5709_s7 }
0x1f37   :  { %v2821_v23 = vpop.permute.xlu1 %2820 }
0x1f38   :  { %4712 = vmatmul.msk.f32.vlgmr.msra.gmra.mxu0 %vm349_vm0, %v2821_v23 }
0x1f74   :  { %v2962_v31 = vpop.permute.xlu2 %2961 }
0x1f75   :  { %v2964_v2 = vadd.f32 %v2962_v31, %v6587_v10 }
0x1f77   :  { %5075 = vtanh.f32 %v2964_v2 }
0x1f7d   :  { %v5076_v26 = vpop.eup %5075 }
0x1fb5   :  { %v2841_v29 = vpop.f32.mrf.mxu0 }
0x1fb6   :  { %v2842_v40 = vadd.f32 %v2841_v29, %v6348_v52  ;;  %v2907_v29 = vrot.slane %v6629_v59, 6 }
0x1fb8   :  { %v2869_v61 = vrot.slane %v2842_v40, 4 }
0x1fba   :  { %2891 = vrot.lane.b32.xlu1 %v2869_v61, %s5709_s7  ;;  %v2871_v1 = vadd.f32 %v2869_v61, %v6432_v5 }
0x1fbc   :  { %v4714_v15 = vmul.f32 -1.442695, %v2871_v1  ;;  %v3135_v1 = vsel %vm1694_vm3, %v6601_v38, %v6629_v59 }
0x1fbe   :  { %5077 = vpow2.f32 %v4714_v15 }
0x1fbf   :  { %5079 = vpow2.f32 %v4716_v62 }
0x1fc2   :  { %2968 = vrot.lane.b32.xlu1 %v5076_v26, %s5710_s26 }
0x1fc4   :  { %v5078_v63 = vpop.eup %5077 }
0x1fc5   :  { %v2875_v17 = vadd.f32 1.0, %v5078_v63  ;;  %v5080_v7 = vpop.eup %5079 }
0x1fc6   :  { %v2940_v30 = vadd.f32 1.0, %v5080_v7 }
0x1fc7   :  { %5081 = vrcp.f32 %v2875_v17  ;;  %v2887_v49 = vand.u32 2147483648, %v2875_v17  ;;  %vm2881_vm14 = vweird.f32 %v2875_v17  ;;  %v2885_v12 = vand.u32 2147483647, %v2875_v17 }
0x1fc8   :  { %5083 = vrcp.f32 %v2940_v30  ;;  %v2952_v8 = vand.u32 2147483648, %v2940_v30  ;;  %vm2946_vm6 = vweird.f32 %v2940_v30  ;;  %v2950_v3 = vand.u32 2147483647, %v2940_v30 }
0x1fc9   :  { %v2888_v55 = vor.u32 1.1754944e-38, %v2887_v49  ;;  %vm2886_vm5 = vcmp.eq.f32.partialorder %v2885_v12, 8.507059e+37 }
0x1fca   :  { %v2953_v36 = vor.u32 1.1754944e-38, %v2952_v8  ;;  %vm2951_vm8 = vcmp.eq.f32.partialorder %v2950_v3, 8.507059e+37 }
0x1fcd   :  { %v5082_v60 = vpop.eup %5081 }
0x1fce   :  { %v2877_v9 = vmul.f32 %v5082_v60, %v2875_v17  ;;  %v5084_v32 = vpop.eup %5083  ;;  %vm2882_vm13 = vweird.f32 %v5082_v60 }
0x1fcf   :  { %v2942_v37 = vmul.f32 %v5084_v32, %v2940_v30  ;;  %vm2883_vm15 = vmor %vm2881_vm14, %vm2882_vm13  ;;  %vm2947_vm1 = vweird.f32 %v5084_v32 }
0x1fd0   :  { %v2878_v11 = vsub.f32 1.0, %v2877_v9  ;;  %vm2948_vm7 = vmor %vm2946_vm6, %vm2947_vm1 }
0x1fd1   :  { %v2943_v58 = vsub.f32 1.0, %v2942_v37 }
0x1fd2   :  { %v2879_v51 = vmul.f32 %v5082_v60, %v2878_v11 }
0x1fd3   :  { %v2944_v53 = vmul.f32 %v5084_v32, %v2943_v58 }
0x1fd4   :  { %v2880_v45 = vadd.f32 %v5082_v60, %v2879_v51 }
0x1fd5   :  { %v2945_v54 = vadd.f32 %v5084_v32, %v2944_v53 }
0x1fd6   :  { %v2884_v14 = vsel %vm2883_vm15, %v5082_v60, %v2880_v45 }
0x1fd7   :  { %v2889_v0 = vsel %vm2886_vm5, %v2888_v55, %v2884_v14  ;;  %v2949_v48 = vsel %vm2948_vm7, %v5084_v32, %v2945_v54 }
0x1fd8   :  { %v2954_v50 = vsel %vm2951_vm8, %v2953_v36, %v2949_v48  ;;  %v2901_v31 = vsub.f32 1.0, %v2889_v0  ;;  %v2909_v2 = vmul.f32 %v2907_v29, %v2889_v0 }
0x1fd9   :  { %v2966_v43 = vsub.f32 1.0, %v2954_v50  ;;  %v2974_v16 = vmul.f32 %v2972_v19, %v2954_v50 }
0x202c   :  { %v2892_v18 = vpop.permute.xlu1 %2891 }
0x202d   :  { %v2894_v46 = vmul.f32 %v2892_v18, %v2889_v0 }
0x202f   :  { %2896 = vrot.lane.b32.xlu0 %v2894_v46, %s5709_s7 }
0x2034   :  { %v2969_v56 = vpop.permute.xlu1 %2968 }
0x2035   :  { %v2971_v20 = vmul.f32 %v2969_v56, %v2966_v43 }
0x2037   :  { %v6644_v21 = vadd.f32 %v2974_v16, %v2971_v20 }
0x2039   :  { %v3003_v4 = vrot.slane %v6644_v21, 2 }
0x203b   :  { %4718 = vmatmul.msk.f32.vlgmr.msra.gmra.mxu3 %vm349_vm0, %v3003_v4 }
0x20a1   :  { %v2897_v57 = vpop.permute.xlu0 %2896 }
0x20a2   :  { %v2899_v34 = vadd.f32 %v2897_v57, %v6432_v5 }
0x20a4   :  { %5085 = vtanh.f32 %v2899_v34 }
0x20aa   :  { %v5086_v35 = vpop.eup %5085 }
0x20ab   :  { %2903 = vrot.lane.b32.xlu2 %v5086_v35, %s5710_s26 }
0x20be   :  { %v3023_v25 = vpop.f32.mrf.mxu3 }
0x20bf   :  { %v3024_v23 = vadd.f32 %v3023_v25, %v6417_v33 }
0x20c1   :  { %3070 = vrot.lane.b32.xlu1 %v3024_v23, %s5710_s26  ;;  %3113 = vrot.lane.b32.xlu2 %v3024_v23, %s5707_s10 }
0x2105   :  { %v2904_v40 = vpop.permute.xlu2 %2903 }
0x2106   :  { %v2906_v61 = vmul.f32 %v2904_v40, %v2901_v31 }
0x2108   :  { %v6656_v26 = vadd.f32 %v2909_v2, %v2906_v61 }
0x210a   :  { %v2977_v24 = vrot.slane %v6656_v26, 4  ;;  %v6664_v33 = vsel %vm1696_vm4, %v3135_v1, %v6656_v26 }
0x210c   :  { %2978 = vrot.lane.b32.xlu0 %v2977_v24, %s5710_s26 }
0x211b   :  { %v3114_v58 = vpop.permute.xlu2 %3113 }
0x2133   :  { %v3071_v15 = vpop.permute.xlu1 %3070 }
0x2134   :  { %v3073_v62 = vadd.f32 %v3071_v15, %v6427_v44  ;;  %v3093_v18 = vadd.f32 %v3071_v15, %v6587_v10 }
0x2136   :  { %v4720_v63 = vmul.f32 -1.442695, %v3073_v62  ;;  %v4721_v46 = vmul.f32 -1.442695, %v3093_v18 }
0x2138   :  { %5087 = vpow2.f32 %v4720_v63 }
0x213e   :  { %v5088_v17 = vpop.eup %5087 }
0x213f   :  { %v3077_v7 = vadd.f32 1.0, %v5088_v17 }
0x2141   :  { %5089 = vrcp.f32 %v3077_v7  ;;  %v3089_v38 = vand.u32 2147483648, %v3077_v7  ;;  %v3087_v32 = vand.u32 2147483647, %v3077_v7  ;;  %vm3083_vm10 = vweird.f32 %v3077_v7 }
0x2143   :  { %v3090_v37 = vor.u32 1.1754944e-38, %v3089_v38  ;;  %vm3088_vm12 = vcmp.eq.f32.partialorder %v3087_v32, 8.507059e+37 }
0x2147   :  { %v5090_v30 = vpop.eup %5089 }
0x2148   :  { %v3079_v60 = vmul.f32 %v5090_v30, %v3077_v7  ;;  %vm3084_vm9 = vweird.f32 %v5090_v30 }
0x2149   :  { %vm3085_vm11 = vmor %vm3083_vm10, %vm3084_vm9 }
0x214a   :  { %v3080_v9 = vsub.f32 1.0, %v3079_v60 }
0x214c   :  { %v3081_v59 = vmul.f32 %v5090_v30, %v3080_v9 }
0x214e   :  { %v3082_v11 = vadd.f32 %v5090_v30, %v3081_v59 }
0x2150   :  { %v3086_v51 = vsel %vm3085_vm11, %v5090_v30, %v3082_v11 }
0x2151   :  { %v3091_v44 = vsel %vm3088_vm12, %v3090_v37, %v3086_v51 }
0x2152   :  { %v3116_v45 = vmul.f32 %v3114_v58, %v3091_v44 }
0x2154   :  { %3118 = vrot.lane.b32.xlu1 %v3116_v45, %s5709_s7 }
0x217e   :  { %v2979_v53 = vpop.permute.xlu0 %2978 }
0x217f   :  { %4717 = vmatmul.msk.f32.vlgmr.msrb.gmra.mxu2 %vm349_vm0, %v2979_v53  ;;  %v3246_v53 = vld [vmem:[#allocation16 + $0x8] sm:$0xff] }
0x21c6   :  { %v3119_v49 = vpop.permute.xlu1 %3118 }
0x21c7   :  { %v3121_v54 = vadd.f32 %v3119_v49, %v6587_v10  ;;  %v6696_v49 = vld [vmem:[#allocation19 + $0x18] sm:$0xff] }
0x21c8   :  { %3314 = vmatpush.msra.mxu2 %v6696_v49  ;;  %3379 = vmatpush.msrb.mxu3 %v6696_v49 }
0x21c9   :  { %5091 = vtanh.f32 %v3121_v54  ;;  %v3065_v54 = vrot.slane %v6656_v26, 6  ;;  %v6738_v26 = vld [vmem:[#allocation20] ss:$0 sm:$0xff] }
0x21cf   :  { %v5092_v8 = vpop.eup %5091 }
0x2202   :  { %v2999_v12 = vpop.f32.mrf.mxu2 }
0x2203   :  { %v3000_v14 = vadd.f32 %v2999_v12, %v6348_v52  ;;  %v6707_v12 = vld [vmem:[#allocation19] sm:$0xff] }
0x2205   :  { %v3027_v55 = vrot.slane %v3000_v14, 2 }
0x2207   :  { %3049 = vrot.lane.b32.xlu0 %v3027_v55, %s5709_s7  ;;  %v3029_v3 = vadd.f32 %v3027_v55, %v6432_v5 }
0x2209   :  { %v4719_v0 = vmul.f32 -1.442695, %v3029_v3 }
0x220b   :  { %5093 = vpow2.f32 %v4719_v0 }
0x220c   :  { %5095 = vpow2.f32 %v4721_v46 }
0x220f   :  { %3125 = vrot.lane.b32.xlu0 %v5092_v8, %s5710_s26 }
0x2211   :  { %v5094_v48 = vpop.eup %5093 }
0x2212   :  { %v3033_v36 = vadd.f32 1.0, %v5094_v48  ;;  %v5096_v52 = vpop.eup %5095 }
0x2213   :  { %v3097_v50 = vadd.f32 1.0, %v5096_v52 }
0x2214   :  { %5097 = vrcp.f32 %v3033_v36  ;;  %v3045_v25 = vand.u32 2147483648, %v3033_v36  ;;  %vm3039_vm14 = vweird.f32 %v3033_v36  ;;  %v3043_v23 = vand.u32 2147483647, %v3033_v36 }
0x2215   :  { %5099 = vrcp.f32 %v3097_v50  ;;  %v3109_v2 = vand.u32 2147483648, %v3097_v50  ;;  %vm3103_vm6 = vweird.f32 %v3097_v50  ;;  %v3107_v61 = vand.u32 2147483647, %v3097_v50 }
0x2216   :  { %v3046_v40 = vor.u32 1.1754944e-38, %v3045_v25  ;;  %vm3044_vm5 = vcmp.eq.f32.partialorder %v3043_v23, 8.507059e+37 }
0x2217   :  { %v3110_v63 = vor.u32 1.1754944e-38, %v3109_v2  ;;  %vm3108_vm8 = vcmp.eq.f32.partialorder %v3107_v61, 8.507059e+37 }
0x221a   :  { %v5098_v43 = vpop.eup %5097 }
0x221b   :  { %v3035_v19 = vmul.f32 %v5098_v43, %v3033_v36  ;;  %v5100_v56 = vpop.eup %5099  ;;  %vm3040_vm13 = vweird.f32 %v5098_v43 }
0x221c   :  { %v3099_v20 = vmul.f32 %v5100_v56, %v3097_v50  ;;  %vm3041_vm15 = vmor %vm3039_vm14, %vm3040_vm13  ;;  %vm3104_vm1 = vweird.f32 %v5100_v56 }
0x221d   :  { %v3036_v16 = vsub.f32 1.0, %v3035_v19  ;;  %vm3105_vm7 = vmor %vm3103_vm6, %vm3104_vm1  ;;  %v6742_v19 = vld [vmem:[#allocation17] ss:$0 sm:$0xff] }
0x221e   :  { %v3100_v34 = vsub.f32 1.0, %v3099_v20 }
0x221f   :  { %v3037_v57 = vmul.f32 %v5098_v43, %v3036_v16 }
0x2220   :  { %v3101_v10 = vmul.f32 %v5100_v56, %v3100_v34 }
0x2221   :  { %v3038_v35 = vadd.f32 %v5098_v43, %v3037_v57 }
0x2222   :  { %v3102_v29 = vadd.f32 %v5100_v56, %v3101_v10 }
0x2223   :  { %v3042_v31 = vsel %vm3041_vm15, %v5098_v43, %v3038_v35 }
0x2224   :  { %v6676_v24 = vsel %vm3044_vm5, %v3046_v40, %v3042_v31  ;;  %v3106_v62 = vsel %vm3105_vm7, %v5100_v56, %v3102_v29 }
0x2225   :  { %v3111_v17 = vsel %vm3108_vm8, %v3110_v63, %v3106_v62  ;;  %v3059_v14 = vsub.f32 1.0, %v6676_v24  ;;  %v3067_v8 = vmul.f32 %v3065_v54, %v6676_v24  ;;  %vm3231_vm8 = vcmask 41984  }
0x2226   :  { %v3123_v7 = vsub.f32 1.0, %v3111_v17  ;;  %v3130_v60 = vmul.f32 %v3111_v17, %v3003_v4 }
0x2279   :  { %v3050_v1 = vpop.permute.xlu0 %3049 }
0x227a   :  { %v3052_v15 = vmul.f32 %v3050_v1, %v6676_v24 }
0x227c   :  { %3054 = vrot.lane.b32.xlu2 %v3052_v15, %s5709_s7 }
0x2281   :  { %v3126_v30 = vpop.permute.xlu0 %3125 }
0x2282   :  { %v3128_v9 = vmul.f32 %v3126_v30, %v3123_v7 }
0x2284   :  { %v6682_v38 = vadd.f32 %v3130_v60, %v3128_v9 }
0x2286   :  { %v3138_v59 = vsel %vm1694_vm3, %v6682_v38, %v6644_v21  ;;  %v3248_v21 = vld [vmem:[#allocation16 + $0x18] sm:$0xff] }
0x2287   :  { %v3139_v32 = vsel %vm1696_vm4, %v3138_v59, %v6619_v28  ;;  %v3247_v28 = vld [vmem:[#allocation16 + $0x10] sm:$0xff]  ;;  %3275 = vmatpush.msrb.mxu1 %v3248_v21 }
0x2288   :  { %v3140_v11 = vsel %vm1698_vm2, %v3139_v32, %v6595_v27  ;;  %v3245_v27 = vld [vmem:[#allocation16] sm:$0xff] }
0x2289   :  { %3235 = vrot.lane.b32.xlu2 %v3140_v11, %s5707_s10  ;;  %3276 = vmatpush.msrb.mxu1 %v3247_v28  ;;  %v3145_v11 = vrot.slane %v6315_v42, 2 }
0x228b   :  { %3277 = vmatpush.msrb.mxu1 %v3246_v53 }
0x228d   :  { %3278 = vmatpush.msrb.mxu1 %v3245_v27 }
0x228f   :  { %3720 = vmatpush.msra.mxu1 %v6696_v49 }
0x22d6   :  { %v3055_v37 = vpop.permute.xlu2 %3054 }
0x22d7   :  { %v3057_v51 = vadd.f32 %v3055_v37, %v6432_v5  ;;  %v6698_v5 = vld [vmem:[#allocation19 + $0x10] sm:$0xff] }
0x22d8   :  { %3315 = vmatpush.msra.mxu2 %v6698_v5  ;;  %3380 = vmatpush.msrb.mxu3 %v6698_v5 }
0x22d9   :  { %5101 = vtanh.f32 %v3057_v51  ;;  %3721 = vmatpush.msra.mxu1 %v6698_v5 }
0x22df   :  { %v5102_v4 = vpop.eup %5101 }
0x22e0   :  { %3061 = vrot.lane.b32.xlu1 %v5102_v4, %s5710_s26 }
0x22e3   :  { %v3236_v58 = vpop.permute.xlu2 %3235 }
0x22e4   :  { %v3241_v44 = vadd.f32 %v3236_v58, %v6568_v13  ;;  %v6702_v13 = vld [vmem:[#allocation19 + $0x8] sm:$0xff] }
0x22e5   :  { %3316 = vmatpush.msra.mxu2 %v6702_v13  ;;  %3381 = vmatpush.msrb.mxu3 %v6702_v13 }
0x22e6   :  { %v3243_v45 = vmul.f32 0.5, %v3241_v44  ;;  %3722 = vmatpush.msra.mxu1 %v6702_v13  ;;  %v3152_v44 = vrot.slane %v6682_v38, 2 }
0x22e7   :  { %3317 = vmatpush.msra.mxu2 %v6707_v12  ;;  %3382 = vmatpush.msrb.mxu3 %v6707_v12 }
0x22e8   :  { %3255 = vrot.lane.b32.xlu1 %v3243_v45, %s5710_s26  ;;  %3723 = vmatpush.msra.mxu1 %v6707_v12 }
0x22e9   :  { %3517 = vmatpush.msrb.mxu2 %v6696_v49  ;;  %3586 = vmatpush.msra.mxu3 %v6696_v49 }
0x22eb   :  { %3518 = vmatpush.msrb.mxu2 %v6698_v5  ;;  %3587 = vmatpush.msra.mxu3 %v6698_v5 }
0x22ed   :  { %3519 = vmatpush.msrb.mxu2 %v6702_v13  ;;  %3588 = vmatpush.msra.mxu3 %v6702_v13 }
0x22ef   :  { %3520 = vmatpush.msrb.mxu2 %v6707_v12  ;;  %3589 = vmatpush.msra.mxu3 %v6707_v12 }
0x2352   :  { %v3062_v55 = vpop.permute.xlu1 %3061 }
0x2353   :  { %v3064_v3 = vmul.f32 %v3062_v55, %v3059_v14  ;;  %v4838_v14 = vld [vmem:[#allocation28] ss:$0 sm:$0xff]  ;;  %v3161_v55 = vld [vmem:[#allocation28 + $0x3] sm:$0x1] }
0x2355   :  { %v6727_v18 = vadd.f32 %v3067_v8, %v3064_v3  ;;  %v3168_v3 = vadd.f32 1e-05, %v3161_v55 }
0x2357   :  { %v3291_v0 = vadd.f32 %v6727_v18, %v6394_v47  ;;  %vm3175_vm1 = vweird.f32 %v3168_v3 }
0x2359   :  { %v3292_v46 = vmul.f32 0.5, %v3291_v0 }
0x235a   :  { %v3256_v48 = vpop.permute.xlu1 %3255 }
0x235b   :  { %4723 = vmatmul.msk.f32.vlgmr.msrb.gmra.mxu1 %vm349_vm0, %v3256_v48  ;;  %v3297_v36 = vrot.slane %v3292_v46, 6 }
0x235d   :  { %3298 = vrot.lane.b32.xlu0 %v3297_v36, %s5710_s26 }
0x23cf   :  { %v3299_v52 = vpop.permute.xlu0 %3298 }
0x23d0   :  { %4725 = vmatmul.msk.f32.vlgmr.msra.gmra.mxu2 %vm349_vm0, %v3299_v52 }
0x23d1   :  { %3789 = vmatpush.msra.mxu2 %v6696_v49 }
0x23d3   :  { %3790 = vmatpush.msra.mxu2 %v6698_v5 }
0x23d5   :  { %3791 = vmatpush.msra.mxu2 %v6702_v13 }
0x23d7   :  { %3792 = vmatpush.msra.mxu2 %v6707_v12 }
0x23d8   :  { %v3280_v56 = vpop.f32.mrf.mxu1 }
0x23d9   :  { %v6745_v16 = vadd.f32 %v6742_v19, %v3280_v56 }
0x2453   :  { %v3319_v50 = vpop.f32.mrf.mxu2 }
0x2454   :  { %v3320_v43 = vadd.f32 %v6738_v26, %v3319_v50 }
0x2456   :  { %3343 = vrot.lane.b32.xlu2 %v3320_v43, %s5709_s7  ;;  %v3322_v20 = vadd.f32 %v3320_v43, %v6745_v16 }
0x2458   :  { %v4726_v57 = vmul.f32 -1.442695, %v3322_v20 }
0x245a   :  { %5103 = vpow2.f32 %v4726_v57 }
0x2460   :  { %v5104_v34 = vpop.eup %5103 }
0x2461   :  { %v3326_v35 = vadd.f32 1.0, %v5104_v34 }
0x2463   :  { %5105 = vrcp.f32 %v3326_v35  ;;  %v3338_v40 = vand.u32 2147483648, %v3326_v35  ;;  %vm3332_vm10 = vweird.f32 %v3326_v35  ;;  %v3336_v2 = vand.u32 2147483647, %v3326_v35 }
0x2465   :  { %v3339_v1 = vor.u32 1.1754944e-38, %v3338_v40  ;;  %vm3337_vm12 = vcmp.eq.f32.partialorder %v3336_v2, 8.507059e+37  ;;  %v4837_v40 = vld [vmem:[#allocation28 + $0x2] ss:$0 sm:$0xff]  ;;  %v4839_v2 = vld [vmem:[#allocation28 + $0x1] ss:$0 sm:$0xff] }
0x2469   :  { %v5106_v10 = vpop.eup %5105 }
0x246a   :  { %v3328_v25 = vmul.f32 %v5106_v10, %v3326_v35  ;;  %vm3333_vm9 = vweird.f32 %v5106_v10 }
0x246b   :  { %vm3334_vm11 = vmor %vm3332_vm10, %vm3333_vm9 }
0x246c   :  { %v3329_v23 = vsub.f32 1.0, %v3328_v25 }
0x246e   :  { %v3330_v31 = vmul.f32 %v5106_v10, %v3329_v23 }
0x2470   :  { %v3331_v29 = vadd.f32 %v5106_v10, %v3330_v31 }
0x2472   :  { %v3335_v61 = vsel %vm3334_vm11, %v5106_v10, %v3331_v29 }
0x2473   :  { %v3340_v24 = vsel %vm3337_vm12, %v3339_v1, %v3335_v61 }
0x2474   :  { %v3353_v30 = vsub.f32 1.0, %v3340_v24  ;;  %v3360_v9 = vmul.f32 %v3340_v24, %v3297_v36 }
0x24b0   :  { %v3344_v15 = vpop.permute.xlu2 %3343 }
0x24b1   :  { %v3346_v62 = vmul.f32 %v3344_v15, %v3340_v24 }
0x24b3   :  { %3348 = vrot.lane.b32.xlu0 %v3346_v62, %s5709_s7 }
0x2525   :  { %v3349_v63 = vpop.permute.xlu0 %3348 }
0x2526   :  { %v3351_v17 = vadd.f32 %v3349_v63, %v6745_v16 }
0x2528   :  { %5107 = vtanh.f32 %v3351_v17 }
0x252e   :  { %v5108_v7 = vpop.eup %5107 }
0x252f   :  { %3355 = vrot.lane.b32.xlu1 %v5108_v7, %s5710_s26 }
0x25a1   :  { %v3356_v60 = vpop.permute.xlu1 %3355 }
0x25a2   :  { %v3358_v59 = vmul.f32 %v3356_v60, %v3353_v30 }
0x25a4   :  { %v6751_v32 = vadd.f32 %v3360_v9, %v3358_v59 }
0x25a6   :  { %3363 = vrot.lane.b32.xlu2 %v6751_v32, %s5710_s26 }
0x25ae   :  { %3146 = vrot.lane.b32.xlu2 %v3145_v11, %s5707_s10 }
0x2600   :  { %v3364_v37 = vpop.permute.xlu2 %3363 }
0x2601   :  { %4727 = vmatmul.msk.f32.vlgmr.msrb.gmra.mxu3 %vm349_vm0, %v3364_v37 }
0x2608   :  { %v3147_v61 = vpop.permute.xlu2 %3146 }
0x2609   :  { %v3149_v1 = vadd.f32 %v3147_v61, %v6394_v47 }
0x260b   :  { %v3150_v62 = vadd.f32 %v3149_v1, %v6727_v18 }
0x2684   :  { %v3384_v51 = vpop.f32.mrf.mxu3 }
0x2685   :  { %v3385_v4 = vadd.f32 %v6738_v26, %v3384_v51 }
0x2687   :  { %v3388_v58 = vrot.slane %v3385_v4, 6 }
0x2689   :  { %3410 = vrot.lane.b32.xlu0 %v3388_v58, %s5709_s7  ;;  %v3390_v45 = vadd.f32 %v3388_v58, %v6745_v16 }
0x268b   :  { %v4728_v21 = vmul.f32 -1.442695, %v3390_v45  ;;  %v3199_v45 = vld [vmem:[%s7101_s18 + $0x10] sm:$0xff] }
0x268d   :  { %5109 = vpow2.f32 %v4728_v21  ;;  %v3198_v21 = vld [vmem:[%s7101_s18 + $0x8] sm:$0xff] }
0x2691   :  { %3153 = vrot.lane.b32.xlu0 %v3152_v44, %s5707_s10  ;;  %v3200_v44 = vld [vmem:[%s7101_s18 + $0x18] sm:$0xff] }
0x2692   :  { %3223 = vmatpush.msrb.mxu0 %v3200_v44 }
0x2693   :  { %v5110_v28 = vpop.eup %5109 }
0x2694   :  { %v3394_v53 = vadd.f32 1.0, %v5110_v28  ;;  %3224 = vmatpush.msrb.mxu0 %v3199_v45  ;;  %v3197_v28 = vld [vmem:[%s7101_s18] sm:$0xff]  ;;  %s5713_s18 = smov [#allocation30]  }
0x2695   :  { %s4606_s11 = sshll.u32 %s5713_s18, 4  ;;  %s4607_s11 = int_to_ptr.vmem [resolvable:$true] %s4606_s11 }
0x2696   :  { %5111 = vrcp.f32 %v3394_v53  ;;  %v3406_v36 = vand.u32 2147483648, %v3394_v53  ;;  %vm3400_vm14 = vweird.f32 %v3394_v53  ;;  %v3404_v50 = vand.u32 2147483647, %v3394_v53  ;;  %3225 = vmatpush.msrb.mxu0 %v3198_v21 }
0x2697   :  { %5113 = vrsqrt.f32 %v3168_v3 }
0x2698   :  { %v3407_v20 = vor.u32 1.1754944e-38, %v3406_v36  ;;  %vm3405_vm6 = vcmp.eq.f32.partialorder %v3404_v50, 8.507059e+37  ;;  %3226 = vmatpush.msrb.mxu0 %v3197_v28 }
0x2699   :  { %3187 = vrot.lane.b32.xlu0 %v4838_v14, %s5707_s10 }
0x269a   :  { %3448 = vmatpush.msra.mxu0 %v6696_v49 }
0x269c   :  { %v5112_v27 = vpop.eup %5111  ;;  %3449 = vmatpush.msra.mxu0 %v6698_v5 }
0x269d   :  { %v3396_v54 = vmul.f32 %v5112_v27, %v3394_v53  ;;  %v5114_v46 = vpop.eup %5113  ;;  %vm3401_vm13 = vweird.f32 %v5112_v27 }
0x269e   :  { %v3170_v52 = vmul.f32 %v5114_v46, %v3168_v3  ;;  %vm3402_vm15 = vmor %vm3400_vm14, %vm3401_vm13  ;;  %vm3176_vm5 = vweird.f32 %v5114_v46  ;;  %3450 = vmatpush.msra.mxu0 %v6702_v13 }
0x269f   :  { %v3397_v8 = vsub.f32 1.0, %v3396_v54  ;;  %vm3177_vm7 = vmor %vm3175_vm1, %vm3176_vm5 }
0x26a0   :  { %v3171_v43 = vmul.f32 %v5114_v46, %v3170_v52  ;;  %3451 = vmatpush.msra.mxu0 %v6707_v12 }
0x26a1   :  { %v3398_v0 = vmul.f32 %v5112_v27, %v3397_v8 }
0x26a2   :  { %v3172_v57 = vmul.f32 0.5, %v3171_v43 }
0x26a3   :  { %v3399_v48 = vadd.f32 %v5112_v27, %v3398_v0 }
0x26a4   :  { %v3173_v10 = vsub.f32 1.5, %v3172_v57 }
0x26a5   :  { %v3403_v56 = vsel %vm3402_vm15, %v5112_v27, %v3399_v48  ;;  %v3426_v27 = vrot.slane %v6751_v32, 6  ;;  %v4840_v48 = vld [vmem:[%s7102_s19] ss:$0 sm:$0xff] }
0x26a6   :  { %v3408_v35 = vsel %vm3405_vm6, %v3407_v20, %v3403_v56  ;;  %v3174_v23 = vmul.f32 %v5114_v46, %v3173_v10 }
0x26a7   :  { %v3420_v53 = vsub.f32 1.0, %v3408_v35  ;;  %v3428_v55 = vmul.f32 %v3426_v27, %v3408_v35 }
0x26a8   :  { %v3178_v31 = vsel %vm3177_vm7, %v5114_v46, %v3174_v23 }
0x26a9   :  { %v3179_v29 = vperm.slane %v3178_v31, 0 }
0x26ab   :  { %3181 = vrot.lane.b32.xlu2 %v3179_v29, %s5707_s10 }
0x26fb   :  { %v3411_v34 = vpop.permute.xlu0 %3410 }
0x26fc   :  { %v3413_v25 = vmul.f32 %v3411_v34, %v3408_v35 }
0x26fe   :  { %3415 = vrot.lane.b32.xlu1 %v3413_v25, %s5709_s7 }
0x2703   :  { %v3154_v24 = vpop.permute.xlu0 %3153 }
0x2704   :  { %v3156_v17 = vadd.f32 %v3154_v24, %v3150_v62 }
0x2705   :  { %v3182_v60 = vpop.permute.xlu2 %3181 }
0x2706   :  { %3164 = vrot.lane.b32.xlu1 %v4837_v40, %s5707_s10  ;;  %v3157_v7 = vmul.f32 0.25, %v3156_v17 }
0x270b   :  { %v3188_v37 = vpop.permute.xlu0 %3187 }
0x270e   :  { %3193 = vrot.lane.b32.xlu1 %v4839_v2, %s5707_s10 }
0x2770   :  { %v3416_v15 = vpop.permute.xlu1 %3415 }
0x2771   :  { %v3418_v63 = vadd.f32 %v3416_v15, %v6745_v16 }
0x2773   :  { %5115 = vtanh.f32 %v3418_v63 }
0x2778   :  { %v3165_v30 = vpop.permute.xlu1 %3164 }
0x2779   :  { %v5116_v9 = vpop.eup %5115  ;;  %v3167_v59 = vsub.f32 %v3157_v7, %v3165_v30 }
0x277a   :  { %3422 = vrot.lane.b32.xlu2 %v5116_v9, %s5710_s26 }
0x277b   :  { %v3184_v11 = vmul.f32 %v3182_v60, %v3167_v59 }
0x277d   :  { %v3190_v51 = vmul.f32 %v3188_v37, %v3184_v11 }
0x2780   :  { %v3194_v4 = vpop.permute.xlu1 %3193 }
0x2781   :  { %v3196_v47 = vadd.f32 %v3194_v4, %v3190_v51 }
0x2783   :  { %v3206_v58 = vrot.slane %v3196_v47, 6 }
0x2785   :  { %3207 = vrot.lane.b32.xlu0 %v3206_v58, %s5710_s26  ;;  %v3141_v58 = vsel %vm1694_vm3, %v6557_v22, %v6514_v41 }
0x27d4   :  { %v3423_v14 = vpop.permute.xlu2 %3422 }
0x27d5   :  { %v3425_v54 = vmul.f32 %v3423_v14, %v3420_v53 }
0x27d7   :  { %v3429_v8 = vadd.f32 %v3428_v55, %v3425_v54 }
0x27d9   :  { %v3431_v3 = vrot.slane %v3429_v8, 2  ;;  %v3495_v40 = vrot.slane %v3429_v8, 6  ;;  %v3840_v9 = vsel %vm1694_vm3, %v6751_v32, %v3429_v8  ;;  %v3142_v32 = vsel %vm1696_vm4, %v3141_v58, %v6481_v39 }
0x27da   :  { %v3143_v44 = vsel %vm1698_vm2, %v3142_v32, %v6453_v6 }
0x27db   :  { %3432 = vrot.lane.b32.xlu1 %v3431_v3, %s5710_s26 }
0x27f7   :  { %v3208_v0 = vpop.permute.xlu0 %3207 }
0x27f8   :  { %4722 = vmatmul.msk.f32.vlgmr.msrb.gmra.mxu0 %vm349_vm0, %v3208_v0 }
0x27f9   :  { %3651 = vmatpush.msrb.mxu0 %v6696_v49 }
0x27fb   :  { %3652 = vmatpush.msrb.mxu0 %v6698_v5 }
0x27fd   :  { %3653 = vmatpush.msrb.mxu0 %v6702_v13 }
0x27ff   :  { %3654 = vmatpush.msrb.mxu0 %v6707_v12 }
0x284d   :  { %v3433_v46 = vpop.permute.xlu1 %3432 }
0x284e   :  { %4729 = vmatmul.msk.f32.vlgmr.msra.gmra.mxu0 %vm349_vm0, %v3433_v46 }
0x2875   :  { %v3228_v36 = vpop.f32.mrf.mxu0 }
0x2876   :  { %v3229_v52 = vadd.f32 %v4840_v48, %v3228_v36 }
0x2878   :  { %3232 = vst.msk [vmem:[#allocation29] sm:$0x3] %vm3231_vm8, %v3229_v52 }
0x2879   :  { %4601 = dma.vmem_to_hbm [thread:$0]  %s4597_s1, 32, %s4599_s12, [#allocation4]  }
0x28cb   :  { %v3453_v50 = vpop.f32.mrf.mxu0 }
0x28cc   :  { %v3454_v49 = vadd.f32 %v6738_v26, %v3453_v50 }
0x28ce   :  { %v3457_v43 = vrot.slane %v3454_v49, 4  ;;  %v3137_v49 = vsel %vm1698_vm2, %v6664_v33, %v6727_v18 }
0x28d0   :  { %v3459_v5 = vadd.f32 %v3457_v43, %v6745_v16  ;;  %3479 = vrot.lane.b32.xlu2 %v3457_v43, %s5709_s7 }
0x28d2   :  { %v4730_v13 = vmul.f32 -1.442695, %v3459_v5 }
0x28d4   :  { %5117 = vpow2.f32 %v4730_v13 }
0x28da   :  { %v5118_v12 = vpop.eup %5117 }
0x28db   :  { %v3463_v56 = vadd.f32 1.0, %v5118_v12 }
0x28dd   :  { %5119 = vrcp.f32 %v3463_v56  ;;  %v3475_v35 = vand.u32 2147483648, %v3463_v56  ;;  %v3473_v25 = vand.u32 2147483647, %v3463_v56  ;;  %vm3469_vm10 = vweird.f32 %v3463_v56 }
0x28df   :  { %v3476_v31 = vor.u32 1.1754944e-38, %v3475_v35  ;;  %vm3474_vm12 = vcmp.eq.f32.partialorder %v3473_v25, 8.507059e+37 }
0x28e3   :  { %v5120_v20 = vpop.eup %5119 }
0x28e4   :  { %v3465_v57 = vmul.f32 %v5120_v20, %v3463_v56  ;;  %vm3470_vm9 = vweird.f32 %v5120_v20 }
0x28e5   :  { %vm3471_vm11 = vmor %vm3469_vm10, %vm3470_vm9 }
0x28e6   :  { %v3466_v34 = vsub.f32 1.0, %v3465_v57 }
0x28e8   :  { %v3467_v10 = vmul.f32 %v5120_v20, %v3466_v34 }
0x28ea   :  { %v3468_v23 = vadd.f32 %v5120_v20, %v3467_v10 }
0x28ec   :  { %v3472_v29 = vsel %vm3471_vm11, %v5120_v20, %v3468_v23 }
0x28ed   :  { %v3477_v2 = vsel %vm3474_vm12, %v3476_v31, %v3472_v29 }
0x28ee   :  { %v3497_v61 = vmul.f32 %v3495_v40, %v3477_v2  ;;  %v3489_v17 = vsub.f32 1.0, %v3477_v2 }
0x292a   :  { %v3480_v1 = vpop.permute.xlu2 %3479 }
0x292b   :  { %v3482_v24 = vmul.f32 %v3480_v1, %v3477_v2 }
0x292d   :  { %3484 = vrot.lane.b32.xlu0 %v3482_v24, %s5709_s7 }
0x299f   :  { %v3485_v15 = vpop.permute.xlu0 %3484 }
0x29a0   :  { %v3487_v62 = vadd.f32 %v3485_v15, %v6745_v16 }
0x29a2   :  { %5121 = vtanh.f32 %v3487_v62 }
0x29a8   :  { %v5122_v63 = vpop.eup %5121 }
0x29a9   :  { %3491 = vrot.lane.b32.xlu1 %v5122_v63, %s5710_s26 }
0x2a1b   :  { %v3492_v7 = vpop.permute.xlu1 %3491 }
0x2a1c   :  { %v3494_v30 = vmul.f32 %v3492_v7, %v3489_v17 }
0x2a1e   :  { %v3498_v60 = vadd.f32 %v3497_v61, %v3494_v30 }
0x2a20   :  { %v3500_v59 = vrot.slane %v3498_v60, 4  ;;  %v3841_v11 = vsel %vm1696_vm4, %v3840_v9, %v3498_v60  ;;  %v3564_v12 = vrot.slane %v3498_v60, 6 }
0x2a22   :  { %3501 = vrot.lane.b32.xlu2 %v3500_v59, %s5710_s26 }
0x2a7c   :  { %v3502_v37 = vpop.permute.xlu2 %3501 }
0x2a7d   :  { %4731 = vmatmul.msk.f32.vlgmr.msrb.gmra.mxu2 %vm349_vm0, %v3502_v37  ;;  %v3848_v37 = vld [vmem:[#allocation22 + $0x10] sm:$0xff] }
0x2b00   :  { %v3522_v51 = vpop.f32.mrf.mxu2 }
0x2b01   :  { %v3523_v4 = vadd.f32 %v6738_v26, %v3522_v51  ;;  %v3847_v51 = vld [vmem:[#allocation22 + $0x8] sm:$0xff] }
0x2b03   :  { %v3526_v47 = vrot.slane %v3523_v4, 2  ;;  %v3846_v4 = vld [vmem:[#allocation22] sm:$0xff] }
0x2b05   :  { %3548 = vrot.lane.b32.xlu0 %v3526_v47, %s5709_s7  ;;  %v3528_v45 = vadd.f32 %v3526_v47, %v6745_v16 }
0x2b07   :  { %v4732_v21 = vmul.f32 -1.442695, %v3528_v45 }
0x2b09   :  { %5123 = vpow2.f32 %v4732_v21 }
0x2b0d   :  { %3237 = vrot.lane.b32.xlu0 %v3143_v44, %s5707_s10 }
0x2b0f   :  { %v5124_v28 = vpop.eup %5123 }
0x2b10   :  { %v3532_v53 = vadd.f32 1.0, %v5124_v28 }
0x2b12   :  { %5125 = vrcp.f32 %v3532_v53  ;;  %v3544_v22 = vand.u32 2147483648, %v3532_v53  ;;  %vm3538_vm14 = vweird.f32 %v3532_v53  ;;  %v3542_v39 = vand.u32 2147483647, %v3532_v53 }
0x2b14   :  { %v3545_v8 = vor.u32 1.1754944e-38, %v3544_v22  ;;  %vm3543_vm1 = vcmp.eq.f32.partialorder %v3542_v39, 8.507059e+37  ;;  %v3892_v39 = vadd.f32 %v6682_v38, %v6315_v42 }
0x2b18   :  { %v5126_v27 = vpop.eup %5125 }
0x2b19   :  { %v3534_v14 = vmul.f32 %v5126_v27, %v3532_v53  ;;  %vm3539_vm13 = vweird.f32 %v5126_v27 }
0x2b1a   :  { %vm3540_vm15 = vmor %vm3538_vm14, %vm3539_vm13 }
0x2b1b   :  { %v3535_v54 = vsub.f32 1.0, %v3534_v14  ;;  %v6848_v14 = vld [vmem:[#allocation25 + $0x18] sm:$0xff] }
0x2b1c   :  { %3912 = vmatpush.msra.mxu0 %v6848_v14  ;;  %3979 = vmatpush.msrb.mxu1 %v6848_v14 }
0x2b1d   :  { %v3536_v55 = vmul.f32 %v5126_v27, %v3535_v54  ;;  %v6850_v54 = vld [vmem:[#allocation25 + $0x10] sm:$0xff]  ;;  %4048 = vmatpush.msrb.mxu2 %v6848_v14 }
0x2b1e   :  { %3913 = vmatpush.msra.mxu0 %v6850_v54  ;;  %3980 = vmatpush.msrb.mxu1 %v6850_v54 }
0x2b1f   :  { %v3537_v41 = vadd.f32 %v5126_v27, %v3536_v55  ;;  %v6854_v55 = vld [vmem:[#allocation25 + $0x8] sm:$0xff]  ;;  %4049 = vmatpush.msrb.mxu2 %v6850_v54 }
0x2b20   :  { %3914 = vmatpush.msra.mxu0 %v6854_v55  ;;  %3981 = vmatpush.msrb.mxu1 %v6854_v55 }
0x2b21   :  { %v3541_v6 = vsel %vm3540_vm15, %v5126_v27, %v3537_v41  ;;  %v6860_v41 = vld [vmem:[#allocation25] sm:$0xff]  ;;  %4050 = vmatpush.msrb.mxu2 %v6854_v55 }
0x2b22   :  { %v3546_v0 = vsel %vm3543_vm1, %v3545_v8, %v3541_v6  ;;  %3915 = vmatpush.msra.mxu0 %v6860_v41  ;;  %3982 = vmatpush.msrb.mxu1 %v6860_v41  ;;  %v6878_v6 = vmul.f32 0.5, %v3892_v39 }
0x2b23   :  { %v3558_v13 = vsub.f32 1.0, %v3546_v0  ;;  %v3566_v20 = vmul.f32 %v3564_v12, %v3546_v0  ;;  %4051 = vmatpush.msrb.mxu2 %v6860_v41 }
0x2b77   :  { %v3549_v3 = vpop.permute.xlu0 %3548 }
0x2b78   :  { %v3551_v46 = vmul.f32 %v3549_v3, %v3546_v0  ;;  %v6889_v3 = vld [vmem:[#allocation26] ss:$0 sm:$0xff] }
0x2b7a   :  { %3553 = vrot.lane.b32.xlu1 %v3551_v46, %s5709_s7 }
0x2b7f   :  { %v3238_v50 = vpop.permute.xlu0 %3237 }
0x2b80   :  { %v3242_v43 = vadd.f32 %v3238_v50, %v3137_v49  ;;  %v6894_v49 = vld [vmem:[#allocation23] ss:$0 sm:$0xff] }
0x2b82   :  { %v3244_v5 = vmul.f32 0.5, %v3242_v43 }
0x2bec   :  { %v3554_v48 = vpop.permute.xlu1 %3553 }
0x2bed   :  { %v3556_v36 = vadd.f32 %v3554_v48, %v6745_v16 }
0x2bef   :  { %5127 = vtanh.f32 %v3556_v36 }
0x2bf5   :  { %v5128_v52 = vpop.eup %5127 }
0x2bf6   :  { %3560 = vrot.lane.b32.xlu2 %v5128_v52, %s5710_s26 }
0x2bfe   :  { %3257 = vrot.lane.b32.xlu2 %v3244_v5, %s5710_s26 }
0x2c50   :  { %v3561_v56 = vpop.permute.xlu2 %3560 }
0x2c51   :  { %v3563_v57 = vmul.f32 %v3561_v56, %v3558_v13 }
0x2c53   :  { %v3567_v34 = vadd.f32 %v3566_v20, %v3563_v57 }
0x2c55   :  { %v3569_v16 = vrot.slane %v3567_v34, 6  ;;  %v3842_v35 = vsel %vm1698_vm2, %v3841_v11, %v3567_v34  ;;  %v3849_v11 = vld [vmem:[#allocation22 + $0x18] sm:$0xff] }
0x2c56   :  { %3876 = vmatpush.msrb.mxu3 %v3849_v11 }
0x2c57   :  { %3570 = vrot.lane.b32.xlu1 %v3569_v16, %s5710_s26 }
0x2c58   :  { %v3258_v10 = vpop.permute.xlu2 %3257  ;;  %3877 = vmatpush.msrb.mxu3 %v3848_v37 }
0x2c59   :  { %4724 = vmatmul.msk.f32.gmra.mxu1 %vm349_vm0, %v3258_v10 }
0x2c5a   :  { %3878 = vmatpush.msrb.mxu3 %v3847_v51 }
0x2c5c   :  { %3879 = vmatpush.msrb.mxu3 %v3846_v4 }
0x2cc9   :  { %v3571_v25 = vpop.permute.xlu1 %3570 }
0x2cca   :  { %4733 = vmatmul.msk.f32.vlgmr.msra.gmra.mxu3 %vm349_vm0, %v3571_v25 }
0x2ccb   :  { %4320 = vmatpush.msra.mxu3 %v6848_v14 }
0x2ccd   :  { %4321 = vmatpush.msra.mxu3 %v6850_v54 }
0x2ccf   :  { %4322 = vmatpush.msra.mxu3 %v6854_v55 }
0x2cd1   :  { %4323 = vmatpush.msra.mxu3 %v6860_v41 }
0x2cd6   :  { %v3283_v23 = vpop.f32.mrf.mxu1 }
0x2cd7   :  { %v6836_v31 = vadd.f32 %v6742_v19, %v3283_v23 }
0x2d4d   :  { %v3591_v33 = vpop.f32.mrf.mxu3 }
0x2d4e   :  { %v3592_v18 = vadd.f32 %v6738_v26, %v3591_v33 }
0x2d50   :  { %3615 = vrot.lane.b32.xlu0 %v3592_v18, %s5709_s7  ;;  %v3594_v29 = vadd.f32 %v3592_v18, %v6836_v31 }
0x2d52   :  { %v4734_v40 = vmul.f32 -1.442695, %v3594_v29 }
0x2d54   :  { %5129 = vpow2.f32 %v4734_v40 }
0x2d5a   :  { %v5130_v2 = vpop.eup %5129 }
0x2d5b   :  { %v3598_v61 = vadd.f32 1.0, %v5130_v2 }
0x2d5d   :  { %5131 = vrcp.f32 %v3598_v61  ;;  %v3610_v17 = vand.u32 2147483648, %v3598_v61  ;;  %vm3604_vm6 = vweird.f32 %v3598_v61  ;;  %v3608_v7 = vand.u32 2147483647, %v3598_v61 }
0x2d5f   :  { %v3611_v19 = vor.u32 1.1754944e-38, %v3610_v17  ;;  %vm3609_vm8 = vcmp.eq.f32.partialorder %v3608_v7, 8.507059e+37 }
0x2d63   :  { %v5132_v1 = vpop.eup %5131 }
0x2d64   :  { %v3600_v24 = vmul.f32 %v5132_v1, %v3598_v61  ;;  %vm3605_vm5 = vweird.f32 %v5132_v1 }
0x2d65   :  { %vm3606_vm7 = vmor %vm3604_vm6, %vm3605_vm5 }
0x2d66   :  { %v3601_v15 = vsub.f32 1.0, %v3600_v24 }
0x2d68   :  { %v3602_v62 = vmul.f32 %v5132_v1, %v3601_v15 }
0x2d6a   :  { %v3603_v63 = vadd.f32 %v5132_v1, %v3602_v62 }
0x2d6c   :  { %v3607_v30 = vsel %vm3606_vm7, %v5132_v1, %v3603_v63 }
0x2d6d   :  { %v3612_v9 = vsel %vm3609_vm8, %v3611_v19, %v3607_v30 }
0x2d6e   :  { %v3625_v45 = vsub.f32 1.0, %v3612_v9  ;;  %v3632_v28 = vmul.f32 %v3612_v9, %v3569_v16 }
0x2dc2   :  { %v3616_v60 = vpop.permute.xlu0 %3615 }
0x2dc3   :  { %v3618_v59 = vmul.f32 %v3616_v60, %v3612_v9 }
0x2dc5   :  { %3620 = vrot.lane.b32.xlu1 %v3618_v59, %s5709_s7 }
0x2dcd   :  { %3856 = vrot.lane.b32.xlu1 %v3842_v35, %s5710_s26 }
0x2e37   :  { %v3621_v47 = vpop.permute.xlu1 %3620 }
0x2e38   :  { %v3623_v58 = vadd.f32 %v3621_v47, %v6836_v31 }
0x2e3a   :  { %5133 = vtanh.f32 %v3623_v58 }
0x2e3f   :  { %v3857_v32 = vpop.permute.xlu1 %3856 }
0x2e40   :  { %v5134_v44 = vpop.eup %5133  ;;  %4741 = vmatmul.msk.f32.vlgmr.msrb.gmra.mxu3 %vm349_vm0, %v3857_v32 }
0x2e41   :  { %3627 = vrot.lane.b32.xlu2 %v5134_v44, %s5710_s26 }
0x2e9b   :  { %v3628_v21 = vpop.permute.xlu2 %3627 }
0x2e9c   :  { %v3630_v53 = vmul.f32 %v3628_v21, %v3625_v45 }
0x2e9e   :  { %v6844_v27 = vadd.f32 %v3632_v28, %v3630_v53 }
0x2ea0   :  { %3635 = vrot.lane.b32.xlu0 %v6844_v27, %s5710_s26  ;;  %v3698_v32 = vrot.slane %v6844_v27, 6 }
0x2ec3   :  { %v3881_v43 = vpop.f32.mrf.mxu3 }
0x2ec4   :  { %v6897_v13 = vadd.f32 %v6894_v49, %v3881_v43 }
0x2f12   :  { %v3636_v22 = vpop.permute.xlu0 %3635 }
0x2f13   :  { %4735 = vmatmul.msk.f32.vlgmr.msrb.gmra.mxu0 %vm349_vm0, %v3636_v22 }
0x2f14   :  { %4117 = vmatpush.msrb.mxu0 %v6848_v14 }
0x2f16   :  { %4118 = vmatpush.msrb.mxu0 %v6850_v54 }
0x2f18   :  { %4119 = vmatpush.msrb.mxu0 %v6854_v55 }
0x2f1a   :  { %4120 = vmatpush.msrb.mxu0 %v6860_v41 }
0x2f1b   :  { %4743 = vmatmul.msk.f32.vlgmr.msra.gmra.mxu0 %vm349_vm0, %v6878_v6 }
0x2f1c   :  { %4389 = vmatpush.msra.mxu0 %v6848_v14 }
0x2f1e   :  { %4390 = vmatpush.msra.mxu0 %v6850_v54 }
0x2f20   :  { %4391 = vmatpush.msra.mxu0 %v6854_v55 }
0x2f22   :  { %4392 = vmatpush.msra.mxu0 %v6860_v41 }
0x2f90   :  { %v3656_v42 = vpop.f32.mrf.mxu0 }
0x2f91   :  { %v3657_v38 = vadd.f32 %v6738_v26, %v3656_v42 }
0x2f93   :  { %v3660_v8 = vrot.slane %v3657_v38, 6 }
0x2f95   :  { %3682 = vrot.lane.b32.xlu2 %v3660_v8, %s5709_s7  ;;  %v3662_v48 = vadd.f32 %v3660_v8, %v6836_v31 }
0x2f97   :  { %v4736_v36 = vmul.f32 -1.442695, %v3662_v48 }
0x2f98   :  { %v3917_v0 = vpop.f32.mrf.mxu0 }
0x2f99   :  { %v3918_v46 = vadd.f32 %v6889_v3, %v3917_v0  ;;  %5135 = vpow2.f32 %v4736_v36 }
0x2f9b   :  { %3941 = vrot.lane.b32.xlu0 %v3918_v46, %s5709_s7  ;;  %v3920_v12 = vadd.f32 %v3918_v46, %v6897_v13 }
0x2f9d   :  { %v4744_v20 = vmul.f32 -1.442695, %v3920_v12 }
0x2f9f   :  { %v5136_v52 = vpop.eup %5135 }
0x2fa0   :  { %v3666_v50 = vadd.f32 1.0, %v5136_v52 }
0x2fa2   :  { %5137 = vrcp.f32 %v3666_v50  ;;  %v3678_v35 = vand.u32 2147483648, %v3666_v50  ;;  %vm3672_vm10 = vweird.f32 %v3666_v50  ;;  %v3676_v25 = vand.u32 2147483647, %v3666_v50 }
0x2fa3   :  { %5139 = vpow2.f32 %v4744_v20 }
0x2fa4   :  { %v3679_v23 = vor.u32 1.1754944e-38, %v3678_v35  ;;  %vm3677_vm12 = vcmp.eq.f32.partialorder %v3676_v25, 8.507059e+37 }
0x2fa8   :  { %v5138_v5 = vpop.eup %5137 }
0x2fa9   :  { %v3668_v56 = vmul.f32 %v5138_v5, %v3666_v50  ;;  %vm3673_vm9 = vweird.f32 %v5138_v5  ;;  %v5140_v10 = vpop.eup %5139 }
0x2faa   :  { %vm3674_vm11 = vmor %vm3672_vm10, %vm3673_vm9  ;;  %v3924_v18 = vadd.f32 1.0, %v5140_v10 }
0x2fab   :  { %v3669_v57 = vsub.f32 1.0, %v3668_v56 }
0x2fac   :  { %5141 = vrcp.f32 %v3924_v18  ;;  %v3936_v63 = vand.u32 2147483648, %v3924_v18  ;;  %vm3930_vm14 = vweird.f32 %v3924_v18  ;;  %v3934_v17 = vand.u32 2147483647, %v3924_v18 }
0x2fad   :  { %v3670_v34 = vmul.f32 %v5138_v5, %v3669_v57 }
0x2fae   :  { %v3937_v30 = vor.u32 1.1754944e-38, %v3936_v63  ;;  %vm3935_vm1 = vcmp.eq.f32.partialorder %v3934_v17, 8.507059e+37 }
0x2faf   :  { %v3671_v16 = vadd.f32 %v5138_v5, %v3670_v34 }
0x2fb1   :  { %v3675_v33 = vsel %vm3674_vm11, %v5138_v5, %v3671_v16 }
0x2fb2   :  { %v3680_v40 = vsel %vm3677_vm12, %v3679_v23, %v3675_v33  ;;  %v5142_v61 = vpop.eup %5141 }
0x2fb3   :  { %v3926_v1 = vmul.f32 %v5142_v61, %v3924_v18  ;;  %vm3931_vm13 = vweird.f32 %v5142_v61  ;;  %v3692_v58 = vsub.f32 1.0, %v3680_v40  ;;  %v3700_v45 = vmul.f32 %v3698_v32, %v3680_v40 }
0x2fb4   :  { %vm3932_vm15 = vmor %vm3930_vm14, %vm3931_vm13 }
0x2fb5   :  { %v3927_v24 = vsub.f32 1.0, %v3926_v1 }
0x2fb7   :  { %v3928_v15 = vmul.f32 %v5142_v61, %v3927_v24 }
0x2fb9   :  { %v3929_v62 = vadd.f32 %v5142_v61, %v3928_v15 }
0x2fbb   :  { %v3933_v7 = vsel %vm3932_vm15, %v5142_v61, %v3929_v62 }
0x2fbc   :  { %v3938_v60 = vsel %vm3935_vm1, %v3937_v30, %v3933_v7 }
0x2fbd   :  { %v3951_v39 = vsub.f32 1.0, %v3938_v60 }
0x2fef   :  { %v3683_v29 = vpop.permute.xlu2 %3682 }
0x2ff0   :  { %v3685_v2 = vmul.f32 %v3683_v29, %v3680_v40 }
0x2ff2   :  { %3687 = vrot.lane.b32.xlu1 %v3685_v2, %s5709_s7 }
0x300d   :  { %v3942_v19 = vpop.permute.xlu0 %3941 }
0x300e   :  { %v3944_v9 = vmul.f32 %v3942_v19, %v3938_v60 }
0x3010   :  { %3946 = vrot.lane.b32.xlu2 %v3944_v9, %s5709_s7 }
0x3018   :  { %3957 = vrot.lane.b32.xlu2 %v6878_v6, %s5707_s10 }
0x3064   :  { %v3688_v59 = vpop.permute.xlu1 %3687 }
0x3065   :  { %v3690_v11 = vadd.f32 %v3688_v59, %v6836_v31 }
0x3067   :  { %5143 = vtanh.f32 %v3690_v11 }
0x306a   :  { %v3947_v37 = vpop.permute.xlu2 %3946 }
0x306b   :  { %v3949_v51 = vadd.f32 %v3947_v37, %v6897_v13 }
0x306d   :  { %v5144_v4 = vpop.eup %5143  ;;  %5145 = vtanh.f32 %v3949_v51 }
0x306e   :  { %3694 = vrot.lane.b32.xlu0 %v5144_v4, %s5710_s26 }
0x3072   :  { %v3958_v53 = vpop.permute.xlu2 %3957 }
0x3073   :  { %v5146_v47 = vpop.eup %5145  ;;  %v3960_v42 = vmul.f32 %v3958_v53, %v3938_v60 }
0x3074   :  { %3953 = vrot.lane.b32.xlu1 %v5146_v47, %s5710_s26 }
0x30e0   :  { %v3695_v44 = vpop.permute.xlu0 %3694 }
0x30e1   :  { %v3697_v21 = vmul.f32 %v3695_v44, %v3692_v58 }
0x30e3   :  { %v6909_v28 = vadd.f32 %v3700_v45, %v3697_v21 }
0x30e5   :  { %v3703_v22 = vrot.slane %v6909_v28, 2  ;;  %v3767_v29 = vrot.slane %v6909_v28, 6 }
0x30e6   :  { %v3954_v6 = vpop.permute.xlu1 %3953 }
0x30e7   :  { %v3956_v38 = vmul.f32 %v3954_v6, %v3951_v39  ;;  %3704 = vrot.lane.b32.xlu0 %v3703_v22, %s5710_s26 }
0x30e9   :  { %v6913_v8 = vadd.f32 %v3960_v42, %v3956_v38  ;;  %v3843_v38 = vsel %vm1694_vm3, %v6844_v27, %v6909_v28 }
0x30eb   :  { %3963 = vrot.lane.b32.xlu1 %v6913_v8, %s5710_s26 }
0x3159   :  { %v3705_v0 = vpop.permute.xlu0 %3704 }
0x315a   :  { %4737 = vmatmul.msk.f32.vlgmr.msra.gmra.mxu1 %vm349_vm0, %v3705_v0 }
0x315b   :  { %4186 = vmatpush.msra.mxu1 %v6848_v14 }
0x315d   :  { %4187 = vmatpush.msra.mxu1 %v6850_v54  ;;  %v3964_v46 = vpop.permute.xlu1 %3963 }
0x315f   :  { %4188 = vmatpush.msra.mxu1 %v6854_v55 }
0x3161   :  { %4189 = vmatpush.msra.mxu1 %v6860_v41 }
0x3162   :  { %4745 = vmatmul.msk.f32.vlgmr.msrb.gmra.mxu1 %vm349_vm0, %v3964_v46 }
0x31d7   :  { %v3725_v48 = vpop.f32.mrf.mxu1 }
0x31d8   :  { %v3726_v36 = vadd.f32 %v6738_v26, %v3725_v48 }
0x31da   :  { %v3729_v52 = vrot.slane %v3726_v36, 4  ;;  %v4026_v36 = vrot.slane %v6913_v8, 6 }
0x31dc   :  { %v3731_v50 = vadd.f32 %v3729_v52, %v6836_v31  ;;  %3751 = vrot.lane.b32.xlu2 %v3729_v52, %s5709_s7 }
0x31de   :  { %v4738_v43 = vmul.f32 -1.442695, %v3731_v50 }
0x31df   :  { %v3984_v5 = vpop.f32.mrf.mxu1 }
0x31e0   :  { %5147 = vpow2.f32 %v4738_v43  ;;  %v3985_v12 = vadd.f32 %v6889_v3, %v3984_v5 }
0x31e2   :  { %v3988_v56 = vrot.slane %v3985_v12, 6 }
0x31e4   :  { %4010 = vrot.lane.b32.xlu0 %v3988_v56, %s5709_s7  ;;  %v3990_v61 = vadd.f32 %v3988_v56, %v6897_v13 }
0x31e6   :  { %v5148_v20 = vpop.eup %5147  ;;  %v4746_v1 = vmul.f32 -1.442695, %v3990_v61 }
0x31e7   :  { %v3735_v57 = vadd.f32 1.0, %v5148_v20 }
0x31e9   :  { %5149 = vrcp.f32 %v3735_v57  ;;  %v3747_v26 = vand.u32 2147483648, %v3735_v57  ;;  %v3745_v25 = vand.u32 2147483647, %v3735_v57  ;;  %vm3741_vm6 = vweird.f32 %v3735_v57 }
0x31ea   :  { %5151 = vpow2.f32 %v4746_v1 }
0x31eb   :  { %v3748_v18 = vor.u32 1.1754944e-38, %v3747_v26  ;;  %vm3746_vm8 = vcmp.eq.f32.partialorder %v3745_v25, 8.507059e+37 }
0x31ef   :  { %v5150_v34 = vpop.eup %5149 }
0x31f0   :  { %v3737_v16 = vmul.f32 %v5150_v34, %v3735_v57  ;;  %vm3742_vm5 = vweird.f32 %v5150_v34  ;;  %v5152_v24 = vpop.eup %5151 }
0x31f1   :  { %vm3743_vm7 = vmor %vm3741_vm6, %vm3742_vm5  ;;  %v3994_v15 = vadd.f32 1.0, %v5152_v24 }
0x31f2   :  { %v3738_v35 = vsub.f32 1.0, %v3737_v16 }
0x31f3   :  { %5153 = vrcp.f32 %v3994_v15  ;;  %v4006_v9 = vand.u32 2147483648, %v3994_v15  ;;  %vm4000_vm10 = vweird.f32 %v3994_v15  ;;  %v4004_v59 = vand.u32 2147483647, %v3994_v15 }
0x31f4   :  { %v3739_v10 = vmul.f32 %v5150_v34, %v3738_v35 }
0x31f5   :  { %v4007_v37 = vor.u32 1.1754944e-38, %v4006_v9  ;;  %vm4005_vm12 = vcmp.eq.f32.partialorder %v4004_v59, 8.507059e+37 }
0x31f6   :  { %v3740_v33 = vadd.f32 %v5150_v34, %v3739_v10 }
0x31f8   :  { %v3744_v23 = vsel %vm3743_vm7, %v5150_v34, %v3740_v33 }
0x31f9   :  { %v3749_v40 = vsel %vm3746_vm8, %v3748_v18, %v3744_v23  ;;  %v5154_v17 = vpop.eup %5153 }
0x31fa   :  { %v3769_v2 = vmul.f32 %v3767_v29, %v3749_v40  ;;  %v3996_v7 = vmul.f32 %v5154_v17, %v3994_v15  ;;  %vm4001_vm9 = vweird.f32 %v5154_v17  ;;  %v3761_v22 = vsub.f32 1.0, %v3749_v40 }
0x31fb   :  { %vm4002_vm11 = vmor %vm4000_vm10, %vm4001_vm9 }
0x31fc   :  { %v3997_v30 = vsub.f32 1.0, %v3996_v7 }
0x31fe   :  { %v3998_v19 = vmul.f32 %v5154_v17, %v3997_v30 }
0x3200   :  { %v3999_v60 = vadd.f32 %v5154_v17, %v3998_v19 }
0x3202   :  { %v4003_v11 = vsel %vm4002_vm11, %v5154_v17, %v3999_v60 }
0x3203   :  { %v4008_v4 = vsel %vm4005_vm12, %v4007_v37, %v4003_v11 }
0x3204   :  { %v4020_v48 = vsub.f32 1.0, %v4008_v4  ;;  %v4028_v43 = vmul.f32 %v4026_v36, %v4008_v4 }
0x3236   :  { %v3752_v62 = vpop.permute.xlu2 %3751 }
0x3237   :  { %v3754_v63 = vmul.f32 %v3752_v62, %v3749_v40  ;;  %v5207_v62 = vld [vmem:[#allocation20] ss:$0 sm:$0xff] }
0x3239   :  { %3756 = vrot.lane.b32.xlu1 %v3754_v63, %s5709_s7 }
0x3256   :  { %v4011_v51 = vpop.permute.xlu0 %4010 }
0x3257   :  { %v4013_v47 = vmul.f32 %v4011_v51, %v4008_v4 }
0x3259   :  { %4015 = vrot.lane.b32.xlu2 %v4013_v47, %s5709_s7 }
0x32ab   :  { %v3757_v58 = vpop.permute.xlu1 %3756 }
0x32ac   :  { %v3759_v32 = vadd.f32 %v3757_v58, %v6836_v31 }
0x32ae   :  { %5155 = vtanh.f32 %v3759_v32 }
0x32b3   :  { %v4016_v44 = vpop.permute.xlu2 %4015 }
0x32b4   :  { %v5156_v45 = vpop.eup %5155  ;;  %v4018_v21 = vadd.f32 %v4016_v44, %v6897_v13 }
0x32b5   :  { %3763 = vrot.lane.b32.xlu0 %v5156_v45, %s5710_s26 }
0x32b6   :  { %5157 = vtanh.f32 %v4018_v21 }
0x32bc   :  { %v5158_v53 = vpop.eup %5157 }
0x32bd   :  { %4022 = vrot.lane.b32.xlu1 %v5158_v53, %s5710_s26 }
0x3327   :  { %v3764_v39 = vpop.permute.xlu0 %3763 }
0x3328   :  { %v3766_v6 = vmul.f32 %v3764_v39, %v3761_v22 }
0x332a   :  { %v6936_v42 = vadd.f32 %v3769_v2, %v3766_v6 }
0x332c   :  { %v3772_v0 = vrot.slane %v6936_v42, 4  ;;  %v6944_v46 = vsel %vm1696_vm4, %v3843_v38, %v6936_v42 }
0x332e   :  { %3773 = vrot.lane.b32.xlu2 %v3772_v0, %s5710_s26 }
0x332f   :  { %v4023_v52 = vpop.permute.xlu1 %4022 }
0x3330   :  { %v4025_v50 = vmul.f32 %v4023_v52, %v4020_v48 }
0x3332   :  { %v4029_v5 = vadd.f32 %v4028_v43, %v4025_v50 }
0x3334   :  { %v4031_v12 = vrot.slane %v4029_v5, 2  ;;  %v4095_v30 = vrot.slane %v4029_v5, 6  ;;  %v4440_v11 = vsel %vm1694_vm3, %v6913_v8, %v4029_v5 }
0x3336   :  { %4032 = vrot.lane.b32.xlu0 %v4031_v12, %s5710_s26 }
0x3388   :  { %v3774_v56 = vpop.permute.xlu2 %3773 }
0x3389   :  { %4739 = vmatmul.msk.f32.vlgmr.msra.gmra.mxu2 %vm349_vm0, %v3774_v56 }
0x338a   :  { %4251 = vmatpush.msra.mxu2 %v6848_v14 }
0x338c   :  { %4252 = vmatpush.msra.mxu2 %v6850_v54 }
0x338e   :  { %4253 = vmatpush.msra.mxu2 %v6854_v55 }
0x3390   :  { %4254 = vmatpush.msra.mxu2 %v6860_v41 }
0x33a8   :  { %v4033_v27 = vpop.permute.xlu0 %4032 }
0x33a9   :  { %4747 = vmatmul.msk.f32.vlgmr.msrb.gmra.mxu2 %vm349_vm0, %v4033_v27 }
0x340c   :  { %v3794_v28 = vpop.f32.mrf.mxu2 }
0x340d   :  { %v3795_v63 = vadd.f32 %v5207_v62, %v3794_v28 }
0x340f   :  { %v3798_v17 = vrot.slane %v3795_v63, 2 }
0x3411   :  { %v3800_v47 = vadd.f32 %v3798_v17, %v6836_v31 }
0x3413   :  { %v4740_v58 = vmul.f32 -1.442695, %v3800_v47 }
0x342c   :  { %v4053_v20 = vpop.f32.mrf.mxu2 }
0x342d   :  { %v4054_v57 = vadd.f32 %v6889_v3, %v4053_v20 }
0x342f   :  { %v4057_v34 = vrot.slane %v4054_v57, 4 }
0x3431   :  { %4079 = vrot.lane.b32.xlu1 %v4057_v34, %s5709_s7  ;;  %v4059_v16 = vadd.f32 %v4057_v34, %v6897_v13 }
0x3433   :  { %v4748_v35 = vmul.f32 -1.442695, %v4059_v16 }
0x3435   :  { %5159 = vpow2.f32 %v4748_v35 }
0x343b   :  { %v5160_v14 = vpop.eup %5159 }
0x343c   :  { %v4063_v54 = vadd.f32 1.0, %v5160_v14 }
0x343e   :  { %5161 = vrcp.f32 %v4063_v54  ;;  %v4075_v33 = vand.u32 2147483648, %v4063_v54  ;;  %vm4069_vm14 = vweird.f32 %v4063_v54  ;;  %v4073_v18 = vand.u32 2147483647, %v4063_v54 }
0x3440   :  { %v4076_v29 = vor.u32 1.1754944e-38, %v4075_v33  ;;  %vm4074_vm1 = vcmp.eq.f32.partialorder %v4073_v18, 8.507059e+37 }
0x3444   :  { %v5162_v55 = vpop.eup %5161 }
0x3445   :  { %v4065_v26 = vmul.f32 %v5162_v55, %v4063_v54  ;;  %vm4070_vm13 = vweird.f32 %v5162_v55 }
0x3446   :  { %vm4071_vm15 = vmor %vm4069_vm14, %vm4070_vm13 }
0x3447   :  { %v4066_v41 = vsub.f32 1.0, %v4065_v26 }
0x3449   :  { %v4067_v10 = vmul.f32 %v5162_v55, %v4066_v41 }
0x344b   :  { %v4068_v25 = vadd.f32 %v5162_v55, %v4067_v10 }
0x344d   :  { %v4072_v23 = vsel %vm4071_vm15, %v5162_v55, %v4068_v25 }
0x344e   :  { %v4077_v2 = vsel %vm4074_vm1, %v4076_v29, %v4072_v23 }
0x344f   :  { %v4089_v7 = vsub.f32 1.0, %v4077_v2  ;;  %v4097_v60 = vmul.f32 %v4095_v30, %v4077_v2 }
0x34a3   :  { %v4080_v40 = vpop.permute.xlu1 %4079 }
0x34a4   :  { %v4082_v61 = vmul.f32 %v4080_v40, %v4077_v2 }
0x34a6   :  { %4084 = vrot.lane.b32.xlu2 %v4082_v61, %s5709_s7 }
0x3500   :  { %v4085_v1 = vpop.permute.xlu2 %4084 }
0x3501   :  { %v4087_v24 = vadd.f32 %v4085_v1, %v6897_v13 }
0x3503   :  { %5163 = vtanh.f32 %v4087_v24 }
0x3504   :  { %5165 = vpow2.f32 %v4740_v58 }
0x3509   :  { %v5164_v15 = vpop.eup %5163 }
0x350a   :  { %4091 = vrot.lane.b32.xlu0 %v5164_v15, %s5710_s26  ;;  %v5166_v32 = vpop.eup %5165  ;;  %v3836_v15 = vrot.slane %v6936_v42, 6 }
0x350b   :  { %v3804_v44 = vadd.f32 1.0, %v5166_v32 }
0x350d   :  { %5167 = vrcp.f32 %v3804_v44  ;;  %v3816_v0 = vand.u32 2147483648, %v3804_v44  ;;  %vm3810_vm6 = vweird.f32 %v3804_v44  ;;  %v3814_v48 = vand.u32 2147483647, %v3804_v44 }
0x350f   :  { %v3817_v43 = vor.u32 1.1754944e-38, %v3816_v0  ;;  %vm3815_vm8 = vcmp.eq.f32.partialorder %v3814_v48, 8.507059e+37 }
0x3512   :  { %3820 = vrot.lane.b32.xlu0 %v3798_v17, %s5709_s7 }
0x3513   :  { %v5168_v45 = vpop.eup %5167 }
0x3514   :  { %v3806_v21 = vmul.f32 %v5168_v45, %v3804_v44  ;;  %vm3811_vm5 = vweird.f32 %v5168_v45 }
0x3515   :  { %vm3812_vm7 = vmor %vm3810_vm6, %vm3811_vm5 }
0x3516   :  { %v3807_v53 = vsub.f32 1.0, %v3806_v21 }
0x3518   :  { %v3808_v8 = vmul.f32 %v5168_v45, %v3807_v53 }
0x351a   :  { %v3809_v6 = vadd.f32 %v5168_v45, %v3808_v8 }
0x351c   :  { %v3813_v52 = vsel %vm3812_vm7, %v5168_v45, %v3809_v6 }
0x351d   :  { %v3818_v12 = vsel %vm3815_vm8, %v3817_v43, %v3813_v52 }
0x351e   :  { %v3830_v24 = vsub.f32 1.0, %v3818_v12  ;;  %v3838_v63 = vmul.f32 %v3836_v15, %v3818_v12 }
0x357c   :  { %v4092_v19 = vpop.permute.xlu0 %4091 }
0x357d   :  { %v4094_v9 = vmul.f32 %v4092_v19, %v4089_v7 }
0x357f   :  { %v4098_v59 = vadd.f32 %v4097_v60, %v4094_v9 }
0x3581   :  { %v4100_v37 = vrot.slane %v4098_v59, 4  ;;  %v6965_v51 = vsel %vm1696_vm4, %v4440_v11, %v4098_v59  ;;  %v4164_v41 = vrot.slane %v4098_v59, 6 }
0x3583   :  { %4101 = vrot.lane.b32.xlu1 %v4100_v37, %s5710_s26 }
0x3584   :  { %v3821_v5 = vpop.permute.xlu0 %3820 }
0x3585   :  { %v3823_v56 = vmul.f32 %v3821_v5, %v3818_v12 }
0x35f5   :  { %v4102_v4 = vpop.permute.xlu1 %4101 }
0x35f6   :  { %4749 = vmatmul.msk.f32.vlgmr.msrb.gmra.mxu0 %vm349_vm0, %v4102_v4 }
0x3673   :  { %v4122_v22 = vpop.f32.mrf.mxu0 }
0x3674   :  { %v4123_v39 = vadd.f32 %v6889_v3, %v4122_v22 }
0x3676   :  { %v4126_v38 = vrot.slane %v4123_v39, 2 }
0x3678   :  { %v4128_v36 = vadd.f32 %v4126_v38, %v6897_v13  ;;  %4148 = vrot.lane.b32.xlu2 %v4126_v38, %s5709_s7 }
0x367a   :  { %v4750_v50 = vmul.f32 -1.442695, %v4128_v36 }
0x367c   :  { %5169 = vpow2.f32 %v4750_v50 }
0x3680   :  { %3825 = vrot.lane.b32.xlu2 %v3823_v56, %s5709_s7 }
0x3682   :  { %v5170_v27 = vpop.eup %5169 }
0x3683   :  { %v4132_v28 = vadd.f32 1.0, %v5170_v27 }
0x3685   :  { %5171 = vrcp.f32 %v4132_v28  ;;  %v4144_v16 = vand.u32 2147483648, %v4132_v28  ;;  %v4142_v14 = vand.u32 2147483647, %v4132_v28  ;;  %vm4138_vm10 = vweird.f32 %v4132_v28 }
0x3687   :  { %v4145_v55 = vor.u32 1.1754944e-38, %v4144_v16  ;;  %vm4143_vm12 = vcmp.eq.f32.partialorder %v4142_v14, 8.507059e+37 }
0x368b   :  { %v5172_v20 = vpop.eup %5171 }
0x368c   :  { %v4134_v57 = vmul.f32 %v5172_v20, %v4132_v28  ;;  %vm4139_vm9 = vweird.f32 %v5172_v20 }
0x368d   :  { %vm4140_vm11 = vmor %vm4138_vm10, %vm4139_vm9 }
0x368e   :  { %v4135_v34 = vsub.f32 1.0, %v4134_v57 }
0x3690   :  { %v4136_v35 = vmul.f32 %v5172_v20, %v4135_v34 }
0x3692   :  { %v4137_v54 = vadd.f32 %v5172_v20, %v4136_v35 }
0x3694   :  { %v4141_v26 = vsel %vm4140_vm11, %v5172_v20, %v4137_v54 }
0x3695   :  { %v4146_v10 = vsel %vm4143_vm12, %v4145_v55, %v4141_v26 }
0x3696   :  { %v4166_v25 = vmul.f32 %v4164_v41, %v4146_v10  ;;  %v4158_v30 = vsub.f32 1.0, %v4146_v10 }
0x36d2   :  { %v4149_v33 = vpop.permute.xlu2 %4148 }
0x36d3   :  { %v4151_v18 = vmul.f32 %v4149_v33, %v4146_v10 }
0x36d5   :  { %4153 = vrot.lane.b32.xlu1 %v4151_v18, %s5709_s7 }
0x36da   :  { %v3826_v23 = vpop.permute.xlu2 %3825 }
0x36db   :  { %v3828_v29 = vadd.f32 %v3826_v23, %v6836_v31 }
0x36dd   :  { %5173 = vtanh.f32 %v3828_v29 }
0x36e3   :  { %v5174_v40 = vpop.eup %5173 }
0x36e4   :  { %3832 = vrot.lane.b32.xlu1 %v5174_v40, %s5710_s26 }
0x3747   :  { %v4154_v2 = vpop.permute.xlu1 %4153 }
0x3748   :  { %v4156_v61 = vadd.f32 %v4154_v2, %v6897_v13 }
0x374a   :  { %5175 = vtanh.f32 %v4156_v61 }
0x3750   :  { %v5176_v1 = vpop.eup %5175 }
0x3751   :  { %4160 = vrot.lane.b32.xlu0 %v5176_v1, %s5710_s26 }
0x3756   :  { %v3833_v62 = vpop.permute.xlu1 %3832 }
0x3757   :  { %v3835_v17 = vmul.f32 %v3833_v62, %v3830_v24 }
0x3759   :  { %v3839_v7 = vadd.f32 %v3838_v63, %v3835_v17 }
0x375b   :  { %v3845_v31 = vsel %vm1698_vm2, %v6944_v46, %v3839_v7 }
0x375c   :  { %3858 = vrot.lane.b32.xlu0 %v3845_v31, %s5710_s26 }
0x37c3   :  { %v4161_v19 = vpop.permute.xlu0 %4160 }
0x37c4   :  { %v4163_v60 = vmul.f32 %v4161_v19, %v4158_v30 }
0x37c6   :  { %v4167_v13 = vadd.f32 %v4166_v25, %v4163_v60 }
0x37c8   :  { %v4169_v9 = vrot.slane %v4167_v13, 6  ;;  %v6985_v59 = vsel %vm1698_vm2, %v6965_v51, %v4167_v13 }
0x37ca   :  { %4170 = vrot.lane.b32.xlu2 %v4169_v9, %s5710_s26 }
0x37ce   :  { %v3859_v42 = vpop.permute.xlu0 %3858 }
0x37cf   :  { %4742 = vmatmul.msk.f32.gmra.mxu3 %vm349_vm0, %v3859_v42 }
0x3824   :  { %v4171_v11 = vpop.permute.xlu2 %4170 }
0x3825   :  { %4751 = vmatmul.msk.f32.vlgmr.msra.gmra.mxu1 %vm349_vm0, %v4171_v11 }
0x3852   :  { %v3884_v4 = vpop.f32.mrf.mxu3 }
0x3853   :  { %v6993_v47 = vadd.f32 %v6894_v49, %v3884_v4 }
0x38a2   :  { %v4191_v46 = vpop.f32.mrf.mxu1 }
0x38a3   :  { %v4192_v37 = vadd.f32 %v6889_v3, %v4191_v46 }
0x38a5   :  { %4215 = vrot.lane.b32.xlu1 %v4192_v37, %s5709_s7  ;;  %v4194_v51 = vadd.f32 %v4192_v37, %v6993_v47 }
0x38a7   :  { %v4752_v58 = vmul.f32 -1.442695, %v4194_v51 }
0x38a9   :  { %5177 = vpow2.f32 %v4752_v58 }
0x38af   :  { %v5178_v32 = vpop.eup %5177 }
0x38b0   :  { %v4198_v44 = vadd.f32 1.0, %v5178_v32 }
0x38b2   :  { %5179 = vrcp.f32 %v4198_v44  ;;  %v4210_v39 = vand.u32 2147483648, %v4198_v44  ;;  %vm4204_vm14 = vweird.f32 %v4198_v44  ;;  %v4208_v6 = vand.u32 2147483647, %v4198_v44 }
0x38b4   :  { %v4211_v49 = vor.u32 1.1754944e-38, %v4210_v39  ;;  %vm4209_vm1 = vcmp.eq.f32.partialorder %v4208_v6, 8.507059e+37 }
0x38b8   :  { %v5180_v45 = vpop.eup %5179 }
0x38b9   :  { %v4200_v21 = vmul.f32 %v5180_v45, %v4198_v44  ;;  %vm4205_vm13 = vweird.f32 %v5180_v45 }
0x38ba   :  { %vm4206_vm15 = vmor %vm4204_vm14, %vm4205_vm13 }
0x38bb   :  { %v4201_v53 = vsub.f32 1.0, %v4200_v21 }
0x38bd   :  { %v4202_v8 = vmul.f32 %v5180_v45, %v4201_v53 }
0x38bf   :  { %v4203_v22 = vadd.f32 %v5180_v45, %v4202_v8 }
0x38c1   :  { %v4207_v38 = vsel %vm4206_vm15, %v5180_v45, %v4203_v22  ;;  %vm4487_vm15 = vcmask 130048  }
0x38c2   :  { %v4212_v48 = vsel %vm4209_vm1, %v4211_v49, %v4207_v38 }
0x38c3   :  { %v4225_v5 = vsub.f32 1.0, %v4212_v48  ;;  %v4232_v56 = vmul.f32 %v4212_v48, %v4169_v9 }
0x3917   :  { %v4216_v0 = vpop.permute.xlu1 %4215 }
0x3918   :  { %v4218_v36 = vmul.f32 %v4216_v0, %v4212_v48 }
0x391a   :  { %4220 = vrot.lane.b32.xlu2 %v4218_v36, %s5709_s7 }
0x3974   :  { %v4221_v52 = vpop.permute.xlu2 %4220 }
0x3975   :  { %v4223_v50 = vadd.f32 %v4221_v52, %v6993_v47 }
0x3977   :  { %5181 = vtanh.f32 %v4223_v50 }
0x397d   :  { %v5182_v43 = vpop.eup %5181 }
0x397e   :  { %4227 = vrot.lane.b32.xlu0 %v5182_v43, %s5710_s26 }
0x39f0   :  { %v4228_v12 = vpop.permute.xlu0 %4227 }
0x39f1   :  { %v4230_v27 = vmul.f32 %v4228_v12, %v4225_v5 }
0x39f3   :  { %v6999_v28 = vadd.f32 %v4232_v56, %v4230_v27 }
0x39f5   :  { %4235 = vrot.lane.b32.xlu1 %v6999_v28, %s5710_s26  ;;  %v4298_v17 = vrot.slane %v6999_v28, 6 }
0x3a67   :  { %v4236_v20 = vpop.permute.xlu1 %4235 }
0x3a68   :  { %4753 = vmatmul.msk.f32.vlgmr.msra.gmra.mxu2 %vm349_vm0, %v4236_v20 }
0x3aeb   :  { %v4256_v57 = vpop.f32.mrf.mxu2 }
0x3aec   :  { %v4257_v34 = vadd.f32 %v6889_v3, %v4256_v57 }
0x3aee   :  { %v4260_v16 = vrot.slane %v4257_v34, 6 }
0x3af0   :  { %4282 = vrot.lane.b32.xlu2 %v4260_v16, %s5709_s7  ;;  %v4262_v35 = vadd.f32 %v4260_v16, %v6993_v47 }
0x3af2   :  { %v4754_v14 = vmul.f32 -1.442695, %v4262_v35 }
0x3af4   :  { %5183 = vpow2.f32 %v4754_v14 }
0x3afa   :  { %v5184_v54 = vpop.eup %5183 }
0x3afb   :  { %v4266_v55 = vadd.f32 1.0, %v5184_v54 }
0x3afd   :  { %5185 = vrcp.f32 %v4266_v55  ;;  %v4278_v18 = vand.u32 2147483648, %v4266_v55  ;;  %vm4272_vm6 = vweird.f32 %v4266_v55  ;;  %v4276_v23 = vand.u32 2147483647, %v4266_v55 }
0x3aff   :  { %v4279_v40 = vor.u32 1.1754944e-38, %v4278_v18  ;;  %vm4277_vm8 = vcmp.eq.f32.partialorder %v4276_v23, 8.507059e+37 }
0x3b03   :  { %v5186_v26 = vpop.eup %5185 }
0x3b04   :  { %v4268_v41 = vmul.f32 %v5186_v26, %v4266_v55  ;;  %vm4273_vm5 = vweird.f32 %v5186_v26 }
0x3b05   :  { %vm4274_vm7 = vmor %vm4272_vm6, %vm4273_vm5  ;;  %vm4588_vm6 = vcmask 80896  }
0x3b06   :  { %v4269_v10 = vsub.f32 1.0, %v4268_v41  ;;  %v4449_v41 = vld [vmem:[%s7103_s20 + $0x18] sm:$0xff] }
0x3b07   :  { %4476 = vmatpush.msrb.mxu1 %v4449_v41 }
0x3b08   :  { %v4270_v25 = vmul.f32 %v5186_v26, %v4269_v10  ;;  %v4447_v10 = vld [vmem:[%s7103_s20 + $0x8] sm:$0xff] }
0x3b0a   :  { %v4271_v33 = vadd.f32 %v5186_v26, %v4270_v25 }
0x3b0c   :  { %v4275_v29 = vsel %vm4274_vm7, %v5186_v26, %v4271_v33 }
0x3b0d   :  { %v4280_v61 = vsel %vm4277_vm8, %v4279_v40, %v4275_v29 }
0x3b0e   :  { %v4292_v63 = vsub.f32 1.0, %v4280_v61  ;;  %v4300_v30 = vmul.f32 %v4298_v17, %v4280_v61 }
0x3b4a   :  { %v4283_v2 = vpop.permute.xlu2 %4282 }
0x3b4b   :  { %v4285_v1 = vmul.f32 %v4283_v2, %v4280_v61 }
0x3b4d   :  { %4287 = vrot.lane.b32.xlu0 %v4285_v1, %s5709_s7 }
0x3bbf   :  { %v4288_v24 = vpop.permute.xlu0 %4287 }
0x3bc0   :  { %v4290_v15 = vadd.f32 %v4288_v24, %v6993_v47 }
0x3bc2   :  { %5187 = vtanh.f32 %v4290_v15 }
0x3bc8   :  { %v5188_v62 = vpop.eup %5187 }
0x3bc9   :  { %4294 = vrot.lane.b32.xlu1 %v5188_v62, %s5710_s26 }
0x3c3b   :  { %v4295_v7 = vpop.permute.xlu1 %4294 }
0x3c3c   :  { %v4297_v31 = vmul.f32 %v4295_v7, %v4292_v63 }
0x3c3e   :  { %v4301_v19 = vadd.f32 %v4300_v30, %v4297_v31  ;;  %v4843_v30 = vld [vmem:[%s7104_s21] ss:$0 sm:$0xff] }
0x3c40   :  { %v4303_v60 = vrot.slane %v4301_v19, 2  ;;  %v4367_v50 = vrot.slane %v4301_v19, 6  ;;  %v4443_v27 = vsel %vm1694_vm3, %v6999_v28, %v4301_v19 }
0x3c42   :  { %4304 = vrot.lane.b32.xlu2 %v4303_v60, %s5710_s26 }
0x3c9c   :  { %v4305_v13 = vpop.permute.xlu2 %4304 }
0x3c9d   :  { %4755 = vmatmul.msk.f32.vlgmr.msra.gmra.mxu3 %vm349_vm0, %v4305_v13 }
0x3d20   :  { %v4325_v9 = vpop.f32.mrf.mxu3 }
0x3d21   :  { %v4326_v42 = vadd.f32 %v6889_v3, %v4325_v9 }
0x3d23   :  { %v4329_v11 = vrot.slane %v4326_v42, 4 }
0x3d25   :  { %4351 = vrot.lane.b32.xlu0 %v4329_v11, %s5709_s7  ;;  %v4331_v46 = vadd.f32 %v4329_v11, %v6993_v47 }
0x3d27   :  { %v4756_v37 = vmul.f32 -1.442695, %v4331_v46 }
0x3d29   :  { %5189 = vpow2.f32 %v4756_v37 }
0x3d2f   :  { %v5190_v4 = vpop.eup %5189 }
0x3d30   :  { %v4335_v51 = vadd.f32 1.0, %v5190_v4 }
0x3d32   :  { %5191 = vrcp.f32 %v4335_v51  ;;  %v4347_v53 = vand.u32 2147483648, %v4335_v51  ;;  %vm4341_vm10 = vweird.f32 %v4335_v51  ;;  %v4345_v8 = vand.u32 2147483647, %v4335_v51 }
0x3d34   :  { %v4348_v39 = vor.u32 1.1754944e-38, %v4347_v53  ;;  %vm4346_vm12 = vcmp.eq.f32.partialorder %v4345_v8, 8.507059e+37 }
0x3d38   :  { %v5192_v58 = vpop.eup %5191 }
0x3d39   :  { %v4337_v32 = vmul.f32 %v5192_v58, %v4335_v51  ;;  %vm4342_vm9 = vweird.f32 %v5192_v58  ;;  %v5711_v51 = vmov 16.0  }
0x3d3a   :  { %vm4343_vm11 = vmor %vm4341_vm10, %vm4342_vm9 }
0x3d3b   :  { %v4338_v44 = vsub.f32 1.0, %v4337_v32 }
0x3d3d   :  { %v4339_v45 = vmul.f32 %v5192_v58, %v4338_v44 }
0x3d3f   :  { %v4340_v21 = vadd.f32 %v5192_v58, %v4339_v45 }
0x3d41   :  { %v4344_v22 = vsel %vm4343_vm11, %v5192_v58, %v4340_v21 }
0x3d42   :  { %v4349_v38 = vsel %vm4346_vm12, %v4348_v39, %v4344_v22 }
0x3d43   :  { %v4361_v52 = vsub.f32 1.0, %v4349_v38  ;;  %v4369_v5 = vmul.f32 %v4367_v50, %v4349_v38 }
0x3d97   :  { %v4352_v6 = vpop.permute.xlu0 %4351 }
0x3d98   :  { %v4354_v49 = vmul.f32 %v4352_v6, %v4349_v38 }
0x3d9a   :  { %4356 = vrot.lane.b32.xlu1 %v4354_v49, %s5709_s7 }
0x3e0c   :  { %v4357_v0 = vpop.permute.xlu1 %4356 }
0x3e0d   :  { %v4359_v48 = vadd.f32 %v4357_v0, %v6993_v47  ;;  %v4554_v0 = vld [vmem:[%s7107_s24 + $0x8] sm:$0xff] }
0x3e0e   :  { %4579 = vmatpush.msrb.mxu2 %v4554_v0 }
0x3e0f   :  { %5193 = vtanh.f32 %v4359_v48  ;;  %v4553_v48 = vld [vmem:[%s7107_s24] sm:$0xff] }
0x3e10   :  { %4580 = vmatpush.msrb.mxu2 %v4553_v48 }
0x3e15   :  { %v5194_v36 = vpop.eup %5193 }
0x3e16   :  { %4363 = vrot.lane.b32.xlu2 %v5194_v36, %s5710_s26 }
0x3e70   :  { %v4364_v43 = vpop.permute.xlu2 %4363 }
0x3e71   :  { %v4366_v12 = vmul.f32 %v4364_v43, %v4361_v52 }
0x3e73   :  { %v4370_v56 = vadd.f32 %v4369_v5, %v4366_v12 }
0x3e75   :  { %v4372_v20 = vrot.slane %v4370_v56, 4  ;;  %v4444_v57 = vsel %vm1696_vm4, %v4443_v27, %v4370_v56  ;;  %v4436_v42 = vrot.slane %v4370_v56, 6 }
0x3e77   :  { %4373 = vrot.lane.b32.xlu0 %v4372_v20, %s5710_s26 }
0x3ee9   :  { %v4374_v34 = vpop.permute.xlu0 %4373 }
0x3eea   :  { %4757 = vmatmul.msk.f32.vlgmr.msra.gmra.mxu0 %vm349_vm0, %v4374_v34 }
0x3f67   :  { %v4394_v16 = vpop.f32.mrf.mxu0 }
0x3f68   :  { %v4395_v35 = vadd.f32 %v6889_v3, %v4394_v16  ;;  %v4448_v3 = vld [vmem:[%s7103_s20 + $0x10] sm:$0xff] }
0x3f69   :  { %4477 = vmatpush.msrb.mxu1 %v4448_v3 }
0x3f6a   :  { %v4398_v14 = vrot.slane %v4395_v35, 2  ;;  %v4845_v35 = vld [vmem:[%s7106_s23] ss:$0 sm:$0xff] }
0x3f6b   :  { %4478 = vmatpush.msrb.mxu1 %v4447_v10 }
0x3f6c   :  { %4420 = vrot.lane.b32.xlu1 %v4398_v14, %s5709_s7  ;;  %v4400_v54 = vadd.f32 %v4398_v14, %v6993_v47 }
0x3f6e   :  { %v4758_v28 = vmul.f32 -1.442695, %v4400_v54 }
0x3f70   :  { %5195 = vpow2.f32 %v4758_v28 }
0x3f74   :  { %4456 = vrot.lane.b32.xlu1 %v6985_v59, %s5710_s26  ;;  %v4446_v59 = vld [vmem:[%s7103_s20] sm:$0xff] }
0x3f75   :  { %4479 = vmatpush.msrb.mxu1 %v4446_v59 }
0x3f76   :  { %v5196_v55 = vpop.eup %5195 }
0x3f77   :  { %v4404_v26 = vadd.f32 1.0, %v5196_v55 }
0x3f79   :  { %5197 = vrcp.f32 %v4404_v26  ;;  %v4416_v40 = vand.u32 2147483648, %v4404_v26  ;;  %vm4410_vm4 = vweird.f32 %v4404_v26  ;;  %v4414_v2 = vand.u32 2147483647, %v4404_v26 }
0x3f7b   :  { %v4417_v1 = vor.u32 1.1754944e-38, %v4416_v40  ;;  %vm4415_vm14 = vcmp.eq.f32.partialorder %v4414_v2, 8.507059e+37 }
0x3f7f   :  { %v5198_v25 = vpop.eup %5197 }
0x3f80   :  { %v4406_v33 = vmul.f32 %v5198_v25, %v4404_v26  ;;  %vm4411_vm3 = vweird.f32 %v5198_v25 }
0x3f81   :  { %vm4412_vm13 = vmor %vm4410_vm4, %vm4411_vm3 }
0x3f82   :  { %v4407_v18 = vsub.f32 1.0, %v4406_v33 }
0x3f84   :  { %v4408_v23 = vmul.f32 %v5198_v25, %v4407_v18 }
0x3f86   :  { %v4409_v29 = vadd.f32 %v5198_v25, %v4408_v23 }
0x3f88   :  { %v4413_v61 = vsel %vm4412_vm13, %v5198_v25, %v4409_v29 }
0x3f89   :  { %v4418_v15 = vsel %vm4415_vm14, %v4417_v1, %v4413_v61 }
0x3f8a   :  { %v4430_v9 = vsub.f32 1.0, %v4418_v15  ;;  %v4438_v46 = vmul.f32 %v4436_v42, %v4418_v15 }
0x3fde   :  { %v4421_v24 = vpop.permute.xlu1 %4420 }
0x3fdf   :  { %v4423_v62 = vmul.f32 %v4421_v24, %v4418_v15 }
0x3fe1   :  { %4425 = vrot.lane.b32.xlu2 %v4423_v62, %s5709_s7 }
0x3fe6   :  { %v4457_v63 = vpop.permute.xlu1 %4456 }
0x3fe7   :  { %4759 = vmatmul.msk.f32.vlgmr.msrb.gmra.mxu1 %vm349_vm0, %v4457_v63 }
0x403b   :  { %v4426_v17 = vpop.permute.xlu2 %4425 }
0x403c   :  { %v4428_v7 = vadd.f32 %v4426_v17, %v6993_v47 }
0x403e   :  { %5199 = vtanh.f32 %v4428_v7 }
0x403f   :  { %5201 = vrcp.f32 %v5711_v51 }
0x4044   :  { %v5200_v31 = vpop.eup %5199 }
0x4045   :  { %4432 = vrot.lane.b32.xlu0 %v5200_v31, %s5710_s26  ;;  %v5202_v58 = vpop.eup %5201 }
0x4046   :  { %v4495_v32 = vmul.f32 16.0, %v5202_v58  ;;  %vm4499_vm1 = vweird.f32 %v5202_v58 }
0x4048   :  { %v4496_v44 = vsub.f32 1.0, %v4495_v32 }
0x404a   :  { %v4497_v45 = vmul.f32 %v5202_v58, %v4496_v44 }
0x404c   :  { %v4498_v21 = vadd.f32 %v5202_v58, %v4497_v45 }
0x404e   :  { %v4500_v53 = vsel %vm4499_vm1, %v5202_v58, %v4498_v21 }
0x4064   :  { %v4481_v19 = vpop.f32.mrf.mxu1 }
0x4065   :  { %v4482_v60 = vadd.f32 %v4843_v30, %v4481_v19 }
0x4067   :  { %v4488_v13 = vsel %vm4487_vm15, %v4482_v60, 0.0 }
0x406f   :  { %4489 = vadd.xlane.f32.xlu0 %v4488_v13 }
0x40b7   :  { %v4433_v11 = vpop.permute.xlu0 %4432 }
0x40b8   :  { %v4435_v37 = vmul.f32 %v4433_v11, %v4430_v9 }
0x40ba   :  { %v4439_v47 = vadd.f32 %v4438_v46, %v4435_v37 }
0x40bc   :  { %v4445_v4 = vsel %vm1698_vm2, %v4444_v57, %v4439_v47  ;;  %v4844_v57 = vld [vmem:[%s7105_s22] ss:$0 sm:$0xff]  ;;  %s7146_s22 = sld [smem:[#allocation55_spill]] }
0x40bd   :  { %4458 = vrot.lane.b32.xlu2 %v4445_v4, %s5710_s26 }
0x40c2   :  { %v4846_v3 = vld [vmem:[%s7146_s22] ss:$0 sm:$0xff] }
0x40e2   :  { %v4490_v8 = vpop.xlane.xlu0 %4489 }
0x40e3   :  { %v4501_v22 = vmul.f32 %v4500_v53, %v4490_v8 }
0x40e5   :  { %v4503_v39 = vsub.f32 %v4482_v60, %v4501_v22 }
0x40e7   :  { %v4505_v6 = vmul.f32 %v4503_v39, %v4503_v39 }
0x40e9   :  { %v4507_v38 = vsel %vm4487_vm15, %v4505_v6, 0.0 }
0x40ea   :  { %4508 = vadd.xlane.f32.xlu2 %v4507_v38 }
0x4117   :  { %v4459_v49 = vpop.permute.xlu2 %4458 }
0x4118   :  { %4760 = vmatmul.msk.f32.gmra.mxu1 %vm349_vm0, %v4459_v49 }
0x415d   :  { %v4509_v36 = vpop.xlane.xlu2 %4508 }
0x415e   :  { %v4513_v52 = vmul.f32 %v4509_v36, %v4500_v53 }
0x4160   :  { %v4515_v50 = vadd.f32 1e-05, %v4513_v52 }
0x4162   :  { %5203 = vrsqrt.f32 %v4515_v50  ;;  %vm4523_vm2 = vweird.f32 %v4515_v50 }
0x4168   :  { %v5204_v43 = vpop.eup %5203 }
0x4169   :  { %v4518_v5 = vmul.f32 %v5204_v43, %v4515_v50  ;;  %vm4524_vm0 = vweird.f32 %v5204_v43 }
0x416a   :  { %vm4525_vm5 = vmor %vm4523_vm2, %vm4524_vm0 }
0x416b   :  { %v4519_v12 = vmul.f32 %v5204_v43, %v4518_v5 }
0x416d   :  { %v4520_v56 = vmul.f32 0.5, %v4519_v12 }
0x416f   :  { %v4521_v27 = vsub.f32 1.5, %v4520_v56 }
0x4171   :  { %v4522_v20 = vmul.f32 %v5204_v43, %v4521_v27 }
0x4173   :  { %v4526_v34 = vsel %vm4525_vm5, %v5204_v43, %v4522_v20 }
0x4174   :  { %v4537_v16 = vmul.f32 %v4526_v34, %v4503_v39 }
0x4176   :  { %v4543_v14 = vmul.f32 %v4844_v57, %v4537_v16 }
0x4178   :  { %v4549_v54 = vadd.f32 %v4845_v35, %v4543_v14 }
0x417a   :  { %v4551_v28 = vmax.f32 %v4549_v54, 0.0 }
0x417c   :  { %4761 = vmatmul.msk.f32.vlgmr.msrb.gmra.mxu2 %vm4487_vm15, %v4551_v28 }
0x4195   :  { %v4484_v55 = vpop.f32.mrf.mxu1 }
0x4196   :  { %v4485_v26 = vadd.f32 %v4843_v30, %v4484_v55 }
0x4198   :  { %v4491_v41 = vsel %vm4487_vm15, %v4485_v26, 0.0 }
0x4199   :  { %4492 = vadd.xlane.f32.xlu1 %v4491_v41 }
0x41ff   :  { %v4582_v10 = vpop.f32.mrf.mxu2 }
0x4200   :  { %v4583_v59 = vadd.f32 %v4846_v3, %v4582_v10 }
0x4202   :  { %4589 = vst.msk [vmem:[#allocation30] sm:$0xff] %vm4588_vm6, %v4583_v59 }
0x420c   :  { %v4493_v25 = vpop.xlane.xlu1 %4492 }
0x420d   :  { %v4502_v33 = vmul.f32 %v4500_v53, %v4493_v25 }
0x420f   :  { %v4504_v18 = vsub.f32 %v4485_v26, %v4502_v33 }
0x4211   :  { %v4506_v23 = vmul.f32 %v4504_v18, %v4504_v18 }
0x4213   :  { %v4510_v29 = vsel %vm4487_vm15, %v4506_v23, 0.0 }
0x4214   :  { %4511 = vadd.xlane.f32.xlu2 %v4510_v29 }
0x4287   :  { %v4512_v40 = vpop.xlane.xlu2 %4511 }
0x4288   :  { %v4514_v2 = vmul.f32 %v4512_v40, %v4500_v53 }
0x428a   :  { %v4516_v61 = vadd.f32 1e-05, %v4514_v2 }
0x428c   :  { %5205 = vrsqrt.f32 %v4516_v61  ;;  %vm4533_vm8 = vweird.f32 %v4516_v61 }
0x4292   :  { %v5206_v1 = vpop.eup %5205 }
0x4293   :  { %v4528_v24 = vmul.f32 %v5206_v1, %v4516_v61  ;;  %vm4534_vm7 = vweird.f32 %v5206_v1 }
0x4294   :  { %vm4535_vm9 = vmor %vm4533_vm8, %vm4534_vm7 }
0x4295   :  { %v4529_v15 = vmul.f32 %v5206_v1, %v4528_v24 }
0x4297   :  { %v4530_v62 = vmul.f32 0.5, %v4529_v15 }
0x4299   :  { %v4531_v63 = vsub.f32 1.5, %v4530_v62 }
0x429b   :  { %v4532_v17 = vmul.f32 %v5206_v1, %v4531_v63 }
0x429d   :  { %v4536_v7 = vsel %vm4535_vm9, %v5206_v1, %v4532_v17 }
0x429e   :  { %v4538_v31 = vmul.f32 %v4536_v7, %v4504_v18 }
0x42a0   :  { %v4544_v30 = vmul.f32 %v4844_v57, %v4538_v31 }
0x42a2   :  { %v4550_v19 = vadd.f32 %v4845_v35, %v4544_v30 }
0x42a4   :  { %v4552_v60 = vmax.f32 %v4550_v19, 0.0 }
0x42a6   :  { %4762 = vmatmul.msk.f32.gmra.mxu2 %vm4487_vm15, %v4552_v60 }
0x4329   :  { %v4585_v13 = vpop.f32.mrf.mxu2 }
0x432a   :  { %v4586_v9 = vadd.f32 %v4846_v3, %v4585_v13 }
0x432c   :  { %4590 = vst.msk [vmem:[#allocation30 + $0x8] sm:$0xff] %vm4588_vm6, %v4586_v9 }
0x432d   :  { %4614 = dma.vmem_to_hbm [thread:$0]  %s4607_s11, 256, %s4609_s29, [#allocation31], %s7140_s28, %s7140_s28, %s5696_s27  }
0x432e   :  { %5682 = dma.done.wait [#allocation4], 32  }
0x432f   :  { %5683 = vsyncadd [#allocation4], 4294967264 }
0x4330   :  { %5684 = dma.done.wait [#allocation31], 256  }
0x4331   :  { %5685 = vsyncadd [#allocation31], 4294967040 }
0x4332   :  { %4623 = vsyncpa [#allocation3], 1 }
0x4333   :  { %4624 = vsyncpa [#allocation6], 1 }
0x4334   :  { %4625 = vsyncpa [#allocation9], 1 }
0x4335   :  { %4626 = vsyncpa [#allocation12], 1 }
0x4336   :  { %4627 = vsyncpa [#allocation15], 1 }
0x4337   :  { %4628 = vsyncpa [#allocation18], 1 }
0x4338   :  { %4629 = vsyncpa [#allocation21], 1 }
0x4339   :  { %4630 = vsyncpa [#allocation24], 1 }
0x433a   :  { %4631 = vsyncpa [#allocation27], 1 }
0x433b   :  { %4632 = vsyncpa [#allocation4], 1 }
0x433c   :  { %4633 = vsyncpa [#allocation31], 1 }

</bundles_post_ra>
